<compile_context>
chip_gen: v7x
topology: tpu7x:2x2x1
jax: 0.10.0
libtpu: 0.0.40
codegen_flags: <defaults>
</compile_context>

<pallas_src>
import functools
import math

import jax
import jax.numpy as jnp
from jax.experimental import pallas as pl
from jax.experimental.pallas import tpu as pltpu

EPS = 1e-5
_BF16 = jnp.bfloat16


# ----------------------------------------------------------------------------- helpers

def _row_tile(m):
    for t in (1024, 512, 256, 128, 64, 32, 16, 8):
        if m % t == 0:
            return t
    return m


def _strip_tile(g):
    for t in (16, 8, 4, 2):
        if g % t == 0:
            return t
    return 1


def _parallel(n=1):
    return pltpu.CompilerParams(dimension_semantics=("parallel",) * n)


def _pad_rows(w, c_total, lo):
    """Embed an (sc, n) weight into a (C, n) weight with zero rows outside [lo, lo+sc)."""
    out = jnp.zeros((c_total, w.shape[1]), w.dtype)
    return out.at[lo:lo + w.shape[0]].set(w)


# ----------------------------------------------------------------------------- kernels

def _row_proj_kernel(x_ref, g_ref, beta_ref, w1_ref, b1_ref, wqkv_ref, bqkv_ref, o_ref):
    """o = (LayerNorm(x) @ W1 + b1) @ Wqkv + bqkv   (LN + conv1 1x1 + q/k/v projections)."""
    x = x_ref[...]
    mu = jnp.mean(x, axis=-1, keepdims=True)
    var = jnp.mean(jnp.square(x - mu), axis=-1, keepdims=True)
    xn = (x - mu) * jax.lax.rsqrt(var + EPS)
    xn = xn * g_ref[...] + beta_ref[...]
    y = jnp.dot(xn.astype(_BF16), w1_ref[...].astype(_BF16),
                preferred_element_type=jnp.float32) + b1_ref[...]
    o = jnp.dot(y.astype(_BF16), wqkv_ref[...].astype(_BF16),
                preferred_element_type=jnp.float32) + bqkv_ref[...]
    o_ref[...] = o


def row_proj(x, ln_g, ln_b, w1, b1, wqkv, bqkv):
    M, C = x.shape
    O = wqkv.shape[1]
    tm = _row_tile(M)
    row = lambda i: (i, 0)
    full = lambda i: (0, 0)
    return pl.pallas_call(
        _row_proj_kernel,
        grid=(M // tm,),
        in_specs=[pl.BlockSpec((tm, C), row),
                  pl.BlockSpec((1, C), full), pl.BlockSpec((1, C), full),
                  pl.BlockSpec((C, C), full), pl.BlockSpec((1, C), full),
                  pl.BlockSpec((C, O), full), pl.BlockSpec((1, O), full)],
        out_specs=pl.BlockSpec((tm, O), row),
        out_shape=jax.ShapeDtypeStruct((M, O), jnp.float32),
        compiler_params=_parallel(1),
    )(x, ln_g.reshape(1, C), ln_b.reshape(1, C), w1, b1.reshape(1, C),
      wqkv, bqkv.reshape(1, O))


def _mha_kernel(q_ref, k_ref, v_ref, o_ref, *, heads):
    """Batched scaled-dot-product attention over a tile of independent strips.

    q/k/v blocks: (GT, N, D); heads split D into contiguous chunks; the 1/sqrt(dh)
    scale is already folded into q by the projection kernel.
    """
    q = q_ref[...]
    k = k_ref[...]
    v = v_ref[...]
    D = q.shape[-1]
    dh = D // heads
    outs = []
    for h in range(heads):
        sl = slice(h * dh, (h + 1) * dh)
        qh = q[..., sl].astype(_BF16)
        kh = k[..., sl].astype(_BF16)
        vh = v[..., sl].astype(_BF16)
        # scores: contract last dims (no explicit k transpose), batch over strips.
        s = jax.lax.dot_general(qh, kh, (((2,), (2,)), ((0,), (0,))),
                                preferred_element_type=jnp.float32)        # (GT, N, N)
        s = s - jnp.max(s, axis=-1, keepdims=True)
        p = jnp.exp(s)
        p = p * pl.reciprocal(jnp.sum(p, axis=-1, keepdims=True), approx=True)
        o = jax.lax.dot_general(p.astype(_BF16), vh, (((2,), (1,)), ((0,), (0,))),
                                preferred_element_type=jnp.float32)        # (GT, N, dh)
        outs.append(o)
    o_ref[...] = jnp.concatenate(outs, axis=-1).astype(o_ref.dtype)


def multi_head_attention(q, k, v, heads):
    """q, k, v: (G, N, D) — G independent attention problems, batched per grid step."""
    G, N, D = q.shape
    gt = _strip_tile(G)
    spec = pl.BlockSpec((gt, N, D), lambda i: (i, 0, 0))
    return pl.pallas_call(
        functools.partial(_mha_kernel, heads=heads),
        grid=(G // gt,),
        in_specs=[spec, spec, spec],
        out_specs=spec,
        out_shape=jax.ShapeDtypeStruct((G, N, D), jnp.float32),
        compiler_params=_parallel(1),
    )(q, k, v)


def _conv2_res_mlp_kernel(ah_ref, av_ref, x_ref, c2wh_ref, c2wv_ref, c2b_ref,
                          g_ref, beta_ref, w1_ref, b1_ref, w2_ref, b2_ref, o_ref):
    """t = conv2(cat(attn_h, attn_v)) + x ; o = t + FC2(GELU(FC1(LayerNorm(t))))."""
    x = x_ref[...]
    t = (jnp.dot(ah_ref[...].astype(_BF16), c2wh_ref[...].astype(_BF16),
                 preferred_element_type=jnp.float32)
         + jnp.dot(av_ref[...].astype(_BF16), c2wv_ref[...].astype(_BF16),
                   preferred_element_type=jnp.float32)
         + c2b_ref[...] + x)
    mu = jnp.mean(t, axis=-1, keepdims=True)
    var = jnp.mean(jnp.square(t - mu), axis=-1, keepdims=True)
    tn = (t - mu) * jax.lax.rsqrt(var + EPS)
    tn = tn * g_ref[...] + beta_ref[...]
    h = jnp.dot(tn.astype(_BF16), w1_ref[...].astype(_BF16),
                preferred_element_type=jnp.float32) + b1_ref[...]
    h = jax.nn.gelu(h, approximate=True)
    o = t + jnp.dot(h.astype(_BF16), w2_ref[...].astype(_BF16),
                    preferred_element_type=jnp.float32) + b2_ref[...]
    o_ref[...] = o


def conv2_res_mlp(attn_h, attn_v, x, p):
    M, C = x.shape
    sc = attn_h.shape[1]
    Ch = p["mlp"]["w1"].shape[1]
    tm = _row_tile(M)
    row = lambda i: (i, 0)
    full = lambda i: (0, 0)
    c2wh = p["conv2_w"][:sc]        # rows multiplying attn_h channels
    c2wv = p["conv2_w"][sc:]        # rows multiplying attn_v channels
    return pl.pallas_call(
        _conv2_res_mlp_kernel,
        grid=(M // tm,),
        in_specs=[pl.BlockSpec((tm, sc), row), pl.BlockSpec((tm, sc), row),
                  pl.BlockSpec((tm, C), row),
                  pl.BlockSpec((sc, C), full), pl.BlockSpec((sc, C), full),
                  pl.BlockSpec((1, C), full),
                  pl.BlockSpec((1, C), full), pl.BlockSpec((1, C), full),
                  pl.BlockSpec((C, Ch), full), pl.BlockSpec((1, Ch), full),
                  pl.BlockSpec((Ch, C), full), pl.BlockSpec((1, C), full)],
        out_specs=pl.BlockSpec((tm, C), row),
        out_shape=jax.ShapeDtypeStruct((M, C), jnp.float32),
        compiler_params=_parallel(1),
    )(attn_h, attn_v, x, c2wh, c2wv, p["conv2_b"].reshape(1, C),
      p["mlp"]["ln_g"].reshape(1, C), p["mlp"]["ln_b"].reshape(1, C),
      p["mlp"]["w1"], p["mlp"]["b1"].reshape(1, Ch),
      p["mlp"]["w2"], p["mlp"]["b2"].reshape(1, C))


# ----------------------------------------------------------------------------- blocks

def intra_sa_forward(x_nhwc, p, heads):
    B, H, W, C = x_nhwc.shape
    sc = C // 2
    assert sc % heads == 0, "split_channels must be divisible by heads"
    dh = sc // heads
    scale = 1.0 / math.sqrt(dh)
    M = B * H * W
    x_flat = x_nhwc.reshape(M, C)

    # Fused q/k/v projection weights (C, 6*sc): [q_h k_h v_h | q_v k_v v_v].
    # Channel-half selection is baked in via zero rows; attention scale folded into q.
    wqkv = jnp.concatenate([
        _pad_rows(p["pqh_w"] * scale, C, 0),
        _pad_rows(p["pkh_w"], C, 0),
        _pad_rows(p["pvh_w"], C, 0),
        _pad_rows(p["pqv_w"] * scale, C, sc),
        _pad_rows(p["pkv_w"], C, sc),
        _pad_rows(p["pvv_w"], C, sc),
    ], axis=1)
    bqkv = jnp.concatenate([p["pqh_b"] * scale, p["pkh_b"], p["pvh_b"],
                            p["pqv_b"] * scale, p["pkv_b"], p["pvv_b"]])

    proj = row_proj(x_flat, p["ln_g"], p["ln_b"], p["conv1_w"], p["conv1_b"], wqkv, bqkv)
    proj = proj.reshape(B, H, W, 6 * sc)

    # horizontal strips: one per (b, h), tokens along W, feature dim sc.
    qh = proj[..., 0 * sc:1 * sc].reshape(B * H, W, sc)
    kh = proj[..., 1 * sc:2 * sc].reshape(B * H, W, sc)
    vh = proj[..., 2 * sc:3 * sc].reshape(B * H, W, sc)
    attn_h = multi_head_attention(qh, kh, vh, heads).reshape(M, sc)

    # vertical strips: one per (b, w), tokens along H.
    proj_t = jnp.transpose(proj, (0, 2, 1, 3))                    # (B, W, H, 6*sc)
    qv = proj_t[..., 3 * sc:4 * sc].reshape(B * W, H, sc)
    kv = proj_t[..., 4 * sc:5 * sc].reshape(B * W, H, sc)
    vv = proj_t[..., 5 * sc:6 * sc].reshape(B * W, H, sc)
    attn_v = multi_head_attention(qv, kv, vv, heads).reshape(B, W, H, sc)
    attn_v = jnp.transpose(attn_v, (0, 2, 1, 3)).reshape(M, sc)   # back to (b,h,w,d)

    out = conv2_res_mlp(attn_h, attn_v, x_flat, p)
    return out.reshape(B, H, W, C)


def inter_sa_forward(x_nhwc, p, heads):
    B, H, W, C = x_nhwc.shape
    sc = C // 2
    assert sc % heads == 0, "split_channels must be divisible by heads"
    M = B * H * W
    x_flat = x_nhwc.reshape(M, C)
    scale_h = 1.0 / math.sqrt((sc * W) // heads)
    scale_v = 1.0 / math.sqrt((sc * H) // heads)

    # NOTE: the reference applies conv_h to BOTH splits (conv_v is unused) -- reproduced.
    wh, bh = p["convh_w"], p["convh_b"]                          # (sc, 3*sc), (3*sc,)
    wq, wk, wv = wh[:, :sc], wh[:, sc:2 * sc], wh[:, 2 * sc:]
    bq, bk, bv = bh[:sc], bh[sc:2 * sc], bh[2 * sc:]
    wqkv = jnp.concatenate([
        _pad_rows(wq * scale_h, C, 0), _pad_rows(wk, C, 0), _pad_rows(wv, C, 0),
        _pad_rows(wq * scale_v, C, sc), _pad_rows(wk, C, sc), _pad_rows(wv, C, sc),
    ], axis=1)
    bqkv = jnp.concatenate([bq * scale_h, bk, bv, bq * scale_v, bk, bv])

    proj = row_proj(x_flat, p["ln_g"], p["ln_b"], p["conv1_w"], p["conv1_b"], wqkv, bqkv)
    proj = proj.reshape(B, H, W, 6 * sc)

    # horizontal: tokens = H rows, features = (c, w) flattened c-major.
    ph = jnp.transpose(proj, (0, 1, 3, 2))                        # (B, H, 6*sc, W)
    qh = ph[:, :, 0 * sc:1 * sc, :].reshape(B, H, sc * W)
    kh = ph[:, :, 1 * sc:2 * sc, :].reshape(B, H, sc * W)
    vh = ph[:, :, 2 * sc:3 * sc, :].reshape(B, H, sc * W)
    ah = multi_head_attention(qh, kh, vh, heads)                  # (B, H, sc*W)
    attn_h = jnp.transpose(ah.reshape(B, H, sc, W), (0, 1, 3, 2)).reshape(M, sc)

    # vertical: tokens = W cols, features = (c, h) flattened c-major.
    pv = jnp.transpose(proj, (0, 2, 3, 1))                        # (B, W, 6*sc, H)
    qv = pv[:, :, 3 * sc:4 * sc, :].reshape(B, W, sc * H)
    kv = pv[:, :, 4 * sc:5 * sc, :].reshape(B, W, sc * H)
    vv = pv[:, :, 5 * sc:6 * sc, :].reshape(B, W, sc * H)
    av = multi_head_attention(qv, kv, vv, heads)                  # (B, W, sc*H)
    attn_v = jnp.transpose(av.reshape(B, W, sc, H), (0, 3, 1, 2)).reshape(M, sc)

    out = conv2_res_mlp(attn_h, attn_v, x_flat, p)
    return out.reshape(B, H, W, C)


# ----------------------------------------------------------------------------- params

def _dense(key, shape, scale=0.05):
    return jax.random.normal(key, shape, jnp.float32) * scale


def init_mlp_params(key, C, expansion=4):
    k1, k2, k3, k4 = jax.random.split(key, 4)
    Ch = C * expansion
    return dict(
        ln_g=jnp.ones((C,), jnp.float32), ln_b=jnp.zeros((C,), jnp.float32),
        w1=_dense(k1, (C, Ch)), b1=_dense(k2, (Ch,), 0.01),
        w2=_dense(k3, (Ch, C)), b2=_dense(k4, (C,), 0.01),
    )


def init_intra_params(key, C):
    sc = C // 2
    ks = jax.random.split(key, 16)
    return dict(
        ln_g=jnp.ones((C,), jnp.float32), ln_b=jnp.zeros((C,), jnp.float32),
        conv1_w=_dense(ks[0], (C, C)), conv1_b=_dense(ks[1], (C,), 0.01),
        pqh_w=_dense(ks[2], (sc, sc)), pqh_b=_dense(ks[3], (sc,), 0.01),
        pkh_w=_dense(ks[4], (sc, sc)), pkh_b=_dense(ks[5], (sc,), 0.01),
        pvh_w=_dense(ks[6], (sc, sc)), pvh_b=_dense(ks[7], (sc,), 0.01),
        pqv_w=_dense(ks[8], (sc, sc)), pqv_b=_dense(ks[9], (sc,), 0.01),
        pkv_w=_dense(ks[10], (sc, sc)), pkv_b=_dense(ks[11], (sc,), 0.01),
        pvv_w=_dense(ks[12], (sc, sc)), pvv_b=_dense(ks[13], (sc,), 0.01),
        conv2_w=_dense(ks[14], (C, C)), conv2_b=_dense(ks[15], (C,), 0.01),
        mlp=init_mlp_params(jax.random.fold_in(key, 99), C),
    )


def init_inter_params(key, C):
    sc = C // 2
    ks = jax.random.split(key, 8)
    return dict(
        ln_g=jnp.ones((C,), jnp.float32), ln_b=jnp.zeros((C,), jnp.float32),
        conv1_w=_dense(ks[0], (C, C)), conv1_b=_dense(ks[1], (C,), 0.01),
        convh_w=_dense(ks[2], (sc, 3 * sc)), convh_b=_dense(ks[3], (3 * sc,), 0.01),
        convv_w=_dense(ks[4], (sc, 3 * sc)), convv_b=_dense(ks[5], (3 * sc,), 0.01),  # unused (matches reference)
        conv2_w=_dense(ks[6], (C, C)), conv2_b=_dense(ks[7], (C,), 0.01),
        mlp=init_mlp_params(jax.random.fold_in(key, 100), C),
    )


def init_attention_blocks(key, blocks, channels):
    """Returns a pure-array pytree: [intra_0, inter_0, intra_1, inter_1, ...]."""
    params = []
    for i in range(blocks):
        params.append(init_intra_params(jax.random.fold_in(key, 2 * i), channels))
        params.append(init_inter_params(jax.random.fold_in(key, 2 * i + 1), channels))
    return params


def attention_blocks_forward(x_nchw, params, heads):
    # NCHW -> NHWC once, run all blocks channel-last, convert back at the end.
    # Block kind is implied by list position (even = IntraSA, odd = InterSA), so the
    # params pytree contains only arrays (jit-friendly).
    x = jnp.transpose(x_nchw, (0, 2, 3, 1))
    for i, p in enumerate(params):
        if i % 2 == 0:
            x = intra_sa_forward(x, p, heads)
        else:
            x = inter_sa_forward(x, p, heads)
    return jnp.transpose(x, (0, 3, 1, 2))


# ----------------------------------------------------------------------------- main

if __name__ == "__main__":
    BLOCKS, CHANNELS, HEADS = 1, 8, 2     # split_channels=4, divisible by heads
    B, H, W = 2, 16, 16

    key = jax.random.PRNGKey(0)
    k_x, k_p = jax.random.split(key)
    x = jax.random.normal(k_x, (B, CHANNELS, H, W), jnp.float32)   # NCHW like PyTorch
    params = init_attention_blocks(k_p, BLOCKS, CHANNELS)

    fwd = jax.jit(functools.partial(attention_blocks_forward, heads=HEADS))
    out = jax.block_until_ready(fwd(x, params))

    assert out.shape == x.shape and out.dtype == jnp.float32
    assert bool(jnp.all(jnp.isfinite(out)))
    print("KERNEL_OK")
</pallas_src>

<mosaic_0001>
module attributes {stable_mosaic.version = 11 : i64} {
  func.func @_row_proj_kernel(%arg0: i32, %arg1: memref<512x8xf32, #tpu.memory_space<vmem>>, %arg2: memref<1x8xf32, #tpu.memory_space<vmem>>, %arg3: memref<1x8xf32, #tpu.memory_space<vmem>>, %arg4: memref<8x8xf32, #tpu.memory_space<vmem>>, %arg5: memref<1x8xf32, #tpu.memory_space<vmem>>, %arg6: memref<8x24xf32, #tpu.memory_space<vmem>>, %arg7: memref<1x24xf32, #tpu.memory_space<vmem>>, %arg8: memref<512x24xf32, #tpu.memory_space<vmem>>) attributes {dimension_semantics = [#tpu.dimension_semantics<parallel>], iteration_bounds = array<i64: 1>, scalar_prefetch = 0 : i64, scratch_operands = 0 : i64, tpu.core_type = #tpu.core_type<tc>, window_params = [{transform_indices = @transform_0, window_bounds = array<i64: 512, 8>}, {pipeline_mode = #tpu.pipeline_mode<synchronous>, transform_indices = @transform_1, window_bounds = array<i64: 1, 8>}, {pipeline_mode = #tpu.pipeline_mode<synchronous>, transform_indices = @transform_2, window_bounds = array<i64: 1, 8>}, {pipeline_mode = #tpu.pipeline_mode<synchronous>, transform_indices = @transform_3, window_bounds = array<i64: 8, 8>}, {pipeline_mode = #tpu.pipeline_mode<synchronous>, transform_indices = @transform_4, window_bounds = array<i64: 1, 8>}, {pipeline_mode = #tpu.pipeline_mode<synchronous>, transform_indices = @transform_5, window_bounds = array<i64: 8, 24>}, {pipeline_mode = #tpu.pipeline_mode<synchronous>, transform_indices = @transform_6, window_bounds = array<i64: 1, 24>}, {transform_indices = @transform_7, window_bounds = array<i64: 512, 24>}]} {
    %c0 = arith.constant 0 : index
    %c0_0 = arith.constant 0 : index
    %0 = vector.load %arg1[%c0, %c0_0] : memref<512x8xf32, #tpu.memory_space<vmem>>, vector<512x8xf32>
    %cst = arith.constant dense<0.000000e+00> : vector<512xf32>
    %1 = vector.multi_reduction <add>, %0, %cst [1] : vector<512x8xf32> to vector<512xf32>
    %2 = vector.shape_cast %1 : vector<512xf32> to vector<512x1xf32>
    %cst_1 = arith.constant 8.000000e+00 : f32
    %3 = vector.broadcast %cst_1 : f32 to vector<512x1xf32>
    %4 = arith.divf %2, %3 : vector<512x1xf32>
    %5 = vector.broadcast %4 : vector<512x1xf32> to vector<512x8xf32>
    %6 = arith.subf %0, %5 : vector<512x8xf32>
    %7 = arith.mulf %6, %6 : vector<512x8xf32>
    %cst_2 = arith.constant dense<0.000000e+00> : vector<512xf32>
    %8 = vector.multi_reduction <add>, %7, %cst_2 [1] : vector<512x8xf32> to vector<512xf32>
    %9 = vector.shape_cast %8 : vector<512xf32> to vector<512x1xf32>
    %cst_3 = arith.constant 8.000000e+00 : f32
    %10 = vector.broadcast %cst_3 : f32 to vector<512x1xf32>
    %11 = arith.divf %9, %10 : vector<512x1xf32>
    %12 = vector.broadcast %4 : vector<512x1xf32> to vector<512x8xf32>
    %13 = arith.subf %0, %12 : vector<512x8xf32>
    %cst_4 = arith.constant 9.99999974E-6 : f32
    %14 = vector.broadcast %cst_4 : f32 to vector<512x1xf32>
    %15 = arith.addf %11, %14 : vector<512x1xf32>
    %16 = math.rsqrt %15 : vector<512x1xf32>
    %17 = vector.broadcast %16 : vector<512x1xf32> to vector<512x8xf32>
    %18 = arith.mulf %13, %17 : vector<512x8xf32>
    %c0_5 = arith.constant 0 : index
    %c0_6 = arith.constant 0 : index
    %19 = vector.load %arg2[%c0_5, %c0_6] : memref<1x8xf32, #tpu.memory_space<vmem>>, vector<1x8xf32>
    %20 = vector.broadcast %19 : vector<1x8xf32> to vector<512x8xf32>
    %21 = arith.mulf %18, %20 : vector<512x8xf32>
    %c0_7 = arith.constant 0 : index
    %c0_8 = arith.constant 0 : index
    %22 = vector.load %arg3[%c0_7, %c0_8] : memref<1x8xf32, #tpu.memory_space<vmem>>, vector<1x8xf32>
    %23 = vector.broadcast %22 : vector<1x8xf32> to vector<512x8xf32>
    %24 = arith.addf %21, %23 : vector<512x8xf32>
    %25 = arith.truncf %24 : vector<512x8xf32> to vector<512x8xbf16>
    %c0_9 = arith.constant 0 : index
    %c0_10 = arith.constant 0 : index
    %26 = vector.load %arg4[%c0_9, %c0_10] : memref<8x8xf32, #tpu.memory_space<vmem>>, vector<8x8xf32>
    %27 = arith.truncf %26 : vector<8x8xf32> to vector<8x8xbf16>
    %cst_11 = arith.constant dense<0.000000e+00> : vector<512x8xf32>
    %28 = tpu.matmul %25, %27, %cst_11 {dimension_numbers = #tpu.dot_dimension_numbers<[1], [0], [0], [1], [0, 0, 1, 1], [], []>} : vector<512x8xbf16>, vector<8x8xbf16>, vector<512x8xf32> -> vector<512x8xf32>
    %c0_12 = arith.constant 0 : index
    %c0_13 = arith.constant 0 : index
    %29 = vector.load %arg5[%c0_12, %c0_13] : memref<1x8xf32, #tpu.memory_space<vmem>>, vector<1x8xf32>
    %30 = vector.broadcast %29 : vector<1x8xf32> to vector<512x8xf32>
    %31 = arith.addf %28, %30 : vector<512x8xf32>
    %32 = arith.truncf %31 : vector<512x8xf32> to vector<512x8xbf16>
    %c0_14 = arith.constant 0 : index
    %c0_15 = arith.constant 0 : index
    %33 = vector.load %arg6[%c0_14, %c0_15] : memref<8x24xf32, #tpu.memory_space<vmem>>, vector<8x24xf32>
    %34 = arith.truncf %33 : vector<8x24xf32> to vector<8x24xbf16>
    %cst_16 = arith.constant dense<0.000000e+00> : vector<512x24xf32>
    %35 = tpu.matmul %32, %34, %cst_16 {dimension_numbers = #tpu.dot_dimension_numbers<[1], [0], [0], [1], [0, 0, 1, 1], [], []>} : vector<512x8xbf16>, vector<8x24xbf16>, vector<512x24xf32> -> vector<512x24xf32>
    %c0_17 = arith.constant 0 : index
    %c0_18 = arith.constant 0 : index
    %36 = vector.load %arg7[%c0_17, %c0_18] : memref<1x24xf32, #tpu.memory_space<vmem>>, vector<1x24xf32>
    %37 = vector.broadcast %36 : vector<1x24xf32> to vector<512x24xf32>
    %38 = arith.addf %35, %37 : vector<512x24xf32>
    %c0_19 = arith.constant 0 : index
    %c0_20 = arith.constant 0 : index
    %39 = vector.load %arg8[%c0_19, %c0_20] : memref<512x24xf32, #tpu.memory_space<vmem>>, vector<512x24xf32>
    tpu.vector_store %arg8[%c0_19, %c0_20], %38 {strides = array<i32>} : memref<512x24xf32, #tpu.memory_space<vmem>>, vector<512x24xf32>,
    return
  }
  func.func @transform_0(%arg0: i32) -> (i32, i32) {
    %c0_i32 = arith.constant 0 : i32
    %c0_i32_0 = arith.constant 0 : i32
    return %arg0, %c0_i32 : i32, i32
  }
  func.func @transform_1(%arg0: i32) -> (i32, i32) {
    %c0_i32 = arith.constant 0 : i32
    %c0_i32_0 = arith.constant 0 : i32
    %c0_i32_1 = arith.constant 0 : i32
    return %c0_i32, %c0_i32_0 : i32, i32
  }
  func.func @transform_2(%arg0: i32) -> (i32, i32) {
    %c0_i32 = arith.constant 0 : i32
    %c0_i32_0 = arith.constant 0 : i32
    %c0_i32_1 = arith.constant 0 : i32
    return %c0_i32, %c0_i32_0 : i32, i32
  }
  func.func @transform_3(%arg0: i32) -> (i32, i32) {
    %c0_i32 = arith.constant 0 : i32
    %c0_i32_0 = arith.constant 0 : i32
    %c0_i32_1 = arith.constant 0 : i32
    return %c0_i32, %c0_i32_0 : i32, i32
  }
  func.func @transform_4(%arg0: i32) -> (i32, i32) {
    %c0_i32 = arith.constant 0 : i32
    %c0_i32_0 = arith.constant 0 : i32
    %c0_i32_1 = arith.constant 0 : i32
    return %c0_i32, %c0_i32_0 : i32, i32
  }
  func.func @transform_5(%arg0: i32) -> (i32, i32) {
    %c0_i32 = arith.constant 0 : i32
    %c0_i32_0 = arith.constant 0 : i32
    %c0_i32_1 = arith.constant 0 : i32
    return %c0_i32, %c0_i32_0 : i32, i32
  }
  func.func @transform_6(%arg0: i32) -> (i32, i32) {
    %c0_i32 = arith.constant 0 : i32
    %c0_i32_0 = arith.constant 0 : i32
    %c0_i32_1 = arith.constant 0 : i32
    return %c0_i32, %c0_i32_0 : i32, i32
  }
  func.func @transform_7(%arg0: i32) -> (i32, i32) {
    %c0_i32 = arith.constant 0 : i32
    %c0_i32_0 = arith.constant 0 : i32
    return %arg0, %c0_i32 : i32, i32
  }
}

module attributes {stable_mosaic.version = 11 : i64} {
  func.func @_mha_kernel(%arg0: i32, %arg1: memref<16x16x4xf32, #tpu.memory_space<vmem>>, %arg2: memref<16x16x4xf32, #tpu.memory_space<vmem>>, %arg3: memref<16x16x4xf32, #tpu.memory_space<vmem>>, %arg4: memref<16x16x4xf32, #tpu.memory_space<vmem>>) attributes {dimension_semantics = [#tpu.dimension_semantics<parallel>], iteration_bounds = array<i64: 2>, scalar_prefetch = 0 : i64, scratch_operands = 0 : i64, tpu.core_type = #tpu.core_type<tc>, window_params = [{transform_indices = @transform_0, window_bounds = array<i64: 16, 16, 4>}, {transform_indices = @transform_1, window_bounds = array<i64: 16, 16, 4>}, {transform_indices = @transform_2, window_bounds = array<i64: 16, 16, 4>}, {transform_indices = @transform_3, window_bounds = array<i64: 16, 16, 4>}]} {
    %c0 = arith.constant 0 : index
    %c0_0 = arith.constant 0 : index
    %c0_1 = arith.constant 0 : index
    %0 = vector.load %arg1[%c0, %c0_0, %c0_1] : memref<16x16x4xf32, #tpu.memory_space<vmem>>, vector<16x16x4xf32>
    %c0_2 = arith.constant 0 : index
    %c0_3 = arith.constant 0 : index
    %c0_4 = arith.constant 0 : index
    %1 = vector.load %arg2[%c0_2, %c0_3, %c0_4] : memref<16x16x4xf32, #tpu.memory_space<vmem>>, vector<16x16x4xf32>
    %c0_5 = arith.constant 0 : index
    %c0_6 = arith.constant 0 : index
    %c0_7 = arith.constant 0 : index
    %2 = vector.load %arg3[%c0_5, %c0_6, %c0_7] : memref<16x16x4xf32, #tpu.memory_space<vmem>>, vector<16x16x4xf32>
    %3 = vector.extract_strided_slice %0 {offsets = [0, 0, 0], sizes = [16, 16, 2], strides = [1, 1, 1]} : vector<16x16x4xf32> to vector<16x16x2xf32>
    %4 = arith.truncf %3 : vector<16x16x2xf32> to vector<16x16x2xbf16>
    %5 = vector.extract_strided_slice %1 {offsets = [0, 0, 0], sizes = [16, 16, 2], strides = [1, 1, 1]} : vector<16x16x4xf32> to vector<16x16x2xf32>
    %6 = arith.truncf %5 : vector<16x16x2xf32> to vector<16x16x2xbf16>
    %7 = vector.extract_strided_slice %2 {offsets = [0, 0, 0], sizes = [16, 16, 2], strides = [1, 1, 1]} : vector<16x16x4xf32> to vector<16x16x2xf32>
    %8 = arith.truncf %7 : vector<16x16x2xf32> to vector<16x16x2xbf16>
    %cst = arith.constant dense<0.000000e+00> : vector<16x16x16xf32>
    %9 = tpu.matmul %4, %6, %cst {dimension_numbers = #tpu.dot_dimension_numbers<[2], [2], [1], [1], [0, 0, 0, 1, 1, 1], [0], [0]>} : vector<16x16x2xbf16>, vector<16x16x2xbf16>, vector<16x16x16xf32> -> vector<16x16x16xf32>
    %cst_8 = arith.constant dense<0xFF800000> : vector<16x16xf32>
    %10 = vector.multi_reduction <maximumf>, %9, %cst_8 [2] : vector<16x16x16xf32> to vector<16x16xf32>
    %11 = vector.shape_cast %10 : vector<16x16xf32> to vector<16x16x1xf32>
    %12 = vector.broadcast %11 : vector<16x16x1xf32> to vector<16x16x16xf32>
    %13 = arith.subf %9, %12 : vector<16x16x16xf32>
    %14 = math.exp %13 : vector<16x16x16xf32>
    %cst_9 = arith.constant dense<0.000000e+00> : vector<16x16xf32>
    %15 = vector.multi_reduction <add>, %14, %cst_9 [2] : vector<16x16x16xf32> to vector<16x16xf32>
    %16 = vector.shape_cast %15 : vector<16x16xf32> to vector<16x16x1xf32>
    %17 = tpu.reciprocal %16 {approx = true} : vector<16x16x1xf32> -> vector<16x16x1xf32>
    %18 = vector.broadcast %17 : vector<16x16x1xf32> to vector<16x16x16xf32>
    %19 = arith.mulf %14, %18 : vector<16x16x16xf32>
    %20 = arith.truncf %19 : vector<16x16x16xf32> to vector<16x16x16xbf16>
    %cst_10 = arith.constant dense<0.000000e+00> : vector<16x16x2xf32>
    %21 = tpu.matmul %20, %8, %cst_10 {dimension_numbers = #tpu.dot_dimension_numbers<[2], [1], [1], [2], [0, 0, 0, 1, 1, 2], [0], [0]>} : vector<16x16x16xbf16>, vector<16x16x2xbf16>, vector<16x16x2xf32> -> vector<16x16x2xf32>
    %22 = vector.extract_strided_slice %0 {offsets = [0, 0, 2], sizes = [16, 16, 2], strides = [1, 1, 1]} : vector<16x16x4xf32> to vector<16x16x2xf32>
    %23 = arith.truncf %22 : vector<16x16x2xf32> to vector<16x16x2xbf16>
    %24 = vector.extract_strided_slice %1 {offsets = [0, 0, 2], sizes = [16, 16, 2], strides = [1, 1, 1]} : vector<16x16x4xf32> to vector<16x16x2xf32>
    %25 = arith.truncf %24 : vector<16x16x2xf32> to vector<16x16x2xbf16>
    %26 = vector.extract_strided_slice %2 {offsets = [0, 0, 2], sizes = [16, 16, 2], strides = [1, 1, 1]} : vector<16x16x4xf32> to vector<16x16x2xf32>
    %27 = arith.truncf %26 : vector<16x16x2xf32> to vector<16x16x2xbf16>
    %cst_11 = arith.constant dense<0.000000e+00> : vector<16x16x16xf32>
    %28 = tpu.matmul %23, %25, %cst_11 {dimension_numbers = #tpu.dot_dimension_numbers<[2], [2], [1], [1], [0, 0, 0, 1, 1, 1], [0], [0]>} : vector<16x16x2xbf16>, vector<16x16x2xbf16>, vector<16x16x16xf32> -> vector<16x16x16xf32>
    %cst_12 = arith.constant dense<0xFF800000> : vector<16x16xf32>
    %29 = vector.multi_reduction <maximumf>, %28, %cst_12 [2] : vector<16x16x16xf32> to vector<16x16xf32>
    %30 = vector.shape_cast %29 : vector<16x16xf32> to vector<16x16x1xf32>
    %31 = vector.broadcast %30 : vector<16x16x1xf32> to vector<16x16x16xf32>
    %32 = arith.subf %28, %31 : vector<16x16x16xf32>
    %33 = math.exp %32 : vector<16x16x16xf32>
    %cst_13 = arith.constant dense<0.000000e+00> : vector<16x16xf32>
    %34 = vector.multi_reduction <add>, %33, %cst_13 [2] : vector<16x16x16xf32> to vector<16x16xf32>
    %35 = vector.shape_cast %34 : vector<16x16xf32> to vector<16x16x1xf32>
    %36 = tpu.reciprocal %35 {approx = true} : vector<16x16x1xf32> -> vector<16x16x1xf32>
    %37 = vector.broadcast %36 : vector<16x16x1xf32> to vector<16x16x16xf32>
    %38 = arith.mulf %33, %37 : vector<16x16x16xf32>
    %39 = arith.truncf %38 : vector<16x16x16xf32> to vector<16x16x16xbf16>
    %cst_14 = arith.constant dense<0.000000e+00> : vector<16x16x2xf32>
    %40 = tpu.matmul %39, %27, %cst_14 {dimension_numbers = #tpu.dot_dimension_numbers<[2], [1], [1], [2], [0, 0, 0, 1, 1, 2], [0], [0]>} : vector<16x16x16xbf16>, vector<16x16x2xbf16>, vector<16x16x2xf32> -> vector<16x16x2xf32>
    %41 = tpu.concatenate %21, %40 in 2 : vector<16x16x2xf32>, vector<16x16x2xf32> -> vector<16x16x4xf32>
    %c0_15 = arith.constant 0 : index
    %c0_16 = arith.constant 0 : index
    %c0_17 = arith.constant 0 : index
    %42 = vector.load %arg4[%c0_15, %c0_16, %c0_17] : memref<16x16x4xf32, #tpu.memory_space<vmem>>, vector<16x16x4xf32>
    tpu.vector_store %arg4[%c0_15, %c0_16, %c0_17], %41 {strides = array<i32>} : memref<16x16x4xf32, #tpu.memory_space<vmem>>, vector<16x16x4xf32>,
    return
  }
  func.func @transform_0(%arg0: i32) -> (i32, i32, i32) {
    %c0_i32 = arith.constant 0 : i32
    %c0_i32_0 = arith.constant 0 : i32
    %c0_i32_1 = arith.constant 0 : i32
    return %arg0, %c0_i32, %c0_i32_0 : i32, i32, i32
  }
  func.func @transform_1(%arg0: i32) -> (i32, i32, i32) {
    %c0_i32 = arith.constant 0 : i32
    %c0_i32_0 = arith.constant 0 : i32
    %c0_i32_1 = arith.constant 0 : i32
    return %arg0, %c0_i32, %c0_i32_0 : i32, i32, i32
  }
  func.func @transform_2(%arg0: i32) -> (i32, i32, i32) {
    %c0_i32 = arith.constant 0 : i32
    %c0_i32_0 = arith.constant 0 : i32
    %c0_i32_1 = arith.constant 0 : i32
    return %arg0, %c0_i32, %c0_i32_0 : i32, i32, i32
  }
  func.func @transform_3(%arg0: i32) -> (i32, i32, i32) {
    %c0_i32 = arith.constant 0 : i32
    %c0_i32_0 = arith.constant 0 : i32
    %c0_i32_1 = arith.constant 0 : i32
    return %arg0, %c0_i32, %c0_i32_0 : i32, i32, i32
  }
}

module attributes {stable_mosaic.version = 11 : i64} {
  func.func @_conv2_res_mlp_kernel(%arg0: i32, %arg1: memref<512x4xf32, #tpu.memory_space<vmem>>, %arg2: memref<512x4xf32, #tpu.memory_space<vmem>>, %arg3: memref<512x8xf32, #tpu.memory_space<vmem>>, %arg4: memref<4x8xf32, #tpu.memory_space<vmem>>, %arg5: memref<4x8xf32, #tpu.memory_space<vmem>>, %arg6: memref<1x8xf32, #tpu.memory_space<vmem>>, %arg7: memref<1x8xf32, #tpu.memory_space<vmem>>, %arg8: memref<1x8xf32, #tpu.memory_space<vmem>>, %arg9: memref<8x32xf32, #tpu.memory_space<vmem>>, %arg10: memref<1x32xf32, #tpu.memory_space<vmem>>, %arg11: memref<32x8xf32, #tpu.memory_space<vmem>>, %arg12: memref<1x8xf32, #tpu.memory_space<vmem>>, %arg13: memref<512x8xf32, #tpu.memory_space<vmem>>) attributes {dimension_semantics = [#tpu.dimension_semantics<parallel>], iteration_bounds = array<i64: 1>, scalar_prefetch = 0 : i64, scratch_operands = 0 : i64, tpu.core_type = #tpu.core_type<tc>, window_params = [{transform_indices = @transform_0, window_bounds = array<i64: 512, 4>}, {transform_indices = @transform_1, window_bounds = array<i64: 512, 4>}, {transform_indices = @transform_2, window_bounds = array<i64: 512, 8>}, {pipeline_mode = #tpu.pipeline_mode<synchronous>, transform_indices = @transform_3, window_bounds = array<i64: 4, 8>}, {pipeline_mode = #tpu.pipeline_mode<synchronous>, transform_indices = @transform_4, window_bounds = array<i64: 4, 8>}, {pipeline_mode = #tpu.pipeline_mode<synchronous>, transform_indices = @transform_5, window_bounds = array<i64: 1, 8>}, {pipeline_mode = #tpu.pipeline_mode<synchronous>, transform_indices = @transform_6, window_bounds = array<i64: 1, 8>}, {pipeline_mode = #tpu.pipeline_mode<synchronous>, transform_indices = @transform_7, window_bounds = array<i64: 1, 8>}, {pipeline_mode = #tpu.pipeline_mode<synchronous>, transform_indices = @transform_8, window_bounds = array<i64: 8, 32>}, {pipeline_mode = #tpu.pipeline_mode<synchronous>, transform_indices = @transform_9, window_bounds = array<i64: 1, 32>}, {pipeline_mode = #tpu.pipeline_mode<synchronous>, transform_indices = @transform_10, window_bounds = array<i64: 32, 8>}, {pipeline_mode = #tpu.pipeline_mode<synchronous>, transform_indices = @transform_11, window_bounds = array<i64: 1, 8>}, {transform_indices = @transform_12, window_bounds = array<i64: 512, 8>}]} {
    %c0 = arith.constant 0 : index
    %c0_0 = arith.constant 0 : index
    %0 = vector.load %arg3[%c0, %c0_0] : memref<512x8xf32, #tpu.memory_space<vmem>>, vector<512x8xf32>
    %c0_1 = arith.constant 0 : index
    %c0_2 = arith.constant 0 : index
    %1 = vector.load %arg1[%c0_1, %c0_2] : memref<512x4xf32, #tpu.memory_space<vmem>>, vector<512x4xf32>
    %2 = arith.truncf %1 : vector<512x4xf32> to vector<512x4xbf16>
    %c0_3 = arith.constant 0 : index
    %c0_4 = arith.constant 0 : index
    %3 = vector.load %arg4[%c0_3, %c0_4] : memref<4x8xf32, #tpu.memory_space<vmem>>, vector<4x8xf32>
    %4 = arith.truncf %3 : vector<4x8xf32> to vector<4x8xbf16>
    %cst = arith.constant dense<0.000000e+00> : vector<512x8xf32>
    %5 = tpu.matmul %2, %4, %cst {dimension_numbers = #tpu.dot_dimension_numbers<[1], [0], [0], [1], [0, 0, 1, 1], [], []>} : vector<512x4xbf16>, vector<4x8xbf16>, vector<512x8xf32> -> vector<512x8xf32>
    %c0_5 = arith.constant 0 : index
    %c0_6 = arith.constant 0 : index
    %6 = vector.load %arg2[%c0_5, %c0_6] : memref<512x4xf32, #tpu.memory_space<vmem>>, vector<512x4xf32>
    %7 = arith.truncf %6 : vector<512x4xf32> to vector<512x4xbf16>
    %c0_7 = arith.constant 0 : index
    %c0_8 = arith.constant 0 : index
    %8 = vector.load %arg5[%c0_7, %c0_8] : memref<4x8xf32, #tpu.memory_space<vmem>>, vector<4x8xf32>
    %9 = arith.truncf %8 : vector<4x8xf32> to vector<4x8xbf16>
    %cst_9 = arith.constant dense<0.000000e+00> : vector<512x8xf32>
    %10 = tpu.matmul %7, %9, %cst_9 {dimension_numbers = #tpu.dot_dimension_numbers<[1], [0], [0], [1], [0, 0, 1, 1], [], []>} : vector<512x4xbf16>, vector<4x8xbf16>, vector<512x8xf32> -> vector<512x8xf32>
    %11 = arith.addf %5, %10 : vector<512x8xf32>
    %c0_10 = arith.constant 0 : index
    %c0_11 = arith.constant 0 : index
    %12 = vector.load %arg6[%c0_10, %c0_11] : memref<1x8xf32, #tpu.memory_space<vmem>>, vector<1x8xf32>
    %13 = vector.broadcast %12 : vector<1x8xf32> to vector<512x8xf32>
    %14 = arith.addf %11, %13 : vector<512x8xf32>
    %15 = arith.addf %14, %0 : vector<512x8xf32>
    %cst_12 = arith.constant dense<0.000000e+00> : vector<512xf32>
    %16 = vector.multi_reduction <add>, %15, %cst_12 [1] : vector<512x8xf32> to vector<512xf32>
    %17 = vector.shape_cast %16 : vector<512xf32> to vector<512x1xf32>
    %cst_13 = arith.constant 8.000000e+00 : f32
    %18 = vector.broadcast %cst_13 : f32 to vector<512x1xf32>
    %19 = arith.divf %17, %18 : vector<512x1xf32>
    %20 = vector.broadcast %19 : vector<512x1xf32> to vector<512x8xf32>
    %21 = arith.subf %15, %20 : vector<512x8xf32>
    %22 = arith.mulf %21, %21 : vector<512x8xf32>
    %cst_14 = arith.constant dense<0.000000e+00> : vector<512xf32>
    %23 = vector.multi_reduction <add>, %22, %cst_14 [1] : vector<512x8xf32> to vector<512xf32>
    %24 = vector.shape_cast %23 : vector<512xf32> to vector<512x1xf32>
    %cst_15 = arith.constant 8.000000e+00 : f32
    %25 = vector.broadcast %cst_15 : f32 to vector<512x1xf32>
    %26 = arith.divf %24, %25 : vector<512x1xf32>
    %27 = vector.broadcast %19 : vector<512x1xf32> to vector<512x8xf32>
    %28 = arith.subf %15, %27 : vector<512x8xf32>
    %cst_16 = arith.constant 9.99999974E-6 : f32
    %29 = vector.broadcast %cst_16 : f32 to vector<512x1xf32>
    %30 = arith.addf %26, %29 : vector<512x1xf32>
    %31 = math.rsqrt %30 : vector<512x1xf32>
    %32 = vector.broadcast %31 : vector<512x1xf32> to vector<512x8xf32>
    %33 = arith.mulf %28, %32 : vector<512x8xf32>
    %c0_17 = arith.constant 0 : index
    %c0_18 = arith.constant 0 : index
    %34 = vector.load %arg7[%c0_17, %c0_18] : memref<1x8xf32, #tpu.memory_space<vmem>>, vector<1x8xf32>
    %35 = vector.broadcast %34 : vector<1x8xf32> to vector<512x8xf32>
    %36 = arith.mulf %33, %35 : vector<512x8xf32>
    %c0_19 = arith.constant 0 : index
    %c0_20 = arith.constant 0 : index
    %37 = vector.load %arg8[%c0_19, %c0_20] : memref<1x8xf32, #tpu.memory_space<vmem>>, vector<1x8xf32>
    %38 = vector.broadcast %37 : vector<1x8xf32> to vector<512x8xf32>
    %39 = arith.addf %36, %38 : vector<512x8xf32>
    %40 = arith.truncf %39 : vector<512x8xf32> to vector<512x8xbf16>
    %c0_21 = arith.constant 0 : index
    %c0_22 = arith.constant 0 : index
    %41 = vector.load %arg9[%c0_21, %c0_22] : memref<8x32xf32, #tpu.memory_space<vmem>>, vector<8x32xf32>
    %42 = arith.truncf %41 : vector<8x32xf32> to vector<8x32xbf16>
    %cst_23 = arith.constant dense<0.000000e+00> : vector<512x32xf32>
    %43 = tpu.matmul %40, %42, %cst_23 {dimension_numbers = #tpu.dot_dimension_numbers<[1], [0], [0], [1], [0, 0, 1, 1], [], []>} : vector<512x8xbf16>, vector<8x32xbf16>, vector<512x32xf32> -> vector<512x32xf32>
    %c0_24 = arith.constant 0 : index
    %c0_25 = arith.constant 0 : index
    %44 = vector.load %arg10[%c0_24, %c0_25] : memref<1x32xf32, #tpu.memory_space<vmem>>, vector<1x32xf32>
    %45 = vector.broadcast %44 : vector<1x32xf32> to vector<512x32xf32>
    %46 = arith.addf %43, %45 : vector<512x32xf32>
    %47 = arith.mulf %46, %46 : vector<512x32xf32>
    %48 = arith.mulf %46, %47 : vector<512x32xf32>
    %cst_26 = arith.constant 4.471500e-02 : f32
    %49 = vector.broadcast %cst_26 : f32 to vector<512x32xf32>
    %50 = arith.mulf %49, %48 : vector<512x32xf32>
    %51 = arith.addf %46, %50 : vector<512x32xf32>
    %cst_27 = arith.constant 0.797884583 : f32
    %52 = vector.broadcast %cst_27 : f32 to vector<512x32xf32>
    %53 = arith.mulf %52, %51 : vector<512x32xf32>
    %54 = math.tanh %53 : vector<512x32xf32>
    %cst_28 = arith.constant 1.000000e+00 : f32
    %55 = vector.broadcast %cst_28 : f32 to vector<512x32xf32>
    %56 = arith.addf %55, %54 : vector<512x32xf32>
    %cst_29 = arith.constant 5.000000e-01 : f32
    %57 = vector.broadcast %cst_29 : f32 to vector<512x32xf32>
    %58 = arith.mulf %57, %56 : vector<512x32xf32>
    %59 = arith.mulf %46, %58 : vector<512x32xf32>
    %60 = arith.truncf %59 : vector<512x32xf32> to vector<512x32xbf16>
    %c0_30 = arith.constant 0 : index
    %c0_31 = arith.constant 0 : index
    %61 = vector.load %arg11[%c0_30, %c0_31] : memref<32x8xf32, #tpu.memory_space<vmem>>, vector<32x8xf32>
    %62 = arith.truncf %61 : vector<32x8xf32> to vector<32x8xbf16>
    %cst_32 = arith.constant dense<0.000000e+00> : vector<512x8xf32>
    %63 = tpu.matmul %60, %62, %cst_32 {dimension_numbers = #tpu.dot_dimension_numbers<[1], [0], [0], [1], [0, 0, 1, 1], [], []>} : vector<512x32xbf16>, vector<32x8xbf16>, vector<512x8xf32> -> vector<512x8xf32>
    %64 = arith.addf %15, %63 : vector<512x8xf32>
    %c0_33 = arith.constant 0 : index
    %c0_34 = arith.constant 0 : index
    %65 = vector.load %arg12[%c0_33, %c0_34] : memref<1x8xf32, #tpu.memory_space<vmem>>, vector<1x8xf32>
    %66 = vector.broadcast %65 : vector<1x8xf32> to vector<512x8xf32>
    %67 = arith.addf %64, %66 : vector<512x8xf32>
    %c0_35 = arith.constant 0 : index
    %c0_36 = arith.constant 0 : index
    %68 = vector.load %arg13[%c0_35, %c0_36] : memref<512x8xf32, #tpu.memory_space<vmem>>, vector<512x8xf32>
    tpu.vector_store %arg13[%c0_35, %c0_36], %67 {strides = array<i32>} : memref<512x8xf32, #tpu.memory_space<vmem>>, vector<512x8xf32>,
    return
  }
  func.func @transform_0(%arg0: i32) -> (i32, i32) {
    %c0_i32 = arith.constant 0 : i32
    %c0_i32_0 = arith.constant 0 : i32
    return %arg0, %c0_i32 : i32, i32
  }
  func.func @transform_1(%arg0: i32) -> (i32, i32) {
    %c0_i32 = arith.constant 0 : i32
    %c0_i32_0 = arith.constant 0 : i32
    return %arg0, %c0_i32 : i32, i32
  }
  func.func @transform_2(%arg0: i32) -> (i32, i32) {
    %c0_i32 = arith.constant 0 : i32
    %c0_i32_0 = arith.constant 0 : i32
    return %arg0, %c0_i32 : i32, i32
  }
  func.func @transform_3(%arg0: i32) -> (i32, i32) {
    %c0_i32 = arith.constant 0 : i32
    %c0_i32_0 = arith.constant 0 : i32
    %c0_i32_1 = arith.constant 0 : i32
    return %c0_i32, %c0_i32_0 : i32, i32
  }
  func.func @transform_4(%arg0: i32) -> (i32, i32) {
    %c0_i32 = arith.constant 0 : i32
    %c0_i32_0 = arith.constant 0 : i32
    %c0_i32_1 = arith.constant 0 : i32
    return %c0_i32, %c0_i32_0 : i32, i32
  }
  func.func @transform_5(%arg0: i32) -> (i32, i32) {
    %c0_i32 = arith.constant 0 : i32
    %c0_i32_0 = arith.constant 0 : i32
    %c0_i32_1 = arith.constant 0 : i32
    return %c0_i32, %c0_i32_0 : i32, i32
  }
  func.func @transform_6(%arg0: i32) -> (i32, i32) {
    %c0_i32 = arith.constant 0 : i32
    %c0_i32_0 = arith.constant 0 : i32
    %c0_i32_1 = arith.constant 0 : i32
    return %c0_i32, %c0_i32_0 : i32, i32
  }
  func.func @transform_7(%arg0: i32) -> (i32, i32) {
    %c0_i32 = arith.constant 0 : i32
    %c0_i32_0 = arith.constant 0 : i32
    %c0_i32_1 = arith.constant 0 : i32
    return %c0_i32, %c0_i32_0 : i32, i32
  }
  func.func @transform_8(%arg0: i32) -> (i32, i32) {
    %c0_i32 = arith.constant 0 : i32
    %c0_i32_0 = arith.constant 0 : i32
    %c0_i32_1 = arith.constant 0 : i32
    return %c0_i32, %c0_i32_0 : i32, i32
  }
  func.func @transform_9(%arg0: i32) -> (i32, i32) {
    %c0_i32 = arith.constant 0 : i32
    %c0_i32_0 = arith.constant 0 : i32
    %c0_i32_1 = arith.constant 0 : i32
    return %c0_i32, %c0_i32_0 : i32, i32
  }
  func.func @transform_10(%arg0: i32) -> (i32, i32) {
    %c0_i32 = arith.constant 0 : i32
    %c0_i32_0 = arith.constant 0 : i32
    %c0_i32_1 = arith.constant 0 : i32
    return %c0_i32, %c0_i32_0 : i32, i32
  }
  func.func @transform_11(%arg0: i32) -> (i32, i32) {
    %c0_i32 = arith.constant 0 : i32
    %c0_i32_0 = arith.constant 0 : i32
    %c0_i32_1 = arith.constant 0 : i32
    return %c0_i32, %c0_i32_0 : i32, i32
  }
  func.func @transform_12(%arg0: i32) -> (i32, i32) {
    %c0_i32 = arith.constant 0 : i32
    %c0_i32_0 = arith.constant 0 : i32
    return %arg0, %c0_i32 : i32, i32
  }
}

module attributes {stable_mosaic.version = 11 : i64} {
  func.func @_mha_kernel(%arg0: i32, %arg1: memref<2x16x64xf32, #tpu.memory_space<vmem>>, %arg2: memref<2x16x64xf32, #tpu.memory_space<vmem>>, %arg3: memref<2x16x64xf32, #tpu.memory_space<vmem>>, %arg4: memref<2x16x64xf32, #tpu.memory_space<vmem>>) attributes {dimension_semantics = [#tpu.dimension_semantics<parallel>], iteration_bounds = array<i64: 1>, scalar_prefetch = 0 : i64, scratch_operands = 0 : i64, tpu.core_type = #tpu.core_type<tc>, window_params = [{transform_indices = @transform_0, window_bounds = array<i64: 2, 16, 64>}, {transform_indices = @transform_1, window_bounds = array<i64: 2, 16, 64>}, {transform_indices = @transform_2, window_bounds = array<i64: 2, 16, 64>}, {transform_indices = @transform_3, window_bounds = array<i64: 2, 16, 64>}]} {
    %c0 = arith.constant 0 : index
    %c0_0 = arith.constant 0 : index
    %c0_1 = arith.constant 0 : index
    %0 = vector.load %arg1[%c0, %c0_0, %c0_1] : memref<2x16x64xf32, #tpu.memory_space<vmem>>, vector<2x16x64xf32>
    %c0_2 = arith.constant 0 : index
    %c0_3 = arith.constant 0 : index
    %c0_4 = arith.constant 0 : index
    %1 = vector.load %arg2[%c0_2, %c0_3, %c0_4] : memref<2x16x64xf32, #tpu.memory_space<vmem>>, vector<2x16x64xf32>
    %c0_5 = arith.constant 0 : index
    %c0_6 = arith.constant 0 : index
    %c0_7 = arith.constant 0 : index
    %2 = vector.load %arg3[%c0_5, %c0_6, %c0_7] : memref<2x16x64xf32, #tpu.memory_space<vmem>>, vector<2x16x64xf32>
    %3 = vector.extract_strided_slice %0 {offsets = [0, 0, 0], sizes = [2, 16, 32], strides = [1, 1, 1]} : vector<2x16x64xf32> to vector<2x16x32xf32>
    %4 = arith.truncf %3 : vector<2x16x32xf32> to vector<2x16x32xbf16>
    %5 = vector.extract_strided_slice %1 {offsets = [0, 0, 0], sizes = [2, 16, 32], strides = [1, 1, 1]} : vector<2x16x64xf32> to vector<2x16x32xf32>
    %6 = arith.truncf %5 : vector<2x16x32xf32> to vector<2x16x32xbf16>
    %7 = vector.extract_strided_slice %2 {offsets = [0, 0, 0], sizes = [2, 16, 32], strides = [1, 1, 1]} : vector<2x16x64xf32> to vector<2x16x32xf32>
    %8 = arith.truncf %7 : vector<2x16x32xf32> to vector<2x16x32xbf16>
    %cst = arith.constant dense<0.000000e+00> : vector<2x16x16xf32>
    %9 = tpu.matmul %4, %6, %cst {dimension_numbers = #tpu.dot_dimension_numbers<[2], [2], [1], [1], [0, 0, 0, 1, 1, 1], [0], [0]>} : vector<2x16x32xbf16>, vector<2x16x32xbf16>, vector<2x16x16xf32> -> vector<2x16x16xf32>
    %cst_8 = arith.constant dense<0xFF800000> : vector<2x16xf32>
    %10 = vector.multi_reduction <maximumf>, %9, %cst_8 [2] : vector<2x16x16xf32> to vector<2x16xf32>
    %11 = vector.shape_cast %10 : vector<2x16xf32> to vector<2x16x1xf32>
    %12 = vector.broadcast %11 : vector<2x16x1xf32> to vector<2x16x16xf32>
    %13 = arith.subf %9, %12 : vector<2x16x16xf32>
    %14 = math.exp %13 : vector<2x16x16xf32>
    %cst_9 = arith.constant dense<0.000000e+00> : vector<2x16xf32>
    %15 = vector.multi_reduction <add>, %14, %cst_9 [2] : vector<2x16x16xf32> to vector<2x16xf32>
    %16 = vector.shape_cast %15 : vector<2x16xf32> to vector<2x16x1xf32>
    %17 = tpu.reciprocal %16 {approx = true} : vector<2x16x1xf32> -> vector<2x16x1xf32>
    %18 = vector.broadcast %17 : vector<2x16x1xf32> to vector<2x16x16xf32>
    %19 = arith.mulf %14, %18 : vector<2x16x16xf32>
    %20 = arith.truncf %19 : vector<2x16x16xf32> to vector<2x16x16xbf16>
    %cst_10 = arith.constant dense<0.000000e+00> : vector<2x16x32xf32>
    %21 = tpu.matmul %20, %8, %cst_10 {dimension_numbers = #tpu.dot_dimension_numbers<[2], [1], [1], [2], [0, 0, 0, 1, 1, 2], [0], [0]>} : vector<2x16x16xbf16>, vector<2x16x32xbf16>, vector<2x16x32xf32> -> vector<2x16x32xf32>
    %22 = vector.extract_strided_slice %0 {offsets = [0, 0, 32], sizes = [2, 16, 32], strides = [1, 1, 1]} : vector<2x16x64xf32> to vector<2x16x32xf32>
    %23 = arith.truncf %22 : vector<2x16x32xf32> to vector<2x16x32xbf16>
    %24 = vector.extract_strided_slice %1 {offsets = [0, 0, 32], sizes = [2, 16, 32], strides = [1, 1, 1]} : vector<2x16x64xf32> to vector<2x16x32xf32>
    %25 = arith.truncf %24 : vector<2x16x32xf32> to vector<2x16x32xbf16>
    %26 = vector.extract_strided_slice %2 {offsets = [0, 0, 32], sizes = [2, 16, 32], strides = [1, 1, 1]} : vector<2x16x64xf32> to vector<2x16x32xf32>
    %27 = arith.truncf %26 : vector<2x16x32xf32> to vector<2x16x32xbf16>
    %cst_11 = arith.constant dense<0.000000e+00> : vector<2x16x16xf32>
    %28 = tpu.matmul %23, %25, %cst_11 {dimension_numbers = #tpu.dot_dimension_numbers<[2], [2], [1], [1], [0, 0, 0, 1, 1, 1], [0], [0]>} : vector<2x16x32xbf16>, vector<2x16x32xbf16>, vector<2x16x16xf32> -> vector<2x16x16xf32>
    %cst_12 = arith.constant dense<0xFF800000> : vector<2x16xf32>
    %29 = vector.multi_reduction <maximumf>, %28, %cst_12 [2] : vector<2x16x16xf32> to vector<2x16xf32>
    %30 = vector.shape_cast %29 : vector<2x16xf32> to vector<2x16x1xf32>
    %31 = vector.broadcast %30 : vector<2x16x1xf32> to vector<2x16x16xf32>
    %32 = arith.subf %28, %31 : vector<2x16x16xf32>
    %33 = math.exp %32 : vector<2x16x16xf32>
    %cst_13 = arith.constant dense<0.000000e+00> : vector<2x16xf32>
    %34 = vector.multi_reduction <add>, %33, %cst_13 [2] : vector<2x16x16xf32> to vector<2x16xf32>
    %35 = vector.shape_cast %34 : vector<2x16xf32> to vector<2x16x1xf32>
    %36 = tpu.reciprocal %35 {approx = true} : vector<2x16x1xf32> -> vector<2x16x1xf32>
    %37 = vector.broadcast %36 : vector<2x16x1xf32> to vector<2x16x16xf32>
    %38 = arith.mulf %33, %37 : vector<2x16x16xf32>
    %39 = arith.truncf %38 : vector<2x16x16xf32> to vector<2x16x16xbf16>
    %cst_14 = arith.constant dense<0.000000e+00> : vector<2x16x32xf32>
    %40 = tpu.matmul %39, %27, %cst_14 {dimension_numbers = #tpu.dot_dimension_numbers<[2], [1], [1], [2], [0, 0, 0, 1, 1, 2], [0], [0]>} : vector<2x16x16xbf16>, vector<2x16x32xbf16>, vector<2x16x32xf32> -> vector<2x16x32xf32>
    %41 = tpu.concatenate %21, %40 in 2 : vector<2x16x32xf32>, vector<2x16x32xf32> -> vector<2x16x64xf32>
    %c0_15 = arith.constant 0 : index
    %c0_16 = arith.constant 0 : index
    %c0_17 = arith.constant 0 : index
    %42 = vector.load %arg4[%c0_15, %c0_16, %c0_17] : memref<2x16x64xf32, #tpu.memory_space<vmem>>, vector<2x16x64xf32>
    tpu.vector_store %arg4[%c0_15, %c0_16, %c0_17], %41 {strides = array<i32>} : memref<2x16x64xf32, #tpu.memory_space<vmem>>, vector<2x16x64xf32>,
    return
  }
  func.func @transform_0(%arg0: i32) -> (i32, i32, i32) {
    %c0_i32 = arith.constant 0 : i32
    %c0_i32_0 = arith.constant 0 : i32
    %c0_i32_1 = arith.constant 0 : i32
    return %arg0, %c0_i32, %c0_i32_0 : i32, i32, i32
  }
  func.func @transform_1(%arg0: i32) -> (i32, i32, i32) {
    %c0_i32 = arith.constant 0 : i32
    %c0_i32_0 = arith.constant 0 : i32
    %c0_i32_1 = arith.constant 0 : i32
    return %arg0, %c0_i32, %c0_i32_0 : i32, i32, i32
  }
  func.func @transform_2(%arg0: i32) -> (i32, i32, i32) {
    %c0_i32 = arith.constant 0 : i32
    %c0_i32_0 = arith.constant 0 : i32
    %c0_i32_1 = arith.constant 0 : i32
    return %arg0, %c0_i32, %c0_i32_0 : i32, i32, i32
  }
  func.func @transform_3(%arg0: i32) -> (i32, i32, i32) {
    %c0_i32 = arith.constant 0 : i32
    %c0_i32_0 = arith.constant 0 : i32
    %c0_i32_1 = arith.constant 0 : i32
    return %arg0, %c0_i32, %c0_i32_0 : i32, i32, i32
  }
}

</mosaic_0001>

<bundles_post_ra>
// kernel: attention_blocks_forward.8
= control target key start
LH: loop header
LB: loop body
LE: loop exit
PB: predicated region body
PF: predicated region fallthrough
CT: control target
= control target key end

     0   :  { %vm91_vm0 = vcmask 64512   ;;  %vm1204_vm1 = vcmask 1043456   ;;  %vm1926_vm2 = vcmask 195584   ;;  %s3935_s0 = inlined_call_operand.vmem [shape: f32[512,8], index: 0, kind: input, shape index: {}]   ;;  %s3936_s3 = inlined_call_operand.vmem [shape: f32[8,8], index: 3, kind: input, shape index: {}]   ;;  %s3937_s1 = inlined_call_operand.vmem [shape: f32[1,8], index: 1, kind: input, shape index: {}]   ;;  %s3938_s2 = inlined_call_operand.vmem [shape: f32[1,8], index: 2, kind: input, shape index: {}]   ;;  %s3939_s5 = inlined_call_operand.vmem [shape: f32[8,24], index: 5, kind: input, shape index: {}]   ;;  %s3940_s4 = inlined_call_operand.vmem [shape: f32[1,8], index: 4, kind: input, shape index: {}]   ;;  %s3941_s6 = inlined_call_operand.vmem [shape: f32[1,24], index: 6, kind: input, shape index: {}]   ;;  %s3942_s7 = inlined_call_operand.vmem [shape: f32[512,24], index: 7, kind: output, shape index: {}]  }
   0x1   :  { %v2436_v0 = vld [vmem:[%s3935_s0] sm:$0xff]  ;;  %v2441_v1 = vld [vmem:[%s3935_s0 + $0x10] sm:$0xff]  ;;  %v2446_v2 = vld [vmem:[%s3935_s0 + $0x8] sm:$0xff] }
   0x2   :  { %v92_v3 = vsel %vm91_vm0, %v2436_v0, 0.0  ;;  %v98_v4 = vsel %vm91_vm0, %v2441_v1, 0.0  ;;  %v2455_v5 = vld [vmem:[%s3935_s0 + $0x18] sm:$0xff]  ;;  %v95_v6 = vsel %vm91_vm0, %v2446_v2, 0.0  ;;  %v2464_v8 = vld [vmem:[%s3935_s0 + $0x20] sm:$0xff]  ;;  %v2469_v9 = vld [vmem:[%s3935_s0 + $0x28] sm:$0xff] }
   0x3   :  { %93 = vadd.xlane.f32.xlu0 %v92_v3  ;;  %99 = vadd.xlane.f32.xlu1 %v98_v4  ;;  %v101_v7 = vsel %vm91_vm0, %v2455_v5, 0.0  ;;  %v104_v10 = vsel %vm91_vm0, %v2464_v8, 0.0  ;;  %v107_v11 = vsel %vm91_vm0, %v2469_v9, 0.0  ;;  %v2478_v12 = vld [vmem:[%s3935_s0 + $0x30] sm:$0xff]  ;;  %v2483_v13 = vld [vmem:[%s3935_s0 + $0x38] sm:$0xff]  ;;  %v2492_v16 = vld [vmem:[%s3935_s0 + $0x40] sm:$0xff] }
   0x4   :  { %v110_v14 = vsel %vm91_vm0, %v2478_v12, 0.0  ;;  %v113_v15 = vsel %vm91_vm0, %v2483_v13, 0.0  ;;  %v2497_v17 = vld [vmem:[%s3935_s0 + $0x48] sm:$0xff]  ;;  %v116_v18 = vsel %vm91_vm0, %v2492_v16, 0.0  ;;  %v2506_v20 = vld [vmem:[%s3935_s0 + $0x50] sm:$0xff]  ;;  %v2511_v21 = vld [vmem:[%s3935_s0 + $0x58] sm:$0xff] }
   0x5   :  { %v119_v19 = vsel %vm91_vm0, %v2497_v17, 0.0  ;;  %v122_v22 = vsel %vm91_vm0, %v2506_v20, 0.0  ;;  %v125_v23 = vsel %vm91_vm0, %v2511_v21, 0.0  ;;  %v2520_v24 = vld [vmem:[%s3935_s0 + $0x60] sm:$0xff]  ;;  %v2525_v25 = vld [vmem:[%s3935_s0 + $0x68] sm:$0xff]  ;;  %v2534_v28 = vld [vmem:[%s3935_s0 + $0x70] sm:$0xff] }
   0x6   :  { %v128_v26 = vsel %vm91_vm0, %v2520_v24, 0.0  ;;  %v131_v27 = vsel %vm91_vm0, %v2525_v25, 0.0  ;;  %v2539_v29 = vld [vmem:[%s3935_s0 + $0x78] sm:$0xff]  ;;  %v134_v30 = vsel %vm91_vm0, %v2534_v28, 0.0  ;;  %v2548_v32 = vld [vmem:[%s3935_s0 + $0x80] sm:$0xff]  ;;  %v2553_v33 = vld [vmem:[%s3935_s0 + $0x88] sm:$0xff] }
   0x7   :  { %96 = vadd.xlane.f32.xlu0 %v95_v6  ;;  %102 = vadd.xlane.f32.xlu1 %v101_v7  ;;  %v137_v31 = vsel %vm91_vm0, %v2539_v29, 0.0  ;;  %v140_v34 = vsel %vm91_vm0, %v2548_v32, 0.0  ;;  %v143_v35 = vsel %vm91_vm0, %v2553_v33, 0.0  ;;  %v2562_v36 = vld [vmem:[%s3935_s0 + $0x90] sm:$0xff]  ;;  %v2567_v37 = vld [vmem:[%s3935_s0 + $0x98] sm:$0xff]  ;;  %v2576_v40 = vld [vmem:[%s3935_s0 + $0xa0] sm:$0xff] }
   0x8   :  { %v146_v38 = vsel %vm91_vm0, %v2562_v36, 0.0  ;;  %v149_v39 = vsel %vm91_vm0, %v2567_v37, 0.0  ;;  %v2581_v41 = vld [vmem:[%s3935_s0 + $0xa8] sm:$0xff]  ;;  %v152_v42 = vsel %vm91_vm0, %v2576_v40, 0.0  ;;  %v2590_v44 = vld [vmem:[%s3935_s0 + $0xb0] sm:$0xff]  ;;  %v2595_v45 = vld [vmem:[%s3935_s0 + $0xb8] sm:$0xff] }
   0x9   :  { %v155_v43 = vsel %vm91_vm0, %v2581_v41, 0.0  ;;  %v158_v46 = vsel %vm91_vm0, %v2590_v44, 0.0  ;;  %v161_v47 = vsel %vm91_vm0, %v2595_v45, 0.0  ;;  %v2604_v48 = vld [vmem:[%s3935_s0 + $0xc0] sm:$0xff]  ;;  %v2609_v49 = vld [vmem:[%s3935_s0 + $0xc8] sm:$0xff]  ;;  %v2618_v52 = vld [vmem:[%s3935_s0 + $0xd0] sm:$0xff] }
   0xa   :  { %v164_v50 = vsel %vm91_vm0, %v2604_v48, 0.0  ;;  %v167_v51 = vsel %vm91_vm0, %v2609_v49, 0.0  ;;  %v2623_v53 = vld [vmem:[%s3935_s0 + $0xd8] sm:$0xff]  ;;  %v170_v54 = vsel %vm91_vm0, %v2618_v52, 0.0  ;;  %v2632_v56 = vld [vmem:[%s3935_s0 + $0xe0] sm:$0xff]  ;;  %v2637_v57 = vld [vmem:[%s3935_s0 + $0xe8] sm:$0xff] }
   0xb   :  { %105 = vadd.xlane.f32.xlu0 %v104_v10  ;;  %108 = vadd.xlane.f32.xlu1 %v107_v11  ;;  %v173_v55 = vsel %vm91_vm0, %v2623_v53, 0.0  ;;  %v176_v58 = vsel %vm91_vm0, %v2632_v56, 0.0  ;;  %v179_v59 = vsel %vm91_vm0, %v2637_v57, 0.0  ;;  %v2646_v60 = vld [vmem:[%s3935_s0 + $0xf0] sm:$0xff]  ;;  %v2651_v61 = vld [vmem:[%s3935_s0 + $0xf8] sm:$0xff]  ;;  %v2660_v3 = vld [vmem:[%s3935_s0 + $0x100] sm:$0xff] }
   0xc   :  { %v182_v62 = vsel %vm91_vm0, %v2646_v60, 0.0  ;;  %v185_v63 = vsel %vm91_vm0, %v2651_v61, 0.0  ;;  %v2665_v4 = vld [vmem:[%s3935_s0 + $0x108] sm:$0xff]  ;;  %v188_v6 = vsel %vm91_vm0, %v2660_v3, 0.0  ;;  %v2674_v10 = vld [vmem:[%s3935_s0 + $0x110] sm:$0xff]  ;;  %v2679_v11 = vld [vmem:[%s3935_s0 + $0x118] sm:$0xff] }
   0xd   :  { %v191_v7 = vsel %vm91_vm0, %v2665_v4, 0.0 }
   0xf   :  { %111 = vadd.xlane.f32.xlu0 %v110_v14  ;;  %114 = vadd.xlane.f32.xlu1 %v113_v15  ;;  %v194_v14 = vsel %vm91_vm0, %v2674_v10, 0.0  ;;  %v197_v15 = vsel %vm91_vm0, %v2679_v11, 0.0 }
  0x13   :  { %117 = vadd.xlane.f32.xlu0 %v116_v18  ;;  %120 = vadd.xlane.f32.xlu1 %v119_v19  ;;  %v2688_v18 = vld [vmem:[%s3935_s0 + $0x120] sm:$0xff]  ;;  %v2693_v19 = vld [vmem:[%s3935_s0 + $0x128] sm:$0xff] }
  0x17   :  { %123 = vadd.xlane.f32.xlu0 %v122_v22  ;;  %126 = vadd.xlane.f32.xlu1 %v125_v23  ;;  %v200_v22 = vsel %vm91_vm0, %v2688_v18, 0.0  ;;  %v203_v23 = vsel %vm91_vm0, %v2693_v19, 0.0 }
  0x1b   :  { %129 = vadd.xlane.f32.xlu0 %v128_v26  ;;  %132 = vadd.xlane.f32.xlu1 %v131_v27  ;;  %v2702_v26 = vld [vmem:[%s3935_s0 + $0x130] sm:$0xff]  ;;  %v2707_v27 = vld [vmem:[%s3935_s0 + $0x138] sm:$0xff] }
  0x1f   :  { %135 = vadd.xlane.f32.xlu0 %v134_v30  ;;  %138 = vadd.xlane.f32.xlu1 %v137_v31  ;;  %v206_v30 = vsel %vm91_vm0, %v2702_v26, 0.0  ;;  %v209_v31 = vsel %vm91_vm0, %v2707_v27, 0.0 }
  0x23   :  { %141 = vadd.xlane.f32.xlu0 %v140_v34  ;;  %144 = vadd.xlane.f32.xlu1 %v143_v35  ;;  %v2716_v34 = vld [vmem:[%s3935_s0 + $0x140] sm:$0xff]  ;;  %v2721_v35 = vld [vmem:[%s3935_s0 + $0x148] sm:$0xff] }
  0x27   :  { %147 = vadd.xlane.f32.xlu0 %v146_v38  ;;  %150 = vadd.xlane.f32.xlu1 %v149_v39  ;;  %v212_v38 = vsel %vm91_vm0, %v2716_v34, 0.0  ;;  %v215_v39 = vsel %vm91_vm0, %v2721_v35, 0.0 }
  0x2b   :  { %153 = vadd.xlane.f32.xlu0 %v152_v42  ;;  %156 = vadd.xlane.f32.xlu1 %v155_v43  ;;  %v2730_v42 = vld [vmem:[%s3935_s0 + $0x150] sm:$0xff]  ;;  %v2735_v43 = vld [vmem:[%s3935_s0 + $0x158] sm:$0xff] }
  0x2f   :  { %159 = vadd.xlane.f32.xlu0 %v158_v46  ;;  %162 = vadd.xlane.f32.xlu1 %v161_v47  ;;  %v218_v46 = vsel %vm91_vm0, %v2730_v42, 0.0  ;;  %v221_v47 = vsel %vm91_vm0, %v2735_v43, 0.0 }
  0x33   :  { %165 = vadd.xlane.f32.xlu0 %v164_v50  ;;  %168 = vadd.xlane.f32.xlu1 %v167_v51  ;;  %v2744_v50 = vld [vmem:[%s3935_s0 + $0x160] sm:$0xff]  ;;  %v2749_v51 = vld [vmem:[%s3935_s0 + $0x168] sm:$0xff] }
  0x37   :  { %171 = vadd.xlane.f32.xlu0 %v170_v54  ;;  %174 = vadd.xlane.f32.xlu1 %v173_v55  ;;  %v224_v54 = vsel %vm91_vm0, %v2744_v50, 0.0  ;;  %v227_v55 = vsel %vm91_vm0, %v2749_v51, 0.0 }
  0x3b   :  { %177 = vadd.xlane.f32.xlu0 %v176_v58  ;;  %180 = vadd.xlane.f32.xlu1 %v179_v59  ;;  %v2758_v58 = vld [vmem:[%s3935_s0 + $0x170] sm:$0xff]  ;;  %v2763_v59 = vld [vmem:[%s3935_s0 + $0x178] sm:$0xff] }
  0x3f   :  { %183 = vadd.xlane.f32.xlu0 %v182_v62  ;;  %186 = vadd.xlane.f32.xlu1 %v185_v63  ;;  %v230_v62 = vsel %vm91_vm0, %v2758_v58, 0.0  ;;  %v233_v63 = vsel %vm91_vm0, %v2763_v59, 0.0 }
  0x43   :  { %189 = vadd.xlane.f32.xlu0 %v188_v6  ;;  %192 = vadd.xlane.f32.xlu1 %v191_v7  ;;  %v2772_v6 = vld [vmem:[%s3935_s0 + $0x180] sm:$0xff]  ;;  %v2777_v7 = vld [vmem:[%s3935_s0 + $0x188] sm:$0xff] }
  0x47   :  { %195 = vadd.xlane.f32.xlu0 %v194_v14  ;;  %198 = vadd.xlane.f32.xlu1 %v197_v15  ;;  %v236_v14 = vsel %vm91_vm0, %v2772_v6, 0.0  ;;  %v239_v15 = vsel %vm91_vm0, %v2777_v7, 0.0 }
  0x4b   :  { %201 = vadd.xlane.f32.xlu0 %v200_v22  ;;  %204 = vadd.xlane.f32.xlu1 %v203_v23  ;;  %v2786_v22 = vld [vmem:[%s3935_s0 + $0x190] sm:$0xff]  ;;  %v2791_v23 = vld [vmem:[%s3935_s0 + $0x198] sm:$0xff] }
  0x4c   :  { %3971 = vst [vmem:[#allocation2_spill] sm:$0xff] %v2786_v22  ;;  %3972 = vst [vmem:[#allocation3_spill] sm:$0xff] %v2791_v23 }
  0x4f   :  { %207 = vadd.xlane.f32.xlu0 %v206_v30  ;;  %210 = vadd.xlane.f32.xlu1 %v209_v31  ;;  %v242_v30 = vsel %vm91_vm0, %v2786_v22, 0.0  ;;  %v245_v31 = vsel %vm91_vm0, %v2791_v23, 0.0 }
  0x53   :  { %213 = vadd.xlane.f32.xlu0 %v212_v38  ;;  %216 = vadd.xlane.f32.xlu1 %v215_v39  ;;  %v2800_v38 = vld [vmem:[%s3935_s0 + $0x1a0] sm:$0xff]  ;;  %v2805_v39 = vld [vmem:[%s3935_s0 + $0x1a8] sm:$0xff] }
  0x54   :  { %3973 = vst [vmem:[#allocation4_spill] sm:$0xff] %v2800_v38  ;;  %3974 = vst [vmem:[#allocation5_spill] sm:$0xff] %v2805_v39 }
  0x57   :  { %219 = vadd.xlane.f32.xlu0 %v218_v46  ;;  %222 = vadd.xlane.f32.xlu1 %v221_v47  ;;  %v248_v46 = vsel %vm91_vm0, %v2800_v38, 0.0  ;;  %v251_v47 = vsel %vm91_vm0, %v2805_v39, 0.0 }
  0x5b   :  { %225 = vadd.xlane.f32.xlu0 %v224_v54  ;;  %228 = vadd.xlane.f32.xlu1 %v227_v55  ;;  %v2814_v54 = vld [vmem:[%s3935_s0 + $0x1b0] sm:$0xff]  ;;  %v2819_v55 = vld [vmem:[%s3935_s0 + $0x1b8] sm:$0xff] }
  0x5c   :  { %3975 = vst [vmem:[#allocation6_spill] sm:$0xff] %v2814_v54  ;;  %3976 = vst [vmem:[#allocation7_spill] sm:$0xff] %v2819_v55 }
  0x5f   :  { %231 = vadd.xlane.f32.xlu0 %v230_v62  ;;  %234 = vadd.xlane.f32.xlu1 %v233_v63  ;;  %v254_v62 = vsel %vm91_vm0, %v2814_v54, 0.0  ;;  %v257_v63 = vsel %vm91_vm0, %v2819_v55, 0.0 }
  0x63   :  { %237 = vadd.xlane.f32.xlu0 %v236_v14  ;;  %240 = vadd.xlane.f32.xlu1 %v239_v15  ;;  %v2828_v14 = vld [vmem:[%s3935_s0 + $0x1c0] sm:$0xff]  ;;  %v2833_v15 = vld [vmem:[%s3935_s0 + $0x1c8] sm:$0xff] }
  0x64   :  { %3977 = vst [vmem:[#allocation8_spill] sm:$0xff] %v2828_v14 }
  0x67   :  { %243 = vadd.xlane.f32.xlu0 %v242_v30  ;;  %246 = vadd.xlane.f32.xlu1 %v245_v31  ;;  %v260_v30 = vsel %vm91_vm0, %v2828_v14, 0.0  ;;  %v263_v31 = vsel %vm91_vm0, %v2833_v15, 0.0 }
  0x6b   :  { %249 = vadd.xlane.f32.xlu0 %v248_v46  ;;  %252 = vadd.xlane.f32.xlu1 %v251_v47 }
  0x6f   :  { %255 = vadd.xlane.f32.xlu0 %v254_v62  ;;  %258 = vadd.xlane.f32.xlu1 %v257_v63 }
  0x73   :  { %261 = vadd.xlane.f32.xlu0 %v260_v30  ;;  %264 = vadd.xlane.f32.xlu1 %v263_v31 }
  0x90   :  { %v94_v46 = vpop.xlane.xlu0 %93  ;;  %v100_v47 = vpop.xlane.xlu1 %99 }
  0x91   :  { %v285_v55 = vmul.f32 0.125, %v94_v46  ;;  %v287_v54 = vmul.f32 0.125, %v100_v47 }
  0x93   :  { %v2840_v39 = vsub.f32 %v2436_v0, %v285_v55  ;;  %v2843_v38 = vsub.f32 %v2441_v1, %v287_v54 }
  0x94   :  { %v97_v62 = vpop.xlane.xlu0 %96  ;;  %v103_v63 = vpop.xlane.xlu1 %102 }
  0x95   :  { %3978 = vst [vmem:[#allocation9_spill] sm:$0xff] %v2843_v38  ;;  %v286_v23 = vmul.f32 0.125, %v97_v62  ;;  %v288_v22 = vmul.f32 0.125, %v103_v63  ;;  %v413_v14 = vmul.f32 %v2840_v39, %v2840_v39  ;;  %v415_v30 = vmul.f32 %v2843_v38, %v2843_v38 }
  0x97   :  { %v2850_v31 = vsub.f32 %v2446_v2, %v286_v23  ;;  %v2853_v46 = vsub.f32 %v2455_v5, %v288_v22  ;;  %v477_v0 = vsel %vm91_vm0, %v413_v14, 0.0  ;;  %v483_v55 = vsel %vm91_vm0, %v415_v30, 0.0 }
  0x98   :  { %478 = vadd.xlane.f32.xlu0 %v477_v0  ;;  %v106_v1 = vpop.xlane.xlu0 %105  ;;  %v109_v54 = vpop.xlane.xlu1 %108 }
  0x99   :  { %v289_v47 = vmul.f32 0.125, %v106_v1  ;;  %v290_v62 = vmul.f32 0.125, %v109_v54  ;;  %v414_v63 = vmul.f32 %v2850_v31, %v2850_v31  ;;  %v416_v38 = vmul.f32 %v2853_v46, %v2853_v46 }
  0x9b   :  { %v2862_v2 = vsub.f32 %v2464_v8, %v289_v47  ;;  %v2865_v5 = vsub.f32 %v2469_v9, %v290_v62  ;;  %v480_v22 = vsel %vm91_vm0, %v414_v63, 0.0  ;;  %v486_v30 = vsel %vm91_vm0, %v416_v38, 0.0 }
  0x9c   :  { %484 = vadd.xlane.f32.xlu0 %v483_v55  ;;  %481 = vadd.xlane.f32.xlu1 %v480_v22  ;;  %v112_v23 = vpop.xlane.xlu0 %111  ;;  %v115_v14 = vpop.xlane.xlu1 %114 }
  0x9d   :  { %v291_v0 = vmul.f32 0.125, %v112_v23  ;;  %v292_v1 = vmul.f32 0.125, %v115_v14  ;;  %v417_v54 = vmul.f32 %v2862_v2, %v2862_v2  ;;  %v418_v8 = vmul.f32 %v2865_v5, %v2865_v5 }
  0x9f   :  { %v2874_v47 = vsub.f32 %v2478_v12, %v291_v0  ;;  %v2877_v9 = vsub.f32 %v2483_v13, %v292_v1  ;;  %v489_v55 = vsel %vm91_vm0, %v417_v54, 0.0  ;;  %v492_v63 = vsel %vm91_vm0, %v418_v8, 0.0 }
  0xa0   :  { %487 = vadd.xlane.f32.xlu1 %v486_v30  ;;  %490 = vadd.xlane.f32.xlu0 %v489_v55  ;;  %v118_v62 = vpop.xlane.xlu0 %117  ;;  %v121_v38 = vpop.xlane.xlu1 %120 }
  0xa1   :  { %v293_v22 = vmul.f32 0.125, %v118_v62  ;;  %v294_v23 = vmul.f32 0.125, %v121_v38  ;;  %v419_v14 = vmul.f32 %v2874_v47, %v2874_v47  ;;  %v420_v12 = vmul.f32 %v2877_v9, %v2877_v9 }
  0xa3   :  { %v2886_v0 = vsub.f32 %v2492_v16, %v293_v22  ;;  %v2889_v13 = vsub.f32 %v2497_v17, %v294_v23  ;;  %v495_v30 = vsel %vm91_vm0, %v419_v14, 0.0  ;;  %v498_v8 = vsel %vm91_vm0, %v420_v12, 0.0 }
  0xa4   :  { %493 = vadd.xlane.f32.xlu1 %v492_v63  ;;  %496 = vadd.xlane.f32.xlu0 %v495_v30  ;;  %v124_v1 = vpop.xlane.xlu0 %123  ;;  %v127_v54 = vpop.xlane.xlu1 %126 }
  0xa5   :  { %v295_v55 = vmul.f32 0.125, %v124_v1  ;;  %v296_v62 = vmul.f32 0.125, %v127_v54  ;;  %v421_v38 = vmul.f32 %v2886_v0, %v2886_v0  ;;  %v422_v16 = vmul.f32 %v2889_v13, %v2889_v13 }
  0xa7   :  { %v2898_v22 = vsub.f32 %v2506_v20, %v295_v55  ;;  %v2901_v17 = vsub.f32 %v2511_v21, %v296_v62  ;;  %v501_v63 = vsel %vm91_vm0, %v421_v38, 0.0  ;;  %v504_v12 = vsel %vm91_vm0, %v422_v16, 0.0 }
  0xa8   :  { %499 = vadd.xlane.f32.xlu1 %v498_v8  ;;  %502 = vadd.xlane.f32.xlu0 %v501_v63  ;;  %v130_v23 = vpop.xlane.xlu0 %129  ;;  %v133_v14 = vpop.xlane.xlu1 %132 }
  0xa9   :  { %v297_v30 = vmul.f32 0.125, %v130_v23  ;;  %v298_v1 = vmul.f32 0.125, %v133_v14  ;;  %v423_v54 = vmul.f32 %v2898_v22, %v2898_v22  ;;  %v424_v20 = vmul.f32 %v2901_v17, %v2901_v17 }
  0xab   :  { %v2910_v55 = vsub.f32 %v2520_v24, %v297_v30  ;;  %v2913_v21 = vsub.f32 %v2525_v25, %v298_v1  ;;  %v507_v8 = vsel %vm91_vm0, %v423_v54, 0.0  ;;  %v510_v16 = vsel %vm91_vm0, %v424_v20, 0.0 }
  0xac   :  { %505 = vadd.xlane.f32.xlu1 %v504_v12  ;;  %508 = vadd.xlane.f32.xlu0 %v507_v8  ;;  %v136_v62 = vpop.xlane.xlu0 %135  ;;  %v139_v38 = vpop.xlane.xlu1 %138 }
  0xad   :  { %v299_v63 = vmul.f32 0.125, %v136_v62  ;;  %v300_v23 = vmul.f32 0.125, %v139_v38  ;;  %v425_v14 = vmul.f32 %v2910_v55, %v2910_v55  ;;  %v426_v24 = vmul.f32 %v2913_v21, %v2913_v21 }
  0xaf   :  { %v2922_v30 = vsub.f32 %v2534_v28, %v299_v63  ;;  %v2925_v25 = vsub.f32 %v2539_v29, %v300_v23  ;;  %v513_v12 = vsel %vm91_vm0, %v425_v14, 0.0  ;;  %v516_v20 = vsel %vm91_vm0, %v426_v24, 0.0 }
  0xb0   :  { %511 = vadd.xlane.f32.xlu1 %v510_v16  ;;  %514 = vadd.xlane.f32.xlu0 %v513_v12  ;;  %v142_v1 = vpop.xlane.xlu0 %141  ;;  %v145_v54 = vpop.xlane.xlu1 %144 }
  0xb1   :  { %v301_v8 = vmul.f32 0.125, %v142_v1  ;;  %v302_v62 = vmul.f32 0.125, %v145_v54  ;;  %v427_v38 = vmul.f32 %v2922_v30, %v2922_v30  ;;  %v428_v28 = vmul.f32 %v2925_v25, %v2925_v25 }
  0xb3   :  { %v2934_v63 = vsub.f32 %v2548_v32, %v301_v8  ;;  %v2937_v29 = vsub.f32 %v2553_v33, %v302_v62  ;;  %v519_v16 = vsel %vm91_vm0, %v427_v38, 0.0  ;;  %v522_v24 = vsel %vm91_vm0, %v428_v28, 0.0 }
  0xb4   :  { %517 = vadd.xlane.f32.xlu1 %v516_v20  ;;  %520 = vadd.xlane.f32.xlu0 %v519_v16  ;;  %v148_v23 = vpop.xlane.xlu0 %147  ;;  %v151_v14 = vpop.xlane.xlu1 %150 }
  0xb5   :  { %3979 = vst [vmem:[#allocation10_spill] sm:$0xff] %v2937_v29  ;;  %v303_v12 = vmul.f32 0.125, %v148_v23  ;;  %v304_v1 = vmul.f32 0.125, %v151_v14  ;;  %v429_v54 = vmul.f32 %v2934_v63, %v2934_v63  ;;  %v430_v32 = vmul.f32 %v2937_v29, %v2937_v29 }
  0xb7   :  { %v2946_v8 = vsub.f32 %v2562_v36, %v303_v12  ;;  %v2949_v33 = vsub.f32 %v2567_v37, %v304_v1  ;;  %v525_v20 = vsel %vm91_vm0, %v429_v54, 0.0  ;;  %v528_v62 = vsel %vm91_vm0, %v430_v32, 0.0  ;;  %v2960_v37 = vld [vmem:[%s3935_s0 + $0x1d0] sm:$0xff] }
  0xb8   :  { %523 = vadd.xlane.f32.xlu1 %v522_v24  ;;  %526 = vadd.xlane.f32.xlu0 %v525_v20  ;;  %v154_v38 = vpop.xlane.xlu0 %153  ;;  %v157_v28 = vpop.xlane.xlu1 %156  ;;  %v266_v1 = vsel %vm91_vm0, %v2960_v37, 0.0 }
  0xb9   :  { %3980 = vst [vmem:[#allocation11_spill] sm:$0xff] %v2946_v8  ;;  %3981 = vst [vmem:[#allocation12_spill] sm:$0xff] %v2949_v33  ;;  %v431_v16 = vmul.f32 %v2946_v8, %v2946_v8  ;;  %v305_v23 = vmul.f32 0.125, %v154_v38  ;;  %v306_v14 = vmul.f32 0.125, %v157_v28  ;;  %v432_v36 = vmul.f32 %v2949_v33, %v2949_v33  ;;  %v2975_v28 = vld [vmem:[%s3935_s0 + $0x1d8] sm:$0xff] }
  0xbb   :  { %v531_v24 = vsel %vm91_vm0, %v431_v16, 0.0  ;;  %v2964_v12 = vsub.f32 %v2576_v40, %v305_v23  ;;  %v2969_v20 = vsub.f32 %v2581_v41, %v306_v14  ;;  %v534_v38 = vsel %vm91_vm0, %v432_v36, 0.0  ;;  %v1099_v16 = vld [vmem:[%s3936_s3] sm:$0xff] }
  0xbc   :  { %529 = vadd.xlane.f32.xlu1 %v528_v62  ;;  %532 = vadd.xlane.f32.xlu0 %v531_v24  ;;  %v160_v54 = vpop.xlane.xlu0 %159  ;;  %v163_v32 = vpop.xlane.xlu1 %162  ;;  %v269_v41 = vsel %vm91_vm0, %v2975_v28, 0.0  ;;  %v1100_v36 = vpack.c.bf16 %v1099_v16, %v1099_v16 }
  0xbd   :  { %3982 = vst [vmem:[#allocation13_spill] sm:$0xff] %v2964_v12  ;;  %3983 = vst [vmem:[#allocation14_spill] sm:$0xff] %v2969_v20  ;;  %v433_v40 = vmul.f32 %v2964_v12, %v2964_v12  ;;  %v307_v62 = vmul.f32 0.125, %v160_v54  ;;  %v308_v8 = vmul.f32 0.125, %v163_v32  ;;  %v434_v54 = vmul.f32 %v2969_v20, %v2969_v20  ;;  %v3006_v20 = vld [vmem:[%s3935_s0 + $0x1e8] sm:$0xff] }
  0xbe   :  { %2261 = vmatprep.subr.msk.bf16.mxu0 %vm1204_vm1, %v1100_v36  ;;  %v1206_v32 = vsel %vm1204_vm1, %v1100_v36, 0  ;;  %v275_v36 = vsel %vm91_vm0, %v3006_v20, 0.0 }
  0xbf   :  { %v537_v24 = vsel %vm91_vm0, %v433_v40, 0.0  ;;  %v2986_v33 = vsub.f32 %v2590_v44, %v307_v62  ;;  %v3000_v62 = vsub.f32 %v2595_v45, %v308_v8  ;;  %v540_v16 = vsel %vm91_vm0, %v434_v54, 0.0  ;;  %2130 = vmatpush3.bf16.msra.mxu0 %v1206_v32 }
  0xc0   :  { %535 = vadd.xlane.f32.xlu1 %v534_v38  ;;  %267 = vadd.xlane.f32.xlu0 %v266_v1  ;;  %v166_v23 = vpop.xlane.xlu0 %165  ;;  %v169_v14 = vpop.xlane.xlu1 %168  ;;  %v2993_v38 = vld [vmem:[%s3935_s0 + $0x1e0] sm:$0xff] }
  0xc1   :  { %3984 = vst [vmem:[#allocation15_spill] sm:$0xff] %v2986_v33  ;;  %3985 = vst [vmem:[#allocation16_spill] sm:$0xff] %v2993_v38  ;;  %v272_v1 = vsel %vm91_vm0, %v2993_v38, 0.0  ;;  %v310_v12 = vmul.f32 0.125, %v169_v14  ;;  %v436_v38 = vmul.f32 %v3000_v62, %v3000_v62 }
  0xc2   :  { %3986 = vst [vmem:[#allocation17_spill] sm:$0xff] %v3000_v62 }
  0xc3   :  { %v3024_v14 = vsub.f32 %v2609_v49, %v310_v12 }
  0xc4   :  { %270 = vadd.xlane.f32.xlu1 %v269_v41  ;;  %538 = vadd.xlane.f32.xlu0 %v537_v24  ;;  %v172_v40 = vpop.xlane.xlu0 %171  ;;  %v175_v44 = vpop.xlane.xlu1 %174  ;;  %v435_v41 = vmul.f32 %v2986_v33, %v2986_v33  ;;  %v309_v24 = vmul.f32 0.125, %v166_v23  ;;  %v3021_v23 = vld [vmem:[%s3935_s0 + $0x1f0] sm:$0xff] }
  0xc5   :  { %3987 = vst [vmem:[#allocation18_spill] sm:$0xff] %v3021_v23  ;;  %3988 = vst [vmem:[#allocation19_spill] sm:$0xff] %v3024_v14  ;;  %v278_v32 = vsel %vm91_vm0, %v3021_v23, 0.0 }
  0xc6   :  { %v543_v54 = vsel %vm91_vm0, %v435_v41, 0.0  ;;  %v3014_v29 = vsub.f32 %v2604_v48, %v309_v24  ;;  %v546_v24 = vsel %vm91_vm0, %v436_v38, 0.0 }
  0xc8   :  { %541 = vadd.xlane.f32.xlu1 %v540_v16  ;;  %273 = vadd.xlane.f32.xlu0 %v272_v1  ;;  %v178_v45 = vpop.xlane.xlu0 %177  ;;  %v181_v8 = vpop.xlane.xlu1 %180  ;;  %v311_v1 = vmul.f32 0.125, %v172_v40  ;;  %v312_v16 = vmul.f32 0.125, %v175_v44  ;;  %v3035_v40 = vld [vmem:[%s3935_s0 + $0x1f8] sm:$0xff]  ;;  %v437_v49 = vmul.f32 %v3014_v29, %v3014_v29 }
  0xc9   :  { %v313_v12 = vmul.f32 0.125, %v178_v45  ;;  %v281_v38 = vsel %vm91_vm0, %v3035_v40, 0.0 }
  0xca   :  { %v3030_v62 = vsub.f32 %v2618_v52, %v311_v1  ;;  %v3040_v44 = vsub.f32 %v2623_v53, %v312_v16  ;;  %v438_v52 = vmul.f32 %v3024_v14, %v3024_v14  ;;  %v549_v33 = vsel %vm91_vm0, %v437_v49, 0.0 }
  0xcb   :  { %v3048_v23 = vsub.f32 %v2632_v56, %v313_v12 }
  0xcc   :  { %276 = vadd.xlane.f32.xlu1 %v275_v36  ;;  %544 = vadd.xlane.f32.xlu0 %v543_v54  ;;  %v184_v48 = vpop.xlane.xlu0 %183  ;;  %v187_v41 = vpop.xlane.xlu1 %186  ;;  %v314_v36 = vmul.f32 0.125, %v181_v8  ;;  %v439_v45 = vmul.f32 %v3030_v62, %v3030_v62  ;;  %v552_v8 = vsel %vm91_vm0, %v438_v52, 0.0 }
  0xcd   :  { %v316_v16 = vmul.f32 0.125, %v187_v41 }
  0xce   :  { %v3053_v53 = vsub.f32 %v2637_v57, %v314_v36  ;;  %v555_v56 = vsel %vm91_vm0, %v439_v45, 0.0 }
  0xcf   :  { %v3065_v57 = vsub.f32 %v2651_v61, %v316_v16 }
  0xd0   :  { %547 = vadd.xlane.f32.xlu1 %v546_v24  ;;  %279 = vadd.xlane.f32.xlu0 %v278_v32  ;;  %v190_v54 = vpop.xlane.xlu0 %189  ;;  %v193_v1 = vpop.xlane.xlu1 %192  ;;  %v315_v32 = vmul.f32 0.125, %v184_v48  ;;  %v440_v24 = vmul.f32 %v3040_v44, %v3040_v44  ;;  %v441_v48 = vmul.f32 %v3048_v23, %v3048_v23  ;;  %v442_v36 = vmul.f32 %v3053_v53, %v3053_v53 }
  0xd2   :  { %v3060_v12 = vsub.f32 %v2646_v60, %v315_v32  ;;  %v558_v41 = vsel %vm91_vm0, %v440_v24, 0.0  ;;  %v561_v60 = vsel %vm91_vm0, %v441_v48, 0.0  ;;  %v444_v24 = vmul.f32 %v3065_v57, %v3065_v57 }
  0xd4   :  { %282 = vadd.xlane.f32.xlu1 %v281_v38  ;;  %550 = vadd.xlane.f32.xlu0 %v549_v33  ;;  %v196_v14 = vpop.xlane.xlu0 %195  ;;  %v199_v49 = vpop.xlane.xlu1 %198  ;;  %v317_v33 = vmul.f32 0.125, %v190_v54  ;;  %v318_v38 = vmul.f32 0.125, %v193_v1  ;;  %v443_v54 = vmul.f32 %v3060_v12, %v3060_v12  ;;  %v564_v1 = vsel %vm91_vm0, %v442_v36, 0.0 }
  0xd5   :  { %v320_v16 = vmul.f32 0.125, %v199_v49  ;;  %v570_v49 = vsel %vm91_vm0, %v444_v24, 0.0 }
  0xd6   :  { %v3072_v32 = vsub.f32 %v2660_v3, %v317_v33  ;;  %v3077_v61 = vsub.f32 %v2665_v4, %v318_v38  ;;  %v567_v3 = vsel %vm91_vm0, %v443_v54, 0.0 }
  0xd7   :  { %v3089_v4 = vsub.f32 %v2679_v11, %v320_v16 }
  0xd8   :  { %553 = vadd.xlane.f32.xlu1 %v552_v8  ;;  %556 = vadd.xlane.f32.xlu0 %v555_v56  ;;  %v202_v52 = vpop.xlane.xlu0 %201  ;;  %v205_v45 = vpop.xlane.xlu1 %204  ;;  %v319_v8 = vmul.f32 0.125, %v196_v14  ;;  %v445_v14 = vmul.f32 %v3072_v32, %v3072_v32  ;;  %v446_v36 = vmul.f32 %v3077_v61, %v3077_v61 }
  0xd9   :  { %v322_v38 = vmul.f32 0.125, %v205_v45  ;;  %v448_v24 = vmul.f32 %v3089_v4, %v3089_v4 }
  0xda   :  { %v3084_v33 = vsub.f32 %v2674_v10, %v319_v8  ;;  %v573_v10 = vsel %vm91_vm0, %v445_v14, 0.0  ;;  %v576_v45 = vsel %vm91_vm0, %v446_v36, 0.0 }
  0xdb   :  { %v3101_v11 = vsub.f32 %v2693_v19, %v322_v38 }
  0xdc   :  { %559 = vadd.xlane.f32.xlu1 %v558_v41  ;;  %562 = vadd.xlane.f32.xlu0 %v561_v60  ;;  %v208_v56 = vpop.xlane.xlu0 %207  ;;  %v211_v48 = vpop.xlane.xlu1 %210  ;;  %v321_v41 = vmul.f32 0.125, %v202_v52  ;;  %v447_v52 = vmul.f32 %v3084_v33, %v3084_v33 }
  0xdd   :  { %v324_v16 = vmul.f32 0.125, %v211_v48  ;;  %v582_v48 = vsel %vm91_vm0, %v448_v24, 0.0  ;;  %v450_v36 = vmul.f32 %v3101_v11, %v3101_v11 }
  0xde   :  { %v3096_v8 = vsub.f32 %v2688_v18, %v321_v41  ;;  %v579_v18 = vsel %vm91_vm0, %v447_v52, 0.0 }
  0xdf   :  { %v3113_v19 = vsub.f32 %v2707_v27, %v324_v16 }
  0xe0   :  { %565 = vadd.xlane.f32.xlu1 %v564_v1  ;;  %568 = vadd.xlane.f32.xlu0 %v567_v3  ;;  %v214_v60 = vpop.xlane.xlu0 %213  ;;  %v217_v54 = vpop.xlane.xlu1 %216  ;;  %v323_v1 = vmul.f32 0.125, %v208_v56  ;;  %v449_v56 = vmul.f32 %v3096_v8, %v3096_v8 }
  0xe1   :  { %v326_v38 = vmul.f32 0.125, %v217_v54  ;;  %v588_v54 = vsel %vm91_vm0, %v450_v36, 0.0  ;;  %v452_v24 = vmul.f32 %v3113_v19, %v3113_v19 }
  0xe2   :  { %v3108_v41 = vsub.f32 %v2702_v26, %v323_v1  ;;  %v585_v26 = vsel %vm91_vm0, %v449_v56, 0.0 }
  0xe3   :  { %v3125_v27 = vsub.f32 %v2721_v35, %v326_v38 }
  0xe4   :  { %571 = vadd.xlane.f32.xlu1 %v570_v49  ;;  %574 = vadd.xlane.f32.xlu0 %v573_v10  ;;  %v220_v3 = vpop.xlane.xlu0 %219  ;;  %v223_v14 = vpop.xlane.xlu1 %222  ;;  %v325_v49 = vmul.f32 0.125, %v214_v60  ;;  %v451_v60 = vmul.f32 %v3108_v41, %v3108_v41 }
  0xe5   :  { %v328_v16 = vmul.f32 0.125, %v223_v14  ;;  %v594_v14 = vsel %vm91_vm0, %v452_v24, 0.0  ;;  %v454_v36 = vmul.f32 %v3125_v27, %v3125_v27 }
  0xe6   :  { %v3120_v1 = vsub.f32 %v2716_v34, %v325_v49  ;;  %v591_v34 = vsel %vm91_vm0, %v451_v60, 0.0 }
  0xe7   :  { %v3137_v35 = vsub.f32 %v2735_v43, %v328_v16 }
  0xe8   :  { %577 = vadd.xlane.f32.xlu1 %v576_v45  ;;  %580 = vadd.xlane.f32.xlu0 %v579_v18  ;;  %v226_v10 = vpop.xlane.xlu0 %225  ;;  %v229_v52 = vpop.xlane.xlu1 %228  ;;  %v327_v45 = vmul.f32 0.125, %v220_v3  ;;  %v453_v3 = vmul.f32 %v3120_v1, %v3120_v1 }
  0xe9   :  { %v330_v38 = vmul.f32 0.125, %v229_v52  ;;  %v600_v52 = vsel %vm91_vm0, %v454_v36, 0.0  ;;  %v456_v24 = vmul.f32 %v3137_v35, %v3137_v35 }
  0xea   :  { %v3132_v49 = vsub.f32 %v2730_v42, %v327_v45  ;;  %v597_v42 = vsel %vm91_vm0, %v453_v3, 0.0 }
  0xeb   :  { %v3149_v43 = vsub.f32 %v2749_v51, %v330_v38 }
  0xec   :  { %583 = vadd.xlane.f32.xlu1 %v582_v48  ;;  %586 = vadd.xlane.f32.xlu0 %v585_v26  ;;  %v232_v18 = vpop.xlane.xlu0 %231  ;;  %v235_v56 = vpop.xlane.xlu1 %234  ;;  %v329_v48 = vmul.f32 0.125, %v226_v10  ;;  %v455_v10 = vmul.f32 %v3132_v49, %v3132_v49 }
  0xed   :  { %v332_v16 = vmul.f32 0.125, %v235_v56  ;;  %v606_v56 = vsel %vm91_vm0, %v456_v24, 0.0  ;;  %v458_v36 = vmul.f32 %v3149_v43, %v3149_v43 }
  0xee   :  { %v3144_v45 = vsub.f32 %v2744_v50, %v329_v48  ;;  %v603_v50 = vsel %vm91_vm0, %v455_v10, 0.0 }
  0xef   :  { %v3161_v51 = vsub.f32 %v2763_v59, %v332_v16 }
  0xf0   :  { %589 = vadd.xlane.f32.xlu1 %v588_v54  ;;  %592 = vadd.xlane.f32.xlu0 %v591_v34  ;;  %v238_v26 = vpop.xlane.xlu0 %237  ;;  %v241_v60 = vpop.xlane.xlu1 %240  ;;  %v331_v54 = vmul.f32 0.125, %v232_v18  ;;  %v457_v18 = vmul.f32 %v3144_v45, %v3144_v45 }
  0xf1   :  { %3989 = vst [vmem:[#allocation20_spill] sm:$0xff] %v3161_v51  ;;  %v334_v38 = vmul.f32 0.125, %v241_v60  ;;  %v612_v60 = vsel %vm91_vm0, %v458_v36, 0.0  ;;  %v460_v24 = vmul.f32 %v3161_v51, %v3161_v51 }
  0xf2   :  { %v3156_v48 = vsub.f32 %v2758_v58, %v331_v54  ;;  %v609_v10 = vsel %vm91_vm0, %v457_v18, 0.0  ;;  %v3991_v18 = vld [vmem:[#allocation2_spill] sm:$0xff] }
  0xf3   :  { %v3173_v59 = vsub.f32 %v2777_v7, %v334_v38  ;;  %v3993_v7 = vld [vmem:[#allocation3_spill] sm:$0xff] }
  0xf4   :  { %595 = vadd.xlane.f32.xlu1 %v594_v14  ;;  %598 = vadd.xlane.f32.xlu0 %v597_v42  ;;  %v244_v34 = vpop.xlane.xlu0 %243  ;;  %v247_v3 = vpop.xlane.xlu1 %246  ;;  %v333_v14 = vmul.f32 0.125, %v238_v26  ;;  %v459_v26 = vmul.f32 %v3156_v48, %v3156_v48 }
  0xf5   :  { %v335_v54 = vmul.f32 0.125, %v244_v34  ;;  %3990 = vst [vmem:[#allocation21_spill] sm:$0xff] %v3173_v59  ;;  %v336_v16 = vmul.f32 0.125, %v247_v3  ;;  %v618_v3 = vsel %vm91_vm0, %v460_v24, 0.0 }
  0xf6   :  { %v3168_v58 = vsub.f32 %v2772_v6, %v333_v14  ;;  %v615_v6 = vsel %vm91_vm0, %v459_v26, 0.0 }
  0xf7   :  { %v3180_v14 = vsub.f32 %v3991_v18, %v335_v54  ;;  %v3185_v38 = vsub.f32 %v3993_v7, %v336_v16  ;;  %v3995_v54 = vld [vmem:[#allocation4_spill] sm:$0xff]  ;;  %v3997_v16 = vld [vmem:[#allocation5_spill] sm:$0xff] }
  0xf8   :  { %601 = vadd.xlane.f32.xlu1 %v600_v52  ;;  %604 = vadd.xlane.f32.xlu0 %v603_v50  ;;  %v250_v42 = vpop.xlane.xlu0 %249  ;;  %v253_v52 = vpop.xlane.xlu1 %252  ;;  %v461_v34 = vmul.f32 %v3168_v58, %v3168_v58 }
  0xf9   :  { %3992 = vst [vmem:[#allocation2_spill] sm:$0xff] %v3180_v14  ;;  %3994 = vst [vmem:[#allocation3_spill] sm:$0xff] %v3185_v38  ;;  %v338_v36 = vmul.f32 0.125, %v253_v52 }
  0xfa   :  { %v621_v26 = vsel %vm91_vm0, %v461_v34, 0.0 }
  0xfb   :  { %v3197_v7 = vsub.f32 %v3997_v16, %v338_v36  ;;  %v4001_v36 = vld [vmem:[#allocation7_spill] sm:$0xff]  ;;  %v4003_v16 = vld [vmem:[#allocation8_spill] sm:$0xff] }
  0xfc   :  { %607 = vadd.xlane.f32.xlu1 %v606_v56  ;;  %610 = vadd.xlane.f32.xlu0 %v609_v10  ;;  %v256_v50 = vpop.xlane.xlu0 %255  ;;  %v337_v56 = vmul.f32 0.125, %v250_v42  ;;  %v462_v10 = vmul.f32 %v3173_v59, %v3173_v59  ;;  %v259_v51 = vpop.xlane.xlu1 %258  ;;  %v463_v42 = vmul.f32 %v3180_v14, %v3180_v14  ;;  %v464_v59 = vmul.f32 %v3185_v38, %v3185_v38 }
  0xfd   :  { %3998 = vst [vmem:[#allocation5_spill] sm:$0xff] %v3197_v7  ;;  %v340_v24 = vmul.f32 0.125, %v259_v51 }
  0xfe   :  { %v3192_v18 = vsub.f32 %v3995_v54, %v337_v56  ;;  %v624_v52 = vsel %vm91_vm0, %v462_v10, 0.0  ;;  %v627_v34 = vsel %vm91_vm0, %v463_v42, 0.0  ;;  %v3999_v56 = vld [vmem:[#allocation6_spill] sm:$0xff]  ;;  %v630_v51 = vsel %vm91_vm0, %v464_v59, 0.0 }
  0xff   :  { %v466_v10 = vmul.f32 %v3197_v7, %v3197_v7 }
 0x100   :  { %613 = vadd.xlane.f32.xlu1 %v612_v60  ;;  %616 = vadd.xlane.f32.xlu0 %v615_v6  ;;  %3996 = vst [vmem:[#allocation4_spill] sm:$0xff] %v3192_v18  ;;  %v339_v60 = vmul.f32 0.125, %v256_v50  ;;  %v262_v6 = vpop.xlane.xlu0 %261  ;;  %v465_v50 = vmul.f32 %v3192_v18, %v3192_v18 }
 0x101   :  { %v341_v14 = vmul.f32 0.125, %v262_v6 }
 0x102   :  { %v3204_v54 = vsub.f32 %v3999_v56, %v339_v60  ;;  %v633_v42 = vsel %vm91_vm0, %v465_v50, 0.0 }
 0x103   :  { %v3216_v60 = vsub.f32 %v4003_v16, %v341_v14 }
 0x104   :  { %619 = vadd.xlane.f32.xlu1 %v618_v3  ;;  %622 = vadd.xlane.f32.xlu0 %v621_v26  ;;  %4000 = vst [vmem:[#allocation6_spill] sm:$0xff] %v3204_v54  ;;  %v265_v3 = vpop.xlane.xlu1 %264  ;;  %v3209_v26 = vsub.f32 %v4001_v36, %v340_v24  ;;  %v467_v6 = vmul.f32 %v3204_v54, %v3204_v54 }
 0x105   :  { %4004 = vst [vmem:[#allocation8_spill] sm:$0xff] %v3216_v60  ;;  %v342_v56 = vmul.f32 0.125, %v265_v3  ;;  %v469_v14 = vmul.f32 %v3216_v60, %v3216_v60 }
 0x106   :  { %4002 = vst [vmem:[#allocation7_spill] sm:$0xff] %v3209_v26  ;;  %v639_v59 = vsel %vm91_vm0, %v467_v6, 0.0 }
 0x107   :  { %v3222_v24 = vsub.f32 %v2833_v15, %v342_v56  ;;  %v645_v3 = vsel %vm91_vm0, %v469_v14, 0.0 }
 0x108   :  { %625 = vadd.xlane.f32.xlu1 %v624_v52  ;;  %628 = vadd.xlane.f32.xlu0 %v627_v34  ;;  %v636_v52 = vsel %vm91_vm0, %v466_v10, 0.0  ;;  %v468_v34 = vmul.f32 %v3209_v26, %v3209_v26 }
 0x109   :  { %4005 = vst [vmem:[#allocation22_spill] sm:$0xff] %v3222_v24  ;;  %v470_v36 = vmul.f32 %v3222_v24, %v3222_v24 }
 0x10a   :  { %v642_v50 = vsel %vm91_vm0, %v468_v34, 0.0 }
 0x10b   :  { %v648_v15 = vsel %vm91_vm0, %v470_v36, 0.0 }
 0x10c   :  { %631 = vadd.xlane.f32.xlu1 %v630_v51  ;;  %634 = vadd.xlane.f32.xlu0 %v633_v42 }
 0x110   :  { %637 = vadd.xlane.f32.xlu1 %v636_v52  ;;  %640 = vadd.xlane.f32.xlu0 %v639_v59 }
 0x114   :  { %643 = vadd.xlane.f32.xlu1 %v642_v50  ;;  %646 = vadd.xlane.f32.xlu0 %v645_v3 }
 0x118   :  { %649 = vadd.xlane.f32.xlu1 %v648_v15 }
 0x125   :  { %v479_v51 = vpop.xlane.xlu0 %478 }
 0x126   :  { %v669_v10 = vmul.f32 0.125, %v479_v51 }
 0x128   :  { %v733_v42 = vadd.f32 1e-05, %v669_v10 }
 0x129   :  { %v482_v16 = vpop.xlane.xlu1 %481  ;;  %v485_v56 = vpop.xlane.xlu0 %484 }
 0x12a   :  { %2263 = vrsqrt.f32 %v733_v42  ;;  %v670_v6 = vmul.f32 0.125, %v482_v16  ;;  %v671_v52 = vmul.f32 0.125, %v485_v56 }
 0x12c   :  { %v734_v59 = vadd.f32 1e-05, %v670_v6  ;;  %v735_v34 = vadd.f32 1e-05, %v671_v52 }
 0x12d   :  { %v488_v60 = vpop.xlane.xlu1 %487  ;;  %v491_v14 = vpop.xlane.xlu0 %490 }
 0x12e   :  { %2265 = vrsqrt.f32 %v734_v59  ;;  %v672_v26 = vmul.f32 0.125, %v488_v60  ;;  %v673_v24 = vmul.f32 0.125, %v491_v14 }
 0x12f   :  { %2267 = vrsqrt.f32 %v735_v34 }
 0x130   :  { %v736_v50 = vadd.f32 1e-05, %v672_v26  ;;  %v737_v3 = vadd.f32 1e-05, %v673_v24  ;;  %v3238_v26 = vld [vmem:[%s3937_s1] ss:$0 sm:$0xff] }
 0x131   :  { %v494_v36 = vpop.xlane.xlu1 %493  ;;  %v497_v15 = vpop.xlane.xlu0 %496 }
 0x132   :  { %2269 = vrsqrt.f32 %v736_v50  ;;  %v674_v51 = vmul.f32 0.125, %v494_v36  ;;  %v675_v10 = vmul.f32 0.125, %v497_v15 }
 0x133   :  { %2271 = vrsqrt.f32 %v737_v3 }
 0x134   :  { %v2264_v54 = vpop.eup %2263  ;;  %v738_v42 = vadd.f32 1e-05, %v674_v51  ;;  %v739_v16 = vadd.f32 1e-05, %v675_v10 }
 0x135   :  { %v500_v56 = vpop.xlane.xlu1 %499  ;;  %v503_v6 = vpop.xlane.xlu0 %502  ;;  %v861_v52 = vmul.f32 %v2264_v54, %v2840_v39  ;;  %v4006_v39 = vld [vmem:[#allocation9_spill] sm:$0xff] }
 0x136   :  { %2273 = vrsqrt.f32 %v738_v42  ;;  %v676_v59 = vmul.f32 0.125, %v500_v56  ;;  %v677_v60 = vmul.f32 0.125, %v503_v6  ;;  %v3246_v56 = vld [vmem:[%s3938_s2] ss:$0 sm:$0xff] }
 0x137   :  { %2275 = vrsqrt.f32 %v739_v16  ;;  %v932_v51 = vmul.f32 %v3238_v26, %v861_v52 }
 0x138   :  { %v2266_v24 = vpop.eup %2265  ;;  %v740_v34 = vadd.f32 1e-05, %v676_v59  ;;  %v741_v14 = vadd.f32 1e-05, %v677_v60 }
 0x139   :  { %v2268_v50 = vpop.eup %2267  ;;  %v506_v3 = vpop.xlane.xlu1 %505  ;;  %v862_v15 = vmul.f32 %v2266_v24, %v2850_v31 }
 0x13a   :  { %v509_v36 = vpop.xlane.xlu0 %508  ;;  %v863_v54 = vmul.f32 %v2268_v50, %v4006_v39  ;;  %2277 = vrsqrt.f32 %v740_v34  ;;  %v678_v10 = vmul.f32 0.125, %v506_v3  ;;  %v1003_v34 = vadd.f32 %v3246_v56, %v932_v51 }
 0x13b   :  { %v679_v42 = vmul.f32 0.125, %v509_v36  ;;  %2279 = vrsqrt.f32 %v741_v14  ;;  %v933_v16 = vmul.f32 %v3238_v26, %v862_v15 }
 0x13c   :  { %v2270_v6 = vpop.eup %2269  ;;  %v742_v59 = vadd.f32 1e-05, %v678_v10  ;;  %v934_v3 = vmul.f32 %v3238_v26, %v863_v54 }
 0x13d   :  { %v743_v60 = vadd.f32 1e-05, %v679_v42  ;;  %v2272_v7 = vpop.eup %2271  ;;  %v864_v31 = vmul.f32 %v2270_v6, %v2853_v46  ;;  %v512_v52 = vpop.xlane.xlu1 %511  ;;  %v1004_v50 = vadd.f32 %v3246_v56, %v933_v16 }
 0x13e   :  { %v515_v24 = vpop.xlane.xlu0 %514  ;;  %v865_v36 = vmul.f32 %v2272_v7, %v2862_v2  ;;  %2281 = vrsqrt.f32 %v742_v59  ;;  %v680_v14 = vmul.f32 0.125, %v512_v52  ;;  %v1005_v54 = vadd.f32 %v3246_v56, %v934_v3 }
 0x13f   :  { %v681_v39 = vmul.f32 0.125, %v515_v24  ;;  %2283 = vrsqrt.f32 %v743_v60  ;;  %v1067_v15 = vpack.c.bf16 %v1004_v50, %v1003_v34  ;;  %v935_v10 = vmul.f32 %v3238_v26, %v864_v31 }
 0x140   :  { %v2274_v42 = vpop.eup %2273  ;;  %v744_v18 = vadd.f32 1e-05, %v680_v14  ;;  %v936_v7 = vmul.f32 %v3238_v26, %v865_v36 }
 0x141   :  { %v745_v46 = vadd.f32 1e-05, %v681_v39  ;;  %v2276_v6 = vpop.eup %2275  ;;  %v866_v38 = vmul.f32 %v2274_v42, %v2865_v5  ;;  %v518_v51 = vpop.xlane.xlu1 %517  ;;  %2131 = vmatprep.mubr.msk.bf16.mxu0 %vm91_vm0, %v1067_v15  ;;  %v1006_v2 = vadd.f32 %v3246_v56, %v935_v10 }
 0x142   :  { %v521_v16 = vpop.xlane.xlu0 %520  ;;  %v867_v59 = vmul.f32 %v2276_v6, %v2874_v47  ;;  %2285 = vrsqrt.f32 %v744_v18  ;;  %v682_v60 = vmul.f32 0.125, %v518_v51  ;;  %v1007_v36 = vadd.f32 %v3246_v56, %v936_v7 }
 0x143   :  { %v683_v31 = vmul.f32 0.125, %v521_v16  ;;  %2287 = vrsqrt.f32 %v745_v46  ;;  %v1068_v52 = vpack.c.bf16 %v1006_v2, %v1005_v54  ;;  %v937_v24 = vmul.f32 %v3238_v26, %v866_v38 }
 0x144   :  { %v2278_v5 = vpop.eup %2277  ;;  %v746_v34 = vadd.f32 1e-05, %v682_v60  ;;  %v938_v18 = vmul.f32 %v3238_v26, %v867_v59 }
 0x145   :  { %v747_v50 = vadd.f32 1e-05, %v683_v31  ;;  %v2280_v14 = vpop.eup %2279  ;;  %v868_v39 = vmul.f32 %v2278_v5, %v2877_v9  ;;  %v524_v3 = vpop.xlane.xlu1 %523  ;;  %2132 = vmatmul.mubr.msk.bf16.vlgmr.msra.gmra.mrb[0].mxu0 %vm91_vm0, %v1068_v52  ;;  %v1008_v47 = vadd.f32 %v3246_v56, %v937_v24 }
 0x146   :  { %v527_v15 = vpop.xlane.xlu0 %526  ;;  %v869_v10 = vmul.f32 %v2280_v14, %v2886_v0  ;;  %2289 = vrsqrt.f32 %v746_v34  ;;  %v684_v38 = vmul.f32 0.125, %v524_v3  ;;  %v1009_v59 = vadd.f32 %v3246_v56, %v938_v18 }
 0x147   :  { %v685_v42 = vmul.f32 0.125, %v527_v15  ;;  %2291 = vrsqrt.f32 %v747_v50  ;;  %v1069_v46 = vpack.c.bf16 %v1008_v47, %v1007_v36  ;;  %v939_v6 = vmul.f32 %v3238_v26, %v868_v39 }
 0x148   :  { %v2282_v9 = vpop.eup %2281  ;;  %v748_v51 = vadd.f32 1e-05, %v684_v38  ;;  %v940_v31 = vmul.f32 %v3238_v26, %v869_v10 }
 0x149   :  { %v749_v16 = vadd.f32 1e-05, %v685_v42  ;;  %v2284_v54 = vpop.eup %2283  ;;  %v870_v2 = vmul.f32 %v2282_v9, %v2889_v13  ;;  %v530_v7 = vpop.xlane.xlu1 %529  ;;  %2135 = vmatprep.mubr.msk.bf16.mxu0 %vm91_vm0, %v1069_v46  ;;  %v1010_v0 = vadd.f32 %v3246_v56, %v939_v6 }
 0x14a   :  { %v533_v60 = vpop.xlane.xlu0 %532  ;;  %v871_v52 = vmul.f32 %v2284_v54, %v2898_v22  ;;  %2293 = vrsqrt.f32 %v748_v51  ;;  %v686_v24 = vmul.f32 0.125, %v530_v7  ;;  %v1011_v18 = vadd.f32 %v3246_v56, %v940_v31 }
 0x14b   :  { %v687_v5 = vmul.f32 0.125, %v533_v60  ;;  %2295 = vrsqrt.f32 %v749_v16  ;;  %v1070_v34 = vpack.c.bf16 %v1010_v0, %v1009_v59  ;;  %v941_v50 = vmul.f32 %v3238_v26, %v870_v2 }
 0x14c   :  { %v2286_v13 = vpop.eup %2285  ;;  %v750_v14 = vadd.f32 1e-05, %v686_v24  ;;  %v942_v10 = vmul.f32 %v3238_v26, %v871_v52 }
 0x14d   :  { %v751_v39 = vadd.f32 1e-05, %v687_v5  ;;  %v2288_v3 = vpop.eup %2287  ;;  %v872_v15 = vmul.f32 %v2286_v13, %v2901_v17  ;;  %v536_v36 = vpop.xlane.xlu1 %535  ;;  %2136 = vmatmul.mubr.msk.bf16.gmra.mrb[4].mxu0 %vm91_vm0, %v1070_v34  ;;  %v1012_v22 = vadd.f32 %v3246_v56, %v941_v50 }
 0x14e   :  { %v268_v47 = vpop.xlane.xlu0 %267  ;;  %v873_v38 = vmul.f32 %v2288_v3, %v2910_v55  ;;  %2297 = vrsqrt.f32 %v750_v14  ;;  %v688_v42 = vmul.f32 0.125, %v536_v36  ;;  %v1013_v59 = vadd.f32 %v3246_v56, %v942_v10 }
 0x14f   :  { %v343_v46 = vmul.f32 0.125, %v268_v47  ;;  %2299 = vrsqrt.f32 %v751_v39  ;;  %v1071_v6 = vpack.c.bf16 %v1012_v22, %v1011_v18  ;;  %v943_v9 = vmul.f32 %v3238_v26, %v872_v15 }
 0x150   :  { %v2290_v17 = vpop.eup %2289  ;;  %v752_v51 = vadd.f32 1e-05, %v688_v42  ;;  %v944_v54 = vmul.f32 %v3238_v26, %v873_v38 }
 0x151   :  { %v3284_v16 = vsub.f32 %v2960_v37, %v343_v46  ;;  %v2292_v2 = vpop.eup %2291  ;;  %v874_v7 = vmul.f32 %v2290_v17, %v2913_v21  ;;  %v271_v60 = vpop.xlane.xlu1 %270  ;;  %2139 = vmatprep.mubr.msk.bf16.mxu0 %vm91_vm0, %v1071_v6  ;;  %v1014_v0 = vadd.f32 %v3246_v56, %v943_v9  ;;  %v4007_v9 = vld [vmem:[#allocation16_spill] sm:$0xff] }
 0x152   :  { %v539_v55 = vpop.xlane.xlu0 %538  ;;  %v875_v31 = vmul.f32 %v2292_v2, %v2922_v30  ;;  %2301 = vrsqrt.f32 %v752_v51  ;;  %v344_v52 = vmul.f32 0.125, %v271_v60  ;;  %v1015_v14 = vadd.f32 %v3246_v56, %v944_v54  ;;  %v4008_v2 = vld [vmem:[#allocation10_spill] sm:$0xff] }
 0x153   :  { %v689_v24 = vmul.f32 0.125, %v539_v55  ;;  %v1072_v37 = vpack.c.bf16 %v1014_v0, %v1013_v59  ;;  %v471_v5 = vmul.f32 %v3284_v16, %v3284_v16  ;;  %v945_v34 = vmul.f32 %v3238_v26, %v874_v7 }
 0x154   :  { %v2294_v21 = vpop.eup %2293  ;;  %v3296_v50 = vsub.f32 %v2975_v28, %v344_v52  ;;  %v946_v18 = vmul.f32 %v3238_v26, %v875_v31  ;;  %v4009_v31 = vld [vmem:[#allocation11_spill] sm:$0xff] }
 0x155   :  { %v753_v13 = vadd.f32 1e-05, %v689_v24  ;;  %v2296_v39 = vpop.eup %2295  ;;  %v876_v3 = vmul.f32 %v2294_v21, %v2925_v25  ;;  %v542_v30 = vpop.xlane.xlu1 %541  ;;  %2140 = vmatmul.mubr.msk.bf16.gmra.mrb[8].mxu0 %vm91_vm0, %v1072_v37  ;;  %v651_v15 = vsel %vm91_vm0, %v471_v5, 0.0  ;;  %v1016_v47 = vadd.f32 %v3246_v56, %v945_v34 }
 0x156   :  { %v274_v36 = vpop.xlane.xlu0 %273  ;;  %v877_v22 = vmul.f32 %v2296_v39, %v2934_v63  ;;  %v690_v28 = vmul.f32 0.125, %v542_v30  ;;  %652 = vadd.xlane.f32.xlu0 %v651_v15  ;;  %v472_v38 = vmul.f32 %v3296_v50, %v3296_v50  ;;  %v1017_v59 = vadd.f32 %v3246_v56, %v946_v18  ;;  %v4010_v30 = vld [vmem:[#allocation12_spill] sm:$0xff] }
 0x157   :  { %2303 = vrsqrt.f32 %v753_v13  ;;  %v345_v10 = vmul.f32 0.125, %v274_v36  ;;  %v1073_v25 = vpack.c.bf16 %v1016_v47, %v1015_v14  ;;  %v947_v42 = vmul.f32 %v3238_v26, %v876_v3 }
 0x158   :  { %v2298_v46 = vpop.eup %2297  ;;  %v754_v6 = vadd.f32 1e-05, %v690_v28  ;;  %v948_v51 = vmul.f32 %v3238_v26, %v877_v22  ;;  %v654_v7 = vsel %vm91_vm0, %v472_v38, 0.0 }
 0x159   :  { %v3309_v17 = vsub.f32 %v4007_v9, %v345_v10  ;;  %v2300_v54 = vpop.eup %2299  ;;  %v878_v63 = vmul.f32 %v2298_v46, %v4008_v2  ;;  %v277_v60 = vpop.xlane.xlu1 %276  ;;  %2143 = vmatprep.mubr.msk.bf16.mxu0 %vm91_vm0, %v1073_v25  ;;  %v1018_v0 = vadd.f32 %v3246_v56, %v947_v42  ;;  %655 = vadd.xlane.f32.xlu1 %v654_v7  ;;  %v4011_v9 = vld [vmem:[#allocation18_spill] sm:$0xff]  ;;  %v4012_v2 = vld [vmem:[#allocation13_spill] sm:$0xff] }
 0x15a   :  { %v545_v55 = vpop.xlane.xlu0 %544  ;;  %v879_v52 = vmul.f32 %v2300_v54, %v4009_v31  ;;  %2305 = vrsqrt.f32 %v754_v6  ;;  %v346_v24 = vmul.f32 0.125, %v277_v60  ;;  %v1019_v3 = vadd.f32 %v3246_v56, %v948_v51 }
 0x15b   :  { %v691_v37 = vmul.f32 0.125, %v545_v55  ;;  %v1074_v5 = vpack.c.bf16 %v1018_v0, %v1017_v59  ;;  %v473_v34 = vmul.f32 %v3309_v17, %v3309_v17  ;;  %v949_v21 = vmul.f32 %v3238_v26, %v878_v63 }
 0x15c   :  { %v2302_v13 = vpop.eup %2301  ;;  %v3322_v14 = vsub.f32 %v3006_v20, %v346_v24  ;;  %v950_v28 = vmul.f32 %v3238_v26, %v879_v52 }
 0x15d   :  { %v755_v39 = vadd.f32 1e-05, %v691_v37  ;;  %v880_v15 = vmul.f32 %v2302_v13, %v4010_v30  ;;  %v548_v36 = vpop.xlane.xlu1 %547  ;;  %2144 = vmatmul.mubr.msk.bf16.gmra.mrb[12].mxu0 %vm91_vm0, %v1074_v5  ;;  %v657_v47 = vsel %vm91_vm0, %v473_v34, 0.0  ;;  %v1020_v22 = vadd.f32 %v3246_v56, %v949_v21  ;;  %v4013_v13 = vld [vmem:[#allocation14_spill] sm:$0xff] }
 0x15e   :  { %v280_v18 = vpop.xlane.xlu0 %279  ;;  %v692_v10 = vmul.f32 0.125, %v548_v36  ;;  %658 = vadd.xlane.f32.xlu0 %v657_v47  ;;  %v474_v38 = vmul.f32 %v3322_v14, %v3322_v14  ;;  %v1021_v55 = vadd.f32 %v3246_v56, %v950_v28 }
 0x15f   :  { %2307 = vrsqrt.f32 %v755_v39  ;;  %v347_v20 = vmul.f32 0.125, %v280_v18  ;;  %v1075_v25 = vpack.c.bf16 %v1020_v22, %v1019_v3  ;;  %v951_v42 = vmul.f32 %v3238_v26, %v880_v15 }
 0x160   :  { %v756_v6 = vadd.f32 1e-05, %v692_v10  ;;  %v660_v54 = vsel %vm91_vm0, %v474_v38, 0.0  ;;  %v4014_v38 = vld [vmem:[#allocation15_spill] sm:$0xff] }
 0x161   :  { %v2304_v46 = vpop.eup %2303  ;;  %v3334_v51 = vsub.f32 %v4011_v9, %v347_v20  ;;  %661 = vadd.xlane.f32.xlu1 %v660_v54  ;;  %v283_v7 = vpop.xlane.xlu1 %282  ;;  %2147 = vmatprep.mubr.msk.bf16.mxu0 %vm91_vm0, %v1075_v25  ;;  %v1022_v59 = vadd.f32 %v3246_v56, %v951_v42 }
 0x162   :  { %v881_v63 = vmul.f32 %v2304_v46, %v4012_v2  ;;  %v551_v60 = vpop.xlane.xlu0 %550  ;;  %2309 = vrsqrt.f32 %v756_v6  ;;  %v348_v0 = vmul.f32 0.125, %v283_v7 }
 0x163   :  { %v693_v31 = vmul.f32 0.125, %v551_v60  ;;  %v475_v52 = vmul.f32 %v3334_v51, %v3334_v51  ;;  %v1076_v24 = vpack.c.bf16 %v1022_v59, %v1021_v55  ;;  %v4015_v59 = vld [vmem:[#allocation17_spill] sm:$0xff] }
 0x164   :  { %v2306_v37 = vpop.eup %2305  ;;  %v3344_v5 = vsub.f32 %v3035_v40, %v348_v0  ;;  %v952_v15 = vmul.f32 %v3238_v26, %v881_v63 }
 0x165   :  { %v757_v34 = vadd.f32 1e-05, %v693_v31  ;;  %v663_v21 = vsel %vm91_vm0, %v475_v52, 0.0  ;;  %v882_v39 = vmul.f32 %v2306_v37, %v4013_v13  ;;  %v554_v3 = vpop.xlane.xlu1 %553  ;;  %2148 = vmatmul.mubr.msk.bf16.gmra.mrb[16].mxu0 %vm91_vm0, %v1076_v24 }
 0x166   :  { %664 = vadd.xlane.f32.xlu0 %v663_v21  ;;  %v557_v30 = vpop.xlane.xlu0 %556  ;;  %v694_v36 = vmul.f32 0.125, %v554_v3  ;;  %v476_v18 = vmul.f32 %v3344_v5, %v3344_v5  ;;  %v1023_v6 = vadd.f32 %v3246_v56, %v952_v15 }
 0x167   :  { %2311 = vrsqrt.f32 %v757_v34  ;;  %v695_v47 = vmul.f32 0.125, %v557_v30  ;;  %v953_v40 = vmul.f32 %v3238_v26, %v882_v39 }
 0x168   :  { %v758_v28 = vadd.f32 1e-05, %v694_v36  ;;  %v666_v20 = vsel %vm91_vm0, %v476_v18, 0.0 }
 0x169   :  { %v2308_v22 = vpop.eup %2307  ;;  %v759_v10 = vadd.f32 1e-05, %v695_v47  ;;  %667 = vadd.xlane.f32.xlu1 %v666_v20  ;;  %v560_v42 = vpop.xlane.xlu1 %559  ;;  %v1024_v9 = vadd.f32 %v3246_v56, %v953_v40 }
 0x16a   :  { %v883_v25 = vmul.f32 %v2308_v22, %v4014_v38  ;;  %v563_v46 = vpop.xlane.xlu0 %562  ;;  %2313 = vrsqrt.f32 %v758_v28  ;;  %v696_v54 = vmul.f32 0.125, %v560_v42  ;;  %v4016_v42 = vld [vmem:[#allocation19_spill] sm:$0xff] }
 0x16b   :  { %v697_v2 = vmul.f32 0.125, %v563_v46  ;;  %2315 = vrsqrt.f32 %v759_v10  ;;  %v1077_v63 = vpack.c.bf16 %v1024_v9, %v1023_v6 }
 0x16c   :  { %v2310_v7 = vpop.eup %2309  ;;  %v760_v60 = vadd.f32 1e-05, %v696_v54  ;;  %v954_v24 = vmul.f32 %v3238_v26, %v883_v25 }
 0x16d   :  { %v761_v55 = vadd.f32 1e-05, %v697_v2  ;;  %v884_v0 = vmul.f32 %v2310_v7, %v4015_v59  ;;  %v566_v31 = vpop.xlane.xlu1 %565  ;;  %2151 = vmatprep.mubr.msk.bf16.mxu0 %vm91_vm0, %v1077_v63 }
 0x16e   :  { %v569_v52 = vpop.xlane.xlu0 %568  ;;  %2317 = vrsqrt.f32 %v760_v60  ;;  %v698_v37 = vmul.f32 0.125, %v566_v31  ;;  %v1025_v47 = vadd.f32 %v3246_v56, %v954_v24 }
 0x16f   :  { %v699_v34 = vmul.f32 0.125, %v569_v52  ;;  %2319 = vrsqrt.f32 %v761_v55  ;;  %v955_v21 = vmul.f32 %v3238_v26, %v884_v0 }
 0x170   :  { %v762_v39 = vadd.f32 1e-05, %v698_v37 }
 0x171   :  { %v2312_v13 = vpop.eup %2311  ;;  %v763_v3 = vadd.f32 1e-05, %v699_v34  ;;  %v572_v15 = vpop.xlane.xlu1 %571  ;;  %v1026_v18 = vadd.f32 %v3246_v56, %v955_v21 }
 0x172   :  { %v885_v30 = vmul.f32 %v2312_v13, %v3014_v29  ;;  %v575_v36 = vpop.xlane.xlu0 %574  ;;  %2321 = vrsqrt.f32 %v762_v39  ;;  %v700_v40 = vmul.f32 0.125, %v572_v15 }
 0x173   :  { %v701_v22 = vmul.f32 0.125, %v575_v36  ;;  %2323 = vrsqrt.f32 %v763_v3  ;;  %v1078_v28 = vpack.c.bf16 %v1026_v18, %v1025_v47 }
 0x174   :  { %v2314_v10 = vpop.eup %2313  ;;  %v764_v20 = vadd.f32 1e-05, %v700_v40  ;;  %v956_v9 = vmul.f32 %v3238_v26, %v885_v30 }
 0x175   :  { %v765_v38 = vadd.f32 1e-05, %v701_v22  ;;  %v2316_v25 = vpop.eup %2315  ;;  %v886_v46 = vmul.f32 %v2314_v10, %v4016_v42  ;;  %v578_v6 = vpop.xlane.xlu1 %577  ;;  %2152 = vmatmul.mubr.msk.bf16.gmra.mrb[20].mxu0 %vm91_vm0, %v1078_v28 }
 0x176   :  { %v581_v29 = vpop.xlane.xlu0 %580  ;;  %v887_v54 = vmul.f32 %v2316_v25, %v3030_v62  ;;  %2325 = vrsqrt.f32 %v764_v20  ;;  %v702_v2 = vmul.f32 0.125, %v578_v6  ;;  %v1027_v37 = vadd.f32 %v3246_v56, %v956_v9 }
 0x177   :  { %v703_v63 = vmul.f32 0.125, %v581_v29  ;;  %2327 = vrsqrt.f32 %v765_v38  ;;  %v957_v7 = vmul.f32 %v3238_v26, %v886_v46 }
 0x178   :  { %v2318_v60 = vpop.eup %2317  ;;  %v766_v55 = vadd.f32 1e-05, %v702_v2  ;;  %v958_v62 = vmul.f32 %v3238_v26, %v887_v54 }
 0x179   :  { %v767_v59 = vadd.f32 1e-05, %v703_v63  ;;  %v2320_v0 = vpop.eup %2319  ;;  %v888_v31 = vmul.f32 %v2318_v60, %v3040_v44  ;;  %v584_v52 = vpop.xlane.xlu1 %583  ;;  %v1028_v34 = vadd.f32 %v3246_v56, %v957_v7 }
 0x17a   :  { %v587_v24 = vpop.xlane.xlu0 %586  ;;  %v889_v21 = vmul.f32 %v2320_v0, %v3048_v23  ;;  %2329 = vrsqrt.f32 %v766_v55  ;;  %v704_v13 = vmul.f32 0.125, %v584_v52  ;;  %v1029_v28 = vadd.f32 %v3246_v56, %v958_v62 }
 0x17b   :  { %v705_v39 = vmul.f32 0.125, %v587_v24  ;;  %2331 = vrsqrt.f32 %v767_v59  ;;  %v1079_v3 = vpack.c.bf16 %v1028_v34, %v1027_v37  ;;  %v959_v30 = vmul.f32 %v3238_v26, %v888_v31 }
 0x17c   :  { %v2322_v15 = vpop.eup %2321  ;;  %v768_v36 = vadd.f32 1e-05, %v704_v13  ;;  %v960_v10 = vmul.f32 %v3238_v26, %v889_v21 }
 0x17d   :  { %v769_v44 = vadd.f32 1e-05, %v705_v39  ;;  %v2324_v47 = vpop.eup %2323  ;;  %v890_v18 = vmul.f32 %v2322_v15, %v3053_v53  ;;  %v590_v40 = vpop.xlane.xlu1 %589  ;;  %2155 = vmatprep.mubr.msk.bf16.mxu0 %vm91_vm0, %v1079_v3  ;;  %v1030_v23 = vadd.f32 %v3246_v56, %v959_v30 }
 0x17e   :  { %v593_v22 = vpop.xlane.xlu0 %592  ;;  %v891_v20 = vmul.f32 %v2324_v47, %v3060_v12  ;;  %2333 = vrsqrt.f32 %v768_v36  ;;  %v706_v38 = vmul.f32 0.125, %v590_v40  ;;  %v1031_v7 = vadd.f32 %v3246_v56, %v960_v10 }
 0x17f   :  { %v707_v25 = vmul.f32 0.125, %v593_v22  ;;  %2335 = vrsqrt.f32 %v769_v44  ;;  %v1080_v42 = vpack.c.bf16 %v1030_v23, %v1029_v28  ;;  %v961_v46 = vmul.f32 %v3238_v26, %v890_v18 }
 0x180   :  { %v2326_v53 = vpop.eup %2325  ;;  %v770_v6 = vadd.f32 1e-05, %v706_v38  ;;  %v962_v60 = vmul.f32 %v3238_v26, %v891_v20 }
 0x181   :  { %v771_v29 = vadd.f32 1e-05, %v707_v25  ;;  %v2328_v9 = vpop.eup %2327  ;;  %v892_v54 = vmul.f32 %v2326_v53, %v3065_v57  ;;  %v596_v2 = vpop.xlane.xlu1 %595  ;;  %2156 = vmatmul.mubr.msk.bf16.gmra.mrb[24].mxu0 %vm91_vm0, %v1080_v42  ;;  %v1032_v12 = vadd.f32 %v3246_v56, %v961_v46 }
 0x182   :  { %v599_v63 = vpop.xlane.xlu0 %598  ;;  %v893_v55 = vmul.f32 %v2328_v9, %v3072_v32  ;;  %2337 = vrsqrt.f32 %v770_v6  ;;  %v708_v59 = vmul.f32 0.125, %v596_v2  ;;  %v1033_v39 = vadd.f32 %v3246_v56, %v962_v60 }
 0x183   :  { %v709_v0 = vmul.f32 0.125, %v599_v63  ;;  %2339 = vrsqrt.f32 %v771_v29  ;;  %v1081_v31 = vpack.c.bf16 %v1032_v12, %v1031_v7  ;;  %v963_v52 = vmul.f32 %v3238_v26, %v892_v54 }
 0x184   :  { %v2330_v57 = vpop.eup %2329  ;;  %v772_v24 = vadd.f32 1e-05, %v708_v59  ;;  %v964_v3 = vmul.f32 %v3238_v26, %v893_v55 }
 0x185   :  { %v773_v37 = vadd.f32 1e-05, %v709_v0  ;;  %v2332_v34 = vpop.eup %2331  ;;  %v894_v62 = vmul.f32 %v2330_v57, %v3077_v61  ;;  %v602_v21 = vpop.xlane.xlu1 %601  ;;  %2159 = vmatprep.mubr.msk.bf16.mxu0 %vm91_vm0, %v1081_v31  ;;  %v1034_v32 = vadd.f32 %v3246_v56, %v963_v52 }
 0x186   :  { %v605_v13 = vpop.xlane.xlu0 %604  ;;  %v895_v30 = vmul.f32 %v2332_v34, %v3084_v33  ;;  %2341 = vrsqrt.f32 %v772_v24  ;;  %v710_v15 = vmul.f32 0.125, %v602_v21  ;;  %v1035_v20 = vadd.f32 %v3246_v56, %v964_v3 }
 0x187   :  { %v711_v36 = vmul.f32 0.125, %v605_v13  ;;  %2343 = vrsqrt.f32 %v773_v37  ;;  %v1082_v44 = vpack.c.bf16 %v1034_v32, %v1033_v39  ;;  %v965_v47 = vmul.f32 %v3238_v26, %v894_v62 }
 0x188   :  { %v2334_v61 = vpop.eup %2333  ;;  %v774_v18 = vadd.f32 1e-05, %v710_v15  ;;  %v966_v38 = vmul.f32 %v3238_v26, %v895_v30 }
 0x189   :  { %v775_v40 = vadd.f32 1e-05, %v711_v36  ;;  %v2336_v22 = vpop.eup %2335  ;;  %v896_v28 = vmul.f32 %v2334_v61, %v3089_v4  ;;  %v608_v23 = vpop.xlane.xlu1 %607  ;;  %2160 = vmatmul.mubr.msk.bf16.gmra.mrb[28].mxu0 %vm91_vm0, %v1082_v44  ;;  %v1036_v33 = vadd.f32 %v3246_v56, %v965_v47 }
 0x18a   :  { %v611_v10 = vpop.xlane.xlu0 %610  ;;  %v897_v25 = vmul.f32 %v2336_v22, %v3096_v8  ;;  %2345 = vrsqrt.f32 %v774_v18  ;;  %v712_v42 = vmul.f32 0.125, %v608_v23  ;;  %v1037_v12 = vadd.f32 %v3246_v56, %v966_v38 }
 0x18b   :  { %v713_v46 = vmul.f32 0.125, %v611_v10  ;;  %2347 = vrsqrt.f32 %v775_v40  ;;  %v1083_v53 = vpack.c.bf16 %v1036_v33, %v1035_v20  ;;  %v967_v6 = vmul.f32 %v3238_v26, %v896_v28 }
 0x18c   :  { %v2338_v4 = vpop.eup %2337  ;;  %v776_v29 = vadd.f32 1e-05, %v712_v42  ;;  %v968_v60 = vmul.f32 %v3238_v26, %v897_v25 }
 0x18d   :  { %v777_v9 = vadd.f32 1e-05, %v713_v46  ;;  %v2340_v54 = vpop.eup %2339  ;;  %v898_v2 = vmul.f32 %v2338_v4, %v3101_v11  ;;  %v614_v63 = vpop.xlane.xlu1 %613  ;;  %2163 = vmatprep.mubr.msk.bf16.mxu0 %vm91_vm0, %v1083_v53  ;;  %v1038_v8 = vadd.f32 %v3246_v56, %v967_v6 }
 0x18e   :  { %v617_v7 = vpop.xlane.xlu0 %616  ;;  %v899_v55 = vmul.f32 %v2340_v54, %v3108_v41  ;;  %2349 = vrsqrt.f32 %v776_v29  ;;  %v714_v59 = vmul.f32 0.125, %v614_v63  ;;  %v1039_v13 = vadd.f32 %v3246_v56, %v968_v60 }
 0x18f   :  { %v715_v0 = vmul.f32 0.125, %v617_v7  ;;  %2351 = vrsqrt.f32 %v777_v9  ;;  %v1084_v31 = vpack.c.bf16 %v1038_v8, %v1037_v12  ;;  %v969_v52 = vmul.f32 %v3238_v26, %v898_v2 }
 0x190   :  { %v2342_v11 = vpop.eup %2341  ;;  %v778_v57 = vadd.f32 1e-05, %v714_v59  ;;  %v970_v39 = vmul.f32 %v3238_v26, %v899_v55 }
 0x191   :  { %v779_v24 = vadd.f32 1e-05, %v715_v0  ;;  %v2344_v37 = vpop.eup %2343  ;;  %v900_v34 = vmul.f32 %v2342_v11, %v3113_v19  ;;  %v620_v62 = vpop.xlane.xlu1 %619  ;;  %2164 = vmatmul.mubr.msk.bf16.gmra.mrb[32].mxu0 %vm91_vm0, %v1084_v31  ;;  %v1040_v41 = vadd.f32 %v3246_v56, %v969_v52  ;;  %v1529_v0 = vld [vmem:[%s3939_s5] sm:$0xff] }
 0x192   :  { %v623_v21 = vpop.xlane.xlu0 %622  ;;  %v901_v32 = vmul.f32 %v2344_v37, %v3120_v1  ;;  %2353 = vrsqrt.f32 %v778_v57  ;;  %v716_v3 = vmul.f32 0.125, %v620_v62  ;;  %v1041_v28 = vadd.f32 %v3246_v56, %v970_v39 }
 0x193   :  { %v717_v30 = vmul.f32 0.125, %v623_v21  ;;  %2355 = vrsqrt.f32 %v779_v24  ;;  %v1085_v15 = vpack.c.bf16 %v1040_v41, %v1039_v13  ;;  %v971_v36 = vmul.f32 %v3238_v26, %v900_v34 }
 0x194   :  { %v2346_v19 = vpop.eup %2345  ;;  %v780_v44 = vadd.f32 1e-05, %v716_v3  ;;  %v972_v23 = vmul.f32 %v3238_v26, %v901_v32  ;;  %v1530_v37 = vpack.c.bf16 %v1529_v0, %v1529_v0 }
 0x195   :  { %v781_v47 = vadd.f32 1e-05, %v717_v30  ;;  %v2348_v61 = vpop.eup %2347  ;;  %v902_v18 = vmul.f32 %v2346_v19, %v3125_v27  ;;  %v626_v40 = vpop.xlane.xlu1 %625  ;;  %2167 = vmatprep.mubr.msk.bf16.mxu0 %vm91_vm0, %v1085_v15  ;;  %v1042_v1 = vadd.f32 %v3246_v56, %v971_v36  ;;  %v4017_v36 = vld [vmem:[#allocation20_spill] sm:$0xff] }
 0x196   :  { %v629_v22 = vpop.xlane.xlu0 %628  ;;  %v903_v10 = vmul.f32 %v2348_v61, %v3132_v49  ;;  %2357 = vrsqrt.f32 %v780_v44  ;;  %v718_v20 = vmul.f32 0.125, %v626_v40  ;;  %v1043_v9 = vadd.f32 %v3246_v56, %v972_v23  ;;  %2262 = vmatprep.subr.msk.bf16.mxu1 %vm1204_vm1, %v1530_v37 }
 0x197   :  { %v719_v33 = vmul.f32 0.125, %v629_v22  ;;  %2359 = vrsqrt.f32 %v781_v47  ;;  %v1086_v38 = vpack.c.bf16 %v1042_v1, %v1041_v28  ;;  %v973_v25 = vmul.f32 %v3238_v26, %v902_v18 }
 0x198   :  { %v2350_v27 = vpop.eup %2349  ;;  %v782_v42 = vadd.f32 1e-05, %v718_v20  ;;  %v974_v54 = vmul.f32 %v3238_v26, %v903_v10  ;;  %v1635_v30 = vsel %vm1204_vm1, %v1530_v37, 0 }
 0x199   :  { %v783_v46 = vadd.f32 1e-05, %v719_v33  ;;  %v2352_v53 = vpop.eup %2351  ;;  %v904_v6 = vmul.f32 %v2350_v27, %v3137_v35  ;;  %v632_v4 = vpop.xlane.xlu1 %631  ;;  %2168 = vmatmul.mubr.msk.bf16.gmra.mrb[36].mxu0 %vm91_vm0, %v1086_v38  ;;  %v1044_v49 = vadd.f32 %v3246_v56, %v973_v25  ;;  %2196 = vmatpush3.bf16.msra.mxu1 %v1635_v30  ;;  %v4018_v38 = vld [vmem:[#allocation21_spill] sm:$0xff] }
 0x19a   :  { %v635_v29 = vpop.xlane.xlu0 %634  ;;  %v905_v2 = vmul.f32 %v2352_v53, %v3144_v45  ;;  %2361 = vrsqrt.f32 %v782_v42  ;;  %v720_v63 = vmul.f32 0.125, %v632_v4  ;;  %v1045_v57 = vadd.f32 %v3246_v56, %v974_v54  ;;  %v4019_v53 = vld [vmem:[#allocation2_spill] sm:$0xff] }
 0x19b   :  { %v721_v7 = vmul.f32 0.125, %v635_v29  ;;  %2363 = vrsqrt.f32 %v783_v46  ;;  %v1087_v12 = vpack.c.bf16 %v1044_v49, %v1043_v9  ;;  %v975_v8 = vmul.f32 %v3238_v26, %v904_v6 }
 0x19c   :  { %v2354_v35 = vpop.eup %2353  ;;  %v784_v60 = vadd.f32 1e-05, %v720_v63  ;;  %v976_v59 = vmul.f32 %v3238_v26, %v905_v2  ;;  %v4020_v63 = vld [vmem:[#allocation3_spill] sm:$0xff] }
 0x19d   :  { %v785_v55 = vadd.f32 1e-05, %v721_v7  ;;  %v2356_v31 = vpop.eup %2355  ;;  %v906_v52 = vmul.f32 %v2354_v35, %v3149_v43  ;;  %v638_v45 = vpop.xlane.xlu1 %637  ;;  %2171 = vmatprep.mubr.msk.bf16.mxu0 %vm91_vm0, %v1087_v12  ;;  %v1046_v24 = vadd.f32 %v3246_v56, %v975_v8 }
 0x19e   :  { %v641_v11 = vpop.xlane.xlu0 %640  ;;  %v907_v34 = vmul.f32 %v2356_v31, %v3156_v48  ;;  %2365 = vrsqrt.f32 %v784_v60  ;;  %v722_v62 = vmul.f32 0.125, %v638_v45  ;;  %v1047_v3 = vadd.f32 %v3246_v56, %v976_v59  ;;  %v4021_v60 = vld [vmem:[#allocation4_spill] sm:$0xff]  ;;  %v4022_v45 = vld [vmem:[#allocation5_spill] sm:$0xff] }
 0x19f   :  { %v723_v21 = vmul.f32 0.125, %v641_v11  ;;  %2367 = vrsqrt.f32 %v785_v55  ;;  %v1088_v13 = vpack.c.bf16 %v1046_v24, %v1045_v57  ;;  %v977_v41 = vmul.f32 %v3238_v26, %v906_v52 }
 0x1a0   :  { %v2358_v43 = vpop.eup %2357  ;;  %v786_v39 = vadd.f32 1e-05, %v722_v62  ;;  %v978_v61 = vmul.f32 %v3238_v26, %v907_v34  ;;  %v4023_v34 = vld [vmem:[#allocation6_spill] sm:$0xff] }
 0x1a1   :  { %v787_v32 = vadd.f32 1e-05, %v723_v21  ;;  %v2360_v15 = vpop.eup %2359  ;;  %v908_v19 = vmul.f32 %v2358_v43, %v4017_v36  ;;  %v644_v48 = vpop.xlane.xlu1 %643  ;;  %2172 = vmatmul.mubr.msk.bf16.gmra.mrb[40].mxu0 %vm91_vm0, %v1088_v13  ;;  %v1048_v47 = vadd.f32 %v3246_v56, %v977_v41 }
 0x1a2   :  { %v647_v44 = vpop.xlane.xlu0 %646  ;;  %v909_v18 = vmul.f32 %v2360_v15, %v3168_v58  ;;  %2369 = vrsqrt.f32 %v786_v39  ;;  %v724_v40 = vmul.f32 0.125, %v644_v48  ;;  %v1049_v42 = vadd.f32 %v3246_v56, %v978_v61  ;;  %v4024_v39 = vld [vmem:[#allocation7_spill] sm:$0xff]  ;;  %v3478_v15 = vld [vmem:[%s3937_s1] ss:$0 sm:$0xff] }
 0x1a3   :  { %v725_v22 = vmul.f32 0.125, %v647_v44  ;;  %2371 = vrsqrt.f32 %v787_v32  ;;  %v1089_v28 = vpack.c.bf16 %v1048_v47, %v1047_v3  ;;  %v979_v1 = vmul.f32 %v3238_v26, %v908_v19  ;;  %v4025_v19 = vld [vmem:[#allocation8_spill] sm:$0xff]  ;;  %v4026_v61 = vld [vmem:[#allocation22_spill] sm:$0xff] }
 0x1a4   :  { %v2362_v23 = vpop.eup %2361  ;;  %v788_v10 = vadd.f32 1e-05, %v724_v40  ;;  %v980_v46 = vmul.f32 %v3238_v26, %v909_v18 }
 0x1a5   :  { %v789_v20 = vadd.f32 1e-05, %v725_v22  ;;  %v2364_v33 = vpop.eup %2363  ;;  %v910_v25 = vmul.f32 %v2362_v23, %v4018_v38  ;;  %v650_v27 = vpop.xlane.xlu1 %649  ;;  %2175 = vmatprep.mubr.msk.bf16.mxu0 %vm91_vm0, %v1089_v28  ;;  %v1050_v58 = vadd.f32 %v3246_v56, %v979_v1 }
 0x1a6   :  { %v911_v6 = vmul.f32 %v2364_v33, %v4019_v53  ;;  %2373 = vrsqrt.f32 %v788_v10  ;;  %v726_v4 = vmul.f32 0.125, %v650_v27  ;;  %v1051_v12 = vadd.f32 %v3246_v56, %v980_v46  ;;  %v2392_v10 = vld [vmem:[%s3938_s2] ss:$0 sm:$0xff] }
 0x1a7   :  { %2375 = vrsqrt.f32 %v789_v20  ;;  %v1090_v29 = vpack.c.bf16 %v1050_v58, %v1049_v42  ;;  %v981_v9 = vmul.f32 %v3238_v26, %v910_v25 }
 0x1a8   :  { %v2366_v49 = vpop.eup %2365  ;;  %v790_v54 = vadd.f32 1e-05, %v726_v4  ;;  %v982_v35 = vmul.f32 %v3238_v26, %v911_v6 }
 0x1a9   :  { %v2368_v2 = vpop.eup %2367  ;;  %v912_v7 = vmul.f32 %v2366_v49, %v4020_v63  ;;  %2176 = vmatmul.mubr.msk.bf16.gmra.mrb[44].mxu0 %vm91_vm0, %v1090_v29  ;;  %v1052_v8 = vadd.f32 %v3246_v56, %v981_v9 }
 0x1aa   :  { %v913_v55 = vmul.f32 %v2368_v2, %v4021_v60  ;;  %2377 = vrsqrt.f32 %v790_v54  ;;  %v1053_v57 = vadd.f32 %v3246_v56, %v982_v35 }
 0x1ab   :  { %v1091_v59 = vpack.c.bf16 %v1052_v8, %v1051_v12  ;;  %v983_v0 = vmul.f32 %v3238_v26, %v912_v7 }
 0x1ac   :  { %v2370_v31 = vpop.eup %2369  ;;  %v984_v37 = vmul.f32 %v3238_v26, %v913_v55 }
 0x1ad   :  { %v2372_v52 = vpop.eup %2371  ;;  %v914_v11 = vmul.f32 %v2370_v31, %v4022_v45  ;;  %2179 = vmatprep.mubr.msk.bf16.mxu0 %vm91_vm0, %v1091_v59  ;;  %v1054_v24 = vadd.f32 %v3246_v56, %v983_v0 }
 0x1ae   :  { %v915_v62 = vmul.f32 %v2372_v52, %v4023_v34  ;;  %v1055_v3 = vadd.f32 %v3246_v56, %v984_v37 }
 0x1af   :  { %v1092_v21 = vpack.c.bf16 %v1054_v24, %v1053_v57  ;;  %v985_v13 = vmul.f32 %v3238_v26, %v914_v11 }
 0x1b0   :  { %v2374_v41 = vpop.eup %2373  ;;  %v986_v36 = vmul.f32 %v3478_v15, %v915_v62 }
 0x1b1   :  { %v2376_v43 = vpop.eup %2375  ;;  %v916_v32 = vmul.f32 %v2374_v41, %v4024_v39  ;;  %2180 = vmatmul.mubr.msk.bf16.gmra.mrb[48].mxu0 %vm91_vm0, %v1092_v21  ;;  %v1056_v30 = vadd.f32 %v3246_v56, %v985_v13 }
 0x1b2   :  { %v917_v48 = vmul.f32 %v2376_v43, %v4025_v19  ;;  %v1057_v40 = vadd.f32 %v3246_v56, %v986_v36 }
 0x1b3   :  { %v1093_v26 = vpack.c.bf16 %v1056_v30, %v1055_v3  ;;  %v987_v44 = vmul.f32 %v3478_v15, %v916_v32 }
 0x1b4   :  { %v2378_v47 = vpop.eup %2377  ;;  %v988_v28 = vmul.f32 %v3478_v15, %v917_v48 }
 0x1b5   :  { %v918_v18 = vmul.f32 %v2378_v47, %v4026_v61  ;;  %2183 = vmatprep.mubr.msk.bf16.mxu0 %vm91_vm0, %v1093_v26  ;;  %v1058_v22 = vadd.f32 %v3246_v56, %v987_v44 }
 0x1b6   :  { %v1059_v20 = vadd.f32 %v2392_v10, %v988_v28 }
 0x1b7   :  { %v1094_v1 = vpack.c.bf16 %v1058_v22, %v1057_v40  ;;  %v989_v23 = vmul.f32 %v3478_v15, %v918_v18 }
 0x1b9   :  { %2184 = vmatmul.mubr.msk.bf16.gmra.mrb[52].mxu0 %vm91_vm0, %v1094_v1  ;;  %v1060_v33 = vadd.f32 %v2392_v10, %v989_v23 }
 0x1bb   :  { %v1095_v38 = vpack.c.bf16 %v1060_v33, %v1059_v20 }
 0x1bd   :  { %2187 = vmatprep.mubr.msk.bf16.mxu0 %vm91_vm0, %v1095_v38 }
 0x1e3   :  { %v653_v25 = vpop.xlane.xlu0 %652 }
 0x1e4   :  { %v727_v27 = vmul.f32 0.125, %v653_v25 }
 0x1e6   :  { %v791_v42 = vadd.f32 1e-05, %v727_v27  ;;  %v656_v56 = vpop.xlane.xlu1 %655 }
 0x1e7   :  { %v728_v58 = vmul.f32 0.125, %v656_v56 }
 0x1e8   :  { %2379 = vrsqrt.f32 %v791_v42 }
 0x1e9   :  { %v792_v46 = vadd.f32 1e-05, %v728_v58 }
 0x1eb   :  { %v659_v53 = vpop.xlane.xlu0 %658  ;;  %2381 = vrsqrt.f32 %v792_v46 }
 0x1ec   :  { %v729_v6 = vmul.f32 0.125, %v659_v53 }
 0x1ee   :  { %v793_v4 = vadd.f32 1e-05, %v729_v6  ;;  %v662_v29 = vpop.xlane.xlu1 %661 }
 0x1ef   :  { %v730_v9 = vmul.f32 0.125, %v662_v29 }
 0x1f0   :  { %2383 = vrsqrt.f32 %v793_v4 }
 0x1f1   :  { %v794_v49 = vadd.f32 1e-05, %v730_v9 }
 0x1f2   :  { %v2380_v54 = vpop.eup %2379 }
 0x1f3   :  { %v665_v2 = vpop.xlane.xlu0 %664  ;;  %v919_v63 = vmul.f32 %v2380_v54, %v3284_v16  ;;  %2385 = vrsqrt.f32 %v794_v49 }
 0x1f4   :  { %v731_v7 = vmul.f32 0.125, %v665_v2 }
 0x1f5   :  { %v2382_v8 = vpop.eup %2381  ;;  %v990_v59 = vmul.f32 %v3478_v15, %v919_v63 }
 0x1f6   :  { %v795_v12 = vadd.f32 1e-05, %v731_v7  ;;  %v668_v35 = vpop.xlane.xlu1 %667  ;;  %v920_v60 = vmul.f32 %v2382_v8, %v3296_v50 }
 0x1f7   :  { %v732_v55 = vmul.f32 0.125, %v668_v35  ;;  %v1061_v11 = vadd.f32 %v2392_v10, %v990_v59 }
 0x1f8   :  { %2387 = vrsqrt.f32 %v795_v12  ;;  %v991_v31 = vmul.f32 %v3478_v15, %v920_v60 }
 0x1f9   :  { %v796_v0 = vadd.f32 1e-05, %v732_v55 }
 0x1fa   :  { %v2384_v52 = vpop.eup %2383  ;;  %v1062_v16 = vadd.f32 %v2392_v10, %v991_v31 }
 0x1fb   :  { %v921_v45 = vmul.f32 %v2384_v52, %v3309_v17  ;;  %2389 = vrsqrt.f32 %v796_v0 }
 0x1fc   :  { %v1096_v24 = vpack.c.bf16 %v1062_v16, %v1061_v11 }
 0x1fd   :  { %v2386_v57 = vpop.eup %2385  ;;  %v992_v34 = vmul.f32 %v3478_v15, %v921_v45 }
 0x1fe   :  { %v922_v37 = vmul.f32 %v2386_v57, %v3322_v14  ;;  %2188 = vmatmul.mubr.msk.bf16.gmra.mrb[56].mxu0 %vm91_vm0, %v1096_v24 }
 0x1ff   :  { %v1063_v13 = vadd.f32 %v2392_v10, %v992_v34 }
 0x200   :  { %v993_v50 = vmul.f32 %v3478_v15, %v922_v37 }
 0x202   :  { %v2388_v62 = vpop.eup %2387  ;;  %v1064_v41 = vadd.f32 %v2392_v10, %v993_v50 }
 0x203   :  { %v923_v21 = vmul.f32 %v2388_v62, %v3334_v51  ;;  %v3512_v51 = vld [vmem:[%s3940_s4] ss:$0 sm:$0xff] }
 0x204   :  { %v1097_v43 = vpack.c.bf16 %v1064_v41, %v1063_v13 }
 0x205   :  { %v2390_v17 = vpop.eup %2389  ;;  %v994_v32 = vmul.f32 %v3478_v15, %v923_v21 }
 0x206   :  { %v924_v39 = vmul.f32 %v2390_v17, %v3344_v5  ;;  %2191 = vmatprep.mubr.msk.bf16.mxu0 %vm91_vm0, %v1097_v43 }
 0x207   :  { %v1065_v3 = vadd.f32 %v2392_v10, %v994_v32 }
 0x208   :  { %v995_v14 = vmul.f32 %v3478_v15, %v924_v39 }
 0x20a   :  { %v1066_v30 = vadd.f32 %v2392_v10, %v995_v14 }
 0x20c   :  { %v1098_v36 = vpack.c.bf16 %v1066_v30, %v1065_v3 }
 0x20e   :  { %2192 = vmatmul.mubr.msk.bf16.gmra.mrb[60].mxu0 %vm91_vm0, %v1098_v36 }
 0x218   :  { %v2133_v19 = vpop.f32.mrb[0].mxu0 }
 0x219   :  { %v1242_v48 = vpop.f32.mrb[1].mxu0  ;;  %v1251_v5 = vadd.f32 %v2133_v19, %v3512_v51 }
 0x21a   :  { %v2134_v26 = vpop.f32.mrb[2].mxu0  ;;  %v1243_v15 = vadd.f32 %v3512_v51, %v1242_v48 }
 0x21b   :  { %v1254_v44 = vadd.f32 %v2134_v26, %v3512_v51  ;;  %v1245_v47 = vpop.f32.mrb[3].mxu0 }
 0x21c   :  { %v1246_v61 = vadd.f32 %v3512_v51, %v1245_v47 }
 0x21d   :  { %v1498_v18 = vpack.c.bf16 %v1254_v44, %v1251_v5 }
 0x21e   :  { %v1497_v40 = vpack.c.bf16 %v1246_v61, %v1243_v15 }
 0x220   :  { %v2137_v22 = vpop.f32.mrb[4].mxu0  ;;  %2197 = vmatprep.mubr.msk.bf16.mxu1 %vm91_vm0, %v1497_v40 }
 0x221   :  { %v1258_v28 = vpop.f32.mrb[5].mxu0  ;;  %2198 = vmatmul.mubr.msk.bf16.vlgmr.msra.gmra.mrb[0].mxu1 %vm91_vm0, %v1498_v18  ;;  %v1267_v23 = vadd.f32 %v2137_v22, %v3512_v51 }
 0x222   :  { %v2138_v1 = vpop.f32.mrb[6].mxu0  ;;  %v1259_v33 = vadd.f32 %v3512_v51, %v1258_v28 }
 0x223   :  { %v1270_v10 = vadd.f32 %v2138_v1, %v3512_v51  ;;  %v1261_v20 = vpop.f32.mrb[7].mxu0 }
 0x224   :  { %v1262_v38 = vadd.f32 %v3512_v51, %v1261_v20 }
 0x225   :  { %v1500_v25 = vpack.c.bf16 %v1270_v10, %v1267_v23 }
 0x226   :  { %v1499_v27 = vpack.c.bf16 %v1262_v38, %v1259_v33 }
 0x228   :  { %v2141_v42 = vpop.f32.mrb[8].mxu0  ;;  %2201 = vmatprep.mubr.msk.bf16.mxu1 %vm91_vm0, %v1499_v27 }
 0x229   :  { %v1274_v56 = vpop.f32.mrb[9].mxu0  ;;  %2202 = vmatmul.mubr.msk.bf16.gmra.mrb[4].mxu1 %vm91_vm0, %v1500_v25  ;;  %v1283_v46 = vadd.f32 %v2141_v42, %v3512_v51 }
 0x22a   :  { %v2142_v58 = vpop.f32.mrb[10].mxu0  ;;  %v1275_v4 = vadd.f32 %v3512_v51, %v1274_v56 }
 0x22b   :  { %v1286_v53 = vadd.f32 %v2142_v58, %v3512_v51  ;;  %v1277_v6 = vpop.f32.mrb[11].mxu0 }
 0x22c   :  { %v1278_v29 = vadd.f32 %v3512_v51, %v1277_v6 }
 0x22d   :  { %v1502_v9 = vpack.c.bf16 %v1286_v53, %v1283_v46 }
 0x22e   :  { %v1501_v49 = vpack.c.bf16 %v1278_v29, %v1275_v4 }
 0x230   :  { %v2145_v54 = vpop.f32.mrb[12].mxu0  ;;  %2205 = vmatprep.mubr.msk.bf16.mxu1 %vm91_vm0, %v1501_v49 }
 0x231   :  { %v1290_v2 = vpop.f32.mrb[13].mxu0  ;;  %2206 = vmatmul.mubr.msk.bf16.gmra.mrb[8].mxu1 %vm91_vm0, %v1502_v9  ;;  %v1299_v7 = vadd.f32 %v2145_v54, %v3512_v51 }
 0x232   :  { %v2146_v63 = vpop.f32.mrb[14].mxu0  ;;  %v1291_v35 = vadd.f32 %v3512_v51, %v1290_v2 }
 0x233   :  { %v1302_v12 = vadd.f32 %v2146_v63, %v3512_v51  ;;  %v1293_v8 = vpop.f32.mrb[15].mxu0 }
 0x234   :  { %v1294_v60 = vadd.f32 %v3512_v51, %v1293_v8 }
 0x235   :  { %v1504_v55 = vpack.c.bf16 %v1302_v12, %v1299_v7 }
 0x236   :  { %v1503_v59 = vpack.c.bf16 %v1294_v60, %v1291_v35 }
 0x238   :  { %v2149_v0 = vpop.f32.mrb[16].mxu0  ;;  %2209 = vmatprep.mubr.msk.bf16.mxu1 %vm91_vm0, %v1503_v59 }
 0x239   :  { %v1306_v31 = vpop.f32.mrb[17].mxu0  ;;  %2210 = vmatmul.mubr.msk.bf16.gmra.mrb[12].mxu1 %vm91_vm0, %v1504_v55  ;;  %v1315_v45 = vadd.f32 %v2149_v0, %v3512_v51 }
 0x23a   :  { %v2150_v52 = vpop.f32.mrb[18].mxu0  ;;  %v1307_v57 = vadd.f32 %v3512_v51, %v1306_v31 }
 0x23b   :  { %v1318_v11 = vadd.f32 %v2150_v52, %v3512_v51  ;;  %v1309_v16 = vpop.f32.mrb[19].mxu0 }
 0x23c   :  { %v1310_v24 = vadd.f32 %v3512_v51, %v1309_v16 }
 0x23d   :  { %v1506_v37 = vpack.c.bf16 %v1318_v11, %v1315_v45 }
 0x23e   :  { %v1505_v34 = vpack.c.bf16 %v1310_v24, %v1307_v57 }
 0x240   :  { %2213 = vmatprep.mubr.msk.bf16.mxu1 %vm91_vm0, %v1505_v34 }
 0x241   :  { %2214 = vmatmul.mubr.msk.bf16.gmra.mrb[16].mxu1 %vm91_vm0, %v1506_v37 }
 0x248   :  { %v2153_v50 = vpop.f32.mrb[20].mxu0 }
 0x249   :  { %v1322_v62 = vpop.f32.mrb[21].mxu0  ;;  %v1331_v13 = vadd.f32 %v2153_v50, %v3512_v51 }
 0x24a   :  { %v2154_v21 = vpop.f32.mrb[22].mxu0  ;;  %v1323_v17 = vadd.f32 %v3512_v51, %v1322_v62 }
 0x24b   :  { %v1334_v41 = vadd.f32 %v2154_v21, %v3512_v51  ;;  %v1325_v43 = vpop.f32.mrb[23].mxu0 }
 0x24c   :  { %v1326_v39 = vadd.f32 %v3512_v51, %v1325_v43 }
 0x24d   :  { %v1508_v32 = vpack.c.bf16 %v1334_v41, %v1331_v13 }
 0x24e   :  { %v1507_v14 = vpack.c.bf16 %v1326_v39, %v1323_v17 }
 0x250   :  { %2217 = vmatprep.mubr.msk.bf16.mxu1 %vm91_vm0, %v1507_v14 }
 0x251   :  { %2218 = vmatmul.mubr.msk.bf16.gmra.mrb[20].mxu1 %vm91_vm0, %v1508_v32 }
 0x254   :  { %v2157_v3 = vpop.f32.mrb[24].mxu0 }
 0x255   :  { %v1338_v30 = vpop.f32.mrb[25].mxu0  ;;  %v1347_v19 = vadd.f32 %v2157_v3, %v3512_v51 }
 0x256   :  { %v2158_v36 = vpop.f32.mrb[26].mxu0  ;;  %v1339_v5 = vadd.f32 %v3512_v51, %v1338_v30 }
 0x257   :  { %v1350_v48 = vadd.f32 %v2158_v36, %v3512_v51  ;;  %v1341_v26 = vpop.f32.mrb[27].mxu0 }
 0x258   :  { %v1342_v44 = vadd.f32 %v3512_v51, %v1341_v26 }
 0x259   :  { %v1510_v47 = vpack.c.bf16 %v1350_v48, %v1347_v19 }
 0x25a   :  { %v1509_v15 = vpack.c.bf16 %v1342_v44, %v1339_v5 }
 0x25c   :  { %v2161_v61 = vpop.f32.mrb[28].mxu0  ;;  %2221 = vmatprep.mubr.msk.bf16.mxu1 %vm91_vm0, %v1509_v15 }
 0x25d   :  { %v1354_v18 = vpop.f32.mrb[29].mxu0  ;;  %2222 = vmatmul.mubr.msk.bf16.gmra.mrb[24].mxu1 %vm91_vm0, %v1510_v47  ;;  %v1363_v22 = vadd.f32 %v2161_v61, %v3512_v51 }
 0x25e   :  { %v2162_v40 = vpop.f32.mrb[30].mxu0  ;;  %v1355_v23 = vadd.f32 %v3512_v51, %v1354_v18 }
 0x25f   :  { %v1366_v28 = vadd.f32 %v2162_v40, %v3512_v51  ;;  %v1357_v1 = vpop.f32.mrb[31].mxu0 }
 0x260   :  { %v1358_v10 = vadd.f32 %v3512_v51, %v1357_v1 }
 0x261   :  { %v1512_v20 = vpack.c.bf16 %v1366_v28, %v1363_v22 }
 0x262   :  { %v1511_v33 = vpack.c.bf16 %v1358_v10, %v1355_v23 }
 0x264   :  { %v2165_v38 = vpop.f32.mrb[32].mxu0  ;;  %2225 = vmatprep.mubr.msk.bf16.mxu1 %vm91_vm0, %v1511_v33 }
 0x265   :  { %v1370_v25 = vpop.f32.mrb[33].mxu0  ;;  %2226 = vmatmul.mubr.msk.bf16.gmra.mrb[28].mxu1 %vm91_vm0, %v1512_v20  ;;  %v1379_v42 = vadd.f32 %v2165_v38, %v3512_v51 }
 0x266   :  { %v2166_v27 = vpop.f32.mrb[34].mxu0  ;;  %v1371_v46 = vadd.f32 %v3512_v51, %v1370_v25 }
 0x267   :  { %v1382_v56 = vadd.f32 %v2166_v27, %v3512_v51  ;;  %v1373_v58 = vpop.f32.mrb[35].mxu0 }
 0x268   :  { %v1374_v53 = vadd.f32 %v3512_v51, %v1373_v58 }
 0x269   :  { %v1514_v6 = vpack.c.bf16 %v1382_v56, %v1379_v42 }
 0x26a   :  { %v1513_v4 = vpack.c.bf16 %v1374_v53, %v1371_v46 }
 0x26c   :  { %v2169_v29 = vpop.f32.mrb[36].mxu0  ;;  %2229 = vmatprep.mubr.msk.bf16.mxu1 %vm91_vm0, %v1513_v4 }
 0x26d   :  { %v1386_v9 = vpop.f32.mrb[37].mxu0  ;;  %2230 = vmatmul.mubr.msk.bf16.gmra.mrb[32].mxu1 %vm91_vm0, %v1514_v6  ;;  %v1395_v54 = vadd.f32 %v2169_v29, %v3512_v51 }
 0x26e   :  { %v2170_v49 = vpop.f32.mrb[38].mxu0  ;;  %v1387_v7 = vadd.f32 %v3512_v51, %v1386_v9 }
 0x26f   :  { %v1398_v2 = vadd.f32 %v2170_v49, %v3512_v51  ;;  %v1389_v63 = vpop.f32.mrb[39].mxu0 }
 0x270   :  { %v1390_v12 = vadd.f32 %v3512_v51, %v1389_v63 }
 0x271   :  { %v1516_v8 = vpack.c.bf16 %v1398_v2, %v1395_v54 }
 0x272   :  { %v1515_v35 = vpack.c.bf16 %v1390_v12, %v1387_v7  ;;  %v3613_v12 = vld [vmem:[%s3941_s6] ss:$0 sm:$0xff] }
 0x274   :  { %v2173_v60 = vpop.f32.mrb[40].mxu0  ;;  %2233 = vmatprep.mubr.msk.bf16.mxu1 %vm91_vm0, %v1515_v35 }
 0x275   :  { %v1402_v55 = vpop.f32.mrb[41].mxu0  ;;  %2234 = vmatmul.mubr.msk.bf16.gmra.mrb[36].mxu1 %vm91_vm0, %v1516_v8  ;;  %v1411_v0 = vadd.f32 %v2173_v60, %v3512_v51 }
 0x276   :  { %v2174_v59 = vpop.f32.mrb[42].mxu0  ;;  %v1403_v45 = vadd.f32 %v3512_v51, %v1402_v55 }
 0x277   :  { %v1414_v31 = vadd.f32 %v2174_v59, %v3512_v51  ;;  %v1405_v52 = vpop.f32.mrb[43].mxu0 }
 0x278   :  { %v1406_v11 = vadd.f32 %v3512_v51, %v1405_v52 }
 0x279   :  { %v1518_v16 = vpack.c.bf16 %v1414_v31, %v1411_v0 }
 0x27a   :  { %v1517_v57 = vpack.c.bf16 %v1406_v11, %v1403_v45 }
 0x27c   :  { %v2177_v24 = vpop.f32.mrb[44].mxu0  ;;  %2237 = vmatprep.mubr.msk.bf16.mxu1 %vm91_vm0, %v1517_v57 }
 0x27d   :  { %v1418_v37 = vpop.f32.mrb[45].mxu0  ;;  %2238 = vmatmul.mubr.msk.bf16.gmra.mrb[40].mxu1 %vm91_vm0, %v1518_v16  ;;  %v1427_v50 = vadd.f32 %v2177_v24, %v3512_v51 }
 0x27e   :  { %v2178_v34 = vpop.f32.mrb[46].mxu0  ;;  %v1419_v13 = vadd.f32 %v3512_v51, %v1418_v37 }
 0x27f   :  { %v1430_v62 = vadd.f32 %v2178_v34, %v3512_v51  ;;  %v1421_v21 = vpop.f32.mrb[47].mxu0 }
 0x280   :  { %v1422_v41 = vadd.f32 %v3512_v51, %v1421_v21 }
 0x281   :  { %v1520_v43 = vpack.c.bf16 %v1430_v62, %v1427_v50 }
 0x282   :  { %v1519_v17 = vpack.c.bf16 %v1422_v41, %v1419_v13 }
 0x284   :  { %v2181_v39 = vpop.f32.mrb[48].mxu0  ;;  %2241 = vmatprep.mubr.msk.bf16.mxu1 %vm91_vm0, %v1519_v17 }
 0x285   :  { %v1434_v32 = vpop.f32.mrb[49].mxu0  ;;  %2242 = vmatmul.mubr.msk.bf16.gmra.mrb[44].mxu1 %vm91_vm0, %v1520_v43  ;;  %v1443_v3 = vadd.f32 %v2181_v39, %v3512_v51 }
 0x286   :  { %v2182_v14 = vpop.f32.mrb[50].mxu0  ;;  %v1435_v19 = vadd.f32 %v3512_v51, %v1434_v32 }
 0x287   :  { %v1446_v30 = vadd.f32 %v2182_v14, %v3512_v51  ;;  %v1437_v36 = vpop.f32.mrb[51].mxu0 }
 0x288   :  { %v1438_v48 = vadd.f32 %v3512_v51, %v1437_v36 }
 0x289   :  { %v1522_v26 = vpack.c.bf16 %v1446_v30, %v1443_v3 }
 0x28a   :  { %v1521_v5 = vpack.c.bf16 %v1438_v48, %v1435_v19 }
 0x28c   :  { %v2185_v44 = vpop.f32.mrb[52].mxu0  ;;  %2245 = vmatprep.mubr.msk.bf16.mxu1 %vm91_vm0, %v1521_v5 }
 0x28d   :  { %v1450_v47 = vpop.f32.mrb[53].mxu0  ;;  %2246 = vmatmul.mubr.msk.bf16.gmra.mrb[48].mxu1 %vm91_vm0, %v1522_v26  ;;  %v1459_v61 = vadd.f32 %v2185_v44, %v3512_v51 }
 0x28e   :  { %v2186_v15 = vpop.f32.mrb[54].mxu0  ;;  %v1451_v22 = vadd.f32 %v3512_v51, %v1450_v47 }
 0x28f   :  { %v1462_v18 = vadd.f32 %v2186_v15, %v3512_v51  ;;  %v1453_v40 = vpop.f32.mrb[55].mxu0 }
 0x290   :  { %v1454_v28 = vadd.f32 %v3512_v51, %v1453_v40 }
 0x291   :  { %v1524_v1 = vpack.c.bf16 %v1462_v18, %v1459_v61 }
 0x292   :  { %v1523_v23 = vpack.c.bf16 %v1454_v28, %v1451_v22 }
 0x294   :  { %2249 = vmatprep.mubr.msk.bf16.mxu1 %vm91_vm0, %v1523_v23 }
 0x295   :  { %2250 = vmatmul.mubr.msk.bf16.gmra.mrb[52].mxu1 %vm91_vm0, %v1524_v1 }
 0x2d1   :  { %v2189_v10 = vpop.f32.mrb[56].mxu0 }
 0x2d2   :  { %v1466_v20 = vpop.f32.mrb[57].mxu0  ;;  %v1475_v38 = vadd.f32 %v2189_v10, %v3512_v51 }
 0x2d3   :  { %v2190_v33 = vpop.f32.mrb[58].mxu0  ;;  %v1467_v42 = vadd.f32 %v3512_v51, %v1466_v20 }
 0x2d4   :  { %v1478_v25 = vadd.f32 %v2190_v33, %v3512_v51  ;;  %v1469_v27 = vpop.f32.mrb[59].mxu0 }
 0x2d5   :  { %v1470_v56 = vadd.f32 %v3512_v51, %v1469_v27 }
 0x2d6   :  { %v1526_v58 = vpack.c.bf16 %v1478_v25, %v1475_v38 }
 0x2d7   :  { %v1525_v46 = vpack.c.bf16 %v1470_v56, %v1467_v42 }
 0x2d9   :  { %2253 = vmatprep.mubr.msk.bf16.mxu1 %vm91_vm0, %v1525_v46 }
 0x2da   :  { %2254 = vmatmul.mubr.msk.bf16.gmra.mrb[56].mxu1 %vm91_vm0, %v1526_v58 }
 0x2e1   :  { %v2193_v53 = vpop.f32.mrb[60].mxu0 }
 0x2e2   :  { %v1482_v6 = vpop.f32.mrb[61].mxu0  ;;  %v1491_v29 = vadd.f32 %v2193_v53, %v3512_v51 }
 0x2e3   :  { %v2194_v4 = vpop.f32.mrb[62].mxu0  ;;  %v1483_v54 = vadd.f32 %v3512_v51, %v1482_v6 }
 0x2e4   :  { %v1494_v9 = vadd.f32 %v2194_v4, %v3512_v51  ;;  %v1485_v49 = vpop.f32.mrb[63].mxu0 }
 0x2e5   :  { %v1486_v2 = vadd.f32 %v3512_v51, %v1485_v49 }
 0x2e6   :  { %v1528_v63 = vpack.c.bf16 %v1494_v9, %v1491_v29 }
 0x2e7   :  { %v1527_v7 = vpack.c.bf16 %v1486_v2, %v1483_v54 }
 0x2e9   :  { %2257 = vmatprep.mubr.msk.bf16.mxu1 %vm91_vm0, %v1527_v7 }
 0x2ea   :  { %2258 = vmatmul.mubr.msk.bf16.gmra.mrb[60].mxu1 %vm91_vm0, %v1528_v63 }
 0x2f4   :  { %v2199_v8 = vpop.f32.mrb[0].mxu1 }
 0x2f5   :  { %v1680_v35 = vadd.f32 %v2199_v8, %v3613_v12  ;;  %v1671_v60 = vpop.f32.mrb[1].mxu1 }
 0x2f6   :  { %v1672_v55 = vadd.f32 %v3613_v12, %v1671_v60  ;;  %v2200_v59 = vpop.f32.mrb[2].mxu1 }
 0x2f7   :  { %1929 = vst.msk [vmem:[%s3942_s7 + $0x10] sm:$0xff] %vm1926_vm2, %v1680_v35  ;;  %v1683_v51 = vadd.f32 %v2200_v59, %v3613_v12  ;;  %v1674_v0 = vpop.f32.mrb[3].mxu1 }
 0x2f8   :  { %1927 = vst.msk [vmem:[%s3942_s7] sm:$0xff] %vm1926_vm2, %v1672_v55  ;;  %v1675_v31 = vadd.f32 %v3613_v12, %v1674_v0 }
 0x2f9   :  { %1930 = vst.msk [vmem:[%s3942_s7 + $0x18] sm:$0xff] %vm1926_vm2, %v1683_v51 }
 0x2fa   :  { %1928 = vst.msk [vmem:[%s3942_s7 + $0x8] sm:$0xff] %vm1926_vm2, %v1675_v31 }
 0x2fc   :  { %v2203_v52 = vpop.f32.mrb[4].mxu1 }
 0x2fd   :  { %v1696_v45 = vadd.f32 %v2203_v52, %v3613_v12  ;;  %v1687_v11 = vpop.f32.mrb[5].mxu1 }
 0x2fe   :  { %v1688_v16 = vadd.f32 %v3613_v12, %v1687_v11  ;;  %v2204_v57 = vpop.f32.mrb[6].mxu1 }
 0x2ff   :  { %1933 = vst.msk [vmem:[%s3942_s7 + $0x30] sm:$0xff] %vm1926_vm2, %v1696_v45  ;;  %v1699_v24 = vadd.f32 %v2204_v57, %v3613_v12  ;;  %v1690_v37 = vpop.f32.mrb[7].mxu1 }
 0x300   :  { %1931 = vst.msk [vmem:[%s3942_s7 + $0x20] sm:$0xff] %vm1926_vm2, %v1688_v16  ;;  %v1691_v34 = vadd.f32 %v3613_v12, %v1690_v37 }
 0x301   :  { %1934 = vst.msk [vmem:[%s3942_s7 + $0x38] sm:$0xff] %vm1926_vm2, %v1699_v24 }
 0x302   :  { %1932 = vst.msk [vmem:[%s3942_s7 + $0x28] sm:$0xff] %vm1926_vm2, %v1691_v34 }
 0x304   :  { %v2207_v50 = vpop.f32.mrb[8].mxu1 }
 0x305   :  { %v1712_v62 = vadd.f32 %v2207_v50, %v3613_v12  ;;  %v1703_v21 = vpop.f32.mrb[9].mxu1 }
 0x306   :  { %v1704_v13 = vadd.f32 %v3613_v12, %v1703_v21  ;;  %v2208_v41 = vpop.f32.mrb[10].mxu1 }
 0x307   :  { %1937 = vst.msk [vmem:[%s3942_s7 + $0x50] sm:$0xff] %vm1926_vm2, %v1712_v62  ;;  %v1715_v43 = vadd.f32 %v2208_v41, %v3613_v12  ;;  %v1706_v17 = vpop.f32.mrb[11].mxu1 }
 0x308   :  { %1935 = vst.msk [vmem:[%s3942_s7 + $0x40] sm:$0xff] %vm1926_vm2, %v1704_v13  ;;  %v1707_v39 = vadd.f32 %v3613_v12, %v1706_v17 }
 0x309   :  { %1938 = vst.msk [vmem:[%s3942_s7 + $0x58] sm:$0xff] %vm1926_vm2, %v1715_v43 }
 0x30a   :  { %1936 = vst.msk [vmem:[%s3942_s7 + $0x48] sm:$0xff] %vm1926_vm2, %v1707_v39 }
 0x30c   :  { %v2211_v32 = vpop.f32.mrb[12].mxu1 }
 0x30d   :  { %v1728_v14 = vadd.f32 %v2211_v32, %v3613_v12  ;;  %v1719_v3 = vpop.f32.mrb[13].mxu1 }
 0x30e   :  { %v1720_v30 = vadd.f32 %v3613_v12, %v1719_v3  ;;  %v2212_v36 = vpop.f32.mrb[14].mxu1 }
 0x30f   :  { %1941 = vst.msk [vmem:[%s3942_s7 + $0x70] sm:$0xff] %vm1926_vm2, %v1728_v14  ;;  %v1731_v19 = vadd.f32 %v2212_v36, %v3613_v12  ;;  %v1722_v48 = vpop.f32.mrb[15].mxu1 }
 0x310   :  { %1939 = vst.msk [vmem:[%s3942_s7 + $0x60] sm:$0xff] %vm1926_vm2, %v1720_v30  ;;  %v1723_v26 = vadd.f32 %v3613_v12, %v1722_v48 }
 0x311   :  { %1942 = vst.msk [vmem:[%s3942_s7 + $0x78] sm:$0xff] %vm1926_vm2, %v1731_v19 }
 0x312   :  { %1940 = vst.msk [vmem:[%s3942_s7 + $0x68] sm:$0xff] %vm1926_vm2, %v1723_v26 }
 0x314   :  { %v2215_v5 = vpop.f32.mrb[16].mxu1 }
 0x315   :  { %v1744_v44 = vadd.f32 %v2215_v5, %v3613_v12  ;;  %v1735_v47 = vpop.f32.mrb[17].mxu1 }
 0x316   :  { %v1736_v15 = vadd.f32 %v3613_v12, %v1735_v47  ;;  %v2216_v61 = vpop.f32.mrb[18].mxu1 }
 0x317   :  { %1945 = vst.msk [vmem:[%s3942_s7 + $0x90] sm:$0xff] %vm1926_vm2, %v1744_v44  ;;  %v1747_v18 = vadd.f32 %v2216_v61, %v3613_v12  ;;  %v1738_v40 = vpop.f32.mrb[19].mxu1 }
 0x318   :  { %1943 = vst.msk [vmem:[%s3942_s7 + $0x80] sm:$0xff] %vm1926_vm2, %v1736_v15  ;;  %v1739_v22 = vadd.f32 %v3613_v12, %v1738_v40 }
 0x319   :  { %1946 = vst.msk [vmem:[%s3942_s7 + $0x98] sm:$0xff] %vm1926_vm2, %v1747_v18 }
 0x31a   :  { %1944 = vst.msk [vmem:[%s3942_s7 + $0x88] sm:$0xff] %vm1926_vm2, %v1739_v22 }
 0x324   :  { %v2219_v28 = vpop.f32.mrb[20].mxu1 }
 0x325   :  { %v1760_v1 = vadd.f32 %v2219_v28, %v3613_v12  ;;  %v1751_v23 = vpop.f32.mrb[21].mxu1 }
 0x326   :  { %v1752_v10 = vadd.f32 %v3613_v12, %v1751_v23  ;;  %v2220_v20 = vpop.f32.mrb[22].mxu1 }
 0x327   :  { %1949 = vst.msk [vmem:[%s3942_s7 + $0xb0] sm:$0xff] %vm1926_vm2, %v1760_v1  ;;  %v1763_v33 = vadd.f32 %v2220_v20, %v3613_v12  ;;  %v1754_v38 = vpop.f32.mrb[23].mxu1 }
 0x328   :  { %1947 = vst.msk [vmem:[%s3942_s7 + $0xa0] sm:$0xff] %vm1926_vm2, %v1752_v10  ;;  %v1755_v25 = vadd.f32 %v3613_v12, %v1754_v38 }
 0x329   :  { %1950 = vst.msk [vmem:[%s3942_s7 + $0xb8] sm:$0xff] %vm1926_vm2, %v1763_v33 }
 0x32a   :  { %1948 = vst.msk [vmem:[%s3942_s7 + $0xa8] sm:$0xff] %vm1926_vm2, %v1755_v25 }
 0x330   :  { %v2223_v27 = vpop.f32.mrb[24].mxu1 }
 0x331   :  { %v1776_v42 = vadd.f32 %v2223_v27, %v3613_v12  ;;  %v1767_v56 = vpop.f32.mrb[25].mxu1 }
 0x332   :  { %v1768_v58 = vadd.f32 %v3613_v12, %v1767_v56  ;;  %v2224_v46 = vpop.f32.mrb[26].mxu1 }
 0x333   :  { %1953 = vst.msk [vmem:[%s3942_s7 + $0xd0] sm:$0xff] %vm1926_vm2, %v1776_v42  ;;  %v1779_v53 = vadd.f32 %v2224_v46, %v3613_v12  ;;  %v1770_v6 = vpop.f32.mrb[27].mxu1 }
 0x334   :  { %1951 = vst.msk [vmem:[%s3942_s7 + $0xc0] sm:$0xff] %vm1926_vm2, %v1768_v58  ;;  %v1771_v4 = vadd.f32 %v3613_v12, %v1770_v6 }
 0x335   :  { %1954 = vst.msk [vmem:[%s3942_s7 + $0xd8] sm:$0xff] %vm1926_vm2, %v1779_v53 }
 0x336   :  { %1952 = vst.msk [vmem:[%s3942_s7 + $0xc8] sm:$0xff] %vm1926_vm2, %v1771_v4 }
 0x338   :  { %v2227_v29 = vpop.f32.mrb[28].mxu1 }
 0x339   :  { %v1792_v9 = vadd.f32 %v2227_v29, %v3613_v12  ;;  %v1783_v49 = vpop.f32.mrb[29].mxu1 }
 0x33a   :  { %v1784_v54 = vadd.f32 %v3613_v12, %v1783_v49  ;;  %v2228_v2 = vpop.f32.mrb[30].mxu1 }
 0x33b   :  { %1957 = vst.msk [vmem:[%s3942_s7 + $0xf0] sm:$0xff] %vm1926_vm2, %v1792_v9  ;;  %v1795_v63 = vadd.f32 %v2228_v2, %v3613_v12  ;;  %v1786_v7 = vpop.f32.mrb[31].mxu1 }
 0x33c   :  { %1955 = vst.msk [vmem:[%s3942_s7 + $0xe0] sm:$0xff] %vm1926_vm2, %v1784_v54  ;;  %v1787_v8 = vadd.f32 %v3613_v12, %v1786_v7 }
 0x33d   :  { %1958 = vst.msk [vmem:[%s3942_s7 + $0xf8] sm:$0xff] %vm1926_vm2, %v1795_v63 }
 0x33e   :  { %1956 = vst.msk [vmem:[%s3942_s7 + $0xe8] sm:$0xff] %vm1926_vm2, %v1787_v8 }
 0x340   :  { %v2231_v35 = vpop.f32.mrb[32].mxu1 }
 0x341   :  { %v1808_v60 = vadd.f32 %v2231_v35, %v3613_v12  ;;  %v1799_v55 = vpop.f32.mrb[33].mxu1 }
 0x342   :  { %v1800_v59 = vadd.f32 %v3613_v12, %v1799_v55  ;;  %v2232_v51 = vpop.f32.mrb[34].mxu1 }
 0x343   :  { %1961 = vst.msk [vmem:[%s3942_s7 + $0x110] sm:$0xff] %vm1926_vm2, %v1808_v60  ;;  %v1811_v0 = vadd.f32 %v2232_v51, %v3613_v12  ;;  %v1802_v31 = vpop.f32.mrb[35].mxu1 }
 0x344   :  { %1959 = vst.msk [vmem:[%s3942_s7 + $0x100] sm:$0xff] %vm1926_vm2, %v1800_v59  ;;  %v1803_v52 = vadd.f32 %v3613_v12, %v1802_v31 }
 0x345   :  { %1962 = vst.msk [vmem:[%s3942_s7 + $0x118] sm:$0xff] %vm1926_vm2, %v1811_v0 }
 0x346   :  { %1960 = vst.msk [vmem:[%s3942_s7 + $0x108] sm:$0xff] %vm1926_vm2, %v1803_v52 }
 0x348   :  { %v2235_v45 = vpop.f32.mrb[36].mxu1 }
 0x349   :  { %v1824_v11 = vadd.f32 %v2235_v45, %v3613_v12  ;;  %v1815_v16 = vpop.f32.mrb[37].mxu1 }
 0x34a   :  { %v1816_v57 = vadd.f32 %v3613_v12, %v1815_v16  ;;  %v2236_v24 = vpop.f32.mrb[38].mxu1 }
 0x34b   :  { %1965 = vst.msk [vmem:[%s3942_s7 + $0x130] sm:$0xff] %vm1926_vm2, %v1824_v11  ;;  %v1827_v37 = vadd.f32 %v2236_v24, %v3613_v12  ;;  %v1818_v34 = vpop.f32.mrb[39].mxu1 }
 0x34c   :  { %1963 = vst.msk [vmem:[%s3942_s7 + $0x120] sm:$0xff] %vm1926_vm2, %v1816_v57  ;;  %v1819_v50 = vadd.f32 %v3613_v12, %v1818_v34 }
 0x34d   :  { %1966 = vst.msk [vmem:[%s3942_s7 + $0x138] sm:$0xff] %vm1926_vm2, %v1827_v37 }
 0x34e   :  { %1964 = vst.msk [vmem:[%s3942_s7 + $0x128] sm:$0xff] %vm1926_vm2, %v1819_v50 }
 0x350   :  { %v2239_v62 = vpop.f32.mrb[40].mxu1 }
 0x351   :  { %v1840_v21 = vadd.f32 %v2239_v62, %v3613_v12  ;;  %v1831_v13 = vpop.f32.mrb[41].mxu1 }
 0x352   :  { %v1832_v41 = vadd.f32 %v3613_v12, %v1831_v13  ;;  %v2240_v43 = vpop.f32.mrb[42].mxu1 }
 0x353   :  { %1969 = vst.msk [vmem:[%s3942_s7 + $0x150] sm:$0xff] %vm1926_vm2, %v1840_v21  ;;  %v1843_v17 = vadd.f32 %v2240_v43, %v3613_v12  ;;  %v1834_v39 = vpop.f32.mrb[43].mxu1 }
 0x354   :  { %1967 = vst.msk [vmem:[%s3942_s7 + $0x140] sm:$0xff] %vm1926_vm2, %v1832_v41  ;;  %v1835_v32 = vadd.f32 %v3613_v12, %v1834_v39 }
 0x355   :  { %1970 = vst.msk [vmem:[%s3942_s7 + $0x158] sm:$0xff] %vm1926_vm2, %v1843_v17 }
 0x356   :  { %1968 = vst.msk [vmem:[%s3942_s7 + $0x148] sm:$0xff] %vm1926_vm2, %v1835_v32 }
 0x358   :  { %v2243_v14 = vpop.f32.mrb[44].mxu1 }
 0x359   :  { %v1856_v3 = vadd.f32 %v2243_v14, %v3613_v12  ;;  %v1847_v30 = vpop.f32.mrb[45].mxu1 }
 0x35a   :  { %v1848_v36 = vadd.f32 %v3613_v12, %v1847_v30  ;;  %v2244_v19 = vpop.f32.mrb[46].mxu1 }
 0x35b   :  { %1973 = vst.msk [vmem:[%s3942_s7 + $0x170] sm:$0xff] %vm1926_vm2, %v1856_v3  ;;  %v1859_v48 = vadd.f32 %v2244_v19, %v3613_v12  ;;  %v1850_v26 = vpop.f32.mrb[47].mxu1 }
 0x35c   :  { %1971 = vst.msk [vmem:[%s3942_s7 + $0x160] sm:$0xff] %vm1926_vm2, %v1848_v36  ;;  %v1851_v5 = vadd.f32 %v3613_v12, %v1850_v26 }
 0x35d   :  { %1974 = vst.msk [vmem:[%s3942_s7 + $0x178] sm:$0xff] %vm1926_vm2, %v1859_v48 }
 0x35e   :  { %1972 = vst.msk [vmem:[%s3942_s7 + $0x168] sm:$0xff] %vm1926_vm2, %v1851_v5 }
 0x360   :  { %v2247_v44 = vpop.f32.mrb[48].mxu1 }
 0x361   :  { %v1872_v47 = vadd.f32 %v2247_v44, %v3613_v12  ;;  %v1863_v15 = vpop.f32.mrb[49].mxu1 }
 0x362   :  { %v1864_v61 = vadd.f32 %v3613_v12, %v1863_v15  ;;  %v2248_v18 = vpop.f32.mrb[50].mxu1 }
 0x363   :  { %1977 = vst.msk [vmem:[%s3942_s7 + $0x190] sm:$0xff] %vm1926_vm2, %v1872_v47  ;;  %v1875_v40 = vadd.f32 %v2248_v18, %v3613_v12  ;;  %v1866_v22 = vpop.f32.mrb[51].mxu1 }
 0x364   :  { %1975 = vst.msk [vmem:[%s3942_s7 + $0x180] sm:$0xff] %vm1926_vm2, %v1864_v61  ;;  %v1867_v28 = vadd.f32 %v3613_v12, %v1866_v22 }
 0x365   :  { %1978 = vst.msk [vmem:[%s3942_s7 + $0x198] sm:$0xff] %vm1926_vm2, %v1875_v40 }
 0x366   :  { %1976 = vst.msk [vmem:[%s3942_s7 + $0x188] sm:$0xff] %vm1926_vm2, %v1867_v28 }
 0x368   :  { %v2251_v1 = vpop.f32.mrb[52].mxu1 }
 0x369   :  { %v1888_v23 = vadd.f32 %v2251_v1, %v3613_v12  ;;  %v1879_v10 = vpop.f32.mrb[53].mxu1 }
 0x36a   :  { %v1880_v20 = vadd.f32 %v3613_v12, %v1879_v10  ;;  %v2252_v33 = vpop.f32.mrb[54].mxu1 }
 0x36b   :  { %1981 = vst.msk [vmem:[%s3942_s7 + $0x1b0] sm:$0xff] %vm1926_vm2, %v1888_v23  ;;  %v1891_v38 = vadd.f32 %v2252_v33, %v3613_v12  ;;  %v1882_v25 = vpop.f32.mrb[55].mxu1 }
 0x36c   :  { %1979 = vst.msk [vmem:[%s3942_s7 + $0x1a0] sm:$0xff] %vm1926_vm2, %v1880_v20  ;;  %v1883_v27 = vadd.f32 %v3613_v12, %v1882_v25 }
 0x36d   :  { %1982 = vst.msk [vmem:[%s3942_s7 + $0x1b8] sm:$0xff] %vm1926_vm2, %v1891_v38 }
 0x36e   :  { %1980 = vst.msk [vmem:[%s3942_s7 + $0x1a8] sm:$0xff] %vm1926_vm2, %v1883_v27 }
 0x3ad   :  { %v2255_v42 = vpop.f32.mrb[56].mxu1 }
 0x3ae   :  { %v1904_v56 = vadd.f32 %v2255_v42, %v3613_v12  ;;  %v1895_v58 = vpop.f32.mrb[57].mxu1 }
 0x3af   :  { %v1896_v46 = vadd.f32 %v3613_v12, %v1895_v58  ;;  %v2256_v53 = vpop.f32.mrb[58].mxu1 }
 0x3b0   :  { %1985 = vst.msk [vmem:[%s3942_s7 + $0x1d0] sm:$0xff] %vm1926_vm2, %v1904_v56  ;;  %v1907_v6 = vadd.f32 %v2256_v53, %v3613_v12  ;;  %v1898_v4 = vpop.f32.mrb[59].mxu1 }
 0x3b1   :  { %1983 = vst.msk [vmem:[%s3942_s7 + $0x1c0] sm:$0xff] %vm1926_vm2, %v1896_v46  ;;  %v1899_v29 = vadd.f32 %v3613_v12, %v1898_v4 }
 0x3b2   :  { %1986 = vst.msk [vmem:[%s3942_s7 + $0x1d8] sm:$0xff] %vm1926_vm2, %v1907_v6 }
 0x3b3   :  { %1984 = vst.msk [vmem:[%s3942_s7 + $0x1c8] sm:$0xff] %vm1926_vm2, %v1899_v29 }
 0x3bd   :  { %v2259_v9 = vpop.f32.mrb[60].mxu1 }
 0x3be   :  { %v1920_v49 = vadd.f32 %v2259_v9, %v3613_v12  ;;  %v1911_v54 = vpop.f32.mrb[61].mxu1 }
 0x3bf   :  { %v1912_v2 = vadd.f32 %v3613_v12, %v1911_v54  ;;  %v2260_v63 = vpop.f32.mrb[62].mxu1 }
 0x3c0   :  { %1989 = vst.msk [vmem:[%s3942_s7 + $0x1f0] sm:$0xff] %vm1926_vm2, %v1920_v49  ;;  %v1923_v7 = vadd.f32 %v2260_v63, %v3613_v12  ;;  %v1914_v8 = vpop.f32.mrb[63].mxu1 }
 0x3c1   :  { %1987 = vst.msk [vmem:[%s3942_s7 + $0x1e0] sm:$0xff] %vm1926_vm2, %v1912_v2  ;;  %v1915_v35 = vadd.f32 %v3613_v12, %v1914_v8 }
 0x3c2   :  { %1990 = vst.msk [vmem:[%s3942_s7 + $0x1f8] sm:$0xff] %vm1926_vm2, %v1923_v7 }
 0x3c3   :  { %1988 = vst.msk [vmem:[%s3942_s7 + $0x1e8] sm:$0xff] %vm1926_vm2, %v1915_v35 }

// kernel: attention_blocks_forward.10
= control target key start
LH: loop header
LB: loop body
LE: loop exit
PB: predicated region body
PF: predicated region fallthrough
CT: control target
= control target key end

     0   :  { %s5358_s12 = smov 0   ;;  %s6911_s0 = inlined_call_operand.vmem [shape: f32[32,16,4], index: 0, kind: input, shape index: {}]   ;;  %s6912_s1 = inlined_call_operand.vmem [shape: f32[32,16,4], index: 1, kind: input, shape index: {}]   ;;  %s6913_s2 = inlined_call_operand.vmem [shape: f32[32,16,4], index: 2, kind: input, shape index: {}]   ;;  %s6914_s3 = inlined_call_operand.vmem [shape: f32[32,16,4], index: 3, kind: output, shape index: {}]  }
   0x1 LB: > { %s4459_s13 = sadd.s32 4294967295, %s5332_s12   ;;  %p4463_p0 = scmp.ge.s32.totalorder %s5332_s12, 1  ;;  %s5332_s12 = sphi %s5358_s12, %s13_s12  }
   0x2   : > { %p163_p1 = scmp.lt.s32.totalorder %s5332_s12, 3 }
   0x4   : > { %p164_p2 = pnand %p4463_p0, %p163_p1 }
   0x6   : > { %167 = sbr.rel (%p164_p2) target bundleno = 1610 (0x64a), region = 32 }
   0xd   : > { %s4464_s14 = sshll.u32 %s4459_s13, 4  ;;  %v6915_v0 = vmov 0.0   ;;  %vm5335_vm0 = vmmov 0   ;;  %vm374_vm1 = vcmask 15360   ;;  %vm1127_vm2 = vcmask 130048   ;;  %s5336_s25 = smov 126  }
   0xe   : > { %4674 = vmatprep.subr.bf16.mxu0 %v6915_v0  ;;  %4680 = vmatprep.subr.bf16.mxu1 %v6915_v0  ;;  %p202_p3 = scmp.lt.s32.totalorder %s4464_s14, 31  ;;  %s5337_s26 = smov 2   ;;  %vm4344_vm3 = vcmask 31744  }
   0xf   : > { %4676 = vmatprep.mubr.msk.bf16.mxu0 %vm5335_vm0, %v6915_v0  ;;  %4682 = vmatprep.mubr.msk.bf16.mxu1 %vm5335_vm0, %v6915_v0 }
  0x10   : > { %s7018_s14 = smov (!%p202_p3, %s4464_s14), 31 }
  0x11   : > { %s5372_s15 = sshll.u32 %s7018_s14, 4 }
  0x12   : > { %s5378_s18 = scalar_lea.vmem %s6912_s1, %s5372_s15  ;;  %s5390_s21 = scalar_lea.vmem %s6911_s0, %s5372_s15 }
  0x13   : > { %v262_v1 = vld [vmem:[%s5378_s18] sm:$0xff]  ;;  %v263_v2 = vld [vmem:[%s5378_s18 + $0x8] sm:$0xff]  ;;  %v264_v3 = vld [vmem:[%s5378_s18 + $0x10] sm:$0xff]  ;;  %s5840_s24 = scalar_lea.vmem %s6913_s2, %s5372_s15  ;;  %s6778_s29 = scalar_lea.vmem %s6914_s3, %s5372_s15 }
  0x14   : > { %v5383_v4 = vpack.c.bf16 %v263_v2, %v262_v1  ;;  %v265_v5 = vld [vmem:[%s5378_s18 + $0x18] sm:$0xff]  ;;  %v266_v7 = vld [vmem:[%s5378_s18 + $0x20] sm:$0xff]  ;;  %v267_v9 = vld [vmem:[%s5378_s18 + $0x28] sm:$0xff] }
  0x15   : > { %v5392_v6 = vpack.c.bf16 %v265_v5, %v264_v3  ;;  %v268_v10 = vld [vmem:[%s5378_s18 + $0x30] sm:$0xff]  ;;  %v269_v11 = vld [vmem:[%s5378_s18 + $0x38] sm:$0xff]  ;;  %v230_v13 = vld [vmem:[%s5390_s21] sm:$0xff]  ;;  %v5407_v17 = vpack.c.bf16 %v267_v9, %v266_v7 }
  0x16   : > { %v379_v8 = vsel %vm374_vm1, %v5383_v4, 0  ;;  %v231_v14 = vld [vmem:[%s5390_s21 + $0x8] sm:$0xff]  ;;  %v232_v15 = vld [vmem:[%s5390_s21 + $0x10] sm:$0xff]  ;;  %v233_v16 = vld [vmem:[%s5390_s21 + $0x18] sm:$0xff]  ;;  %v5410_v18 = vpack.c.bf16 %v269_v11, %v268_v10 }
  0x17   : > { %4675 = vmatpush3.bf16.xpose.msra.mxu0 %v379_v8  ;;  %v426_v12 = vsel %vm374_vm1, %v5392_v6, 0  ;;  %v5412_v19 = vpack.c.bf16 %v231_v14, %v230_v13  ;;  %v5414_v20 = vpack.c.bf16 %v233_v16, %v232_v15  ;;  %v473_v21 = vsel %vm374_vm1, %v5407_v17, 0  ;;  %v270_v23 = vld [vmem:[%s5378_s18 + $0x40] sm:$0xff]  ;;  %v271_v24 = vld [vmem:[%s5378_s18 + $0x48] sm:$0xff]  ;;  %v272_v25 = vld [vmem:[%s5378_s18 + $0x50] sm:$0xff] }
  0x18   : > { %4681 = vmatpush3.bf16.xpose.msra.mxu1 %v426_v12  ;;  %4686 = vmatprep.subr.bf16.mxu0 %v6915_v0  ;;  %6932 = vst [vmem:[#allocation2_spill] sm:$0xff] %v5410_v18  ;;  %v520_v22 = vsel %vm374_vm1, %v5410_v18, 0  ;;  %v273_v26 = vld [vmem:[%s5378_s18 + $0x58] sm:$0xff]  ;;  %v234_v27 = vld [vmem:[%s5390_s21 + $0x20] sm:$0xff]  ;;  %v235_v28 = vld [vmem:[%s5390_s21 + $0x28] sm:$0xff]  ;;  %v5432_v29 = vpack.c.bf16 %v271_v24, %v270_v23 }
  0x19   : > { %4692 = vmatprep.subr.bf16.mxu1 %v6915_v0  ;;  %v236_v30 = vld [vmem:[%s5390_s21 + $0x30] sm:$0xff]  ;;  %v237_v31 = vld [vmem:[%s5390_s21 + $0x38] sm:$0xff]  ;;  %v5439_v32 = vpack.c.bf16 %v273_v26, %v272_v25  ;;  %v5441_v33 = vpack.c.bf16 %v235_v28, %v234_v27  ;;  %v274_v37 = vld [vmem:[%s5378_s18 + $0x60] sm:$0xff] }
  0x1a   : > { %v5444_v34 = vpack.c.bf16 %v237_v31, %v236_v30  ;;  %v567_v35 = vsel %vm374_vm1, %v5432_v29, 0  ;;  %v275_v38 = vld [vmem:[%s5378_s18 + $0x68] sm:$0xff]  ;;  %v276_v39 = vld [vmem:[%s5378_s18 + $0x70] sm:$0xff]  ;;  %v277_v40 = vld [vmem:[%s5378_s18 + $0x78] sm:$0xff] }
  0x1b   : > { %6933 = vst [vmem:[#allocation3_spill] sm:$0xff] %v5439_v32  ;;  %v614_v36 = vsel %vm374_vm1, %v5439_v32, 0  ;;  %v238_v41 = vld [vmem:[%s5390_s21 + $0x40] sm:$0xff]  ;;  %v239_v42 = vld [vmem:[%s5390_s21 + $0x48] sm:$0xff]  ;;  %v5462_v43 = vpack.c.bf16 %v275_v38, %v274_v37  ;;  %v240_v44 = vld [vmem:[%s5390_s21 + $0x50] sm:$0xff]  ;;  %v5469_v46 = vpack.c.bf16 %v277_v40, %v276_v39 }
  0x1c   : > { %6934 = vst [vmem:[#allocation4_spill] sm:$0xff] %v5444_v34  ;;  %v241_v45 = vld [vmem:[%s5390_s21 + $0x58] sm:$0xff]  ;;  %v5471_v47 = vpack.c.bf16 %v239_v42, %v238_v41  ;;  %v278_v51 = vld [vmem:[%s5378_s18 + $0x80] sm:$0xff]  ;;  %v279_v52 = vld [vmem:[%s5378_s18 + $0x88] sm:$0xff] }
  0x1d   : > { %6935 = vst [vmem:[#allocation5_spill] sm:$0xff] %v5469_v46  ;;  %v5474_v48 = vpack.c.bf16 %v241_v45, %v240_v44  ;;  %v661_v49 = vsel %vm374_vm1, %v5462_v43, 0  ;;  %v708_v50 = vsel %vm374_vm1, %v5469_v46, 0  ;;  %v280_v53 = vld [vmem:[%s5378_s18 + $0x90] sm:$0xff]  ;;  %v281_v54 = vld [vmem:[%s5378_s18 + $0x98] sm:$0xff]  ;;  %v242_v55 = vld [vmem:[%s5390_s21 + $0x60] sm:$0xff]  ;;  %v5492_v57 = vpack.c.bf16 %v279_v52, %v278_v51 }
  0x1e   : > { %4677 = vmatmul.mubr.msk.bf16.vlgmr.msra.gmra.mrb[0].mxu0 %vm374_vm1, %v5412_v19  ;;  %v243_v56 = vld [vmem:[%s5390_s21 + $0x68] sm:$0xff]  ;;  %v244_v58 = vld [vmem:[%s5390_s21 + $0x70] sm:$0xff]  ;;  %v245_v59 = vld [vmem:[%s5390_s21 + $0x78] sm:$0xff]  ;;  %v5499_v60 = vpack.c.bf16 %v281_v54, %v280_v53 }
  0x1f   : > { %4683 = vmatmul.mubr.msk.bf16.vlgmr.msra.gmra.mrb[0].mxu1 %vm374_vm1, %v5414_v20  ;;  %4687 = vmatpush3.bf16.xpose.msra.mxu0 %v473_v21  ;;  %6936 = vst [vmem:[#allocation6_spill] sm:$0xff] %v5474_v48  ;;  %v5501_v61 = vpack.c.bf16 %v243_v56, %v242_v55  ;;  %v5504_v62 = vpack.c.bf16 %v245_v59, %v244_v58  ;;  %v755_v63 = vsel %vm374_vm1, %v5492_v57, 0  ;;  %v282_v2 = vld [vmem:[%s5378_s18 + $0xa0] sm:$0xff]  ;;  %v283_v3 = vld [vmem:[%s5378_s18 + $0xa8] sm:$0xff]  ;;  %v284_v5 = vld [vmem:[%s5378_s18 + $0xb0] sm:$0xff] }
  0x20   : > { %4693 = vmatpush3.bf16.xpose.msra.mxu1 %v520_v22  ;;  %4688 = vmatprep.mubr.msk.bf16.mxu0 %vm5335_vm0, %v6915_v0  ;;  %6937 = vst [vmem:[#allocation7_spill] sm:$0xff] %v5499_v60  ;;  %v802_v1 = vsel %vm374_vm1, %v5499_v60, 0  ;;  %v285_v7 = vld [vmem:[%s5378_s18 + $0xb8] sm:$0xff]  ;;  %v246_v8 = vld [vmem:[%s5390_s21 + $0x80] sm:$0xff]  ;;  %v247_v9 = vld [vmem:[%s5390_s21 + $0x88] sm:$0xff]  ;;  %v5522_v10 = vpack.c.bf16 %v283_v3, %v282_v2 }
  0x21   : > { %4698 = vmatprep.subr.bf16.mxu0 %v6915_v0  ;;  %4694 = vmatprep.mubr.msk.bf16.mxu1 %vm5335_vm0, %v6915_v0  ;;  %6938 = vst [vmem:[#allocation8_spill] sm:$0xff] %v5504_v62  ;;  %v248_v11 = vld [vmem:[%s5390_s21 + $0x90] sm:$0xff]  ;;  %v249_v12 = vld [vmem:[%s5390_s21 + $0x98] sm:$0xff]  ;;  %v5529_v13 = vpack.c.bf16 %v285_v7, %v284_v5  ;;  %v5531_v14 = vpack.c.bf16 %v247_v9, %v246_v8  ;;  %v286_v22 = vld [vmem:[%s5378_s18 + $0xc0] sm:$0xff] }
  0x22   : > { %4704 = vmatprep.subr.bf16.mxu1 %v6915_v0  ;;  %v5534_v15 = vpack.c.bf16 %v249_v12, %v248_v11  ;;  %v849_v16 = vsel %vm374_vm1, %v5522_v10, 0  ;;  %v287_v23 = vld [vmem:[%s5378_s18 + $0xc8] sm:$0xff]  ;;  %v288_v24 = vld [vmem:[%s5378_s18 + $0xd0] sm:$0xff]  ;;  %v289_v25 = vld [vmem:[%s5378_s18 + $0xd8] sm:$0xff] }
  0x23   : > { %6939 = vst [vmem:[#allocation9_spill] sm:$0xff] %v5529_v13  ;;  %v896_v21 = vsel %vm374_vm1, %v5529_v13, 0  ;;  %v250_v26 = vld [vmem:[%s5390_s21 + $0xa0] sm:$0xff]  ;;  %v251_v27 = vld [vmem:[%s5390_s21 + $0xa8] sm:$0xff]  ;;  %v5552_v28 = vpack.c.bf16 %v287_v23, %v286_v22  ;;  %v252_v30 = vld [vmem:[%s5390_s21 + $0xb0] sm:$0xff] }
  0x24   : > { %6940 = vst [vmem:[#allocation10_spill] sm:$0xff] %v5534_v15  ;;  %v253_v31 = vld [vmem:[%s5390_s21 + $0xb8] sm:$0xff]  ;;  %v290_v40 = vld [vmem:[%s5378_s18 + $0xe0] sm:$0xff]  ;;  %v291_v41 = vld [vmem:[%s5378_s18 + $0xe8] sm:$0xff] }
  0x25   : > { %v5564_v37 = vpack.c.bf16 %v253_v31, %v252_v30  ;;  %v943_v38 = vsel %vm374_vm1, %v5552_v28, 0  ;;  %v292_v42 = vld [vmem:[%s5378_s18 + $0xf0] sm:$0xff]  ;;  %v293_v44 = vld [vmem:[%s5378_s18 + $0xf8] sm:$0xff]  ;;  %v254_v45 = vld [vmem:[%s5390_s21 + $0xc0] sm:$0xff] }
  0x26   : > { %4689 = vmatmul.mubr.msk.bf16.vlgmr.msra.gmra.mrb[4].mxu0 %vm374_vm1, %v5441_v33  ;;  %v256_v51 = vld [vmem:[%s5390_s21 + $0xd0] sm:$0xff]  ;;  %v257_v52 = vld [vmem:[%s5390_s21 + $0xd8] sm:$0xff]  ;;  %v5589_v53 = vpack.c.bf16 %v293_v44, %v292_v42  ;;  %v258_v59 = vld [vmem:[%s5390_s21 + $0xe0] sm:$0xff] }
  0x27   : > { %4699 = vmatpush3.bf16.xpose.msra.mxu0 %v567_v35  ;;  %4695 = vmatmul.mubr.msk.bf16.vlgmr.msra.gmra.mrb[4].mxu1 %vm374_vm1, %v5444_v34  ;;  %v5559_v35 = vpack.c.bf16 %v289_v25, %v288_v24  ;;  %6942 = vst [vmem:[#allocation12_spill] sm:$0xff] %v5564_v37  ;;  %v5594_v55 = vpack.c.bf16 %v257_v52, %v256_v51  ;;  %v261_v2 = vld [vmem:[%s5390_s21 + $0xf8] sm:$0xff] }
  0x28   : > { %4705 = vmatpush3.bf16.xpose.msra.mxu1 %v614_v36  ;;  %4700 = vmatprep.mubr.msk.bf16.mxu0 %vm5335_vm0, %v6915_v0  ;;  %v5561_v36 = vpack.c.bf16 %v251_v27, %v250_v26  ;;  %6943 = vst [vmem:[#allocation13_spill] sm:$0xff] %v5589_v53  ;;  %v1084_v58 = vsel %vm374_vm1, %v5589_v53, 0 }
  0x29   : > { %4710 = vmatprep.subr.bf16.mxu0 %v6915_v0  ;;  %4706 = vmatprep.mubr.msk.bf16.mxu1 %vm5335_vm0, %v6915_v0  ;;  %6941 = vst [vmem:[#allocation11_spill] sm:$0xff] %v5559_v35  ;;  %v990_v39 = vsel %vm374_vm1, %v5559_v35, 0  ;;  %6944 = vst [vmem:[#allocation14_spill] sm:$0xff] %v5594_v55 }
  0x2a   : > { %4716 = vmatprep.subr.bf16.mxu1 %v6915_v0 }
  0x2e   : > { %4701 = vmatmul.mubr.msk.bf16.vlgmr.msra.gmra.mrb[8].mxu0 %vm374_vm1, %v5471_v47 }
  0x2f   : > { %4711 = vmatpush3.bf16.xpose.msra.mxu0 %v661_v49  ;;  %4707 = vmatmul.mubr.msk.bf16.vlgmr.msra.gmra.mrb[8].mxu1 %vm374_vm1, %v5474_v48  ;;  %v255_v49 = vld [vmem:[%s5390_s21 + $0xc8] sm:$0xff] }
  0x30   : > { %4717 = vmatpush3.bf16.xpose.msra.mxu1 %v708_v50  ;;  %4712 = vmatprep.mubr.msk.bf16.mxu0 %vm5335_vm0, %v6915_v0  ;;  %v5582_v50 = vpack.c.bf16 %v291_v41, %v290_v40  ;;  %v5591_v54 = vpack.c.bf16 %v255_v49, %v254_v45 }
  0x31   : > { %4722 = vmatprep.subr.bf16.mxu0 %v6915_v0  ;;  %4718 = vmatprep.mubr.msk.bf16.mxu1 %vm5335_vm0, %v6915_v0 }
  0x32   : > { %4728 = vmatprep.subr.bf16.mxu1 %v6915_v0  ;;  %v1037_v56 = vsel %vm374_vm1, %v5582_v50, 0 }
  0x36   : > { %4713 = vmatmul.mubr.msk.bf16.vlgmr.msra.gmra.mrb[12].mxu0 %vm374_vm1, %v5501_v61 }
  0x37   : > { %4723 = vmatpush3.bf16.xpose.msra.mxu0 %v755_v63  ;;  %4719 = vmatmul.mubr.msk.bf16.vlgmr.msra.gmra.mrb[12].mxu1 %vm374_vm1, %v5504_v62  ;;  %v259_v63 = vld [vmem:[%s5390_s21 + $0xe8] sm:$0xff] }
  0x38   : > { %4729 = vmatpush3.bf16.xpose.msra.mxu1 %v802_v1  ;;  %4724 = vmatprep.mubr.msk.bf16.mxu0 %vm5335_vm0, %v6915_v0  ;;  %v260_v1 = vld [vmem:[%s5390_s21 + $0xf0] sm:$0xff]  ;;  %v5613_v3 = vpack.c.bf16 %v259_v63, %v258_v59 }
  0x39   : > { %4734 = vmatprep.subr.bf16.mxu0 %v6915_v0  ;;  %4730 = vmatprep.mubr.msk.bf16.mxu1 %vm5335_vm0, %v6915_v0  ;;  %v5616_v5 = vpack.c.bf16 %v261_v2, %v260_v1 }
  0x3a   : > { %4740 = vmatprep.subr.bf16.mxu1 %v6915_v0  ;;  %6945 = vst [vmem:[#allocation15_spill] sm:$0xff] %v5613_v3 }
  0x3b   : > { %6946 = vst [vmem:[#allocation16_spill] sm:$0xff] %v5616_v5 }
  0x3e   : > { %4725 = vmatmul.mubr.msk.bf16.vlgmr.msra.gmra.mrb[16].mxu0 %vm374_vm1, %v5531_v14 }
  0x3f   : > { %4735 = vmatpush3.bf16.xpose.msra.mxu0 %v849_v16  ;;  %4731 = vmatmul.mubr.msk.bf16.vlgmr.msra.gmra.mrb[16].mxu1 %vm374_vm1, %v5534_v15 }
  0x40   : > { %4741 = vmatpush3.bf16.xpose.msra.mxu1 %v896_v21  ;;  %4736 = vmatprep.mubr.msk.bf16.mxu0 %vm5335_vm0, %v6915_v0 }
  0x41   : > { %4746 = vmatprep.subr.bf16.mxu0 %v6915_v0  ;;  %4742 = vmatprep.mubr.msk.bf16.mxu1 %vm5335_vm0, %v6915_v0 }
  0x42   : > { %4752 = vmatprep.subr.bf16.mxu1 %v6915_v0 }
  0x46   : > { %4737 = vmatmul.mubr.msk.bf16.vlgmr.msra.gmra.mrb[20].mxu0 %vm374_vm1, %v5561_v36 }
  0x47   : > { %4747 = vmatpush3.bf16.xpose.msra.mxu0 %v943_v38  ;;  %4743 = vmatmul.mubr.msk.bf16.vlgmr.msra.gmra.mrb[20].mxu1 %vm374_vm1, %v5564_v37 }
  0x48   : > { %4753 = vmatpush3.bf16.xpose.msra.mxu1 %v990_v39  ;;  %4748 = vmatprep.mubr.msk.bf16.mxu0 %vm5335_vm0, %v6915_v0 }
  0x49   : > { %4758 = vmatprep.subr.bf16.mxu0 %v6915_v0  ;;  %4754 = vmatprep.mubr.msk.bf16.mxu1 %vm5335_vm0, %v6915_v0 }
  0x4a   : > { %4764 = vmatprep.subr.bf16.mxu1 %v6915_v0 }
  0x4e   : > { %4749 = vmatmul.mubr.msk.bf16.vlgmr.msra.gmra.mrb[24].mxu0 %vm374_vm1, %v5591_v54 }
  0x4f   : > { %4759 = vmatpush3.bf16.xpose.msra.mxu0 %v1037_v56  ;;  %4755 = vmatmul.mubr.msk.bf16.vlgmr.msra.gmra.mrb[24].mxu1 %vm374_vm1, %v5594_v55 }
  0x50   : > { %4765 = vmatpush3.bf16.xpose.msra.mxu1 %v1084_v58  ;;  %4760 = vmatprep.mubr.msk.bf16.mxu0 %vm5335_vm0, %v6915_v0 }
  0x51   : > { %4766 = vmatprep.mubr.msk.bf16.mxu1 %vm5335_vm0, %v6915_v0  ;;  %4770 = vmatprep.subr.bf16.mxu0 %v6915_v0 }
  0x52   : > { %4776 = vmatprep.subr.bf16.mxu1 %v6915_v0 }
  0x56   : > { %4761 = vmatmul.mubr.msk.bf16.vlgmr.msra.gmra.mrb[28].mxu0 %vm374_vm1, %v5613_v3 }
  0x57   : > { %4767 = vmatmul.mubr.msk.bf16.vlgmr.msra.gmra.mrb[28].mxu1 %vm374_vm1, %v5616_v5  ;;  %4772 = vmatprep.mubr.msk.bf16.mxu0 %vm5335_vm0, %v6915_v0 }
  0x58   : > { %4778 = vmatprep.mubr.msk.bf16.mxu1 %vm5335_vm0, %v6915_v0 }
  0xf1   : > { %v5626_v7 = vpop.f32.mrb[0].mxu0 }
  0xf2   : > { %v5628_v8 = vpop.f32.mrb[0].mxu1  ;;  %v4678_v9 = vpop.f32.mrb[1].mxu0  ;;  %v1128_v11 = vsel %vm1127_vm2, %v5626_v7, -inf }
  0xf3   : > { %v1134_v12 = vsel %vm1127_vm2, %v5628_v8, -inf  ;;  %v4684_v16 = vpop.f32.mrb[1].mxu1  ;;  %1129 = vmax.xlane.f32.xlu0 %v1128_v11  ;;  %v5634_v21 = vpop.f32.mrb[2].mxu0 }
  0xf4   : > { %1135 = vmax.xlane.f32.xlu1 %v1134_v12  ;;  %v4679_v22 = vpop.f32.mrb[3].mxu0  ;;  %v5636_v23 = vpop.f32.mrb[2].mxu1  ;;  %v1131_v26 = vsel %vm1127_vm2, %v5634_v21, -inf }
  0xf5   : > { %v4685_v24 = vpop.f32.mrb[3].mxu1  ;;  %v1137_v25 = vsel %vm1127_vm2, %v5636_v23, -inf }
  0xf7   : > { %1132 = vmax.xlane.f32.xlu0 %v1131_v26 }
  0xf8   : > { %1138 = vmax.xlane.f32.xlu1 %v1137_v25 }
  0xf9   : > { %v5642_v27 = vpop.f32.mrb[4].mxu0 }
  0xfa   : > { %v4690_v30 = vpop.f32.mrb[5].mxu0  ;;  %v1140_v31 = vsel %vm1127_vm2, %v5642_v27, -inf  ;;  %v5646_v38 = vpop.f32.mrb[4].mxu1 }
  0xfb   : > { %1141 = vmax.xlane.f32.xlu0 %v1140_v31  ;;  %v5648_v39 = vpop.f32.mrb[6].mxu0  ;;  %v4696_v40 = vpop.f32.mrb[5].mxu1  ;;  %v1146_v45 = vsel %vm1127_vm2, %v5646_v38, -inf }
  0xfc   : > { %v4691_v41 = vpop.f32.mrb[7].mxu0  ;;  %v1143_v42 = vsel %vm1127_vm2, %v5648_v39, -inf  ;;  %v5652_v44 = vpop.f32.mrb[6].mxu1 }
  0xfd   : > { %1144 = vmax.xlane.f32.xlu1 %v1143_v42  ;;  %v4697_v49 = vpop.f32.mrb[7].mxu1  ;;  %v1149_v51 = vsel %vm1127_vm2, %v5652_v44, -inf }
  0xff   : > { %1147 = vmax.xlane.f32.xlu0 %v1146_v45 }
 0x101   : > { %1150 = vmax.xlane.f32.xlu1 %v1149_v51  ;;  %v5658_v52 = vpop.f32.mrb[8].mxu0 }
 0x102   : > { %v4702_v56 = vpop.f32.mrb[9].mxu0  ;;  %v1152_v58 = vsel %vm1127_vm2, %v5658_v52, -inf  ;;  %v5662_v59 = vpop.f32.mrb[8].mxu1 }
 0x103   : > { %1153 = vmax.xlane.f32.xlu0 %v1152_v58  ;;  %v5664_v63 = vpop.f32.mrb[10].mxu0  ;;  %v4708_v1 = vpop.f32.mrb[9].mxu1  ;;  %v1158_v12 = vsel %vm1127_vm2, %v5662_v59, -inf }
 0x104   : > { %v4703_v2 = vpop.f32.mrb[11].mxu0  ;;  %v1155_v9 = vsel %vm1127_vm2, %v5664_v63, -inf  ;;  %v5668_v11 = vpop.f32.mrb[10].mxu1 }
 0x105   : > { %1156 = vmax.xlane.f32.xlu1 %v1155_v9  ;;  %v4709_v16 = vpop.f32.mrb[11].mxu1  ;;  %v1161_v22 = vsel %vm1127_vm2, %v5668_v11, -inf }
 0x107   : > { %1159 = vmax.xlane.f32.xlu0 %v1158_v12 }
 0x109   : > { %1162 = vmax.xlane.f32.xlu1 %v1161_v22  ;;  %v5674_v24 = vpop.f32.mrb[12].mxu0 }
 0x10a   : > { %v4714_v25 = vpop.f32.mrb[13].mxu0  ;;  %v1164_v26 = vsel %vm1127_vm2, %v5674_v24, -inf  ;;  %v5678_v30 = vpop.f32.mrb[12].mxu1 }
 0x10b   : > { %1165 = vmax.xlane.f32.xlu0 %v1164_v26  ;;  %v5680_v31 = vpop.f32.mrb[14].mxu0  ;;  %v4720_v40 = vpop.f32.mrb[13].mxu1  ;;  %v1170_v49 = vsel %vm1127_vm2, %v5678_v30, -inf }
 0x10c   : > { %v4715_v41 = vpop.f32.mrb[15].mxu0  ;;  %v1167_v42 = vsel %vm1127_vm2, %v5680_v31, -inf  ;;  %v5684_v45 = vpop.f32.mrb[14].mxu1 }
 0x10d   : > { %1168 = vmax.xlane.f32.xlu1 %v1167_v42  ;;  %v4721_v51 = vpop.f32.mrb[15].mxu1  ;;  %v1173_v56 = vsel %vm1127_vm2, %v5684_v45, -inf }
 0x10f   : > { %1171 = vmax.xlane.f32.xlu0 %v1170_v49 }
 0x111   : > { %1174 = vmax.xlane.f32.xlu1 %v1173_v56  ;;  %v5690_v58 = vpop.f32.mrb[16].mxu0 }
 0x112   : > { %v4726_v1 = vpop.f32.mrb[17].mxu0  ;;  %v1176_v2 = vsel %vm1127_vm2, %v5690_v58, -inf  ;;  %v5694_v9 = vpop.f32.mrb[16].mxu1 }
 0x113   : > { %1177 = vmax.xlane.f32.xlu0 %v1176_v2  ;;  %v5696_v12 = vpop.f32.mrb[18].mxu0  ;;  %v4732_v16 = vpop.f32.mrb[17].mxu1  ;;  %v1182_v40 = vsel %vm1127_vm2, %v5694_v9, -inf }
 0x114   : > { %v4727_v22 = vpop.f32.mrb[19].mxu0  ;;  %v1179_v25 = vsel %vm1127_vm2, %v5696_v12, -inf  ;;  %v5700_v26 = vpop.f32.mrb[18].mxu1 }
 0x115   : > { %1180 = vmax.xlane.f32.xlu1 %v1179_v25  ;;  %v4733_v41 = vpop.f32.mrb[19].mxu1  ;;  %v1185_v42 = vsel %vm1127_vm2, %v5700_v26, -inf }
 0x117   : > { %1183 = vmax.xlane.f32.xlu0 %v1182_v40 }
 0x119   : > { %1186 = vmax.xlane.f32.xlu1 %v1185_v42  ;;  %v5706_v49 = vpop.f32.mrb[20].mxu0 }
 0x11a   : > { %v4738_v51 = vpop.f32.mrb[21].mxu0  ;;  %v1188_v56 = vsel %vm1127_vm2, %v5706_v49, -inf  ;;  %v5710_v1 = vpop.f32.mrb[20].mxu1 }
 0x11b   : > { %1189 = vmax.xlane.f32.xlu0 %v1188_v56  ;;  %v5712_v2 = vpop.f32.mrb[22].mxu0  ;;  %v4744_v16 = vpop.f32.mrb[21].mxu1  ;;  %v1194_v40 = vsel %vm1127_vm2, %v5710_v1, -inf }
 0x11c   : > { %v4739_v22 = vpop.f32.mrb[23].mxu0  ;;  %v1191_v25 = vsel %vm1127_vm2, %v5712_v2, -inf  ;;  %v5716_v41 = vpop.f32.mrb[22].mxu1 }
 0x11d   : > { %1192 = vmax.xlane.f32.xlu1 %v1191_v25  ;;  %v4745_v42 = vpop.f32.mrb[23].mxu1  ;;  %v1197_v51 = vsel %vm1127_vm2, %v5716_v41, -inf }
 0x11f   : > { %1195 = vmax.xlane.f32.xlu0 %v1194_v40 }
 0x121   : > { %1198 = vmax.xlane.f32.xlu1 %v1197_v51  ;;  %v5722_v56 = vpop.f32.mrb[24].mxu0 }
 0x122   : > { %v4750_v0 = vpop.f32.mrb[25].mxu0  ;;  %v1200_v16 = vsel %vm1127_vm2, %v5722_v56, -inf  ;;  %v5726_v22 = vpop.f32.mrb[24].mxu1 }
 0x123   : > { %1201 = vmax.xlane.f32.xlu0 %v1200_v16  ;;  %v5728_v5 = vpop.f32.mrb[26].mxu0  ;;  %v4756_v53 = vpop.f32.mrb[25].mxu1  ;;  %v1206_v40 = vsel %vm1127_vm2, %v5726_v22, -inf }
 0x124   : > { %v4751_v55 = vpop.f32.mrb[27].mxu0  ;;  %v1203_v25 = vsel %vm1127_vm2, %v5728_v5, -inf  ;;  %v5732_v42 = vpop.f32.mrb[26].mxu1 }
 0x125   : > { %1204 = vmax.xlane.f32.xlu1 %v1203_v25  ;;  %v4757_v0 = vpop.f32.mrb[27].mxu1  ;;  %v1209_v51 = vsel %vm1127_vm2, %v5732_v42, -inf }
 0x127   : > { %1207 = vmax.xlane.f32.xlu0 %v1206_v40 }
 0x129   : > { %1210 = vmax.xlane.f32.xlu1 %v1209_v51  ;;  %v5738_v16 = vpop.f32.mrb[28].mxu0 }
 0x12a   : > { %v4762_v35 = vpop.f32.mrb[29].mxu0  ;;  %v1212_v53 = vsel %vm1127_vm2, %v5738_v16, -inf  ;;  %v5742_v55 = vpop.f32.mrb[28].mxu1 }
 0x12b   : > { %1213 = vmax.xlane.f32.xlu0 %v1212_v53  ;;  %v5744_v37 = vpop.f32.mrb[30].mxu0  ;;  %v4768_v13 = vpop.f32.mrb[29].mxu1  ;;  %v1218_v40 = vsel %vm1127_vm2, %v5742_v55, -inf }
 0x12c   : > { %v1215_v25 = vsel %vm1127_vm2, %v5744_v37, -inf  ;;  %v5748_v0 = vpop.f32.mrb[30].mxu1  ;;  %v4763_v51 = vpop.f32.mrb[31].mxu0 }
 0x12d   : > { %1216 = vmax.xlane.f32.xlu1 %v1215_v25  ;;  %v4769_v35 = vpop.f32.mrb[31].mxu1  ;;  %v1221_v15 = vsel %vm1127_vm2, %v5748_v0, -inf }
 0x12f   : > { %1219 = vmax.xlane.f32.xlu0 %v1218_v40 }
 0x131   : > { %1222 = vmax.xlane.f32.xlu1 %v1221_v15 }
 0x180   : > { %v1130_v53 = vpop.xlane.xlu0 %1129 }
 0x181   : > { %v1136_v60 = vpop.xlane.xlu1 %1135  ;;  %v1224_v13 = vsub.f32 %v5626_v7, %v1130_v53 }
 0x182   : > { %v1226_v62 = vsub.f32 %v5628_v8, %v1136_v60 }
 0x183   : > { %v1256_v46 = vmul.f32 1.442695, %v1224_v13 }
 0x184   : > { %v1260_v48 = vmul.f32 1.442695, %v1226_v62  ;;  %v1133_v32 = vpop.xlane.xlu0 %1132 }
 0x185   : > { %5070 = vpow2.f32 %v1256_v46  ;;  %v1139_v34 = vpop.xlane.xlu1 %1138  ;;  %v1225_v51 = vsub.f32 %v5634_v21, %v1133_v32 }
 0x186   : > { %v1227_v25 = vsub.f32 %v5636_v23, %v1139_v34  ;;  %5072 = vpow2.f32 %v1260_v48 }
 0x187   : > { %v1258_v35 = vmul.f32 1.442695, %v1225_v51 }
 0x188   : > { %v1262_v3 = vmul.f32 1.442695, %v1227_v25  ;;  %v1142_v40 = vpop.xlane.xlu0 %1141 }
 0x189   : > { %5074 = vpow2.f32 %v1258_v35  ;;  %v1228_v15 = vsub.f32 %v5642_v27, %v1142_v40 }
 0x18a   : > { %v1145_v18 = vpop.xlane.xlu1 %1144  ;;  %5076 = vpow2.f32 %v1262_v3 }
 0x18b   : > { %v1264_v7 = vmul.f32 1.442695, %v1228_v15  ;;  %v1229_v60 = vsub.f32 %v5648_v39, %v1145_v18 }
 0x18c   : > { %v1148_v62 = vpop.xlane.xlu0 %1147 }
 0x18d   : > { %5078 = vpow2.f32 %v1264_v7  ;;  %v1266_v46 = vmul.f32 1.442695, %v1229_v60  ;;  %v1230_v8 = vsub.f32 %v5646_v38, %v1148_v62 }
 0x18e   : > { %v1151_v32 = vpop.xlane.xlu1 %1150 }
 0x18f   : > { %v5761_v21 = vpop.eup %5070  ;;  %5080 = vpow2.f32 %v1266_v46  ;;  %v1268_v34 = vmul.f32 1.442695, %v1230_v8  ;;  %v1231_v48 = vsub.f32 %v5652_v44, %v1151_v32 }
 0x190   : > { %v1154_v23 = vpop.xlane.xlu0 %1153  ;;  %v1320_v27 = vsel %vm1127_vm2, %v5761_v21, 0.0  ;;  %v5766_v3 = vpop.eup %5072 }
 0x191   : > { %5082 = vpow2.f32 %v1268_v34  ;;  %v1270_v18 = vmul.f32 1.442695, %v1231_v48  ;;  %v1232_v39 = vsub.f32 %v5658_v52, %v1154_v23  ;;  %1321 = vadd.xlane.f32.xlu0 %v1320_v27  ;;  %v1326_v44 = vsel %vm1127_vm2, %v5766_v3, 0.0 }
 0x192   : > { %v1157_v53 = vpop.xlane.xlu1 %1156 }
 0x193   : > { %v5769_v38 = vpop.eup %5074  ;;  %5084 = vpow2.f32 %v1270_v18  ;;  %v1272_v13 = vmul.f32 1.442695, %v1232_v39  ;;  %v1233_v51 = vsub.f32 %v5664_v63, %v1157_v53 }
 0x194   : > { %v1160_v25 = vpop.xlane.xlu0 %1159  ;;  %v1323_v35 = vsel %vm1127_vm2, %v5769_v38, 0.0  ;;  %v5776_v40 = vpop.eup %5076 }
 0x195   : > { %5086 = vpow2.f32 %v1272_v13  ;;  %v1274_v15 = vmul.f32 1.442695, %v1233_v51  ;;  %v1234_v52 = vsub.f32 %v5662_v59, %v1160_v25  ;;  %1327 = vadd.xlane.f32.xlu0 %v1326_v44  ;;  %1324 = vadd.xlane.f32.xlu1 %v1323_v35  ;;  %v1329_v32 = vsel %vm1127_vm2, %v5776_v40, 0.0 }
 0x196   : > { %v1163_v7 = vpop.xlane.xlu1 %1162 }
 0x197   : > { %v5779_v60 = vpop.eup %5078  ;;  %5088 = vpow2.f32 %v1274_v15  ;;  %v1276_v63 = vmul.f32 1.442695, %v1234_v52  ;;  %v1235_v62 = vsub.f32 %v5668_v11, %v1163_v7 }
 0x198   : > { %v1166_v46 = vpop.xlane.xlu0 %1165  ;;  %v1332_v8 = vsel %vm1127_vm2, %v5779_v60, 0.0 }
 0x199   : > { %v5786_v34 = vpop.eup %5080  ;;  %5090 = vpow2.f32 %v1276_v63  ;;  %v1278_v59 = vmul.f32 1.442695, %v1235_v62  ;;  %v1236_v48 = vsub.f32 %v5674_v24, %v1166_v46  ;;  %1333 = vadd.xlane.f32.xlu0 %v1332_v8  ;;  %1330 = vadd.xlane.f32.xlu1 %v1329_v32 }
 0x19a   : > { %v1169_v23 = vpop.xlane.xlu1 %1168  ;;  %v1335_v13 = vsel %vm1127_vm2, %v5786_v34, 0.0 }
 0x19b   : > { %v5789_v27 = vpop.eup %5082  ;;  %5092 = vpow2.f32 %v1278_v59  ;;  %v1280_v11 = vmul.f32 1.442695, %v1236_v48  ;;  %v1237_v18 = vsub.f32 %v5680_v31, %v1169_v23 }
 0x19c   : > { %v1172_v39 = vpop.xlane.xlu0 %1171  ;;  %v1338_v53 = vsel %vm1127_vm2, %v5789_v27, 0.0 }
 0x19d   : > { %v5796_v51 = vpop.eup %5084  ;;  %5094 = vpow2.f32 %v1280_v11  ;;  %v1282_v24 = vmul.f32 1.442695, %v1237_v18  ;;  %v1238_v25 = vsub.f32 %v5678_v30, %v1172_v39  ;;  %1339 = vadd.xlane.f32.xlu0 %v1338_v53  ;;  %1336 = vadd.xlane.f32.xlu1 %v1335_v13 }
 0x19e   : > { %v1175_v44 = vpop.xlane.xlu1 %1174  ;;  %v1341_v63 = vsel %vm1127_vm2, %v5796_v51, 0.0 }
 0x19f   : > { %v5799_v35 = vpop.eup %5086  ;;  %5096 = vpow2.f32 %v1282_v24  ;;  %v1284_v31 = vmul.f32 1.442695, %v1238_v25  ;;  %v1239_v15 = vsub.f32 %v5684_v45, %v1175_v44 }
 0x1a0   : > { %v1178_v52 = vpop.xlane.xlu0 %1177  ;;  %v1344_v7 = vsel %vm1127_vm2, %v5799_v35, 0.0 }
 0x1a1   : > { %v5806_v62 = vpop.eup %5088  ;;  %5098 = vpow2.f32 %v1284_v31  ;;  %v1286_v30 = vmul.f32 1.442695, %v1239_v15  ;;  %v1240_v46 = vsub.f32 %v5690_v58, %v1178_v52  ;;  %1345 = vadd.xlane.f32.xlu0 %v1344_v7  ;;  %1342 = vadd.xlane.f32.xlu1 %v1341_v63 }
 0x1a2   : > { %v1181_v8 = vpop.xlane.xlu1 %1180  ;;  %v1347_v11 = vsel %vm1127_vm2, %v5806_v62, 0.0 }
 0x1a3   : > { %v5809_v32 = vpop.eup %5090  ;;  %5100 = vpow2.f32 %v1286_v30  ;;  %v1288_v45 = vmul.f32 1.442695, %v1240_v46  ;;  %v1241_v59 = vsub.f32 %v5696_v12, %v1181_v8 }
 0x1a4   : > { %v1184_v48 = vpop.xlane.xlu0 %1183  ;;  %v1350_v23 = vsel %vm1127_vm2, %v5809_v32, 0.0 }
 0x1a5   : > { %v5816_v18 = vpop.eup %5092  ;;  %5102 = vpow2.f32 %v1288_v45  ;;  %v1290_v58 = vmul.f32 1.442695, %v1241_v59  ;;  %v1242_v39 = vsub.f32 %v5694_v9, %v1184_v48  ;;  %1351 = vadd.xlane.f32.xlu0 %v1350_v23  ;;  %1348 = vadd.xlane.f32.xlu1 %v1347_v11  ;;  %v294_v48 = vld [vmem:[%s5840_s24] sm:$0xff]  ;;  %v295_v23 = vld [vmem:[%s5840_s24 + $0x8] sm:$0xff] }
 0x1a6   : > { %v1187_v53 = vpop.xlane.xlu1 %1186  ;;  %v1353_v31 = vsel %vm1127_vm2, %v5816_v18, 0.0 }
 0x1a7   : > { %v5819_v13 = vpop.eup %5094  ;;  %5104 = vpow2.f32 %v1290_v58  ;;  %v1292_v12 = vmul.f32 1.442695, %v1242_v39  ;;  %v1243_v24 = vsub.f32 %v5700_v26, %v1187_v53  ;;  %v5847_v58 = vpack.c.bf16 %v295_v23, %v294_v48 }
 0x1a8   : > { %v1190_v25 = vpop.xlane.xlu0 %1189  ;;  %v1356_v44 = vsel %vm1127_vm2, %v5819_v13, 0.0 }
 0x1a9   : > { %v5826_v15 = vpop.eup %5096  ;;  %5106 = vpow2.f32 %v1292_v12  ;;  %v1294_v9 = vmul.f32 1.442695, %v1243_v24  ;;  %v1244_v52 = vsub.f32 %v5706_v49, %v1190_v25  ;;  %1357 = vadd.xlane.f32.xlu0 %v1356_v44  ;;  %1354 = vadd.xlane.f32.xlu1 %v1353_v31 }
 0x1aa   : > { %v1193_v7 = vpop.xlane.xlu1 %1192  ;;  %v1359_v45 = vsel %vm1127_vm2, %v5826_v15, 0.0  ;;  %4771 = vmatpush3.bf16.msra.mxu0 %v5847_v58 }
 0x1ab   : > { %v5829_v63 = vpop.eup %5098  ;;  %5108 = vpow2.f32 %v1294_v9  ;;  %v1296_v26 = vmul.f32 1.442695, %v1244_v52  ;;  %v1245_v30 = vsub.f32 %v5712_v2, %v1193_v7  ;;  %v296_v52 = vld [vmem:[%s5840_s24 + $0x10] sm:$0xff]  ;;  %v297_v7 = vld [vmem:[%s5840_s24 + $0x18] sm:$0xff] }
 0x1ac   : > { %v1196_v46 = vpop.xlane.xlu0 %1195  ;;  %v1362_v8 = vsel %vm1127_vm2, %v5829_v63, 0.0 }
 0x1ad   : > { %v5842_v49 = vpop.eup %5100  ;;  %5110 = vpow2.f32 %v1296_v26  ;;  %v1298_v59 = vmul.f32 1.442695, %v1245_v30  ;;  %v1246_v2 = vsub.f32 %v5710_v1, %v1196_v46  ;;  %1363 = vadd.xlane.f32.xlu0 %v1362_v8  ;;  %1360 = vadd.xlane.f32.xlu1 %v1359_v45  ;;  %v5862_v26 = vpack.c.bf16 %v297_v7, %v296_v52 }
 0x1ae   : > { %v1199_v11 = vpop.xlane.xlu1 %1198  ;;  %v1365_v1 = vsel %vm1127_vm2, %v5842_v49, 0.0  ;;  %v6947_v30 = vmov 0.0  }
 0x1af   : > { %v5849_v39 = vpop.eup %5102  ;;  %5112 = vpow2.f32 %v1298_v59  ;;  %v1300_v53 = vmul.f32 1.442695, %v1246_v2  ;;  %v1247_v12 = vsub.f32 %v5716_v41, %v1199_v11  ;;  %4782 = vmatprep.subr.bf16.mxu0 %v6947_v30  ;;  %4777 = vmatpush3.bf16.msra.mxu1 %v5862_v26 }
 0x1b0   : > { %v1202_v24 = vpop.xlane.xlu0 %1201  ;;  %v1368_v25 = vsel %vm1127_vm2, %v5849_v39, 0.0  ;;  %4788 = vmatprep.subr.bf16.mxu1 %v6947_v30 }
 0x1b1   : > { %v5857_v44 = vpop.eup %5104  ;;  %5114 = vpow2.f32 %v1300_v53  ;;  %v1302_v31 = vmul.f32 1.442695, %v1247_v12  ;;  %v1248_v9 = vsub.f32 %v5722_v56, %v1202_v24  ;;  %1369 = vadd.xlane.f32.xlu0 %v1368_v25  ;;  %1366 = vadd.xlane.f32.xlu1 %v1365_v1 }
 0x1b2   : > { %v1205_v41 = vpop.xlane.xlu1 %1204  ;;  %v1371_v56 = vsel %vm1127_vm2, %v5857_v44, 0.0 }
 0x1b3   : > { %v5865_v46 = vpop.eup %5106  ;;  %5116 = vpow2.f32 %v1302_v31  ;;  %v1304_v8 = vmul.f32 1.442695, %v1248_v9  ;;  %v1249_v45 = vsub.f32 %v5728_v5, %v1205_v41 }
 0x1b4   : > { %v1208_v59 = vpop.xlane.xlu0 %1207  ;;  %v1374_v2 = vsel %vm1127_vm2, %v5865_v46, 0.0 }
 0x1b5   : > { %v5873_v48 = vpop.eup %5108  ;;  %5118 = vpow2.f32 %v1304_v8  ;;  %v1306_v23 = vmul.f32 1.442695, %v1249_v45  ;;  %v1250_v11 = vsub.f32 %v5726_v22, %v1208_v59  ;;  %1375 = vadd.xlane.f32.xlu0 %v1374_v2  ;;  %1372 = vadd.xlane.f32.xlu1 %v1371_v56 }
 0x1b6   : > { %v1211_v53 = vpop.xlane.xlu1 %1210  ;;  %v1377_v31 = vsel %vm1127_vm2, %v5873_v48, 0.0 }
 0x1b7   : > { %v5877_v5 = vpop.eup %5110  ;;  %5120 = vpow2.f32 %v1306_v23  ;;  %v1308_v12 = vmul.f32 1.442695, %v1250_v11  ;;  %v1251_v24 = vsub.f32 %v5732_v42, %v1211_v53 }
 0x1b8   : > { %v1214_v25 = vpop.xlane.xlu0 %1213  ;;  %v1380_v1 = vsel %vm1127_vm2, %v5877_v5, 0.0 }
 0x1b9   : > { %v5884_v9 = vpop.eup %5112  ;;  %5122 = vpow2.f32 %v1308_v12  ;;  %v1310_v22 = vmul.f32 1.442695, %v1251_v24  ;;  %v1252_v52 = vsub.f32 %v5738_v16, %v1214_v25  ;;  %1381 = vadd.xlane.f32.xlu0 %v1380_v1  ;;  %1378 = vadd.xlane.f32.xlu1 %v1377_v31 }
 0x1ba   : > { %v1383_v45 = vsel %vm1127_vm2, %v5884_v9, 0.0 }
 0x1bb   : > { %v5887_v7 = vpop.eup %5114  ;;  %5124 = vpow2.f32 %v1310_v22  ;;  %v1312_v41 = vmul.f32 1.442695, %v1252_v52 }
 0x1bc   : > { %v1220_v42 = vpop.xlane.xlu0 %1219  ;;  %v1386_v8 = vsel %vm1127_vm2, %v5887_v7, 0.0 }
 0x1bd   : > { %v5893_v59 = vpop.eup %5116  ;;  %5126 = vpow2.f32 %v1312_v41  ;;  %v1254_v2 = vsub.f32 %v5742_v55, %v1220_v42  ;;  %1387 = vadd.xlane.f32.xlu0 %v1386_v8  ;;  %1384 = vadd.xlane.f32.xlu1 %v1383_v45  ;;  %v1217_v42 = vpop.xlane.xlu1 %1216 }
 0x1be   : > { %v1389_v11 = vsel %vm1127_vm2, %v5893_v59, 0.0  ;;  %v1253_v8 = vsub.f32 %v5744_v37, %v1217_v42  ;;  %v302_v37 = vld [vmem:[%s5840_s24 + $0x40] sm:$0xff]  ;;  %v311_v42 = vld [vmem:[%s5840_s24 + $0x88] sm:$0xff] }
 0x1bf   : > { %v5896_v16 = vpop.eup %5118  ;;  %v1316_v56 = vmul.f32 1.442695, %v1254_v2 }
 0x1c0   : > { %v1392_v23 = vsel %vm1127_vm2, %v5896_v16, 0.0 }
 0x1c1   : > { %v5902_v53 = vpop.eup %5120  ;;  %5128 = vpow2.f32 %v1316_v56  ;;  %1393 = vadd.xlane.f32.xlu0 %v1392_v23  ;;  %1390 = vadd.xlane.f32.xlu1 %v1389_v11  ;;  %v1223_v45 = vpop.xlane.xlu1 %1222  ;;  %v307_v11 = vld [vmem:[%s5840_s24 + $0x68] sm:$0xff] }
 0x1c2   : > { %v1395_v24 = vsel %vm1127_vm2, %v5902_v53, 0.0  ;;  %v1255_v2 = vsub.f32 %v5748_v0, %v1223_v45 }
 0x1c3   : > { %v5904_v12 = vpop.eup %5122 }
 0x1c4   : > { %v1398_v55 = vsel %vm1127_vm2, %v5904_v12, 0.0 }
 0x1c5   : > { %v5910_v25 = vpop.eup %5124  ;;  %1399 = vadd.xlane.f32.xlu0 %v1398_v55  ;;  %1396 = vadd.xlane.f32.xlu1 %v1395_v24  ;;  %v6952_v55 = vld [vmem:[#allocation6_spill] sm:$0xff] }
 0x1c6   : > { %v1401_v22 = vsel %vm1127_vm2, %v5910_v25, 0.0 }
 0x1c7   : > { %v5912_v1 = vpop.eup %5126 }
 0x1c8   : > { %v1404_v31 = vsel %vm1127_vm2, %v5912_v1, 0.0 }
 0x1c9   : > { %1405 = vadd.xlane.f32.xlu0 %v1404_v31  ;;  %1402 = vadd.xlane.f32.xlu1 %v1401_v22 }
 0x1cb   : > { %v5918_v52 = vpop.eup %5128 }
 0x1cc   : > { %v1410_v41 = vsel %vm1127_vm2, %v5918_v52, 0.0 }
 0x1cd   : > { %1411 = vadd.xlane.f32.xlu0 %v1410_v41  ;;  %v310_v41 = vld [vmem:[%s5840_s24 + $0x80] sm:$0xff] }
 0x1da   : > { %2257 = vrot.lane.b32.xlu1 %v5392_v6, %s5336_s25  ;;  %v1314_v6 = vmul.f32 1.442695, %v1253_v8  ;;  %v6953_v8 = vld [vmem:[#allocation5_spill] sm:$0xff] }
 0x1dc   : > { %5130 = vpow2.f32 %v1314_v6  ;;  %v5997_v6 = vpack.c.bf16 %v311_v42, %v310_v41  ;;  %v304_v41 = vld [vmem:[%s5840_s24 + $0x50] sm:$0xff]  ;;  %v305_v42 = vld [vmem:[%s5840_s24 + $0x58] sm:$0xff] }
 0x1de   : > { %2201 = vrot.lane.b32.xlu1 %v5412_v19, %s5336_s25 }
 0x1e3   : > { %2204 = vrot.lane.b32.xlu0 %v5383_v4, %s5336_s25  ;;  %v1318_v4 = vmul.f32 1.442695, %v1255_v2 }
 0x1e5   : > { %5132 = vpow2.f32 %v1318_v4 }
 0x1e7   : > { %2310 = vrot.lane.b32.xlu0 %v5407_v17, %s5336_s25  ;;  %v5942_v17 = vpop.eup %5130 }
 0x1e8   : > { %v1407_v19 = vsel %vm1127_vm2, %v5942_v17, 0.0 }
 0x1eb   : > { %2307 = vrot.lane.b32.xlu0 %v5441_v33, %s5336_s25 }
 0x1ef   : > { %2416 = vrot.lane.b32.xlu0 %v5432_v29, %s5336_s25  ;;  %v5948_v29 = vpop.eup %5132 }
 0x1f0   : > { %v1413_v33 = vsel %vm1127_vm2, %v5948_v29, 0.0 }
 0x1f3   : > { %2413 = vrot.lane.b32.xlu0 %v5471_v47, %s5336_s25  ;;  %v6949_v47 = vld [vmem:[#allocation15_spill] sm:$0xff] }
 0x1f7   : > { %2522 = vrot.lane.b32.xlu0 %v5462_v43, %s5336_s25  ;;  %v6948_v43 = vld [vmem:[#allocation2_spill] sm:$0xff] }
 0x1fb   : > { %2519 = vrot.lane.b32.xlu0 %v5501_v61, %s5336_s25  ;;  %v298_v61 = vld [vmem:[%s5840_s24 + $0x20] sm:$0xff] }
 0x1ff   : > { %2628 = vrot.lane.b32.xlu0 %v5492_v57, %s5336_s25 }
 0x202   : > { %1408 = vadd.xlane.f32.xlu1 %v1407_v19 }
 0x203   : > { %2625 = vrot.lane.b32.xlu0 %v5531_v14, %s5336_s25  ;;  %v6950_v14 = vld [vmem:[#allocation4_spill] sm:$0xff] }
 0x206   : > { %1414 = vadd.xlane.f32.xlu1 %v1413_v33 }
 0x207   : > { %2734 = vrot.lane.b32.xlu0 %v5522_v10, %s5336_s25  ;;  %v299_v10 = vld [vmem:[%s5840_s24 + $0x28] sm:$0xff] }
 0x20b   : > { %2731 = vrot.lane.b32.xlu0 %v5561_v36, %s5336_s25 }
 0x20f   : > { %2840 = vrot.lane.b32.xlu0 %v5552_v28, %s5336_s25 }
 0x213   : > { %2837 = vrot.lane.b32.xlu0 %v5591_v54, %s5336_s25  ;;  %v6951_v54 = vld [vmem:[#allocation3_spill] sm:$0xff] }
 0x217   : > { %2254 = vrot.lane.b32.xlu1 %v5414_v20, %s5336_s25  ;;  %2946 = vrot.lane.b32.xlu0 %v5582_v50, %s5336_s25  ;;  %v360_v20 = vpack.c.bf16 %v299_v10, %v298_v61  ;;  %v303_v50 = vld [vmem:[%s5840_s24 + $0x48] sm:$0xff]  ;;  %v300_v10 = vld [vmem:[%s5840_s24 + $0x30] sm:$0xff] }
 0x218   : > { %v5981_v0 = vpack.c.bf16 %v303_v50, %v302_v37 }
 0x21b   : > { %2363 = vrot.lane.b32.xlu1 %v6948_v43, %s5336_s25  ;;  %2943 = vrot.lane.b32.xlu0 %v6949_v47, %s5336_s25  ;;  %v6954_v47 = vld [vmem:[#allocation8_spill] sm:$0xff] }
 0x21e   : > { %v1322_v57 = vpop.xlane.xlu0 %1321 }
 0x21f   : > { %2360 = vrot.lane.b32.xlu1 %v6950_v14, %s5336_s25  ;;  %3417 = vrot.lane.b32.xlu0 %v5847_v58, %s5336_s25  ;;  %5134 = vrcp.f32 %v1322_v57  ;;  %v306_v58 = vld [vmem:[%s5840_s24 + $0x60] sm:$0xff]  ;;  %v301_v14 = vld [vmem:[%s5840_s24 + $0x38] sm:$0xff] }
 0x220   : > { %v5989_v24 = vpack.c.bf16 %v307_v11, %v306_v58 }
 0x222   : > { %v1328_v28 = vpop.xlane.xlu0 %1327  ;;  %v1325_v36 = vpop.xlane.xlu1 %1324 }
 0x223   : > { %2469 = vrot.lane.b32.xlu1 %v6951_v54, %s5336_s25  ;;  %3513 = vrot.lane.b32.xlu0 %v360_v20, %s5336_s25  ;;  %5136 = vrcp.f32 %v1325_v36 }
 0x224   : > { %5138 = vrcp.f32 %v1328_v28 }
 0x226   : > { %v1334_v56 = vpop.xlane.xlu0 %1333  ;;  %v1331_v23 = vpop.xlane.xlu1 %1330 }
 0x227   : > { %2466 = vrot.lane.b32.xlu1 %v6952_v55, %s5336_s25  ;;  %3609 = vrot.lane.b32.xlu0 %v5981_v0, %s5336_s25  ;;  %5140 = vrcp.f32 %v1331_v23 }
 0x228   : > { %5142 = vrcp.f32 %v1334_v56  ;;  %v6014_v56 = vpack.c.bf16 %v301_v14, %v300_v10 }
 0x229   : > { %v5135_v45 = vpop.eup %5134 }
 0x22a   : > { %v1340_v31 = vpop.xlane.xlu0 %1339  ;;  %v1337_v22 = vpop.xlane.xlu1 %1336  ;;  %v1448_v33 = vmul.f32 %v5135_v45, %v5761_v21 }
 0x22b   : > { %2575 = vrot.lane.b32.xlu1 %v6953_v8, %s5336_s25  ;;  %3705 = vrot.lane.b32.xlu0 %v5989_v24, %s5336_s25  ;;  %5144 = vrcp.f32 %v1337_v22 }
 0x22c   : > { %5146 = vrcp.f32 %v1340_v31 }
 0x22d   : > { %v5137_v2 = vpop.eup %5136 }
 0x22e   : > { %v1346_v4 = vpop.xlane.xlu0 %1345  ;;  %v1343_v19 = vpop.xlane.xlu1 %1342  ;;  %v1449_v43 = vmul.f32 %v5137_v2, %v5769_v38  ;;  %v6955_v38 = vld [vmem:[#allocation7_spill] sm:$0xff] }
 0x22f   : > { %2572 = vrot.lane.b32.xlu1 %v6954_v47, %s5336_s25  ;;  %3801 = vrot.lane.b32.xlu0 %v5997_v6, %s5336_s25  ;;  %v5139_v57 = vpop.eup %5138  ;;  %5148 = vrcp.f32 %v1343_v19 }
 0x230   : > { %v1480_v61 = vpack.c.bf16 %v1449_v43, %v1448_v33  ;;  %5150 = vrcp.f32 %v1346_v4  ;;  %v1450_v50 = vmul.f32 %v5139_v57, %v5766_v3  ;;  %v6957_v4 = vld [vmem:[#allocation9_spill] sm:$0xff]  ;;  %v6036_v33 = vpack.c.bf16 %v305_v42, %v304_v41 }
 0x231   : > { %v5141_v28 = vpop.eup %5140 }
 0x232   : > { %v1352_v36 = vpop.xlane.xlu0 %1351  ;;  %v1349_v37 = vpop.xlane.xlu1 %1348  ;;  %v1451_v21 = vmul.f32 %v5141_v28, %v5776_v40  ;;  %4773 = vmatmul.mubr.msk.bf16.vlgmr.msra.gmra.mrb[32].mxu0 %vm1127_vm2, %v1480_v61  ;;  %v308_v28 = vld [vmem:[%s5840_s24 + $0x70] sm:$0xff] }
 0x233   : > { %2681 = vrot.lane.b32.xlu1 %v6955_v38, %s5336_s25  ;;  %v5143_v54 = vpop.eup %5142  ;;  %5152 = vrcp.f32 %v1349_v37  ;;  %4783 = vmatpush3.bf16.msra.mxu0 %v360_v20  ;;  %v6956_v20 = vld [vmem:[#allocation10_spill] sm:$0xff]  ;;  %v6959_v38 = vld [vmem:[#allocation11_spill] sm:$0xff] }
 0x234   : > { %4784 = vmatprep.mubr.msk.bf16.mxu0 %vm5335_vm0, %v6947_v30  ;;  %v1481_v23 = vpack.c.bf16 %v1451_v21, %v1450_v50  ;;  %4794 = vmatprep.subr.bf16.mxu0 %v6947_v30  ;;  %5154 = vrcp.f32 %v1352_v36  ;;  %v1452_v11 = vmul.f32 %v5143_v54, %v5779_v60  ;;  %v309_v36 = vld [vmem:[%s5840_s24 + $0x78] sm:$0xff] }
 0x235   : > { %v5145_v3 = vpop.eup %5144 }
 0x236   : > { %v1358_v40 = vpop.xlane.xlu0 %1357  ;;  %v1355_v58 = vpop.xlane.xlu1 %1354  ;;  %v1453_v55 = vmul.f32 %v5145_v3, %v5786_v34  ;;  %4779 = vmatmul.mubr.msk.bf16.vlgmr.msra.gmra.mrb[32].mxu1 %vm1127_vm2, %v1481_v23  ;;  %v6058_v23 = vpack.c.bf16 %v309_v36, %v308_v28 }
 0x237   : > { %2678 = vrot.lane.b32.xlu1 %v6956_v20, %s5336_s25  ;;  %v5147_v31 = vpop.eup %5146  ;;  %5156 = vrcp.f32 %v1355_v58  ;;  %4789 = vmatpush3.bf16.msra.mxu1 %v6014_v56 }
 0x238   : > { %4790 = vmatprep.mubr.msk.bf16.mxu1 %vm5335_vm0, %v6947_v30  ;;  %v1482_v22 = vpack.c.bf16 %v1453_v55, %v1452_v11  ;;  %4800 = vmatprep.subr.bf16.mxu1 %v6947_v30  ;;  %5158 = vrcp.f32 %v1358_v40  ;;  %v1454_v45 = vmul.f32 %v5147_v31, %v5789_v27  ;;  %v312_v31 = vld [vmem:[%s5840_s24 + $0x90] sm:$0xff] }
 0x239   : > { %v5149_v60 = vpop.eup %5148 }
 0x23a   : > { %v1364_v34 = vpop.xlane.xlu0 %1363  ;;  %v1361_v8 = vpop.xlane.xlu1 %1360  ;;  %v1455_v2 = vmul.f32 %v5149_v60, %v5796_v51  ;;  %4785 = vmatmul.mubr.msk.bf16.vlgmr.msra.gmra.mrb[36].mxu0 %vm1127_vm2, %v1482_v22  ;;  %v313_v22 = vld [vmem:[%s5840_s24 + $0x98] sm:$0xff] }
 0x23b   : > { %2787 = vrot.lane.b32.xlu1 %v6957_v4, %s5336_s25  ;;  %v5151_v19 = vpop.eup %5150  ;;  %5160 = vrcp.f32 %v1361_v8  ;;  %4795 = vmatpush3.bf16.msra.mxu0 %v5981_v0  ;;  %v6958_v0 = vld [vmem:[#allocation12_spill] sm:$0xff]  ;;  %v315_v4 = vld [vmem:[%s5840_s24 + $0xa8] sm:$0xff] }
 0x23c   : > { %4796 = vmatprep.mubr.msk.bf16.mxu0 %vm5335_vm0, %v6947_v30  ;;  %v1483_v43 = vpack.c.bf16 %v1455_v2, %v1454_v45  ;;  %4806 = vmatprep.subr.bf16.mxu0 %v6947_v30  ;;  %5162 = vrcp.f32 %v1364_v34  ;;  %v1456_v57 = vmul.f32 %v5151_v19, %v5799_v35  ;;  %v6961_v34 = vld [vmem:[#allocation13_spill] sm:$0xff]  ;;  %v6080_v45 = vpack.c.bf16 %v313_v22, %v312_v31 }
 0x23d   : > { %v5153_v27 = vpop.eup %5152 }
 0x23e   : > { %v1370_v51 = vpop.xlane.xlu0 %1369  ;;  %v1367_v47 = vpop.xlane.xlu1 %1366  ;;  %v1457_v61 = vmul.f32 %v5153_v27, %v5806_v62  ;;  %4791 = vmatmul.mubr.msk.bf16.vlgmr.msra.gmra.mrb[36].mxu1 %vm1127_vm2, %v1483_v43 }
 0x23f   : > { %2784 = vrot.lane.b32.xlu1 %v6958_v0, %s5336_s25  ;;  %v5155_v10 = vpop.eup %5154  ;;  %5164 = vrcp.f32 %v1367_v47  ;;  %4801 = vmatpush3.bf16.msra.mxu1 %v6036_v33  ;;  %v317_v0 = vld [vmem:[%s5840_s24 + $0xb8] sm:$0xff] }
 0x240   : > { %4802 = vmatprep.mubr.msk.bf16.mxu1 %vm5335_vm0, %v6947_v30  ;;  %v1484_v14 = vpack.c.bf16 %v1457_v61, %v1456_v57  ;;  %4812 = vmatprep.subr.bf16.mxu1 %v6947_v30  ;;  %5166 = vrcp.f32 %v1370_v51  ;;  %v1458_v50 = vmul.f32 %v5155_v10, %v5809_v32  ;;  %v6962_v51 = vld [vmem:[#allocation16_spill] sm:$0xff] }
 0x241   : > { %v5157_v35 = vpop.eup %5156 }
 0x242   : > { %v1376_v62 = vpop.xlane.xlu0 %1375  ;;  %v1373_v37 = vpop.xlane.xlu1 %1372  ;;  %v1459_v21 = vmul.f32 %v5157_v35, %v5816_v18  ;;  %4797 = vmatmul.mubr.msk.bf16.vlgmr.msra.gmra.mrb[40].mxu0 %vm1127_vm2, %v1484_v14 }
 0x243   : > { %2893 = vrot.lane.b32.xlu1 %v6959_v38, %s5336_s25  ;;  %v5159_v54 = vpop.eup %5158  ;;  %5168 = vrcp.f32 %v1373_v37  ;;  %4807 = vmatpush3.bf16.msra.mxu0 %v5989_v24  ;;  %v6960_v24 = vld [vmem:[#allocation14_spill] sm:$0xff] }
 0x244   : > { %4808 = vmatprep.mubr.msk.bf16.mxu0 %vm5335_vm0, %v6947_v30  ;;  %v1485_v3 = vpack.c.bf16 %v1459_v21, %v1458_v50  ;;  %4818 = vmatprep.subr.bf16.mxu0 %v6947_v30  ;;  %5170 = vrcp.f32 %v1376_v62  ;;  %v1460_v58 = vmul.f32 %v5159_v54, %v5819_v13 }
 0x245   : > { %v5161_v32 = vpop.eup %5160 }
 0x246   : > { %v1382_v18 = vpop.xlane.xlu0 %1381  ;;  %v1379_v40 = vpop.xlane.xlu1 %1378  ;;  %v1461_v11 = vmul.f32 %v5161_v32, %v5826_v15  ;;  %4803 = vmatmul.mubr.msk.bf16.vlgmr.msra.gmra.mrb[40].mxu1 %vm1127_vm2, %v1485_v3 }
 0x247   : > { %2890 = vrot.lane.b32.xlu1 %v6960_v24, %s5336_s25  ;;  %v5163_v55 = vpop.eup %5162  ;;  %5172 = vrcp.f32 %v1379_v40  ;;  %4813 = vmatpush3.bf16.msra.mxu1 %v6058_v23 }
 0x248   : > { %4814 = vmatprep.mubr.msk.bf16.mxu1 %vm5335_vm0, %v6947_v30  ;;  %v1486_v20 = vpack.c.bf16 %v1461_v11, %v1460_v58  ;;  %4824 = vmatprep.subr.bf16.mxu1 %v6947_v30  ;;  %5174 = vrcp.f32 %v1382_v18  ;;  %v1462_v42 = vmul.f32 %v5163_v55, %v5829_v63  ;;  %v314_v63 = vld [vmem:[%s5840_s24 + $0xa0] sm:$0xff] }
 0x249   : > { %v5165_v13 = vpop.eup %5164  ;;  %v6093_v57 = vpack.c.bf16 %v315_v4, %v314_v63 }
 0x24a   : > { %v1388_v15 = vpop.xlane.xlu0 %1387  ;;  %v1385_v41 = vpop.xlane.xlu1 %1384  ;;  %v1463_v60 = vmul.f32 %v5165_v13, %v5842_v49  ;;  %4809 = vmatmul.mubr.msk.bf16.vlgmr.msra.gmra.mrb[44].mxu0 %vm1127_vm2, %v1486_v20 }
 0x24b   : > { %2999 = vrot.lane.b32.xlu1 %v6961_v34, %s5336_s25  ;;  %v5167_v8 = vpop.eup %5166  ;;  %5176 = vrcp.f32 %v1385_v41  ;;  %4819 = vmatpush3.bf16.msra.mxu0 %v5997_v6 }
 0x24c   : > { %4820 = vmatprep.mubr.msk.bf16.mxu0 %vm5335_vm0, %v6947_v30  ;;  %v1487_v2 = vpack.c.bf16 %v1463_v60, %v1462_v42  ;;  %4830 = vmatprep.subr.bf16.mxu0 %v6947_v30  ;;  %5178 = vrcp.f32 %v1388_v15  ;;  %v1464_v27 = vmul.f32 %v5167_v8, %v5849_v39  ;;  %v316_v39 = vld [vmem:[%s5840_s24 + $0xb0] sm:$0xff] }
 0x24d   : > { %v5169_v49 = vpop.eup %5168  ;;  %v369_v62 = vpack.c.bf16 %v317_v0, %v316_v39  ;;  %v324_v15 = vld [vmem:[%s5840_s24 + $0xf0] sm:$0xff] }
 0x24e   : > { %v1394_v19 = vpop.xlane.xlu0 %1393  ;;  %v1391_v43 = vpop.xlane.xlu1 %1390  ;;  %v1465_v6 = vmul.f32 %v5169_v49, %v5857_v44  ;;  %4815 = vmatmul.mubr.msk.bf16.vlgmr.msra.gmra.mrb[44].mxu1 %vm1127_vm2, %v1487_v2 }
 0x24f   : > { %2996 = vrot.lane.b32.xlu1 %v6962_v51, %s5336_s25  ;;  %v5171_v47 = vpop.eup %5170  ;;  %5180 = vrcp.f32 %v1391_v43  ;;  %4825 = vmatpush3.bf16.msra.mxu1 %v6080_v45 }
 0x250   : > { %4826 = vmatprep.mubr.msk.bf16.mxu1 %vm5335_vm0, %v6947_v30  ;;  %v1488_v61 = vpack.c.bf16 %v1465_v6, %v1464_v27  ;;  %4836 = vmatprep.subr.bf16.mxu1 %v6947_v30  ;;  %5182 = vrcp.f32 %v1394_v19  ;;  %v1466_v14 = vmul.f32 %v5171_v47, %v5865_v46  ;;  %v318_v46 = vld [vmem:[%s5840_s24 + $0xc0] sm:$0xff] }
 0x251   : > { %v5173_v44 = vpop.eup %5172 }
 0x252   : > { %v1397_v10 = vpop.xlane.xlu1 %1396  ;;  %v1467_v28 = vmul.f32 %v5173_v44, %v5873_v48  ;;  %v1400_v36 = vpop.xlane.xlu0 %1399  ;;  %4821 = vmatmul.mubr.msk.bf16.vlgmr.msra.gmra.mrb[48].mxu0 %vm1127_vm2, %v1488_v61  ;;  %v319_v48 = vld [vmem:[%s5840_s24 + $0xc8] sm:$0xff] }
 0x253   : > { %3465 = vrot.lane.b32.xlu1 %v5862_v26, %s5336_s25  ;;  %v5175_v35 = vpop.eup %5174  ;;  %5184 = vrcp.f32 %v1397_v10  ;;  %4831 = vmatpush3.bf16.msra.mxu0 %v6093_v57  ;;  %v6116_v3 = vpack.c.bf16 %v319_v48, %v318_v46 }
 0x254   : > { %4832 = vmatprep.mubr.msk.bf16.mxu0 %vm5335_vm0, %v6947_v30  ;;  %v1489_v37 = vpack.c.bf16 %v1467_v28, %v1466_v14  ;;  %4842 = vmatprep.subr.bf16.mxu0 %v6947_v30  ;;  %5186 = vrcp.f32 %v1400_v36  ;;  %v1468_v26 = vmul.f32 %v5175_v35, %v5877_v5  ;;  %v320_v5 = vld [vmem:[%s5840_s24 + $0xd0] sm:$0xff] }
 0x255   : > { %v5177_v50 = vpop.eup %5176 }
 0x256   : > { %v1403_v21 = vpop.xlane.xlu1 %1402  ;;  %v1469_v38 = vmul.f32 %v5177_v50, %v5884_v9  ;;  %4827 = vmatmul.mubr.msk.bf16.vlgmr.msra.gmra.mrb[48].mxu1 %vm1127_vm2, %v1489_v37  ;;  %v5179_v54 = vpop.eup %5178  ;;  %v321_v9 = vld [vmem:[%s5840_s24 + $0xd8] sm:$0xff] }
 0x257   : > { %3561 = vrot.lane.b32.xlu1 %v6014_v56, %s5336_s25  ;;  %5188 = vrcp.f32 %v1403_v21  ;;  %4837 = vmatpush3.bf16.msra.mxu1 %v369_v62  ;;  %v1470_v40 = vmul.f32 %v5179_v54, %v5887_v7  ;;  %v6129_v11 = vpack.c.bf16 %v321_v9, %v320_v5  ;;  %v322_v7 = vld [vmem:[%s5840_s24 + $0xe0] sm:$0xff] }
 0x258   : > { %4838 = vmatprep.mubr.msk.bf16.mxu1 %vm5335_vm0, %v6947_v30  ;;  %v1490_v32 = vpack.c.bf16 %v1469_v38, %v1468_v26  ;;  %4848 = vmatprep.subr.bf16.mxu1 %v6947_v30 }
 0x259   : > { %v5181_v18 = vpop.eup %5180 }
 0x25a   : > { %v1471_v56 = vmul.f32 %v5181_v18, %v5893_v59  ;;  %4833 = vmatmul.mubr.msk.bf16.vlgmr.msra.gmra.mrb[52].mxu0 %vm1127_vm2, %v1490_v32  ;;  %v5183_v58 = vpop.eup %5182  ;;  %v323_v59 = vld [vmem:[%s5840_s24 + $0xe8] sm:$0xff]  ;;  %v2258_v34 = vpop.permute.xlu1 %2257 }
 0x25b   : > { %3657 = vrot.lane.b32.xlu1 %v6036_v33, %s5336_s25  ;;  %4843 = vmatpush3.bf16.msra.mxu0 %v6116_v3  ;;  %v1472_v20 = vmul.f32 %v5183_v58, %v5896_v16  ;;  %v6142_v22 = vpack.c.bf16 %v323_v59, %v322_v7  ;;  %v325_v16 = vld [vmem:[%s5840_s24 + $0xf8] sm:$0xff]  ;;  %v2263_v35 = vsel %vm374_vm1, %v2258_v34, 0 }
 0x25c   : > { %4844 = vmatprep.mubr.msk.bf16.mxu0 %vm5335_vm0, %v6947_v30  ;;  %v1491_v24 = vpack.c.bf16 %v1471_v56, %v1470_v40  ;;  %4854 = vmatprep.subr.bf16.mxu0 %v6947_v30 }
 0x25d   : > { %v5185_v55 = vpop.eup %5184 }
 0x25e   : > { %v1473_v33 = vmul.f32 %v5185_v55, %v5902_v53  ;;  %4839 = vmatmul.mubr.msk.bf16.vlgmr.msra.gmra.mrb[52].mxu1 %vm1127_vm2, %v1491_v24  ;;  %v5187_v31 = vpop.eup %5186  ;;  %v2202_v2 = vpop.permute.xlu1 %2201 }
 0x25f   : > { %3753 = vrot.lane.b32.xlu1 %v6058_v23, %s5336_s25  ;;  %4849 = vmatpush3.bf16.msra.mxu1 %v6129_v11  ;;  %v1474_v53 = vmul.f32 %v5187_v31, %v5904_v12  ;;  %v6153_v23 = vpack.c.bf16 %v325_v16, %v324_v15  ;;  %v1406_v12 = vpop.xlane.xlu0 %1405 }
 0x260   : > { %4850 = vmatprep.mubr.msk.bf16.mxu1 %vm5335_vm0, %v6947_v30  ;;  %v1492_v13 = vpack.c.bf16 %v1473_v33, %v1472_v20  ;;  %4860 = vmatprep.subr.bf16.mxu1 %v6947_v30  ;;  %5190 = vrcp.f32 %v1406_v12 }
 0x261   : > { %v5189_v41 = vpop.eup %5188 }
 0x262   : > { %v1475_v42 = vmul.f32 %v5189_v41, %v5910_v25  ;;  %4845 = vmatmul.mubr.msk.bf16.vlgmr.msra.gmra.mrb[56].mxu0 %vm1127_vm2, %v1492_v13 }
 0x263   : > { %3849 = vrot.lane.b32.xlu1 %v6080_v45, %s5336_s25  ;;  %4855 = vmatpush3.bf16.msra.mxu0 %v6142_v22  ;;  %v1412_v25 = vpop.xlane.xlu0 %1411 }
 0x264   : > { %4856 = vmatprep.mubr.msk.bf16.mxu0 %vm5335_vm0, %v6947_v30  ;;  %v1493_v60 = vpack.c.bf16 %v1475_v42, %v1474_v53  ;;  %4866 = vmatprep.subr.bf16.mxu0 %v6947_v30 }
 0x266   : > { %4851 = vmatmul.mubr.msk.bf16.vlgmr.msra.gmra.mrb[56].mxu1 %vm1127_vm2, %v1493_v60 }
 0x267   : > { %3897 = vrot.lane.b32.xlu1 %v6093_v57, %s5336_s25  ;;  %4861 = vmatpush3.bf16.msra.mxu1 %v6153_v23  ;;  %v2205_v8 = vpop.permute.xlu0 %2204 }
 0x268   : > { %4862 = vmatprep.mubr.msk.bf16.mxu1 %vm5335_vm0, %v6947_v30  ;;  %4872 = vmatprep.subr.bf16.mxu1 %v6947_v30  ;;  %v2210_v0 = vsel %vm374_vm1, %v2205_v8, 0 }
 0x26a   : > { %v5191_v27 = vpop.eup %5190 }
 0x26b   : > { %3945 = vrot.lane.b32.xlu1 %v369_v62, %s5336_s25  ;;  %v2311_v45 = vpop.permute.xlu0 %2310  ;;  %v1476_v51 = vmul.f32 %v5191_v27, %v5912_v1 }
 0x26f   : > { %v2308_v4 = vpop.permute.xlu0 %2307 }
 0x273   : > { %v2417_v19 = vpop.permute.xlu0 %2416 }
 0x274   : > { %v2422_v50 = vsel %vm374_vm1, %v2417_v19, 0 }
 0x277   : > { %v2414_v39 = vpop.permute.xlu0 %2413 }
 0x28f   : > { %v1409_v63 = vpop.xlane.xlu1 %1408 }
 0x290   : > { %5192 = vrcp.f32 %v1409_v63 }
 0x291   : > { %5194 = vrcp.f32 %v1412_v25 }
 0x293   : > { %v1415_v49 = vpop.xlane.xlu1 %1414 }
 0x294   : > { %5196 = vrcp.f32 %v1415_v49 }
 0x297   : > { %v2255_v43 = vpop.permute.xlu1 %2254 }
 0x29a   : > { %v5193_v6 = vpop.eup %5192 }
 0x29b   : > { %v1477_v47 = vmul.f32 %v5193_v6, %v5942_v17  ;;  %v2364_v57 = vpop.permute.xlu1 %2363  ;;  %v5195_v61 = vpop.eup %5194 }
 0x29c   : > { %v1478_v14 = vmul.f32 %v5195_v61, %v5918_v52  ;;  %v2523_v17 = vpop.permute.xlu0 %2522  ;;  %v2316_v52 = vsel %vm374_vm1, %v2311_v45, 0  ;;  %v2369_v46 = vsel %vm374_vm1, %v2364_v57, 0 }
 0x29d   : > { %v1494_v44 = vpack.c.bf16 %v1477_v47, %v1476_v51  ;;  %v2528_v5 = vsel %vm374_vm1, %v2523_v17, 0 }
 0x29e   : > { %v5197_v10 = vpop.eup %5196 }
 0x29f   : > { %v1479_v28 = vmul.f32 %v5197_v10, %v5948_v29  ;;  %4857 = vmatmul.mubr.msk.bf16.vlgmr.msra.gmra.mrb[60].mxu0 %vm1127_vm2, %v1494_v44  ;;  %v2361_v36 = vpop.permute.xlu1 %2360 }
 0x2a0   : > { %4867 = vmatpush3.bf16.xpose.msra.mxu0 %v2210_v0  ;;  %4868 = vmatprep.mubr.msk.bf16.mxu0 %vm5335_vm0, %v6947_v30  ;;  %v2520_v37 = vpop.permute.xlu0 %2519 }
 0x2a1   : > { %v1495_v1 = vpack.c.bf16 %v1479_v28, %v1478_v14  ;;  %4878 = vmatprep.subr.bf16.mxu0 %v6947_v30 }
 0x2a3   : > { %4863 = vmatmul.mubr.msk.bf16.vlgmr.msra.gmra.mrb[60].mxu1 %vm1127_vm2, %v1495_v1  ;;  %v2470_v62 = vpop.permute.xlu1 %2469 }
 0x2a4   : > { %4873 = vmatpush3.bf16.xpose.msra.mxu1 %v2263_v35  ;;  %4874 = vmatprep.mubr.msk.bf16.mxu1 %vm5335_vm0, %v6947_v30  ;;  %v2629_v21 = vpop.permute.xlu0 %2628  ;;  %v2475_v38 = vsel %vm374_vm1, %v2470_v62, 0 }
 0x2a5   : > { %4884 = vmatprep.subr.bf16.mxu1 %v6947_v30  ;;  %v2634_v56 = vsel %vm374_vm1, %v2629_v21, 0 }
 0x2a7   : > { %4869 = vmatmul.mubr.msk.bf16.vlgmr.msra.gmra.mrb[64].mxu0 %vm374_vm1, %v2202_v2  ;;  %v2467_v29 = vpop.permute.xlu1 %2466 }
 0x2a8   : > { %4879 = vmatpush3.bf16.xpose.msra.mxu0 %v2316_v52  ;;  %4880 = vmatprep.mubr.msk.bf16.mxu0 %vm5335_vm0, %v6947_v30  ;;  %v2626_v32 = vpop.permute.xlu0 %2625 }
 0x2a9   : > { %4890 = vmatprep.subr.bf16.mxu0 %v6947_v30 }
 0x2ab   : > { %4875 = vmatmul.mubr.msk.bf16.vlgmr.msra.gmra.mrb[64].mxu1 %vm374_vm1, %v2255_v43  ;;  %v2576_v48 = vpop.permute.xlu1 %2575 }
 0x2ac   : > { %4885 = vmatpush3.bf16.xpose.msra.mxu1 %v2369_v46  ;;  %4886 = vmatprep.mubr.msk.bf16.mxu1 %vm5335_vm0, %v6947_v30  ;;  %v2581_v18 = vsel %vm374_vm1, %v2576_v48, 0  ;;  %v2735_v40 = vpop.permute.xlu0 %2734 }
 0x2ad   : > { %4896 = vmatprep.subr.bf16.mxu1 %v6947_v30  ;;  %v2740_v55 = vsel %vm374_vm1, %v2735_v40, 0 }
 0x2af   : > { %4881 = vmatmul.mubr.msk.bf16.vlgmr.msra.gmra.mrb[68].mxu0 %vm374_vm1, %v2308_v4  ;;  %v2573_v26 = vpop.permute.xlu1 %2572 }
 0x2b0   : > { %4891 = vmatpush3.bf16.xpose.msra.mxu0 %v2422_v50  ;;  %4892 = vmatprep.mubr.msk.bf16.mxu0 %vm5335_vm0, %v6947_v30  ;;  %v2732_v24 = vpop.permute.xlu0 %2731 }
 0x2b1   : > { %4902 = vmatprep.subr.bf16.mxu0 %v6947_v30 }
 0x2b3   : > { %4887 = vmatmul.mubr.msk.bf16.vlgmr.msra.gmra.mrb[68].mxu1 %vm374_vm1, %v2361_v36  ;;  %v2682_v54 = vpop.permute.xlu1 %2681 }
 0x2b4   : > { %4897 = vmatpush3.bf16.xpose.msra.mxu1 %v2475_v38  ;;  %4898 = vmatprep.mubr.msk.bf16.mxu1 %vm5335_vm0, %v6947_v30  ;;  %v2687_v7 = vsel %vm374_vm1, %v2682_v54, 0  ;;  %v2841_v20 = vpop.permute.xlu0 %2840 }
 0x2b5   : > { %4908 = vmatprep.subr.bf16.mxu1 %v6947_v30  ;;  %v2846_v15 = vsel %vm374_vm1, %v2841_v20, 0 }
 0x2b7   : > { %4893 = vmatmul.mubr.msk.bf16.vlgmr.msra.gmra.mrb[72].mxu0 %vm374_vm1, %v2414_v39  ;;  %v2679_v9 = vpop.permute.xlu1 %2678 }
 0x2b8   : > { %4903 = vmatpush3.bf16.xpose.msra.mxu0 %v2528_v5  ;;  %4904 = vmatprep.mubr.msk.bf16.mxu0 %vm5335_vm0, %v6947_v30  ;;  %v2838_v13 = vpop.permute.xlu0 %2837 }
 0x2b9   : > { %4914 = vmatprep.subr.bf16.mxu0 %v6947_v30 }
 0x2bb   : > { %4899 = vmatmul.mubr.msk.bf16.vlgmr.msra.gmra.mrb[72].mxu1 %vm374_vm1, %v2467_v29  ;;  %v2788_v58 = vpop.permute.xlu1 %2787 }
 0x2bc   : > { %4909 = vmatpush3.bf16.xpose.msra.mxu1 %v2581_v18  ;;  %4910 = vmatprep.mubr.msk.bf16.mxu1 %vm5335_vm0, %v6947_v30  ;;  %v2793_v33 = vsel %vm374_vm1, %v2788_v58, 0  ;;  %v2947_v53 = vpop.permute.xlu0 %2946 }
 0x2bd   : > { %4920 = vmatprep.subr.bf16.mxu1 %v6947_v30  ;;  %v2952_v42 = vsel %vm374_vm1, %v2947_v53, 0 }
 0x2bf   : > { %4905 = vmatmul.mubr.msk.bf16.vlgmr.msra.gmra.mrb[76].mxu0 %vm374_vm1, %v2520_v37  ;;  %v2785_v59 = vpop.permute.xlu1 %2784 }
 0x2c0   : > { %4915 = vmatpush3.bf16.xpose.msra.mxu0 %v2634_v56  ;;  %4916 = vmatprep.mubr.msk.bf16.mxu0 %vm5335_vm0, %v6947_v30  ;;  %v2944_v25 = vpop.permute.xlu0 %2943 }
 0x2c1   : > { %4926 = vmatprep.subr.bf16.mxu0 %v6947_v30 }
 0x2c3   : > { %4911 = vmatmul.mubr.msk.bf16.vlgmr.msra.gmra.mrb[76].mxu1 %vm374_vm1, %v2573_v26  ;;  %v2894_v31 = vpop.permute.xlu1 %2893 }
 0x2c4   : > { %4921 = vmatpush3.bf16.xpose.msra.mxu1 %v2687_v7  ;;  %4922 = vmatprep.mubr.msk.bf16.mxu1 %vm5335_vm0, %v6947_v30  ;;  %v2899_v41 = vsel %vm374_vm1, %v2894_v31, 0 }
 0x2c5   : > { %4932 = vmatprep.subr.bf16.mxu1 %v6947_v30 }
 0x2c7   : > { %4917 = vmatmul.mubr.msk.bf16.vlgmr.msra.gmra.mrb[80].mxu0 %vm374_vm1, %v2626_v32  ;;  %v2891_v16 = vpop.permute.xlu1 %2890 }
 0x2c8   : > { %4927 = vmatpush3.bf16.xpose.msra.mxu0 %v2740_v55  ;;  %4928 = vmatprep.mubr.msk.bf16.mxu0 %vm5335_vm0, %v6947_v30 }
 0x2c9   : > { %4938 = vmatprep.subr.bf16.mxu0 %v6947_v30 }
 0x2cb   : > { %4923 = vmatmul.mubr.msk.bf16.vlgmr.msra.gmra.mrb[80].mxu1 %vm374_vm1, %v2679_v9  ;;  %v3000_v60 = vpop.permute.xlu1 %2999 }
 0x2cc   : > { %4933 = vmatpush3.bf16.xpose.msra.mxu1 %v2793_v33  ;;  %4934 = vmatprep.mubr.msk.bf16.mxu1 %vm5335_vm0, %v6947_v30  ;;  %v3005_v12 = vsel %vm374_vm1, %v3000_v60, 0 }
 0x2cd   : > { %4944 = vmatprep.subr.bf16.mxu1 %v6947_v30 }
 0x2cf   : > { %4929 = vmatmul.mubr.msk.bf16.vlgmr.msra.gmra.mrb[84].mxu0 %vm374_vm1, %v2732_v24  ;;  %v2997_v34 = vpop.permute.xlu1 %2996 }
 0x2d0   : > { %4939 = vmatpush3.bf16.xpose.msra.mxu0 %v2846_v15  ;;  %4940 = vmatprep.mubr.msk.bf16.mxu0 %vm5335_vm0, %v6947_v30 }
 0x2d1   : > { %4950 = vmatprep.subr.bf16.mxu0 %v6947_v30 }
 0x2d3   : > { %4935 = vmatmul.mubr.msk.bf16.vlgmr.msra.gmra.mrb[84].mxu1 %vm374_vm1, %v2785_v59  ;;  %v3466_v60 = vpop.permute.xlu1 %3465 }
 0x2d4   : > { %4945 = vmatpush3.bf16.xpose.msra.mxu1 %v2899_v41  ;;  %4946 = vmatprep.mubr.msk.bf16.mxu1 %vm5335_vm0, %v6947_v30 }
 0x2d5   : > { %4956 = vmatprep.subr.bf16.mxu1 %v6947_v30 }
 0x2d7   : > { %4941 = vmatmul.mubr.msk.bf16.vlgmr.msra.gmra.mrb[88].mxu0 %vm374_vm1, %v2838_v13 }
 0x2d8   : > { %4951 = vmatpush3.bf16.xpose.msra.mxu0 %v2952_v42  ;;  %4952 = vmatprep.mubr.msk.bf16.mxu0 %vm5335_vm0, %v6947_v30 }
 0x2d9   : > { %4962 = vmatprep.subr.bf16.mxu0 %v6947_v30 }
 0x2db   : > { %4947 = vmatmul.mubr.msk.bf16.vlgmr.msra.gmra.mrb[88].mxu1 %vm374_vm1, %v2891_v16 }
 0x2dc   : > { %4957 = vmatpush3.bf16.xpose.msra.mxu1 %v3005_v12  ;;  %4958 = vmatprep.mubr.msk.bf16.mxu1 %vm5335_vm0, %v6947_v30 }
 0x2dd   : > { %4968 = vmatprep.subr.bf16.mxu1 %v6947_v30 }
 0x2df   : > { %4953 = vmatmul.mubr.msk.bf16.vlgmr.msra.gmra.mrb[92].mxu0 %vm374_vm1, %v2944_v25  ;;  %v3418_v25 = vpop.permute.xlu0 %3417 }
 0x2e0   : > { %4964 = vmatprep.mubr.msk.bf16.mxu0 %vm5335_vm0, %v6947_v30  ;;  %4963 = vmatpush3.bf16.msra.mxu0 %v3418_v25 }
 0x2e1   : > { %4974 = vmatprep.subr.bf16.mxu0 %v6947_v30 }
 0x2e3   : > { %4959 = vmatmul.mubr.msk.bf16.vlgmr.msra.gmra.mrb[92].mxu1 %vm374_vm1, %v2997_v34 }
 0x2e4   : > { %4970 = vmatprep.mubr.msk.bf16.mxu1 %vm5335_vm0, %v6947_v30  ;;  %4969 = vmatpush3.bf16.msra.mxu1 %v3466_v60 }
 0x2e5   : > { %4980 = vmatprep.subr.bf16.mxu1 %v6947_v30 }
 0x305   : > { %v6256_v8 = vpop.f32.mrb[32].mxu0 }
 0x306   : > { %v4774_v45 = vpop.f32.mrb[33].mxu0 }
 0x307   : > { %v6258_v2 = vpop.f32.mrb[34].mxu0 }
 0x308   : > { %v4775_v63 = vpop.f32.mrb[35].mxu0 }
 0x309   : > { %v6260_v4 = vpop.f32.mrb[32].mxu1 }
 0x30a   : > { %v4780_v49 = vpop.f32.mrb[33].mxu1 }
 0x30b   : > { %v6262_v19 = vpop.f32.mrb[34].mxu1 }
 0x30c   : > { %v4781_v43 = vpop.f32.mrb[35].mxu1 }
 0x30d   : > { %v6264_v27 = vpop.f32.mrb[36].mxu0 }
 0x30e   : > { %v4786_v6 = vpop.f32.mrb[37].mxu0 }
 0x30f   : > { %v6266_v51 = vpop.f32.mrb[38].mxu0 }
 0x310   : > { %6963 = vst [vmem:[#allocation2_spill] sm:$0xff] %v6266_v51  ;;  %v4787_v47 = vpop.f32.mrb[39].mxu0 }
 0x311   : > { %v6268_v57 = vpop.f32.mrb[36].mxu1 }
 0x312   : > { %6964 = vst [vmem:[#allocation15_spill] sm:$0xff] %v6268_v57  ;;  %v4792_v61 = vpop.f32.mrb[37].mxu1 }
 0x313   : > { %v6270_v39 = vpop.f32.mrb[38].mxu1 }
 0x314   : > { %6965 = vst [vmem:[#allocation4_spill] sm:$0xff] %v6270_v39  ;;  %v4793_v0 = vpop.f32.mrb[39].mxu1 }
 0x315   : > { %v6272_v44 = vpop.f32.mrb[40].mxu0 }
 0x316   : > { %6966 = vst [vmem:[#allocation3_spill] sm:$0xff] %v6272_v44  ;;  %v4798_v10 = vpop.f32.mrb[41].mxu0 }
 0x317   : > { %v6274_v14 = vpop.f32.mrb[42].mxu0 }
 0x318   : > { %6967 = vst [vmem:[#allocation6_spill] sm:$0xff] %v6274_v14  ;;  %v4799_v28 = vpop.f32.mrb[43].mxu0 }
 0x319   : > { %v6276_v36 = vpop.f32.mrb[40].mxu1 }
 0x31a   : > { %6968 = vst [vmem:[#allocation5_spill] sm:$0xff] %v6276_v36  ;;  %v4804_v1 = vpop.f32.mrb[41].mxu1 }
 0x31b   : > { %v6278_v17 = vpop.f32.mrb[42].mxu1 }
 0x31c   : > { %6969 = vst [vmem:[#allocation8_spill] sm:$0xff] %v6278_v17  ;;  %v4805_v35 = vpop.f32.mrb[43].mxu1 }
 0x31d   : > { %v6280_v62 = vpop.f32.mrb[44].mxu0 }
 0x31e   : > { %6970 = vst [vmem:[#allocation7_spill] sm:$0xff] %v6280_v62  ;;  %v4810_v52 = vpop.f32.mrb[45].mxu0 }
 0x31f   : > { %v6282_v29 = vpop.f32.mrb[46].mxu0 }
 0x320   : > { %6971 = vst [vmem:[#allocation10_spill] sm:$0xff] %v6282_v29  ;;  %v4811_v37 = vpop.f32.mrb[47].mxu0 }
 0x321   : > { %v6284_v46 = vpop.f32.mrb[44].mxu1 }
 0x322   : > { %6972 = vst [vmem:[#allocation9_spill] sm:$0xff] %v6284_v46  ;;  %v4816_v48 = vpop.f32.mrb[45].mxu1 }
 0x323   : > { %v6286_v50 = vpop.f32.mrb[46].mxu1 }
 0x324   : > { %6973 = vst [vmem:[#allocation12_spill] sm:$0xff] %v6286_v50  ;;  %v4817_v21 = vpop.f32.mrb[47].mxu1 }
 0x325   : > { %v6288_v26 = vpop.f32.mrb[48].mxu0 }
 0x326   : > { %6974 = vst [vmem:[#allocation11_spill] sm:$0xff] %v6288_v26  ;;  %v4822_v38 = vpop.f32.mrb[49].mxu0 }
 0x327   : > { %v6290_v54 = vpop.f32.mrb[50].mxu0 }
 0x328   : > { %6975 = vst [vmem:[#allocation14_spill] sm:$0xff] %v6290_v54  ;;  %v4823_v32 = vpop.f32.mrb[51].mxu0 }
 0x329   : > { %v6292_v5 = vpop.f32.mrb[48].mxu1 }
 0x32a   : > { %6976 = vst [vmem:[#allocation13_spill] sm:$0xff] %v6292_v5  ;;  %v4828_v9 = vpop.f32.mrb[49].mxu1 }
 0x32b   : > { %v6294_v18 = vpop.f32.mrb[50].mxu1 }
 0x32c   : > { %6977 = vst [vmem:[#allocation16_spill] sm:$0xff] %v6294_v18  ;;  %v4829_v40 = vpop.f32.mrb[51].mxu1 }
 0x32d   : > { %v6296_v56 = vpop.f32.mrb[52].mxu0 }
 0x32e   : > { %6978 = vst [vmem:[#allocation17_spill] sm:$0xff] %v6296_v56  ;;  %v4834_v58 = vpop.f32.mrb[53].mxu0 }
 0x32f   : > { %v6298_v24 = vpop.f32.mrb[54].mxu0 }
 0x330   : > { %6979 = vst [vmem:[#allocation18_spill] sm:$0xff] %v6298_v24  ;;  %v4835_v7 = vpop.f32.mrb[55].mxu0 }
 0x331   : > { %v6300_v59 = vpop.f32.mrb[52].mxu1 }
 0x332   : > { %6980 = vst [vmem:[#allocation19_spill] sm:$0xff] %v6300_v59  ;;  %v4840_v55 = vpop.f32.mrb[53].mxu1 }
 0x333   : > { %v6302_v20 = vpop.f32.mrb[54].mxu1 }
 0x334   : > { %6981 = vst [vmem:[#allocation20_spill] sm:$0xff] %v6302_v20  ;;  %v4841_v33 = vpop.f32.mrb[55].mxu1 }
 0x335   : > { %v6304_v31 = vpop.f32.mrb[56].mxu0 }
 0x336   : > { %6982 = vst [vmem:[#allocation21_spill] sm:$0xff] %v6304_v31  ;;  %v4846_v13 = vpop.f32.mrb[57].mxu0 }
 0x337   : > { %v6306_v15 = vpop.f32.mrb[58].mxu0 }
 0x338   : > { %6983 = vst [vmem:[#allocation22_spill] sm:$0xff] %v6306_v15  ;;  %v4847_v16 = vpop.f32.mrb[59].mxu0 }
 0x339   : > { %v6308_v41 = vpop.f32.mrb[56].mxu1 }
 0x33a   : > { %6984 = vst [vmem:[#allocation23_spill] sm:$0xff] %v6308_v41  ;;  %v4852_v53 = vpop.f32.mrb[57].mxu1 }
 0x33b   : > { %v6310_v42 = vpop.f32.mrb[58].mxu1 }
 0x33c   : > { %6985 = vst [vmem:[#allocation24_spill] sm:$0xff] %v6310_v42  ;;  %v4853_v12 = vpop.f32.mrb[59].mxu1 }
 0x372   : > { %v6314_v34 = vpop.f32.mrb[60].mxu0 }
 0x373   : > { %6986 = vst [vmem:[#allocation25_spill] sm:$0xff] %v6314_v34  ;;  %v4858_v45 = vpop.f32.mrb[61].mxu0 }
 0x374   : > { %v6316_v63 = vpop.f32.mrb[62].mxu0 }
 0x375   : > { %6987 = vst [vmem:[#allocation26_spill] sm:$0xff] %v6316_v63  ;;  %v4859_v49 = vpop.f32.mrb[63].mxu0 }
 0x376   : > { %v6318_v43 = vpop.f32.mrb[60].mxu1 }
 0x377   : > { %6988 = vst [vmem:[#allocation27_spill] sm:$0xff] %v6318_v43  ;;  %v4864_v6 = vpop.f32.mrb[61].mxu1 }
 0x378   : > { %v6320_v47 = vpop.f32.mrb[62].mxu1 }
 0x379   : > { %6989 = vst [vmem:[#allocation28_spill] sm:$0xff] %v6320_v47  ;;  %v4865_v61 = vpop.f32.mrb[63].mxu1 }
 0x37a   : > { %v6322_v0 = vpop.f32.mrb[64].mxu0 }
 0x37b   : > { %v4870_v10 = vpop.f32.mrb[65].mxu0  ;;  %v3048_v28 = vsel %vm1127_vm2, %v6322_v0, -inf }
 0x37c   : > { %3049 = vmax.xlane.f32.xlu0 %v3048_v28  ;;  %v6326_v1 = vpop.f32.mrb[66].mxu0 }
 0x37d   : > { %v4871_v35 = vpop.f32.mrb[67].mxu0  ;;  %v3051_v52 = vsel %vm1127_vm2, %v6326_v1, -inf }
 0x37e   : > { %v6330_v37 = vpop.f32.mrb[64].mxu1  ;;  %3052 = vmax.xlane.f32.xlu1 %v3051_v52 }
 0x37f   : > { %v4876_v48 = vpop.f32.mrb[65].mxu1  ;;  %v3054_v21 = vsel %vm1127_vm2, %v6330_v37, -inf }
 0x380   : > { %v6334_v38 = vpop.f32.mrb[66].mxu1  ;;  %3055 = vmax.xlane.f32.xlu0 %v3054_v21 }
 0x381   : > { %v4877_v32 = vpop.f32.mrb[67].mxu1  ;;  %v3057_v58 = vsel %vm1127_vm2, %v6334_v38, -inf }
 0x382   : > { %v6336_v9 = vpop.f32.mrb[68].mxu0 }
 0x383   : > { %v4882_v40 = vpop.f32.mrb[69].mxu0  ;;  %v3060_v53 = vsel %vm1127_vm2, %v6336_v9, -inf }
 0x384   : > { %3058 = vmax.xlane.f32.xlu0 %v3057_v58  ;;  %v6340_v7 = vpop.f32.mrb[70].mxu0 }
 0x385   : > { %v4883_v55 = vpop.f32.mrb[71].mxu0  ;;  %v3063_v33 = vsel %vm1127_vm2, %v6340_v7, -inf }
 0x386   : > { %v6344_v13 = vpop.f32.mrb[68].mxu1  ;;  %3064 = vmax.xlane.f32.xlu1 %v3063_v33 }
 0x387   : > { %v4888_v16 = vpop.f32.mrb[69].mxu1  ;;  %v3066_v6 = vsel %vm1127_vm2, %v6344_v13, -inf }
 0x388   : > { %v6348_v60 = vpop.f32.mrb[70].mxu1  ;;  %3061 = vmax.xlane.f32.xlu0 %v3060_v53 }
 0x389   : > { %v4889_v12 = vpop.f32.mrb[71].mxu1  ;;  %v3069_v25 = vsel %vm1127_vm2, %v6348_v60, -inf }
 0x38a   : > { %3070 = vmax.xlane.f32.xlu1 %v3069_v25  ;;  %v6352_v45 = vpop.f32.mrb[72].mxu0 }
 0x38b   : > { %v4894_v49 = vpop.f32.mrb[73].mxu0  ;;  %v3072_v48 = vsel %vm1127_vm2, %v6352_v45, -inf }
 0x38c   : > { %3067 = vmax.xlane.f32.xlu0 %v3066_v6  ;;  %v6356_v61 = vpop.f32.mrb[74].mxu0 }
 0x38d   : > { %v4895_v10 = vpop.f32.mrb[75].mxu0  ;;  %v3075_v28 = vsel %vm1127_vm2, %v6356_v61, -inf }
 0x38e   : > { %v6360_v35 = vpop.f32.mrb[72].mxu1  ;;  %3076 = vmax.xlane.f32.xlu1 %v3075_v28 }
 0x38f   : > { %v4900_v52 = vpop.f32.mrb[73].mxu1  ;;  %v3078_v33 = vsel %vm1127_vm2, %v6360_v35, -inf }
 0x390   : > { %v6364_v21 = vpop.f32.mrb[74].mxu1  ;;  %3073 = vmax.xlane.f32.xlu0 %v3072_v48 }
 0x391   : > { %v4901_v32 = vpop.f32.mrb[75].mxu1  ;;  %v3081_v40 = vsel %vm1127_vm2, %v6364_v21, -inf }
 0x392   : > { %3082 = vmax.xlane.f32.xlu1 %v3081_v40  ;;  %v6368_v58 = vpop.f32.mrb[76].mxu0 }
 0x393   : > { %v4906_v55 = vpop.f32.mrb[77].mxu0  ;;  %v3084_v6 = vsel %vm1127_vm2, %v6368_v58, -inf }
 0x394   : > { %3079 = vmax.xlane.f32.xlu0 %v3078_v33  ;;  %v6372_v16 = vpop.f32.mrb[78].mxu0 }
 0x395   : > { %v4907_v53 = vpop.f32.mrb[79].mxu0  ;;  %v3087_v12 = vsel %vm1127_vm2, %v6372_v16, -inf }
 0x396   : > { %v6376_v25 = vpop.f32.mrb[76].mxu1  ;;  %3088 = vmax.xlane.f32.xlu1 %v3087_v12 }
 0x397   : > { %v4912_v49 = vpop.f32.mrb[77].mxu1  ;;  %v3090_v40 = vsel %vm1127_vm2, %v6376_v25, -inf }
 0x398   : > { %v6380_v10 = vpop.f32.mrb[78].mxu1  ;;  %3085 = vmax.xlane.f32.xlu0 %v3084_v6 }
 0x399   : > { %v4913_v28 = vpop.f32.mrb[79].mxu1  ;;  %v3093_v52 = vsel %vm1127_vm2, %v6380_v10, -inf }
 0x39a   : > { %3094 = vmax.xlane.f32.xlu1 %v3093_v52  ;;  %v6384_v48 = vpop.f32.mrb[80].mxu0 }
 0x39b   : > { %v4918_v32 = vpop.f32.mrb[81].mxu0  ;;  %v3096_v6 = vsel %vm1127_vm2, %v6384_v48, -inf }
 0x39c   : > { %3091 = vmax.xlane.f32.xlu0 %v3090_v40  ;;  %v6388_v55 = vpop.f32.mrb[82].mxu0 }
 0x39d   : > { %v4919_v33 = vpop.f32.mrb[83].mxu0  ;;  %v3099_v53 = vsel %vm1127_vm2, %v6388_v55, -inf }
 0x39e   : > { %v6392_v12 = vpop.f32.mrb[80].mxu1  ;;  %3100 = vmax.xlane.f32.xlu1 %v3099_v53 }
 0x39f   : > { %v4924_v49 = vpop.f32.mrb[81].mxu1  ;;  %v3102_v47 = vsel %vm1127_vm2, %v6392_v12, -inf }
 0x3a0   : > { %v6396_v28 = vpop.f32.mrb[82].mxu1  ;;  %3097 = vmax.xlane.f32.xlu0 %v3096_v6 }
 0x3a1   : > { %v4925_v52 = vpop.f32.mrb[83].mxu1  ;;  %v3105_v32 = vsel %vm1127_vm2, %v6396_v28, -inf }
 0x3a2   : > { %3106 = vmax.xlane.f32.xlu1 %v3105_v32  ;;  %v6400_v40 = vpop.f32.mrb[84].mxu0 }
 0x3a3   : > { %v4930_v33 = vpop.f32.mrb[85].mxu0  ;;  %v3108_v52 = vsel %vm1127_vm2, %v6400_v40, -inf }
 0x3a4   : > { %3103 = vmax.xlane.f32.xlu0 %v3102_v47  ;;  %v6404_v53 = vpop.f32.mrb[86].mxu0 }
 0x3a5   : > { %v4931_v49 = vpop.f32.mrb[87].mxu0  ;;  %v3111_v43 = vsel %vm1127_vm2, %v6404_v53, -inf }
 0x3a6   : > { %v6408_v63 = vpop.f32.mrb[84].mxu1  ;;  %3112 = vmax.xlane.f32.xlu1 %v3111_v43 }
 0x3a7   : > { %v4936_v6 = vpop.f32.mrb[85].mxu1  ;;  %v3114_v42 = vsel %vm1127_vm2, %v6408_v63, -inf }
 0x3a8   : > { %v6412_v32 = vpop.f32.mrb[86].mxu1  ;;  %3109 = vmax.xlane.f32.xlu0 %v3108_v52 }
 0x3a9   : > { %v4937_v33 = vpop.f32.mrb[87].mxu1  ;;  %v3117_v47 = vsel %vm1127_vm2, %v6412_v32, -inf }
 0x3aa   : > { %3118 = vmax.xlane.f32.xlu1 %v3117_v47  ;;  %v6416_v34 = vpop.f32.mrb[88].mxu0 }
 0x3ab   : > { %v4942_v49 = vpop.f32.mrb[89].mxu0  ;;  %v3120_v33 = vsel %vm1127_vm2, %v6416_v34, -inf }
 0x3ac   : > { %3115 = vmax.xlane.f32.xlu0 %v3114_v42  ;;  %v6420_v43 = vpop.f32.mrb[90].mxu0 }
 0x3ad   : > { %v4943_v6 = vpop.f32.mrb[91].mxu0  ;;  %v3123_v41 = vsel %vm1127_vm2, %v6420_v43, -inf }
 0x3ae   : > { %v6424_v15 = vpop.f32.mrb[88].mxu1  ;;  %3124 = vmax.xlane.f32.xlu1 %v3123_v41 }
 0x3af   : > { %v4948_v52 = vpop.f32.mrb[89].mxu1  ;;  %v3126_v20 = vsel %vm1127_vm2, %v6424_v15, -inf }
 0x3b0   : > { %v6428_v47 = vpop.f32.mrb[90].mxu1  ;;  %3121 = vmax.xlane.f32.xlu0 %v3120_v33 }
 0x3b1   : > { %v4949_v49 = vpop.f32.mrb[91].mxu1  ;;  %v3129_v42 = vsel %vm1127_vm2, %v6428_v47, -inf }
 0x3b2   : > { %3130 = vmax.xlane.f32.xlu1 %v3129_v42  ;;  %v6432_v31 = vpop.f32.mrb[92].mxu0 }
 0x3b3   : > { %v4954_v6 = vpop.f32.mrb[93].mxu0  ;;  %v3132_v33 = vsel %vm1127_vm2, %v6432_v31, -inf }
 0x3b4   : > { %3127 = vmax.xlane.f32.xlu0 %v3126_v20  ;;  %v6436_v41 = vpop.f32.mrb[94].mxu0 }
 0x3b5   : > { %v3135_v52 = vsel %vm1127_vm2, %v6436_v41, -inf  ;;  %v4955_v59 = vpop.f32.mrb[95].mxu0 }
 0x3b6   : > { %v6442_v49 = vpop.f32.mrb[92].mxu1  ;;  %3136 = vmax.xlane.f32.xlu1 %v3135_v52  ;;  %v6454_v59 = vpop.permute.xlu1 %3561 }
 0x3b7   : > { %v4960_v42 = vpop.f32.mrb[93].mxu1  ;;  %v3138_v56 = vsel %vm1127_vm2, %v6442_v49, -inf }
 0x3b8   : > { %v6444_v24 = vpop.f32.mrb[94].mxu1  ;;  %3133 = vmax.xlane.f32.xlu0 %v3132_v33  ;;  %v6458_v33 = vpop.permute.xlu0 %3513 }
 0x3b9   : > { %v4961_v6 = vpop.f32.mrb[95].mxu1  ;;  %v3141_v20 = vsel %vm1127_vm2, %v6444_v24, -inf }
 0x3ba   : > { %3142 = vmax.xlane.f32.xlu1 %v3141_v20  ;;  %v6456_v52 = vpop.permute.xlu1 %3657 }
 0x3bc   : > { %3139 = vmax.xlane.f32.xlu0 %v3138_v56  ;;  %v6462_v6 = vpop.permute.xlu0 %3609 }
 0x3be   : > { %v6460_v42 = vpop.permute.xlu1 %3753 }
 0x3c0   : > { %v6466_v20 = vpop.permute.xlu0 %3705 }
 0x3c2   : > { %v6464_v18 = vpop.permute.xlu1 %3849 }
 0x3c6   : > { %v6468_v56 = vpop.permute.xlu1 %3897 }
 0x3ca   : > { %v6472_v5 = vpop.permute.xlu1 %3945 }
 0x3cb   : > { %4041 = vrot.lane.b32.xlu1 %v6129_v11, %s5336_s25  ;;  %v6470_v11 = vpop.permute.xlu0 %3801 }
 0x3d2   : > { %3993 = vrot.lane.b32.xlu0 %v6116_v3, %s5336_s25 }
 0x409   : > { %v3050_v3 = vpop.xlane.xlu0 %3049 }
 0x40a   : > { %v3144_v54 = vsub.f32 %v6322_v0, %v3050_v3 }
 0x40b   : > { %v3053_v26 = vpop.xlane.xlu1 %3052 }
 0x40c   : > { %v3176_v50 = vmul.f32 1.442695, %v3144_v54  ;;  %v3145_v46 = vsub.f32 %v6326_v1, %v3053_v26 }
 0x40d   : > { %v3056_v29 = vpop.xlane.xlu0 %3055 }
 0x40e   : > { %5198 = vpow2.f32 %v3176_v50  ;;  %v3178_v62 = vmul.f32 1.442695, %v3145_v46  ;;  %v3146_v17 = vsub.f32 %v6330_v37, %v3056_v29 }
 0x410   : > { %5200 = vpow2.f32 %v3178_v62  ;;  %v3180_v36 = vmul.f32 1.442695, %v3146_v17 }
 0x411   : > { %v3059_v14 = vpop.xlane.xlu0 %3058 }
 0x412   : > { %5202 = vpow2.f32 %v3180_v36  ;;  %v3147_v44 = vsub.f32 %v6334_v38, %v3059_v14 }
 0x413   : > { %v3065_v39 = vpop.xlane.xlu1 %3064 }
 0x414   : > { %v3182_v57 = vmul.f32 1.442695, %v3147_v44  ;;  %v3149_v51 = vsub.f32 %v6340_v7, %v3065_v39 }
 0x415   : > { %v3062_v0 = vpop.xlane.xlu0 %3061 }
 0x416   : > { %5204 = vpow2.f32 %v3182_v57  ;;  %v3186_v54 = vmul.f32 1.442695, %v3149_v51  ;;  %v3148_v26 = vsub.f32 %v6336_v9, %v3062_v0 }
 0x417   : > { %v3071_v1 = vpop.xlane.xlu1 %3070 }
 0x418   : > { %v6480_v50 = vpop.eup %5198  ;;  %5206 = vpow2.f32 %v3186_v54  ;;  %v3184_v29 = vmul.f32 1.442695, %v3148_v26  ;;  %v3151_v17 = vsub.f32 %v6348_v60, %v3071_v1 }
 0x419   : > { %v3068_v62 = vpop.xlane.xlu0 %3067  ;;  %v3240_v14 = vsel %vm1127_vm2, %v6480_v50, 0.0 }
 0x41a   : > { %v6485_v36 = vpop.eup %5200  ;;  %5208 = vpow2.f32 %v3184_v29  ;;  %v3190_v39 = vmul.f32 1.442695, %v3151_v17  ;;  %v3150_v57 = vsub.f32 %v6344_v13, %v3068_v62  ;;  %3241 = vadd.xlane.f32.xlu0 %v3240_v14 }
 0x41b   : > { %v3077_v51 = vpop.xlane.xlu1 %3076  ;;  %v3243_v44 = vsel %vm1127_vm2, %v6485_v36, 0.0 }
 0x41c   : > { %v6490_v46 = vpop.eup %5202  ;;  %5210 = vpow2.f32 %v3190_v39  ;;  %v3188_v37 = vmul.f32 1.442695, %v3150_v57  ;;  %v3153_v38 = vsub.f32 %v6356_v61, %v3077_v51  ;;  %3244 = vadd.xlane.f32.xlu1 %v3243_v44 }
 0x41d   : > { %v3074_v9 = vpop.xlane.xlu0 %3073  ;;  %v3246_v7 = vsel %vm1127_vm2, %v6490_v46, 0.0 }
 0x41e   : > { %5212 = vpow2.f32 %v3188_v37  ;;  %v3194_v60 = vmul.f32 1.442695, %v3153_v38  ;;  %v3152_v13 = vsub.f32 %v6352_v45, %v3074_v9  ;;  %3247 = vadd.xlane.f32.xlu0 %v3246_v7 }
 0x41f   : > { %v3083_v3 = vpop.xlane.xlu1 %3082 }
 0x420   : > { %v6496_v0 = vpop.eup %5204  ;;  %5214 = vpow2.f32 %v3194_v60  ;;  %v3192_v54 = vmul.f32 1.442695, %v3152_v13  ;;  %v3155_v26 = vsub.f32 %v6364_v21, %v3083_v3 }
 0x421   : > { %v3080_v1 = vpop.xlane.xlu0 %3079  ;;  %v3249_v61 = vsel %vm1127_vm2, %v6496_v0, 0.0 }
 0x422   : > { %v6501_v29 = vpop.eup %5206  ;;  %5216 = vpow2.f32 %v3192_v54  ;;  %v3198_v17 = vmul.f32 1.442695, %v3155_v26  ;;  %v3154_v62 = vsub.f32 %v6360_v35, %v3080_v1  ;;  %3250 = vadd.xlane.f32.xlu1 %v3249_v61 }
 0x423   : > { %v3089_v45 = vpop.xlane.xlu1 %3088  ;;  %v3255_v44 = vsel %vm1127_vm2, %v6501_v29, 0.0 }
 0x424   : > { %v6504_v14 = vpop.eup %5208  ;;  %5218 = vpow2.f32 %v3198_v17  ;;  %v3196_v39 = vmul.f32 1.442695, %v3154_v62  ;;  %v3157_v57 = vsub.f32 %v6372_v16, %v3089_v45 }
 0x425   : > { %v3086_v51 = vpop.xlane.xlu0 %3085  ;;  %v3252_v21 = vsel %vm1127_vm2, %v6504_v14, 0.0 }
 0x426   : > { %v6511_v37 = vpop.eup %5210  ;;  %5220 = vpow2.f32 %v3196_v39  ;;  %v3202_v38 = vmul.f32 1.442695, %v3157_v57  ;;  %v3156_v35 = vsub.f32 %v6368_v58, %v3086_v51  ;;  %3253 = vadd.xlane.f32.xlu0 %v3252_v21  ;;  %3256 = vadd.xlane.f32.xlu1 %v3255_v44 }
 0x427   : > { %v3095_v9 = vpop.xlane.xlu1 %3094  ;;  %v3261_v54 = vsel %vm1127_vm2, %v6511_v37, 0.0 }
 0x428   : > { %v6514_v7 = vpop.eup %5212  ;;  %5222 = vpow2.f32 %v3202_v38  ;;  %v3200_v16 = vmul.f32 1.442695, %v3156_v35  ;;  %v3159_v60 = vsub.f32 %v6380_v10, %v3095_v9 }
 0x429   : > { %v3092_v13 = vpop.xlane.xlu0 %3091  ;;  %v3258_v3 = vsel %vm1127_vm2, %v6514_v7, 0.0 }
 0x42a   : > { %v6521_v26 = vpop.eup %5214  ;;  %5224 = vpow2.f32 %v3200_v16  ;;  %v3206_v58 = vmul.f32 1.442695, %v3159_v60  ;;  %v3158_v1 = vsub.f32 %v6376_v25, %v3092_v13  ;;  %3259 = vadd.xlane.f32.xlu0 %v3258_v3  ;;  %3262 = vadd.xlane.f32.xlu1 %v3261_v54 }
 0x42b   : > { %v3101_v61 = vpop.xlane.xlu1 %3100  ;;  %v3267_v39 = vsel %vm1127_vm2, %v6521_v26, 0.0 }
 0x42c   : > { %v6524_v17 = vpop.eup %5216  ;;  %5226 = vpow2.f32 %v3206_v58  ;;  %v3204_v10 = vmul.f32 1.442695, %v3158_v1  ;;  %v3161_v44 = vsub.f32 %v6388_v55, %v3101_v61 }
 0x42d   : > { %v3098_v62 = vpop.xlane.xlu0 %3097  ;;  %v3264_v45 = vsel %vm1127_vm2, %v6524_v17, 0.0 }
 0x42e   : > { %v6530_v57 = vpop.eup %5218  ;;  %5228 = vpow2.f32 %v3204_v10  ;;  %v3160_v51 = vsub.f32 %v6384_v48, %v3098_v62  ;;  %3265 = vadd.xlane.f32.xlu0 %v3264_v45  ;;  %3268 = vadd.xlane.f32.xlu1 %v3267_v39  ;;  %v3210_v58 = vmul.f32 1.442695, %v3161_v44 }
 0x42f   : > { %v3107_v25 = vpop.xlane.xlu1 %3106  ;;  %v3273_v60 = vsel %vm1127_vm2, %v6530_v57, 0.0 }
 0x430   : > { %v6533_v21 = vpop.eup %5220  ;;  %v3208_v38 = vmul.f32 1.442695, %v3160_v51  ;;  %v3163_v35 = vsub.f32 %v6396_v28, %v3107_v25 }
 0x431   : > { %v3104_v9 = vpop.xlane.xlu0 %3103  ;;  %v3270_v16 = vsel %vm1127_vm2, %v6533_v21, 0.0 }
 0x432   : > { %v6541_v13 = vpop.eup %5222  ;;  %5230 = vpow2.f32 %v3208_v38  ;;  %v3214_v48 = vmul.f32 1.442695, %v3163_v35  ;;  %v3162_v3 = vsub.f32 %v6392_v12, %v3104_v9  ;;  %3271 = vadd.xlane.f32.xlu0 %v3270_v16  ;;  %3274 = vadd.xlane.f32.xlu1 %v3273_v60 }
 0x433   : > { %v3113_v54 = vpop.xlane.xlu1 %3112  ;;  %v3279_v10 = vsel %vm1127_vm2, %v6541_v13, 0.0 }
 0x434   : > { %v6544_v55 = vpop.eup %5224  ;;  %5232 = vpow2.f32 %v3214_v48  ;;  %v3212_v28 = vmul.f32 1.442695, %v3162_v3  ;;  %v3165_v51 = vsub.f32 %v6404_v53, %v3113_v54 }
 0x435   : > { %v3110_v1 = vpop.xlane.xlu0 %3109  ;;  %v3276_v61 = vsel %vm1127_vm2, %v6544_v55, 0.0 }
 0x436   : > { %v6550_v62 = vpop.eup %5226  ;;  %5234 = vpow2.f32 %v3212_v28  ;;  %v3164_v12 = vsub.f32 %v6400_v40, %v3110_v1  ;;  %3277 = vadd.xlane.f32.xlu0 %v3276_v61  ;;  %3280 = vadd.xlane.f32.xlu1 %v3279_v10  ;;  %v3218_v53 = vmul.f32 1.442695, %v3165_v51 }
 0x437   : > { %v3119_v45 = vpop.xlane.xlu1 %3118  ;;  %5236 = vpow2.f32 %v3210_v58  ;;  %v3285_v9 = vsel %vm1127_vm2, %v6550_v62, 0.0 }
 0x438   : > { %v6553_v39 = vpop.eup %5228  ;;  %v3216_v25 = vmul.f32 1.442695, %v3164_v12  ;;  %v3167_v44 = vsub.f32 %v6412_v32, %v3119_v45 }
 0x439   : > { %v3116_v38 = vpop.xlane.xlu0 %3115  ;;  %v3282_v35 = vsel %vm1127_vm2, %v6553_v39, 0.0 }
 0x43a   : > { %5238 = vpow2.f32 %v3216_v25  ;;  %v3222_v40 = vmul.f32 1.442695, %v3167_v44  ;;  %v3166_v16 = vsub.f32 %v6408_v63, %v3116_v38  ;;  %3283 = vadd.xlane.f32.xlu0 %v3282_v35  ;;  %3286 = vadd.xlane.f32.xlu1 %v3285_v9 }
 0x43b   : > { %v3125_v60 = vpop.xlane.xlu1 %3124 }
 0x43c   : > { %v6562_v48 = vpop.eup %5230  ;;  %5240 = vpow2.f32 %v3222_v40  ;;  %v3220_v3 = vmul.f32 1.442695, %v3166_v16  ;;  %v3169_v61 = vsub.f32 %v6420_v43, %v3125_v60 }
 0x43d   : > { %v3122_v32 = vpop.xlane.xlu0 %3121  ;;  %v3288_v54 = vsel %vm1127_vm2, %v6562_v48, 0.0 }
 0x43e   : > { %v6566_v58 = vpop.eup %5232  ;;  %5242 = vpow2.f32 %v3220_v3  ;;  %v3168_v28 = vsub.f32 %v6416_v34, %v3122_v32  ;;  %3289 = vadd.xlane.f32.xlu1 %v3288_v54  ;;  %v3226_v9 = vmul.f32 1.442695, %v3169_v61 }
 0x43f   : > { %v3131_v1 = vpop.xlane.xlu1 %3130  ;;  %5244 = vpow2.f32 %v3218_v53  ;;  %v3297_v25 = vsel %vm1127_vm2, %v6566_v58, 0.0 }
 0x440   : > { %v6569_v63 = vpop.eup %5234  ;;  %v3224_v10 = vmul.f32 1.442695, %v3168_v28  ;;  %v3171_v12 = vsub.f32 %v6428_v47, %v3131_v1 }
 0x441   : > { %v3128_v45 = vpop.xlane.xlu0 %3127  ;;  %v3294_v51 = vsel %vm1127_vm2, %v6569_v63, 0.0  ;;  %v6577_v44 = vpop.eup %5236 }
 0x442   : > { %5246 = vpow2.f32 %v3224_v10  ;;  %v3230_v34 = vmul.f32 1.442695, %v3171_v12  ;;  %v3170_v38 = vsub.f32 %v6424_v15, %v3128_v45  ;;  %3295 = vadd.xlane.f32.xlu0 %v3294_v51  ;;  %3298 = vadd.xlane.f32.xlu1 %v3297_v25  ;;  %v3291_v16 = vsel %vm1127_vm2, %v6577_v44, 0.0 }
 0x443   : > { %v3137_v35 = vpop.xlane.xlu1 %3136 }
 0x444   : > { %v6580_v43 = vpop.eup %5238  ;;  %5248 = vpow2.f32 %v3230_v34  ;;  %v3228_v47 = vmul.f32 1.442695, %v3170_v38  ;;  %v3173_v54 = vsub.f32 %v6436_v41, %v3137_v35 }
 0x445   : > { %v3134_v40 = vpop.xlane.xlu0 %3133  ;;  %v3300_v60 = vsel %vm1127_vm2, %v6580_v43, 0.0 }
 0x446   : > { %v6586_v53 = vpop.eup %5240  ;;  %5250 = vpow2.f32 %v3228_v47  ;;  %v3172_v15 = vsub.f32 %v6432_v31, %v3134_v40  ;;  %3292 = vadd.xlane.f32.xlu0 %v3291_v16  ;;  %3301 = vadd.xlane.f32.xlu1 %v3300_v60  ;;  %v3234_v41 = vmul.f32 1.442695, %v3173_v54 }
 0x447   : > { %v3143_v3 = vpop.xlane.xlu1 %3142  ;;  %5252 = vpow2.f32 %v3226_v9  ;;  %v3309_v12 = vsel %vm1127_vm2, %v6586_v53, 0.0 }
 0x448   : > { %v6589_v32 = vpop.eup %5242  ;;  %v3232_v28 = vmul.f32 1.442695, %v3172_v15  ;;  %v3175_v1 = vsub.f32 %v6444_v24, %v3143_v3 }
 0x449   : > { %v3140_v61 = vpop.xlane.xlu0 %3139  ;;  %v3306_v10 = vsel %vm1127_vm2, %v6589_v32, 0.0  ;;  %v6597_v45 = vpop.eup %5244 }
 0x44a   : > { %5254 = vpow2.f32 %v3232_v28  ;;  %v3238_v31 = vmul.f32 1.442695, %v3175_v1  ;;  %v3174_v51 = vsub.f32 %v6442_v49, %v3140_v61  ;;  %3307 = vadd.xlane.f32.xlu0 %v3306_v10  ;;  %3310 = vadd.xlane.f32.xlu1 %v3309_v12  ;;  %v3303_v34 = vsel %vm1127_vm2, %v6597_v45, 0.0 }
 0x44c   : > { %v6600_v25 = vpop.eup %5246  ;;  %5256 = vpow2.f32 %v3238_v31  ;;  %v3236_v24 = vmul.f32 1.442695, %v3174_v51  ;;  %v6640_v31 = vpop.permute.xlu1 %4041 }
 0x44d   : > { %v3312_v38 = vsel %vm1127_vm2, %v6600_v25, 0.0  ;;  %v6638_v12 = vpop.permute.xlu0 %3993 }
 0x44e   : > { %v6606_v35 = vpop.eup %5248  ;;  %5258 = vpow2.f32 %v3236_v24  ;;  %3304 = vadd.xlane.f32.xlu0 %v3303_v34  ;;  %3313 = vadd.xlane.f32.xlu1 %v3312_v38 }
 0x44f   : > { %5260 = vpow2.f32 %v3234_v41  ;;  %v3321_v47 = vsel %vm1127_vm2, %v6606_v35, 0.0 }
 0x450   : > { %v6608_v9 = vpop.eup %5250 }
 0x451   : > { %v3318_v49 = vsel %vm1127_vm2, %v6608_v9, 0.0  ;;  %v6614_v40 = vpop.eup %5252 }
 0x452   : > { %3319 = vadd.xlane.f32.xlu0 %v3318_v49  ;;  %3322 = vadd.xlane.f32.xlu1 %v3321_v47  ;;  %v3315_v60 = vsel %vm1127_vm2, %v6614_v40, 0.0 }
 0x454   : > { %v6616_v16 = vpop.eup %5254 }
 0x455   : > { %v3324_v15 = vsel %vm1127_vm2, %v6616_v16, 0.0 }
 0x456   : > { %v6622_v3 = vpop.eup %5256  ;;  %3316 = vadd.xlane.f32.xlu0 %v3315_v60  ;;  %3325 = vadd.xlane.f32.xlu1 %v3324_v15 }
 0x457   : > { %v3333_v1 = vsel %vm1127_vm2, %v6622_v3, 0.0 }
 0x458   : > { %v6624_v54 = vpop.eup %5258 }
 0x459   : > { %v3330_v28 = vsel %vm1127_vm2, %v6624_v54, 0.0  ;;  %v6630_v61 = vpop.eup %5260 }
 0x45a   : > { %3331 = vadd.xlane.f32.xlu0 %v3330_v28  ;;  %3334 = vadd.xlane.f32.xlu1 %v3333_v1  ;;  %v3327_v10 = vsel %vm1127_vm2, %v6630_v61, 0.0 }
 0x45e   : > { %3328 = vadd.xlane.f32.xlu0 %v3327_v10 }
 0x46b   : > { %4137 = vrot.lane.b32.xlu1 %v6153_v23, %s5336_s25 }
 0x474   : > { %4089 = vrot.lane.b32.xlu0 %v6142_v22, %s5336_s25 }
 0x4a7   : > { %v3242_v51 = vpop.xlane.xlu0 %3241 }
 0x4a8   : > { %5262 = vrcp.f32 %v3242_v51 }
 0x4a9   : > { %v3245_v41 = vpop.xlane.xlu1 %3244 }
 0x4aa   : > { %5264 = vrcp.f32 %v3245_v41 }
 0x4ab   : > { %v3248_v24 = vpop.xlane.xlu0 %3247 }
 0x4ac   : > { %5266 = vrcp.f32 %v3248_v24 }
 0x4af   : > { %v3251_v34 = vpop.xlane.xlu1 %3250 }
 0x4b0   : > { %5268 = vrcp.f32 %v3251_v34 }
 0x4b2   : > { %v5263_v38 = vpop.eup %5262 }
 0x4b3   : > { %v3254_v49 = vpop.xlane.xlu0 %3253  ;;  %v3257_v47 = vpop.xlane.xlu1 %3256  ;;  %v3368_v23 = vmul.f32 %v5263_v38, %v6480_v50 }
 0x4b4   : > { %v5265_v60 = vpop.eup %5264  ;;  %5270 = vrcp.f32 %v3254_v49 }
 0x4b5   : > { %v3369_v22 = vmul.f32 %v5265_v60, %v6485_v36  ;;  %5272 = vrcp.f32 %v3257_v47 }
 0x4b6   : > { %v5267_v10 = vpop.eup %5266 }
 0x4b7   : > { %v3260_v15 = vpop.xlane.xlu0 %3259  ;;  %v3263_v28 = vpop.xlane.xlu1 %3262  ;;  %v3400_v1 = vpack.c.bf16 %v3369_v22, %v3368_v23  ;;  %v3370_v41 = vmul.f32 %v5267_v10, %v6490_v46 }
 0x4b8   : > { %5274 = vrcp.f32 %v3260_v15 }
 0x4b9   : > { %5276 = vrcp.f32 %v3263_v28  ;;  %4965 = vmatmul.mubr.msk.bf16.vlgmr.msra.gmra.mrb[96].mxu0 %vm1127_vm2, %v3400_v1 }
 0x4ba   : > { %v5269_v51 = vpop.eup %5268  ;;  %4975 = vmatpush3.bf16.msra.mxu0 %v6458_v33  ;;  %4976 = vmatprep.mubr.msk.bf16.mxu0 %vm5335_vm0, %v6947_v30 }
 0x4bb   : > { %v3371_v50 = vmul.f32 %v5269_v51, %v6496_v0  ;;  %v3266_v36 = vpop.xlane.xlu0 %3265  ;;  %v3269_v24 = vpop.xlane.xlu1 %3268  ;;  %4986 = vmatprep.subr.bf16.mxu0 %v6947_v30 }
 0x4bc   : > { %5278 = vrcp.f32 %v3266_v36 }
 0x4bd   : > { %5280 = vrcp.f32 %v3269_v24  ;;  %v3401_v34 = vpack.c.bf16 %v3371_v50, %v3370_v41 }
 0x4be   : > { %v5271_v38 = vpop.eup %5270 }
 0x4bf   : > { %v5273_v49 = vpop.eup %5272  ;;  %v3372_v47 = vmul.f32 %v5271_v38, %v6504_v14  ;;  %v3272_v60 = vpop.xlane.xlu0 %3271  ;;  %4971 = vmatmul.mubr.msk.bf16.vlgmr.msra.gmra.mrb[96].mxu1 %vm1127_vm2, %v3401_v34 }
 0x4c0   : > { %v3275_v33 = vpop.xlane.xlu1 %3274  ;;  %v3373_v23 = vmul.f32 %v5273_v49, %v6501_v29  ;;  %5282 = vrcp.f32 %v3272_v60  ;;  %4981 = vmatpush3.bf16.msra.mxu1 %v6454_v59  ;;  %4982 = vmatprep.mubr.msk.bf16.mxu1 %vm5335_vm0, %v6947_v30 }
 0x4c1   : > { %5284 = vrcp.f32 %v3275_v33  ;;  %4992 = vmatprep.subr.bf16.mxu1 %v6947_v30 }
 0x4c2   : > { %v5275_v46 = vpop.eup %5274  ;;  %v3402_v0 = vpack.c.bf16 %v3373_v23, %v3372_v47 }
 0x4c3   : > { %v5277_v22 = vpop.eup %5276  ;;  %v3374_v14 = vmul.f32 %v5275_v46, %v6514_v7  ;;  %v3278_v15 = vpop.xlane.xlu0 %3277 }
 0x4c4   : > { %v3281_v28 = vpop.xlane.xlu1 %3280  ;;  %v3375_v1 = vmul.f32 %v5277_v22, %v6511_v37  ;;  %5286 = vrcp.f32 %v3278_v15  ;;  %4977 = vmatmul.mubr.msk.bf16.vlgmr.msra.gmra.mrb[100].mxu0 %vm1127_vm2, %v3402_v0 }
 0x4c5   : > { %4987 = vmatpush3.bf16.msra.mxu0 %v6462_v6  ;;  %5288 = vrcp.f32 %v3281_v28  ;;  %4988 = vmatprep.mubr.msk.bf16.mxu0 %vm5335_vm0, %v6947_v30 }
 0x4c6   : > { %v5279_v59 = vpop.eup %5278  ;;  %v3403_v29 = vpack.c.bf16 %v3375_v1, %v3374_v14  ;;  %4998 = vmatprep.subr.bf16.mxu0 %v6947_v30 }
 0x4c7   : > { %v5281_v10 = vpop.eup %5280  ;;  %v3376_v7 = vmul.f32 %v5279_v59, %v6524_v17  ;;  %v3284_v51 = vpop.xlane.xlu0 %3283 }
 0x4c8   : > { %v3287_v41 = vpop.xlane.xlu1 %3286  ;;  %v3377_v37 = vmul.f32 %v5281_v10, %v6521_v26  ;;  %5290 = vrcp.f32 %v3284_v51  ;;  %4983 = vmatmul.mubr.msk.bf16.vlgmr.msra.gmra.mrb[100].mxu1 %vm1127_vm2, %v3403_v29 }
 0x4c9   : > { %4993 = vmatpush3.bf16.msra.mxu1 %v6456_v52  ;;  %5292 = vrcp.f32 %v3287_v41  ;;  %4994 = vmatprep.mubr.msk.bf16.mxu1 %vm5335_vm0, %v6947_v30 }
 0x4ca   : > { %v5283_v6 = vpop.eup %5282  ;;  %v3404_v50 = vpack.c.bf16 %v3377_v37, %v3376_v7  ;;  %5004 = vmatprep.subr.bf16.mxu1 %v6947_v30 }
 0x4cb   : > { %v5285_v36 = vpop.eup %5284  ;;  %v3378_v17 = vmul.f32 %v5283_v6, %v6533_v21 }
 0x4cc   : > { %v3290_v24 = vpop.xlane.xlu1 %3289  ;;  %v3379_v34 = vmul.f32 %v5285_v36, %v6530_v57  ;;  %4989 = vmatmul.mubr.msk.bf16.vlgmr.msra.gmra.mrb[104].mxu0 %vm1127_vm2, %v3404_v50 }
 0x4cd   : > { %4999 = vmatpush3.bf16.msra.mxu0 %v6466_v20  ;;  %5000 = vmatprep.mubr.msk.bf16.mxu0 %vm5335_vm0, %v6947_v30 }
 0x4ce   : > { %v5287_v52 = vpop.eup %5286  ;;  %v3405_v26 = vpack.c.bf16 %v3379_v34, %v3378_v17  ;;  %5010 = vmatprep.subr.bf16.mxu0 %v6947_v30 }
 0x4cf   : > { %v5289_v38 = vpop.eup %5288  ;;  %v3380_v49 = vmul.f32 %v5287_v52, %v6544_v55  ;;  %v3296_v47 = vpop.xlane.xlu0 %3295 }
 0x4d0   : > { %v3299_v60 = vpop.xlane.xlu1 %3298  ;;  %v3381_v21 = vmul.f32 %v5289_v38, %v6541_v13  ;;  %5294 = vrcp.f32 %v3296_v47  ;;  %4995 = vmatmul.mubr.msk.bf16.vlgmr.msra.gmra.mrb[104].mxu1 %vm1127_vm2, %v3405_v26 }
 0x4d1   : > { %5005 = vmatpush3.bf16.msra.mxu1 %v6460_v42  ;;  %5296 = vrcp.f32 %v3299_v60  ;;  %5006 = vmatprep.mubr.msk.bf16.mxu1 %vm5335_vm0, %v6947_v30 }
 0x4d2   : > { %v5291_v20 = vpop.eup %5290  ;;  %5298 = vrcp.f32 %v3290_v24  ;;  %v3406_v57 = vpack.c.bf16 %v3381_v21, %v3380_v49  ;;  %5016 = vmatprep.subr.bf16.mxu1 %v6947_v30 }
 0x4d3   : > { %v5293_v33 = vpop.eup %5292  ;;  %v3382_v55 = vmul.f32 %v5291_v20, %v6553_v39  ;;  %v3293_v23 = vpop.xlane.xlu0 %3292 }
 0x4d4   : > { %v3302_v46 = vpop.xlane.xlu1 %3301  ;;  %v3383_v13 = vmul.f32 %v5293_v33, %v6550_v62  ;;  %5300 = vrcp.f32 %v3293_v23  ;;  %5001 = vmatmul.mubr.msk.bf16.vlgmr.msra.gmra.mrb[108].mxu0 %vm1127_vm2, %v3406_v57 }
 0x4d5   : > { %5011 = vmatpush3.bf16.msra.mxu0 %v6470_v11  ;;  %5012 = vmatprep.mubr.msk.bf16.mxu0 %vm5335_vm0, %v6947_v30 }
 0x4d6   : > { %v3407_v42 = vpack.c.bf16 %v3383_v13, %v3382_v55  ;;  %5022 = vmatprep.subr.bf16.mxu0 %v6947_v30 }
 0x4d7   : > { %v3308_v0 = vpop.xlane.xlu0 %3307 }
 0x4d8   : > { %v3311_v22 = vpop.xlane.xlu1 %3310  ;;  %5302 = vrcp.f32 %v3308_v0  ;;  %5007 = vmatmul.mubr.msk.bf16.vlgmr.msra.gmra.mrb[108].mxu1 %vm1127_vm2, %v3407_v42 }
 0x4d9   : > { %5017 = vmatpush3.bf16.msra.mxu1 %v6464_v18  ;;  %5304 = vrcp.f32 %v3311_v22  ;;  %5018 = vmatprep.mubr.msk.bf16.mxu1 %vm5335_vm0, %v6947_v30 }
 0x4da   : > { %v5295_v62 = vpop.eup %5294  ;;  %5306 = vrcp.f32 %v3302_v46  ;;  %5028 = vmatprep.subr.bf16.mxu1 %v6947_v30 }
 0x4db   : > { %v5297_v11 = vpop.eup %5296  ;;  %v3386_v39 = vmul.f32 %v5295_v62, %v6569_v63  ;;  %v3305_v14 = vpop.xlane.xlu0 %3304 }
 0x4dc   : > { %v3314_v15 = vpop.xlane.xlu1 %3313  ;;  %v5299_v28 = vpop.eup %5298  ;;  %v3387_v1 = vmul.f32 %v5297_v11, %v6566_v58  ;;  %5308 = vrcp.f32 %v3305_v14 }
 0x4dd   : > { %v3384_v18 = vmul.f32 %v5299_v28, %v6562_v48 }
 0x4de   : > { %v5301_v59 = vpop.eup %5300  ;;  %v3409_v29 = vpack.c.bf16 %v3387_v1, %v3386_v39 }
 0x4df   : > { %v3385_v10 = vmul.f32 %v5301_v59, %v6577_v44  ;;  %v3320_v7 = vpop.xlane.xlu0 %3319 }
 0x4e0   : > { %v3323_v51 = vpop.xlane.xlu1 %3322  ;;  %5310 = vrcp.f32 %v3320_v7  ;;  %5019 = vmatmul.mubr.msk.bf16.vlgmr.msra.gmra.mrb[112].mxu1 %vm1127_vm2, %v3409_v29 }
 0x4e1   : > { %5029 = vmatpush3.bf16.msra.mxu1 %v6472_v5  ;;  %5312 = vrcp.f32 %v3323_v51  ;;  %v3408_v63 = vpack.c.bf16 %v3385_v10, %v3384_v18  ;;  %5030 = vmatprep.mubr.msk.bf16.mxu1 %vm5335_vm0, %v6947_v30 }
 0x4e2   : > { %v5303_v58 = vpop.eup %5302  ;;  %5314 = vrcp.f32 %v3314_v15  ;;  %5040 = vmatprep.subr.bf16.mxu1 %v6947_v30 }
 0x4e3   : > { %v5305_v41 = vpop.eup %5304  ;;  %v3390_v48 = vmul.f32 %v5303_v58, %v6589_v32  ;;  %v3317_v44 = vpop.xlane.xlu0 %3316  ;;  %5013 = vmatmul.mubr.msk.bf16.vlgmr.msra.gmra.mrb[112].mxu0 %vm1127_vm2, %v3408_v63 }
 0x4e4   : > { %v3326_v37 = vpop.xlane.xlu1 %3325  ;;  %v5307_v6 = vpop.eup %5306  ;;  %v3391_v50 = vmul.f32 %v5305_v41, %v6586_v53  ;;  %5316 = vrcp.f32 %v3317_v44  ;;  %5023 = vmatpush3.bf16.msra.mxu0 %v6468_v56  ;;  %5024 = vmatprep.mubr.msk.bf16.mxu0 %vm5335_vm0, %v6947_v30 }
 0x4e5   : > { %5034 = vmatprep.subr.bf16.mxu0 %v6947_v30  ;;  %v3388_v17 = vmul.f32 %v5307_v6, %v6580_v43 }
 0x4e6   : > { %v5309_v5 = vpop.eup %5308  ;;  %v3411_v36 = vpack.c.bf16 %v3391_v50, %v3390_v48 }
 0x4e7   : > { %v3389_v32 = vmul.f32 %v5309_v5, %v6597_v45  ;;  %v3332_v24 = vpop.xlane.xlu0 %3331 }
 0x4e8   : > { %v3335_v34 = vpop.xlane.xlu1 %3334  ;;  %5318 = vrcp.f32 %v3332_v24  ;;  %5031 = vmatmul.mubr.msk.bf16.vlgmr.msra.gmra.mrb[116].mxu1 %vm1127_vm2, %v3411_v36 }
 0x4e9   : > { %5041 = vmatpush3.bf16.msra.mxu1 %v6640_v31  ;;  %5320 = vrcp.f32 %v3335_v34  ;;  %v3410_v56 = vpack.c.bf16 %v3389_v32, %v3388_v17  ;;  %5042 = vmatprep.mubr.msk.bf16.mxu1 %vm5335_vm0, %v6947_v30 }
 0x4ea   : > { %v5311_v53 = vpop.eup %5310  ;;  %5322 = vrcp.f32 %v3326_v37  ;;  %5052 = vmatprep.subr.bf16.mxu1 %v6947_v30 }
 0x4eb   : > { %v5313_v52 = vpop.eup %5312  ;;  %v3394_v43 = vmul.f32 %v5311_v53, %v6608_v9  ;;  %v3329_v45 = vpop.xlane.xlu0 %3328  ;;  %5025 = vmatmul.mubr.msk.bf16.vlgmr.msra.gmra.mrb[116].mxu0 %vm1127_vm2, %v3410_v56 }
 0x4ec   : > { %v5315_v26 = vpop.eup %5314  ;;  %v3395_v38 = vmul.f32 %v5313_v52, %v6606_v35  ;;  %5324 = vrcp.f32 %v3329_v45  ;;  %5035 = vmatpush3.bf16.msra.mxu0 %v6638_v12  ;;  %5036 = vmatprep.mubr.msk.bf16.mxu0 %vm5335_vm0, %v6947_v30  ;;  %v4138_v47 = vpop.permute.xlu1 %4137 }
 0x4ed   : > { %5046 = vmatprep.subr.bf16.mxu0 %v6947_v30  ;;  %v3392_v60 = vmul.f32 %v5315_v26, %v6600_v25 }
 0x4ee   : > { %v5317_v31 = vpop.eup %5316  ;;  %v3413_v49 = vpack.c.bf16 %v3395_v38, %v3394_v43 }
 0x4ef   : > { %v3393_v9 = vmul.f32 %v5317_v31, %v6614_v40  ;;  %v4090_v21 = vpop.permute.xlu0 %4089 }
 0x4f0   : > { %5043 = vmatmul.mubr.msk.bf16.vlgmr.msra.gmra.mrb[120].mxu1 %vm1127_vm2, %v3413_v49 }
 0x4f1   : > { %v3412_v20 = vpack.c.bf16 %v3393_v9, %v3392_v60  ;;  %5053 = vmatpush3.bf16.msra.mxu1 %v4138_v47  ;;  %5054 = vmatprep.mubr.msk.bf16.mxu1 %vm5335_vm0, %v6947_v30 }
 0x4f2   : > { %v5319_v35 = vpop.eup %5318 }
 0x4f3   : > { %v5321_v12 = vpop.eup %5320  ;;  %v3398_v57 = vmul.f32 %v5319_v35, %v6624_v54  ;;  %5037 = vmatmul.mubr.msk.bf16.vlgmr.msra.gmra.mrb[120].mxu0 %vm1127_vm2, %v3412_v20 }
 0x4f4   : > { %v5323_v33 = vpop.eup %5322  ;;  %v3399_v55 = vmul.f32 %v5321_v12, %v6622_v3  ;;  %5047 = vmatpush3.bf16.msra.mxu0 %v4090_v21  ;;  %5048 = vmatprep.mubr.msk.bf16.mxu0 %vm5335_vm0, %v6947_v30 }
 0x4f5   : > { %v3396_v23 = vmul.f32 %v5323_v33, %v6616_v16 }
 0x4f6   : > { %v5325_v25 = vpop.eup %5324  ;;  %v3415_v40 = vpack.c.bf16 %v3399_v55, %v3398_v57 }
 0x4f7   : > { %v3397_v46 = vmul.f32 %v5325_v25, %v6630_v61 }
 0x4f8   : > { %5055 = vmatmul.mubr.msk.bf16.vlgmr.msra.gmra.mrb[124].mxu1 %vm1127_vm2, %v3415_v40 }
 0x4f9   : > { %v3414_v13 = vpack.c.bf16 %v3397_v46, %v3396_v23 }
 0x4fb   : > { %5049 = vmatmul.mubr.msk.bf16.vlgmr.msra.gmra.mrb[124].mxu0 %vm1127_vm2, %v3414_v13 }
 0x58c   : > { %v3457_v54 = vpop.f32.mrb[96].mxu0 }
 0x58d   : > { %4216 = vrot.lane.b32.xlu0 %v3457_v54, %s5337_s26  ;;  %v4966_v3 = vpop.f32.mrb[97].mxu0 }
 0x58e   : > { %v3460_v42 = vpop.f32.mrb[98].mxu0 }
 0x58f   : > { %4218 = vrot.lane.b32.xlu1 %v3460_v42, %s5337_s26  ;;  %v4967_v30 = vpop.f32.mrb[99].mxu0 }
 0x592   : > { %v3505_v0 = vpop.f32.mrb[96].mxu1 }
 0x593   : > { %v4972_v22 = vpop.f32.mrb[97].mxu1  ;;  %4220 = vrot.lane.b32.xlu0 %v3505_v0, %s5337_s26 }
 0x594   : > { %v3508_v16 = vpop.f32.mrb[98].mxu1 }
 0x595   : > { %v4973_v61 = vpop.f32.mrb[99].mxu1  ;;  %4222 = vrot.lane.b32.xlu1 %v3508_v16, %s5337_s26 }
 0x597   : > { %v3553_v62 = vpop.f32.mrb[100].mxu0 }
 0x598   : > { %4224 = vrot.lane.b32.xlu0 %v3553_v62, %s5337_s26  ;;  %v4978_v11 = vpop.f32.mrb[101].mxu0 }
 0x599   : > { %v3556_v39 = vpop.f32.mrb[102].mxu0 }
 0x59a   : > { %4226 = vrot.lane.b32.xlu1 %v3556_v39, %s5337_s26  ;;  %v4979_v14 = vpop.f32.mrb[103].mxu0 }
 0x59b   : > { %v3601_v15 = vpop.f32.mrb[100].mxu1 }
 0x59c   : > { %v4984_v28 = vpop.f32.mrb[101].mxu1  ;;  %4228 = vrot.lane.b32.xlu0 %v3601_v15, %s5337_s26 }
 0x59d   : > { %v3604_v1 = vpop.f32.mrb[102].mxu1 }
 0x59e   : > { %v4985_v59 = vpop.f32.mrb[103].mxu1  ;;  %4230 = vrot.lane.b32.xlu1 %v3604_v1, %s5337_s26  ;;  %v6990_v1 = vld [vmem:[#allocation2_spill] sm:$0xff] }
 0x59f   : > { %v3649_v29 = vpop.f32.mrb[104].mxu0 }
 0x5a0   : > { %4232 = vrot.lane.b32.xlu0 %v3649_v29, %s5337_s26  ;;  %v4990_v18 = vpop.f32.mrb[105].mxu0  ;;  %v6991_v29 = vld [vmem:[#allocation15_spill] sm:$0xff] }
 0x5a1   : > { %v3652_v10 = vpop.f32.mrb[106].mxu0 }
 0x5a2   : > { %4234 = vrot.lane.b32.xlu1 %v3652_v10, %s5337_s26  ;;  %v4991_v7 = vpop.f32.mrb[107].mxu0  ;;  %v6992_v10 = vld [vmem:[#allocation4_spill] sm:$0xff] }
 0x5a3   : > { %v3697_v51 = vpop.f32.mrb[104].mxu1 }
 0x5a4   : > { %v4996_v63 = vpop.f32.mrb[105].mxu1  ;;  %4236 = vrot.lane.b32.xlu0 %v3697_v51, %s5337_s26  ;;  %v6993_v51 = vld [vmem:[#allocation3_spill] sm:$0xff] }
 0x5a5   : > { %v3700_v58 = vpop.f32.mrb[106].mxu1 }
 0x5a6   : > { %v4997_v41 = vpop.f32.mrb[107].mxu1  ;;  %4238 = vrot.lane.b32.xlu1 %v3700_v58, %s5337_s26 }
 0x5a7   : > { %v3745_v48 = vpop.f32.mrb[108].mxu0  ;;  %v6994_v41 = vld [vmem:[#allocation6_spill] sm:$0xff] }
 0x5a8   : > { %4240 = vrot.lane.b32.xlu0 %v3745_v48, %s5337_s26  ;;  %v5002_v44 = vpop.f32.mrb[109].mxu0 }
 0x5a9   : > { %v3748_v37 = vpop.f32.mrb[110].mxu0 }
 0x5aa   : > { %4242 = vrot.lane.b32.xlu1 %v3748_v37, %s5337_s26  ;;  %v5003_v6 = vpop.f32.mrb[111].mxu0  ;;  %v6995_v37 = vld [vmem:[#allocation5_spill] sm:$0xff] }
 0x5ab   : > { %v3793_v50 = vpop.f32.mrb[108].mxu1 }
 0x5ac   : > { %v5008_v5 = vpop.f32.mrb[109].mxu1  ;;  %4244 = vrot.lane.b32.xlu0 %v3793_v50, %s5337_s26 }
 0x5ad   : > { %v3796_v36 = vpop.f32.mrb[110].mxu1  ;;  %v6996_v5 = vld [vmem:[#allocation8_spill] sm:$0xff] }
 0x5ae   : > { %v5009_v17 = vpop.f32.mrb[111].mxu1  ;;  %4246 = vrot.lane.b32.xlu1 %v3796_v36, %s5337_s26 }
 0x5b3   : > { %v3889_v32 = vpop.f32.mrb[112].mxu1 }
 0x5b4   : > { %v5020_v24 = vpop.f32.mrb[113].mxu1 }
 0x5b5   : > { %v3892_v34 = vpop.f32.mrb[114].mxu1 }
 0x5b6   : > { %v5021_v56 = vpop.f32.mrb[115].mxu1  ;;  %v3841_v53 = vpop.f32.mrb[112].mxu0 }
 0x5b7   : > { %4248 = vrot.lane.b32.xlu0 %v3841_v53, %s5337_s26  ;;  %v5014_v52 = vpop.f32.mrb[113].mxu0  ;;  %v6998_v56 = vld [vmem:[#allocation10_spill] sm:$0xff] }
 0x5b8   : > { %v3844_v43 = vpop.f32.mrb[114].mxu0 }
 0x5b9   : > { %4250 = vrot.lane.b32.xlu1 %v3844_v43, %s5337_s26  ;;  %v5015_v45 = vpop.f32.mrb[115].mxu0  ;;  %v6999_v43 = vld [vmem:[#allocation9_spill] sm:$0xff] }
 0x5bb   : > { %v3985_v26 = vpop.f32.mrb[116].mxu1  ;;  %4252 = vrot.lane.b32.xlu0 %v3889_v32, %s5337_s26  ;;  %v6997_v32 = vld [vmem:[#allocation7_spill] sm:$0xff] }
 0x5bc   : > { %v5032_v38 = vpop.f32.mrb[117].mxu1 }
 0x5bd   : > { %v3988_v31 = vpop.f32.mrb[118].mxu1  ;;  %4254 = vrot.lane.b32.xlu1 %v3892_v34, %s5337_s26  ;;  %v7000_v38 = vld [vmem:[#allocation12_spill] sm:$0xff] }
 0x5be   : > { %v5033_v49 = vpop.f32.mrb[119].mxu1  ;;  %v3937_v47 = vpop.f32.mrb[116].mxu0 }
 0x5bf   : > { %4256 = vrot.lane.b32.xlu0 %v3937_v47, %s5337_s26  ;;  %v5026_v60 = vpop.f32.mrb[117].mxu0  ;;  %v7001_v47 = vld [vmem:[#allocation11_spill] sm:$0xff] }
 0x5c0   : > { %v3940_v9 = vpop.f32.mrb[118].mxu0 }
 0x5c1   : > { %4258 = vrot.lane.b32.xlu1 %v3940_v9, %s5337_s26  ;;  %v5027_v21 = vpop.f32.mrb[119].mxu0 }
 0x5c2   : > { %v7002_v21 = vld [vmem:[#allocation14_spill] sm:$0xff] }
 0x5c3   : > { %v4081_v20 = vpop.f32.mrb[120].mxu1  ;;  %4260 = vrot.lane.b32.xlu0 %v3985_v26, %s5337_s26 }
 0x5c4   : > { %v5044_v35 = vpop.f32.mrb[121].mxu1 }
 0x5c5   : > { %v4084_v12 = vpop.f32.mrb[122].mxu1  ;;  %4262 = vrot.lane.b32.xlu1 %v3988_v31, %s5337_s26 }
 0x5c6   : > { %v5045_v57 = vpop.f32.mrb[123].mxu1  ;;  %v4033_v33 = vpop.f32.mrb[120].mxu0 }
 0x5c7   : > { %4264 = vrot.lane.b32.xlu0 %v4033_v33, %s5337_s26  ;;  %v5038_v55 = vpop.f32.mrb[121].mxu0 }
 0x5c8   : > { %v4036_v25 = vpop.f32.mrb[122].mxu0  ;;  %v7004_v55 = vld [vmem:[#allocation16_spill] sm:$0xff] }
 0x5c9   : > { %4266 = vrot.lane.b32.xlu1 %v4036_v25, %s5337_s26  ;;  %v5039_v40 = vpop.f32.mrb[123].mxu0 }
 0x5cb   : > { %v4177_v23 = vpop.f32.mrb[124].mxu1  ;;  %4268 = vrot.lane.b32.xlu0 %v4081_v20, %s5337_s26 }
 0x5cc   : > { %v5056_v46 = vpop.f32.mrb[125].mxu1 }
 0x5cd   : > { %v4180_v13 = vpop.f32.mrb[126].mxu1  ;;  %4270 = vrot.lane.b32.xlu1 %v4084_v12, %s5337_s26  ;;  %v7003_v12 = vld [vmem:[#allocation13_spill] sm:$0xff] }
 0x5ce   : > { %v5057_v54 = vpop.f32.mrb[127].mxu1  ;;  %v4129_v3 = vpop.f32.mrb[124].mxu0 }
 0x5cf   : > { %4272 = vrot.lane.b32.xlu0 %v4129_v3, %s5337_s26  ;;  %v5050_v42 = vpop.f32.mrb[125].mxu0  ;;  %v7006_v54 = vld [vmem:[#allocation18_spill] sm:$0xff] }
 0x5d0   : > { %v4132_v30 = vpop.f32.mrb[126].mxu0 }
 0x5d1   : > { %4274 = vrot.lane.b32.xlu1 %v4132_v30, %s5337_s26  ;;  %v5051_v0 = vpop.f32.mrb[127].mxu0  ;;  %v7007_v30 = vld [vmem:[#allocation19_spill] sm:$0xff] }
 0x5d3   : > { %4276 = vrot.lane.b32.xlu0 %v4177_v23, %s5337_s26  ;;  %v7005_v23 = vld [vmem:[#allocation17_spill] sm:$0xff] }
 0x5d5   : > { %4278 = vrot.lane.b32.xlu1 %v4180_v13, %s5337_s26 }
 0x5ff   : > { %v4217_v22 = vpop.permute.xlu0 %4216 }
 0x600   : > { %v4312_v16 = vsel %vm374_vm1, %v6256_v8, %v4217_v22 }
 0x601   : > { %4345 = vst.msk [vmem:[%s6778_s29] sm:$0xff] %vm4344_vm3, %v4312_v16  ;;  %v4219_v61 = vpop.permute.xlu1 %4218  ;;  %v7008_v16 = vld [vmem:[#allocation20_spill] sm:$0xff] }
 0x602   : > { %v4313_v62 = vsel %vm374_vm1, %v6258_v2, %v4219_v61 }
 0x603   : > { %4346 = vst.msk [vmem:[%s6778_s29 + $0x8] sm:$0xff] %vm4344_vm3, %v4313_v62 }
 0x605   : > { %v4221_v11 = vpop.permute.xlu0 %4220 }
 0x606   : > { %v4314_v39 = vsel %vm374_vm1, %v6260_v4, %v4221_v11  ;;  %v7009_v11 = vld [vmem:[#allocation21_spill] sm:$0xff] }
 0x607   : > { %4347 = vst.msk [vmem:[%s6778_s29 + $0x10] sm:$0xff] %vm4344_vm3, %v4314_v39  ;;  %v4223_v14 = vpop.permute.xlu1 %4222 }
 0x608   : > { %v4315_v8 = vsel %vm374_vm1, %v6262_v19, %v4223_v14 }
 0x609   : > { %4348 = vst.msk [vmem:[%s6778_s29 + $0x18] sm:$0xff] %vm4344_vm3, %v4315_v8  ;;  %v7010_v8 = vld [vmem:[#allocation22_spill] sm:$0xff] }
 0x60a   : > { %v4225_v15 = vpop.permute.xlu0 %4224 }
 0x60b   : > { %v4316_v2 = vsel %vm374_vm1, %v6264_v27, %v4225_v15 }
 0x60c   : > { %4349 = vst.msk [vmem:[%s6778_s29 + $0x20] sm:$0xff] %vm4344_vm3, %v4316_v2  ;;  %v4227_v28 = vpop.permute.xlu1 %4226 }
 0x60d   : > { %v4317_v4 = vsel %vm374_vm1, %v6990_v1, %v4227_v28  ;;  %v7011_v28 = vld [vmem:[#allocation23_spill] sm:$0xff] }
 0x60e   : > { %4350 = vst.msk [vmem:[%s6778_s29 + $0x28] sm:$0xff] %vm4344_vm3, %v4317_v4  ;;  %v4229_v59 = vpop.permute.xlu0 %4228 }
 0x60f   : > { %v4318_v19 = vsel %vm374_vm1, %v6991_v29, %v4229_v59  ;;  %v7012_v59 = vld [vmem:[#allocation24_spill] sm:$0xff] }
 0x610   : > { %4351 = vst.msk [vmem:[%s6778_s29 + $0x30] sm:$0xff] %vm4344_vm3, %v4318_v19  ;;  %v4231_v18 = vpop.permute.xlu1 %4230 }
 0x611   : > { %v4319_v27 = vsel %vm374_vm1, %v6992_v10, %v4231_v18  ;;  %v7013_v18 = vld [vmem:[#allocation25_spill] sm:$0xff] }
 0x612   : > { %4352 = vst.msk [vmem:[%s6778_s29 + $0x38] sm:$0xff] %vm4344_vm3, %v4319_v27  ;;  %v4233_v7 = vpop.permute.xlu0 %4232 }
 0x613   : > { %v4320_v63 = vsel %vm374_vm1, %v6993_v51, %v4233_v7  ;;  %v7014_v7 = vld [vmem:[#allocation26_spill] sm:$0xff] }
 0x614   : > { %4353 = vst.msk [vmem:[%s6778_s29 + $0x40] sm:$0xff] %vm4344_vm3, %v4320_v63  ;;  %v4235_v58 = vpop.permute.xlu1 %4234 }
 0x615   : > { %v4321_v48 = vsel %vm374_vm1, %v6994_v41, %v4235_v58  ;;  %v7015_v58 = vld [vmem:[#allocation27_spill] sm:$0xff] }
 0x616   : > { %4354 = vst.msk [vmem:[%s6778_s29 + $0x48] sm:$0xff] %vm4344_vm3, %v4321_v48  ;;  %v4237_v44 = vpop.permute.xlu0 %4236 }
 0x617   : > { %v4322_v6 = vsel %vm374_vm1, %v6995_v37, %v4237_v44  ;;  %v7016_v44 = vld [vmem:[#allocation28_spill] sm:$0xff] }
 0x618   : > { %4355 = vst.msk [vmem:[%s6778_s29 + $0x50] sm:$0xff] %vm4344_vm3, %v4322_v6  ;;  %v4239_v50 = vpop.permute.xlu1 %4238 }
 0x619   : > { %v4323_v36 = vsel %vm374_vm1, %v6996_v5, %v4239_v50 }
 0x61a   : > { %4356 = vst.msk [vmem:[%s6778_s29 + $0x58] sm:$0xff] %vm4344_vm3, %v4323_v36  ;;  %v4241_v17 = vpop.permute.xlu0 %4240 }
 0x61b   : > { %v4324_v24 = vsel %vm374_vm1, %v6997_v32, %v4241_v17 }
 0x61c   : > { %4357 = vst.msk [vmem:[%s6778_s29 + $0x60] sm:$0xff] %vm4344_vm3, %v4324_v24  ;;  %v4243_v34 = vpop.permute.xlu1 %4242 }
 0x61d   : > { %v4325_v53 = vsel %vm374_vm1, %v6998_v56, %v4243_v34 }
 0x61e   : > { %4358 = vst.msk [vmem:[%s6778_s29 + $0x68] sm:$0xff] %vm4344_vm3, %v4325_v53  ;;  %v4245_v52 = vpop.permute.xlu0 %4244 }
 0x61f   : > { %v4326_v45 = vsel %vm374_vm1, %v6999_v43, %v4245_v52 }
 0x620   : > { %4359 = vst.msk [vmem:[%s6778_s29 + $0x70] sm:$0xff] %vm4344_vm3, %v4326_v45  ;;  %v4247_v26 = vpop.permute.xlu1 %4246 }
 0x621   : > { %v4327_v31 = vsel %vm374_vm1, %v7000_v38, %v4247_v26 }
 0x622   : > { %4360 = vst.msk [vmem:[%s6778_s29 + $0x78] sm:$0xff] %vm4344_vm3, %v4327_v31 }
 0x629   : > { %v4249_v49 = vpop.permute.xlu0 %4248 }
 0x62a   : > { %v4328_v60 = vsel %vm374_vm1, %v7001_v47, %v4249_v49 }
 0x62b   : > { %4361 = vst.msk [vmem:[%s6778_s29 + $0x80] sm:$0xff] %vm4344_vm3, %v4328_v60  ;;  %v4251_v9 = vpop.permute.xlu1 %4250 }
 0x62c   : > { %v4329_v20 = vsel %vm374_vm1, %v7002_v21, %v4251_v9 }
 0x62d   : > { %4362 = vst.msk [vmem:[%s6778_s29 + $0x88] sm:$0xff] %vm4344_vm3, %v4329_v20  ;;  %v4253_v35 = vpop.permute.xlu0 %4252 }
 0x62e   : > { %v4330_v57 = vsel %vm374_vm1, %v7003_v12, %v4253_v35 }
 0x62f   : > { %4363 = vst.msk [vmem:[%s6778_s29 + $0x90] sm:$0xff] %vm4344_vm3, %v4330_v57  ;;  %v4255_v33 = vpop.permute.xlu1 %4254 }
 0x630   : > { %v4331_v25 = vsel %vm374_vm1, %v7004_v55, %v4255_v33 }
 0x631   : > { %4364 = vst.msk [vmem:[%s6778_s29 + $0x98] sm:$0xff] %vm4344_vm3, %v4331_v25  ;;  %v4257_v40 = vpop.permute.xlu0 %4256 }
 0x632   : > { %v4332_v46 = vsel %vm374_vm1, %v7005_v23, %v4257_v40 }
 0x633   : > { %4365 = vst.msk [vmem:[%s6778_s29 + $0xa0] sm:$0xff] %vm4344_vm3, %v4332_v46  ;;  %v4259_v13 = vpop.permute.xlu1 %4258 }
 0x634   : > { %v4333_v3 = vsel %vm374_vm1, %v7006_v54, %v4259_v13 }
 0x635   : > { %4366 = vst.msk [vmem:[%s6778_s29 + $0xa8] sm:$0xff] %vm4344_vm3, %v4333_v3  ;;  %v4261_v42 = vpop.permute.xlu0 %4260 }
 0x636   : > { %v4334_v0 = vsel %vm374_vm1, %v7007_v30, %v4261_v42 }
 0x637   : > { %4367 = vst.msk [vmem:[%s6778_s29 + $0xb0] sm:$0xff] %vm4344_vm3, %v4334_v0  ;;  %v4263_v22 = vpop.permute.xlu1 %4262 }
 0x638   : > { %v4335_v61 = vsel %vm374_vm1, %v7008_v16, %v4263_v22 }
 0x639   : > { %4368 = vst.msk [vmem:[%s6778_s29 + $0xb8] sm:$0xff] %vm4344_vm3, %v4335_v61  ;;  %v4265_v62 = vpop.permute.xlu0 %4264 }
 0x63a   : > { %v4336_v39 = vsel %vm374_vm1, %v7009_v11, %v4265_v62 }
 0x63b   : > { %4369 = vst.msk [vmem:[%s6778_s29 + $0xc0] sm:$0xff] %vm4344_vm3, %v4336_v39  ;;  %v4267_v14 = vpop.permute.xlu1 %4266 }
 0x63c   : > { %v4337_v15 = vsel %vm374_vm1, %v7010_v8, %v4267_v14 }
 0x63d   : > { %4370 = vst.msk [vmem:[%s6778_s29 + $0xc8] sm:$0xff] %vm4344_vm3, %v4337_v15  ;;  %v4269_v2 = vpop.permute.xlu0 %4268 }
 0x63e   : > { %v4338_v1 = vsel %vm374_vm1, %v7011_v28, %v4269_v2 }
 0x63f   : > { %4371 = vst.msk [vmem:[%s6778_s29 + $0xd0] sm:$0xff] %vm4344_vm3, %v4338_v1  ;;  %v4271_v4 = vpop.permute.xlu1 %4270 }
 0x640   : > { %v4339_v29 = vsel %vm374_vm1, %v7012_v59, %v4271_v4 }
 0x641   : > { %4372 = vst.msk [vmem:[%s6778_s29 + $0xd8] sm:$0xff] %vm4344_vm3, %v4339_v29  ;;  %v4273_v19 = vpop.permute.xlu0 %4272 }
 0x642   : > { %v4340_v10 = vsel %vm374_vm1, %v7013_v18, %v4273_v19 }
 0x643   : > { %4373 = vst.msk [vmem:[%s6778_s29 + $0xe0] sm:$0xff] %vm4344_vm3, %v4340_v10  ;;  %v4275_v27 = vpop.permute.xlu1 %4274 }
 0x644   : > { %v4341_v51 = vsel %vm374_vm1, %v7014_v7, %v4275_v27 }
 0x645   : > { %4374 = vst.msk [vmem:[%s6778_s29 + $0xe8] sm:$0xff] %vm4344_vm3, %v4341_v51  ;;  %v4277_v63 = vpop.permute.xlu0 %4276 }
 0x646   : > { %v4342_v41 = vsel %vm374_vm1, %v7015_v58, %v4277_v63 }
 0x647   : > { %4375 = vst.msk [vmem:[%s6778_s29 + $0xf0] sm:$0xff] %vm4344_vm3, %v4342_v41  ;;  %v4279_v48 = vpop.permute.xlu1 %4278 }
 0x648   : > { %v4343_v37 = vsel %vm374_vm1, %v7016_v44, %v4279_v48 }
 0x649   : > { %4376 = vst.msk [vmem:[%s6778_s29 + $0xf8] sm:$0xff] %vm4344_vm3, %v4343_v37 }
 0x64a PF: > { %s13_s12 = sadd.s32 1, %s5332_s12  }
 0x64b   : > { %p10_p4 = scmp.ge.s32.totalorder %s13_s12, 4  }
 0x64d   :  { %12 = sbr.rel (!%p10_p4) target bundleno = 1 (0x1), region = 68 }

// kernel: attention_blocks_forward.11
= control target key start
LH: loop header
LB: loop body
LE: loop exit
PB: predicated region body
PF: predicated region fallthrough
CT: control target
= control target key end

     0   :  { %vm399_vm0 = vcmask 1041408   ;;  %vm302_vm1 = vcmask 31744   ;;  %vm1215_vm2 = vcmask 64512   ;;  %vm2328_vm3 = vcmask 1043456   ;;  %s7472_s4 = inlined_call_operand.vmem [shape: f32[4,8], index: 4, kind: input, shape index: {}]   ;;  %s7473_s1 = inlined_call_operand.vmem [shape: f32[512,4], index: 1, kind: input, shape index: {}]   ;;  %s7474_s3 = inlined_call_operand.vmem [shape: f32[4,8], index: 3, kind: input, shape index: {}]   ;;  %s7475_s0 = inlined_call_operand.vmem [shape: f32[512,4], index: 0, kind: input, shape index: {}]   ;;  %s7476_s5 = inlined_call_operand.vmem [shape: f32[1,8], index: 5, kind: input, shape index: {}]   ;;  %s7477_s2 = inlined_call_operand.vmem [shape: f32[512,8], index: 2, kind: input, shape index: {}]   ;;  %s7478_s8 = inlined_call_operand.vmem [shape: f32[8,32], index: 8, kind: input, shape index: {}]   ;;  %s7479_s6 = inlined_call_operand.vmem [shape: f32[1,8], index: 6, kind: input, shape index: {}]   ;;  %s7480_s7 = inlined_call_operand.vmem [shape: f32[1,8], index: 7, kind: input, shape index: {}]   ;;  %s7481_s10 = inlined_call_operand.vmem [shape: f32[32,8], index: 10, kind: input, shape index: {}]   ;;  %s7482_s9 = inlined_call_operand.vmem [shape: f32[1,32], index: 9, kind: input, shape index: {}]   ;;  %s7483_s11 = inlined_call_operand.vmem [shape: f32[1,8], index: 11, kind: input, shape index: {}]   ;;  %s7484_s12 = inlined_call_operand.vmem [shape: f32[512,8], index: 12, kind: output, shape index: {}]  }
   0x1   :  { %v300_v0 = vld [vmem:[%s7472_s4] sm:$0xf]  ;;  %v205_v2 = vld [vmem:[%s7473_s1 + $0x8] sm:$0xff]  ;;  %v206_v5 = vld [vmem:[%s7473_s1 + $0x10] sm:$0xff]  ;;  %vm3235_vm4 = vcmask 261120  }
   0x2   :  { %v204_v1 = vld [vmem:[%s7473_s1] sm:$0xff]  ;;  %v301_v3 = vpack.c.bf16 %v300_v0, %v300_v0  ;;  %v207_v6 = vld [vmem:[%s7473_s1 + $0x18] sm:$0xff]  ;;  %v209_v10 = vld [vmem:[%s7473_s1 + $0x28] sm:$0xff] }
   0x3   :  { %v268_v4 = vpack.c.bf16 %v205_v2, %v204_v1  ;;  %v202_v7 = vld [vmem:[%s7474_s3] sm:$0xf]  ;;  %v269_v12 = vpack.c.bf16 %v207_v6, %v206_v5  ;;  %v210_v15 = vld [vmem:[%s7473_s1 + $0x30] sm:$0xff]  ;;  %v211_v16 = vld [vmem:[%s7473_s1 + $0x38] sm:$0xff] }
   0x4   :  { %v203_v8 = vpack.c.bf16 %v202_v7, %v202_v7  ;;  %v208_v9 = vld [vmem:[%s7473_s1 + $0x20] sm:$0xff]  ;;  %4420 = vmatprep.subr.msk.bf16.mxu0 %vm399_vm0, %v301_v3  ;;  %v401_v11 = vsel %vm399_vm0, %v301_v3, 0  ;;  %v213_v18 = vld [vmem:[%s7473_s1 + $0x48] sm:$0xff]  ;;  %v271_v19 = vpack.c.bf16 %v211_v16, %v210_v15  ;;  %v214_v21 = vld [vmem:[%s7473_s1 + $0x50] sm:$0xff] }
   0x5   :  { %4092 = vmatprep.mubr.msk.bf16.mxu0 %vm302_vm1, %v268_v4  ;;  %4091 = vmatpush3.bf16.msra.mxu0 %v401_v11  ;;  %v270_v13 = vpack.c.bf16 %v209_v10, %v208_v9  ;;  %v212_v17 = vld [vmem:[%s7473_s1 + $0x40] sm:$0xff]  ;;  %v215_v22 = vld [vmem:[%s7473_s1 + $0x58] sm:$0xff]  ;;  %v217_v24 = vld [vmem:[%s7473_s1 + $0x68] sm:$0xff] }
   0x6   :  { %4421 = vmatprep.subr.msk.bf16.mxu0 %vm399_vm0, %v203_v8  ;;  %v789_v14 = vsel %vm399_vm0, %v203_v8, 0  ;;  %v272_v20 = vpack.c.bf16 %v213_v18, %v212_v17  ;;  %v216_v23 = vld [vmem:[%s7473_s1 + $0x60] sm:$0xff]  ;;  %v273_v25 = vpack.c.bf16 %v215_v22, %v214_v21  ;;  %v218_v27 = vld [vmem:[%s7473_s1 + $0x70] sm:$0xff]  ;;  %v219_v28 = vld [vmem:[%s7473_s1 + $0x78] sm:$0xff] }
   0x7   :  { %v274_v26 = vpack.c.bf16 %v217_v24, %v216_v23  ;;  %v220_v29 = vld [vmem:[%s7473_s1 + $0x80] sm:$0xff]  ;;  %v221_v30 = vld [vmem:[%s7473_s1 + $0x88] sm:$0xff]  ;;  %v275_v31 = vpack.c.bf16 %v219_v28, %v218_v27  ;;  %v222_v33 = vld [vmem:[%s7473_s1 + $0x90] sm:$0xff] }
   0x8   :  { %4093 = vmatmul.mubr.msk.bf16.vlgmr.msra.gmra.mrb[0].mxu0 %vm302_vm1, %v269_v12  ;;  %v276_v32 = vpack.c.bf16 %v221_v30, %v220_v29  ;;  %v223_v34 = vld [vmem:[%s7473_s1 + $0x98] sm:$0xff]  ;;  %v224_v35 = vld [vmem:[%s7473_s1 + $0xa0] sm:$0xff]  ;;  %v225_v36 = vld [vmem:[%s7473_s1 + $0xa8] sm:$0xff] }
   0x9   :  { %4157 = vmatpush3.bf16.msra.mxu0 %v789_v14  ;;  %4096 = vmatprep.mubr.msk.bf16.mxu0 %vm302_vm1, %v270_v13  ;;  %v277_v37 = vpack.c.bf16 %v223_v34, %v222_v33  ;;  %v278_v38 = vpack.c.bf16 %v225_v36, %v224_v35  ;;  %v226_v39 = vld [vmem:[%s7473_s1 + $0xb0] sm:$0xff]  ;;  %v227_v40 = vld [vmem:[%s7473_s1 + $0xb8] sm:$0xff]  ;;  %v228_v41 = vld [vmem:[%s7473_s1 + $0xc0] sm:$0xff] }
   0xa   :  { %v229_v42 = vld [vmem:[%s7473_s1 + $0xc8] sm:$0xff]  ;;  %v279_v43 = vpack.c.bf16 %v227_v40, %v226_v39  ;;  %v230_v45 = vld [vmem:[%s7473_s1 + $0xd0] sm:$0xff]  ;;  %v231_v46 = vld [vmem:[%s7473_s1 + $0xd8] sm:$0xff] }
   0xb   :  { %v280_v44 = vpack.c.bf16 %v229_v42, %v228_v41  ;;  %v232_v47 = vld [vmem:[%s7473_s1 + $0xe0] sm:$0xff]  ;;  %v233_v48 = vld [vmem:[%s7473_s1 + $0xe8] sm:$0xff]  ;;  %v281_v49 = vpack.c.bf16 %v231_v46, %v230_v45  ;;  %v234_v51 = vld [vmem:[%s7473_s1 + $0xf0] sm:$0xff] }
   0xc   :  { %v282_v50 = vpack.c.bf16 %v233_v48, %v232_v47  ;;  %v235_v52 = vld [vmem:[%s7473_s1 + $0xf8] sm:$0xff]  ;;  %v236_v53 = vld [vmem:[%s7473_s1 + $0x100] sm:$0xff]  ;;  %v237_v54 = vld [vmem:[%s7473_s1 + $0x108] sm:$0xff] }
   0xd   :  { %v283_v55 = vpack.c.bf16 %v235_v52, %v234_v51  ;;  %v284_v56 = vpack.c.bf16 %v237_v54, %v236_v53  ;;  %v238_v57 = vld [vmem:[%s7473_s1 + $0x110] sm:$0xff]  ;;  %v239_v58 = vld [vmem:[%s7473_s1 + $0x118] sm:$0xff]  ;;  %v240_v59 = vld [vmem:[%s7473_s1 + $0x120] sm:$0xff] }
   0xe   :  { %v241_v60 = vld [vmem:[%s7473_s1 + $0x128] sm:$0xff]  ;;  %v285_v61 = vpack.c.bf16 %v239_v58, %v238_v57  ;;  %v242_v63 = vld [vmem:[%s7473_s1 + $0x130] sm:$0xff]  ;;  %v243_v0 = vld [vmem:[%s7473_s1 + $0x138] sm:$0xff] }
   0xf   :  { %v286_v62 = vpack.c.bf16 %v241_v60, %v240_v59  ;;  %v244_v1 = vld [vmem:[%s7473_s1 + $0x140] sm:$0xff]  ;;  %v245_v2 = vld [vmem:[%s7473_s1 + $0x148] sm:$0xff]  ;;  %v287_v3 = vpack.c.bf16 %v243_v0, %v242_v63  ;;  %v246_v5 = vld [vmem:[%s7473_s1 + $0x150] sm:$0xff] }
  0x10   :  { %4097 = vmatmul.mubr.msk.bf16.gmra.mrb[4].mxu0 %vm302_vm1, %v271_v19  ;;  %v288_v4 = vpack.c.bf16 %v245_v2, %v244_v1  ;;  %v247_v6 = vld [vmem:[%s7473_s1 + $0x158] sm:$0xff]  ;;  %v248_v7 = vld [vmem:[%s7473_s1 + $0x160] sm:$0xff]  ;;  %v249_v8 = vld [vmem:[%s7473_s1 + $0x168] sm:$0xff] }
  0x11   :  { %4100 = vmatprep.mubr.msk.bf16.mxu0 %vm302_vm1, %v272_v20  ;;  %v289_v9 = vpack.c.bf16 %v247_v6, %v246_v5  ;;  %v290_v10 = vpack.c.bf16 %v249_v8, %v248_v7  ;;  %v250_v11 = vld [vmem:[%s7473_s1 + $0x170] sm:$0xff]  ;;  %v251_v12 = vld [vmem:[%s7473_s1 + $0x178] sm:$0xff]  ;;  %v252_v13 = vld [vmem:[%s7473_s1 + $0x180] sm:$0xff] }
  0x12   :  { %v253_v14 = vld [vmem:[%s7473_s1 + $0x188] sm:$0xff]  ;;  %v291_v15 = vpack.c.bf16 %v251_v12, %v250_v11  ;;  %v254_v17 = vld [vmem:[%s7473_s1 + $0x190] sm:$0xff]  ;;  %v255_v18 = vld [vmem:[%s7473_s1 + $0x198] sm:$0xff] }
  0x13   :  { %v292_v16 = vpack.c.bf16 %v253_v14, %v252_v13  ;;  %v256_v19 = vld [vmem:[%s7473_s1 + $0x1a0] sm:$0xff]  ;;  %v257_v20 = vld [vmem:[%s7473_s1 + $0x1a8] sm:$0xff]  ;;  %v293_v21 = vpack.c.bf16 %v255_v18, %v254_v17  ;;  %v258_v23 = vld [vmem:[%s7473_s1 + $0x1b0] sm:$0xff] }
  0x14   :  { %v294_v22 = vpack.c.bf16 %v257_v20, %v256_v19  ;;  %v259_v24 = vld [vmem:[%s7473_s1 + $0x1b8] sm:$0xff]  ;;  %v262_v29 = vld [vmem:[%s7473_s1 + $0x1d0] sm:$0xff] }
  0x15   :  { %v295_v27 = vpack.c.bf16 %v259_v24, %v258_v23  ;;  %v263_v30 = vld [vmem:[%s7473_s1 + $0x1d8] sm:$0xff]  ;;  %v266_v35 = vld [vmem:[%s7473_s1 + $0x1f0] sm:$0xff] }
  0x16   :  { %v297_v33 = vpack.c.bf16 %v263_v30, %v262_v29  ;;  %v267_v36 = vld [vmem:[%s7473_s1 + $0x1f8] sm:$0xff]  ;;  %v108_v41 = vld [vmem:[%s7475_s0 + $0x10] sm:$0xff] }
  0x17   :  { %v299_v39 = vpack.c.bf16 %v267_v36, %v266_v35  ;;  %v109_v42 = vld [vmem:[%s7475_s0 + $0x18] sm:$0xff]  ;;  %v112_v47 = vld [vmem:[%s7475_s0 + $0x30] sm:$0xff] }
  0x18   :  { %4101 = vmatmul.mubr.msk.bf16.gmra.mrb[8].mxu0 %vm302_vm1, %v273_v25  ;;  %v260_v25 = vld [vmem:[%s7473_s1 + $0x1c0] sm:$0xff]  ;;  %v171_v45 = vpack.c.bf16 %v109_v42, %v108_v41  ;;  %v113_v48 = vld [vmem:[%s7475_s0 + $0x38] sm:$0xff]  ;;  %v116_v53 = vld [vmem:[%s7475_s0 + $0x50] sm:$0xff] }
  0x19   :  { %4104 = vmatprep.mubr.msk.bf16.mxu0 %vm302_vm1, %v274_v26  ;;  %v261_v26 = vld [vmem:[%s7473_s1 + $0x1c8] sm:$0xff]  ;;  %v173_v51 = vpack.c.bf16 %v113_v48, %v112_v47  ;;  %v117_v54 = vld [vmem:[%s7475_s0 + $0x58] sm:$0xff]  ;;  %v120_v59 = vld [vmem:[%s7475_s0 + $0x70] sm:$0xff] }
  0x1a   :  { %v296_v28 = vpack.c.bf16 %v261_v26, %v260_v25  ;;  %v175_v57 = vpack.c.bf16 %v117_v54, %v116_v53  ;;  %v121_v60 = vld [vmem:[%s7475_s0 + $0x78] sm:$0xff]  ;;  %v124_v1 = vld [vmem:[%s7475_s0 + $0x90] sm:$0xff] }
  0x1b   :  { %v177_v63 = vpack.c.bf16 %v121_v60, %v120_v59  ;;  %v125_v2 = vld [vmem:[%s7475_s0 + $0x98] sm:$0xff]  ;;  %v128_v7 = vld [vmem:[%s7475_s0 + $0xb0] sm:$0xff] }
  0x1c   :  { %v179_v5 = vpack.c.bf16 %v125_v2, %v124_v1  ;;  %v129_v8 = vld [vmem:[%s7475_s0 + $0xb8] sm:$0xff]  ;;  %v132_v13 = vld [vmem:[%s7475_s0 + $0xd0] sm:$0xff] }
  0x1d   :  { %v181_v11 = vpack.c.bf16 %v129_v8, %v128_v7  ;;  %v133_v14 = vld [vmem:[%s7475_s0 + $0xd8] sm:$0xff]  ;;  %v136_v19 = vld [vmem:[%s7475_s0 + $0xf0] sm:$0xff] }
  0x1e   :  { %v183_v17 = vpack.c.bf16 %v133_v14, %v132_v13  ;;  %v137_v20 = vld [vmem:[%s7475_s0 + $0xf8] sm:$0xff]  ;;  %v140_v25 = vld [vmem:[%s7475_s0 + $0x110] sm:$0xff] }
  0x1f   :  { %v185_v23 = vpack.c.bf16 %v137_v20, %v136_v19  ;;  %v141_v26 = vld [vmem:[%s7475_s0 + $0x118] sm:$0xff]  ;;  %v44_v7 = vld [vmem:[%s7477_s2 + $0x10] sm:$0xff] }
  0x20   :  { %4105 = vmatmul.mubr.msk.bf16.gmra.mrb[12].mxu0 %vm302_vm1, %v275_v31  ;;  %v264_v31 = vld [vmem:[%s7473_s1 + $0x1e0] sm:$0xff]  ;;  %v187_v29 = vpack.c.bf16 %v141_v26, %v140_v25  ;;  %v45_v13 = vld [vmem:[%s7477_s2 + $0x18] sm:$0xff]  ;;  %v48_v25 = vld [vmem:[%s7477_s2 + $0x30] sm:$0xff] }
  0x21   :  { %4108 = vmatprep.mubr.msk.bf16.mxu0 %vm302_vm1, %v276_v32  ;;  %v265_v32 = vld [vmem:[%s7473_s1 + $0x1e8] sm:$0xff] }
  0x22   :  { %v298_v34 = vpack.c.bf16 %v265_v32, %v264_v31  ;;  %v144_v31 = vld [vmem:[%s7475_s0 + $0x130] sm:$0xff]  ;;  %v145_v32 = vld [vmem:[%s7475_s0 + $0x138] sm:$0xff] }
  0x23   :  { %v189_v35 = vpack.c.bf16 %v145_v32, %v144_v31  ;;  %v49_v31 = vld [vmem:[%s7477_s2 + $0x38] sm:$0xff] }
  0x28   :  { %4109 = vmatmul.mubr.msk.bf16.gmra.mrb[16].mxu0 %vm302_vm1, %v277_v37  ;;  %v106_v37 = vld [vmem:[%s7475_s0] sm:$0xff] }
  0x29   :  { %4112 = vmatprep.mubr.msk.bf16.mxu0 %vm302_vm1, %v278_v38  ;;  %v107_v38 = vld [vmem:[%s7475_s0 + $0x8] sm:$0xff] }
  0x2a   :  { %v170_v40 = vpack.c.bf16 %v107_v38, %v106_v37  ;;  %v148_v37 = vld [vmem:[%s7475_s0 + $0x150] sm:$0xff]  ;;  %v149_v38 = vld [vmem:[%s7475_s0 + $0x158] sm:$0xff] }
  0x2b   :  { %v191_v41 = vpack.c.bf16 %v149_v38, %v148_v37  ;;  %v47_v38 = vld [vmem:[%s7477_s2 + $0x28] sm:$0xff] }
  0x30   :  { %4113 = vmatmul.mubr.msk.bf16.gmra.mrb[20].mxu0 %vm302_vm1, %v279_v43  ;;  %v110_v43 = vld [vmem:[%s7475_s0 + $0x20] sm:$0xff] }
  0x31   :  { %4116 = vmatprep.mubr.msk.bf16.mxu0 %vm302_vm1, %v280_v44  ;;  %v111_v44 = vld [vmem:[%s7475_s0 + $0x28] sm:$0xff] }
  0x32   :  { %v172_v46 = vpack.c.bf16 %v111_v44, %v110_v43  ;;  %v152_v43 = vld [vmem:[%s7475_s0 + $0x170] sm:$0xff]  ;;  %v153_v44 = vld [vmem:[%s7475_s0 + $0x178] sm:$0xff] }
  0x33   :  { %v193_v47 = vpack.c.bf16 %v153_v44, %v152_v43 }
  0x38   :  { %4117 = vmatmul.mubr.msk.bf16.gmra.mrb[24].mxu0 %vm302_vm1, %v281_v49  ;;  %v114_v49 = vld [vmem:[%s7475_s0 + $0x40] sm:$0xff] }
  0x39   :  { %4120 = vmatprep.mubr.msk.bf16.mxu0 %vm302_vm1, %v282_v50  ;;  %v115_v50 = vld [vmem:[%s7475_s0 + $0x48] sm:$0xff] }
  0x3a   :  { %v174_v52 = vpack.c.bf16 %v115_v50, %v114_v49  ;;  %v156_v49 = vld [vmem:[%s7475_s0 + $0x190] sm:$0xff]  ;;  %v157_v50 = vld [vmem:[%s7475_s0 + $0x198] sm:$0xff] }
  0x3b   :  { %v195_v53 = vpack.c.bf16 %v157_v50, %v156_v49  ;;  %v53_v50 = vld [vmem:[%s7477_s2 + $0x58] sm:$0xff] }
  0x40   :  { %4121 = vmatmul.mubr.msk.bf16.gmra.mrb[28].mxu0 %vm302_vm1, %v283_v55  ;;  %v118_v55 = vld [vmem:[%s7475_s0 + $0x60] sm:$0xff] }
  0x41   :  { %4124 = vmatprep.mubr.msk.bf16.mxu0 %vm302_vm1, %v284_v56  ;;  %v119_v56 = vld [vmem:[%s7475_s0 + $0x68] sm:$0xff] }
  0x42   :  { %v176_v58 = vpack.c.bf16 %v119_v56, %v118_v55  ;;  %v160_v55 = vld [vmem:[%s7475_s0 + $0x1b0] sm:$0xff]  ;;  %v161_v56 = vld [vmem:[%s7475_s0 + $0x1b8] sm:$0xff] }
  0x43   :  { %v197_v59 = vpack.c.bf16 %v161_v56, %v160_v55 }
  0x48   :  { %4125 = vmatmul.mubr.msk.bf16.gmra.mrb[32].mxu0 %vm302_vm1, %v285_v61  ;;  %v122_v61 = vld [vmem:[%s7475_s0 + $0x80] sm:$0xff] }
  0x49   :  { %4128 = vmatprep.mubr.msk.bf16.mxu0 %vm302_vm1, %v286_v62  ;;  %v123_v62 = vld [vmem:[%s7475_s0 + $0x88] sm:$0xff] }
  0x4a   :  { %v178_v0 = vpack.c.bf16 %v123_v62, %v122_v61  ;;  %v164_v61 = vld [vmem:[%s7475_s0 + $0x1d0] sm:$0xff]  ;;  %v165_v62 = vld [vmem:[%s7475_s0 + $0x1d8] sm:$0xff] }
  0x4b   :  { %v199_v1 = vpack.c.bf16 %v165_v62, %v164_v61 }
  0x50   :  { %4129 = vmatmul.mubr.msk.bf16.gmra.mrb[36].mxu0 %vm302_vm1, %v287_v3  ;;  %v126_v3 = vld [vmem:[%s7475_s0 + $0xa0] sm:$0xff] }
  0x51   :  { %4132 = vmatprep.mubr.msk.bf16.mxu0 %vm302_vm1, %v288_v4  ;;  %v127_v4 = vld [vmem:[%s7475_s0 + $0xa8] sm:$0xff] }
  0x52   :  { %v180_v6 = vpack.c.bf16 %v127_v4, %v126_v3  ;;  %v168_v3 = vld [vmem:[%s7475_s0 + $0x1f0] sm:$0xff]  ;;  %v169_v4 = vld [vmem:[%s7475_s0 + $0x1f8] sm:$0xff] }
  0x58   :  { %4133 = vmatmul.mubr.msk.bf16.gmra.mrb[40].mxu0 %vm302_vm1, %v289_v9  ;;  %v130_v9 = vld [vmem:[%s7475_s0 + $0xc0] sm:$0xff] }
  0x59   :  { %4136 = vmatprep.mubr.msk.bf16.mxu0 %vm302_vm1, %v290_v10  ;;  %v131_v10 = vld [vmem:[%s7475_s0 + $0xc8] sm:$0xff] }
  0x5a   :  { %v182_v12 = vpack.c.bf16 %v131_v10, %v130_v9  ;;  %v42_v10 = vld [vmem:[%s7477_s2] sm:$0xff] }
  0x60   :  { %4137 = vmatmul.mubr.msk.bf16.gmra.mrb[44].mxu0 %vm302_vm1, %v291_v15  ;;  %v134_v15 = vld [vmem:[%s7475_s0 + $0xe0] sm:$0xff] }
  0x61   :  { %4140 = vmatprep.mubr.msk.bf16.mxu0 %vm302_vm1, %v292_v16  ;;  %v135_v16 = vld [vmem:[%s7475_s0 + $0xe8] sm:$0xff] }
  0x62   :  { %v184_v18 = vpack.c.bf16 %v135_v16, %v134_v15 }
  0x68   :  { %4141 = vmatmul.mubr.msk.bf16.gmra.mrb[48].mxu0 %vm302_vm1, %v293_v21  ;;  %v138_v21 = vld [vmem:[%s7475_s0 + $0x100] sm:$0xff] }
  0x69   :  { %4144 = vmatprep.mubr.msk.bf16.mxu0 %vm302_vm1, %v294_v22  ;;  %v139_v22 = vld [vmem:[%s7475_s0 + $0x108] sm:$0xff] }
  0x6a   :  { %v186_v24 = vpack.c.bf16 %v139_v22, %v138_v21 }
  0x70   :  { %4145 = vmatmul.mubr.msk.bf16.gmra.mrb[52].mxu0 %vm302_vm1, %v295_v27  ;;  %v142_v27 = vld [vmem:[%s7475_s0 + $0x120] sm:$0xff] }
  0x71   :  { %4148 = vmatprep.mubr.msk.bf16.mxu0 %vm302_vm1, %v296_v28  ;;  %v143_v28 = vld [vmem:[%s7475_s0 + $0x128] sm:$0xff] }
  0x72   :  { %v188_v30 = vpack.c.bf16 %v143_v28, %v142_v27 }
  0x78   :  { %4149 = vmatmul.mubr.msk.bf16.gmra.mrb[56].mxu0 %vm302_vm1, %v297_v33  ;;  %v146_v33 = vld [vmem:[%s7475_s0 + $0x140] sm:$0xff] }
  0x79   :  { %4152 = vmatprep.mubr.msk.bf16.mxu0 %vm302_vm1, %v298_v34  ;;  %v147_v34 = vld [vmem:[%s7475_s0 + $0x148] sm:$0xff] }
  0x7a   :  { %v190_v36 = vpack.c.bf16 %v147_v34, %v146_v33 }
  0x80   :  { %4153 = vmatmul.mubr.msk.bf16.gmra.mrb[60].mxu0 %vm302_vm1, %v299_v39  ;;  %v150_v39 = vld [vmem:[%s7475_s0 + $0x160] sm:$0xff] }
  0x81   :  { %4158 = vmatprep.mubr.msk.bf16.mxu0 %vm302_vm1, %v170_v40  ;;  %v151_v40 = vld [vmem:[%s7475_s0 + $0x168] sm:$0xff] }
  0x82   :  { %v192_v42 = vpack.c.bf16 %v151_v40, %v150_v39 }
  0x88   :  { %4159 = vmatmul.mubr.msk.bf16.vlgmr.msra.gmra.mrb[0].mxu0 %vm302_vm1, %v171_v45  ;;  %v154_v45 = vld [vmem:[%s7475_s0 + $0x180] sm:$0xff] }
  0x89   :  { %4162 = vmatprep.mubr.msk.bf16.mxu0 %vm302_vm1, %v172_v46  ;;  %v155_v46 = vld [vmem:[%s7475_s0 + $0x188] sm:$0xff] }
  0x8a   :  { %v194_v48 = vpack.c.bf16 %v155_v46, %v154_v45  ;;  %v52_v45 = vld [vmem:[%s7477_s2 + $0x50] sm:$0xff] }
  0x90   :  { %4163 = vmatmul.mubr.msk.bf16.gmra.mrb[4].mxu0 %vm302_vm1, %v173_v51  ;;  %v158_v51 = vld [vmem:[%s7475_s0 + $0x1a0] sm:$0xff] }
  0x91   :  { %4166 = vmatprep.mubr.msk.bf16.mxu0 %vm302_vm1, %v174_v52  ;;  %v159_v52 = vld [vmem:[%s7475_s0 + $0x1a8] sm:$0xff] }
  0x92   :  { %v196_v54 = vpack.c.bf16 %v159_v52, %v158_v51 }
  0x98   :  { %4167 = vmatmul.mubr.msk.bf16.gmra.mrb[8].mxu0 %vm302_vm1, %v175_v57  ;;  %v162_v57 = vld [vmem:[%s7475_s0 + $0x1c0] sm:$0xff] }
  0x99   :  { %4170 = vmatprep.mubr.msk.bf16.mxu0 %vm302_vm1, %v176_v58  ;;  %v163_v58 = vld [vmem:[%s7475_s0 + $0x1c8] sm:$0xff] }
  0x9a   :  { %v198_v60 = vpack.c.bf16 %v163_v58, %v162_v57  ;;  %v51_v58 = vld [vmem:[%s7477_s2 + $0x48] sm:$0xff] }
  0xa0   :  { %4171 = vmatmul.mubr.msk.bf16.gmra.mrb[12].mxu0 %vm302_vm1, %v177_v63  ;;  %v166_v63 = vld [vmem:[%s7475_s0 + $0x1e0] sm:$0xff] }
  0xa1   :  { %4174 = vmatprep.mubr.msk.bf16.mxu0 %vm302_vm1, %v178_v0  ;;  %v167_v0 = vld [vmem:[%s7475_s0 + $0x1e8] sm:$0xff] }
  0xa2   :  { %v200_v2 = vpack.c.bf16 %v167_v0, %v166_v63 }
  0xa8   :  { %4175 = vmatmul.mubr.msk.bf16.gmra.mrb[16].mxu0 %vm302_vm1, %v179_v5  ;;  %v201_v5 = vpack.c.bf16 %v169_v4, %v168_v3 }
  0xa9   :  { %4178 = vmatprep.mubr.msk.bf16.mxu0 %vm302_vm1, %v180_v6  ;;  %v5209_v6 = vld [vmem:[%s7476_s5] ss:$0 sm:$0xff] }
  0xb0   :  { %4179 = vmatmul.mubr.msk.bf16.gmra.mrb[20].mxu0 %vm302_vm1, %v181_v11 }
  0xb1   :  { %4182 = vmatprep.mubr.msk.bf16.mxu0 %vm302_vm1, %v182_v12 }
  0xb8   :  { %4183 = vmatmul.mubr.msk.bf16.gmra.mrb[24].mxu0 %vm302_vm1, %v183_v17  ;;  %v43_v17 = vld [vmem:[%s7477_s2 + $0x8] sm:$0xff] }
  0xb9   :  { %4186 = vmatprep.mubr.msk.bf16.mxu0 %vm302_vm1, %v184_v18 }
  0xc0   :  { %4187 = vmatmul.mubr.msk.bf16.gmra.mrb[28].mxu0 %vm302_vm1, %v185_v23 }
  0xc1   :  { %4190 = vmatprep.mubr.msk.bf16.mxu0 %vm302_vm1, %v186_v24 }
  0xc8   :  { %4191 = vmatmul.mubr.msk.bf16.gmra.mrb[32].mxu0 %vm302_vm1, %v187_v29 }
  0xc9   :  { %4194 = vmatprep.mubr.msk.bf16.mxu0 %vm302_vm1, %v188_v30 }
  0xd0   :  { %4195 = vmatmul.mubr.msk.bf16.gmra.mrb[36].mxu0 %vm302_vm1, %v189_v35  ;;  %v46_v35 = vld [vmem:[%s7477_s2 + $0x20] sm:$0xff] }
  0xd1   :  { %4198 = vmatprep.mubr.msk.bf16.mxu0 %vm302_vm1, %v190_v36 }
  0xd8   :  { %4199 = vmatmul.mubr.msk.bf16.gmra.mrb[40].mxu0 %vm302_vm1, %v191_v41 }
  0xd9   :  { %4202 = vmatprep.mubr.msk.bf16.mxu0 %vm302_vm1, %v192_v42 }
  0xe0   :  { %4203 = vmatmul.mubr.msk.bf16.gmra.mrb[44].mxu0 %vm302_vm1, %v193_v47 }
  0xe1   :  { %4206 = vmatprep.mubr.msk.bf16.mxu0 %vm302_vm1, %v194_v48 }
  0xe8   :  { %4207 = vmatmul.mubr.msk.bf16.gmra.mrb[48].mxu0 %vm302_vm1, %v195_v53 }
  0xe9   :  { %4210 = vmatprep.mubr.msk.bf16.mxu0 %vm302_vm1, %v196_v54  ;;  %v50_v54 = vld [vmem:[%s7477_s2 + $0x40] sm:$0xff] }
  0xf0   :  { %4211 = vmatmul.mubr.msk.bf16.gmra.mrb[52].mxu0 %vm302_vm1, %v197_v59 }
  0xf1   :  { %4214 = vmatprep.mubr.msk.bf16.mxu0 %vm302_vm1, %v198_v60 }
  0xf8   :  { %4215 = vmatmul.mubr.msk.bf16.gmra.mrb[56].mxu0 %vm302_vm1, %v199_v1  ;;  %v56_v1 = vld [vmem:[%s7477_s2 + $0x70] sm:$0xff] }
  0xf9   :  { %4218 = vmatprep.mubr.msk.bf16.mxu0 %vm302_vm1, %v200_v2 }
 0x100   :  { %4219 = vmatmul.mubr.msk.bf16.gmra.mrb[60].mxu0 %vm302_vm1, %v201_v5 }
 0x15b   :  { %v4160_v8 = vpop.f32.mrb[0].mxu0 }
 0x15c   :  { %v1089_v9 = vadd.f32 %v4160_v8, %v5209_v6  ;;  %v825_v11 = vpop.f32.mrb[1].mxu0 }
 0x15d   :  { %v1087_v12 = vadd.f32 %v5209_v6, %v825_v11  ;;  %v4161_v14 = vpop.f32.mrb[2].mxu0  ;;  %v54_v11 = vld [vmem:[%s7477_s2 + $0x60] sm:$0xff] }
 0x15e   :  { %v5222_v15 = vadd.f32 %v1089_v9, %v44_v7  ;;  %v1090_v16 = vadd.f32 %v4161_v14, %v5209_v6  ;;  %v828_v18 = vpop.f32.mrb[3].mxu0  ;;  %v57_v7 = vld [vmem:[%s7477_s2 + $0x78] sm:$0xff] }
 0x15f   :  { %v5228_v19 = vadd.f32 %v1087_v12, %v42_v10  ;;  %v1088_v20 = vadd.f32 %v5209_v6, %v828_v18 }
 0x160   :  { %7583 = vst [vmem:[#allocation2_spill] sm:$0xff] %v5222_v15  ;;  %v5231_v21 = vadd.f32 %v1090_v16, %v45_v13  ;;  %v1222_v22 = vsel %vm1215_vm2, %v5222_v15, 0.0  ;;  %v55_v16 = vld [vmem:[%s7477_s2 + $0x68] sm:$0xff] }
 0x161   :  { %7584 = vst [vmem:[#allocation3_spill] sm:$0xff] %v5228_v19  ;;  %v5235_v23 = vadd.f32 %v1088_v20, %v43_v17  ;;  %1223 = vadd.xlane.f32.xlu1 %v1222_v22  ;;  %v1216_v24 = vsel %vm1215_vm2, %v5228_v19, 0.0 }
 0x162   :  { %7585 = vst [vmem:[#allocation4_spill] sm:$0xff] %v5231_v21  ;;  %1217 = vadd.xlane.f32.xlu0 %v1216_v24  ;;  %v1225_v29 = vsel %vm1215_vm2, %v5231_v21, 0.0 }
 0x163   :  { %7586 = vst [vmem:[#allocation5_spill] sm:$0xff] %v5235_v23  ;;  %v4164_v26 = vpop.f32.mrb[4].mxu0  ;;  %v1219_v33 = vsel %vm1215_vm2, %v5235_v23, 0.0 }
 0x164   :  { %v1093_v27 = vadd.f32 %v4164_v26, %v5209_v6  ;;  %v841_v28 = vpop.f32.mrb[5].mxu0  ;;  %v60_v26 = vld [vmem:[%s7477_s2 + $0x90] sm:$0xff] }
 0x165   :  { %v1091_v30 = vadd.f32 %v5209_v6, %v841_v28  ;;  %1226 = vadd.xlane.f32.xlu1 %v1225_v29  ;;  %v4165_v32 = vpop.f32.mrb[6].mxu0 }
 0x166   :  { %v5251_v34 = vadd.f32 %v1093_v27, %v48_v25  ;;  %v1094_v36 = vadd.f32 %v4165_v32, %v5209_v6  ;;  %1220 = vadd.xlane.f32.xlu0 %v1219_v33  ;;  %v844_v37 = vpop.f32.mrb[7].mxu0 }
 0x167   :  { %v1092_v39 = vadd.f32 %v5209_v6, %v844_v37  ;;  %v5265_v42 = vadd.f32 %v1091_v30, %v46_v35 }
 0x168   :  { %7587 = vst [vmem:[#allocation6_spill] sm:$0xff] %v5251_v34  ;;  %v5261_v40 = vadd.f32 %v1094_v36, %v49_v31  ;;  %v1234_v41 = vsel %vm1215_vm2, %v5251_v34, 0.0  ;;  %v61_v31 = vld [vmem:[%s7477_s2 + $0x98] sm:$0xff]  ;;  %v58_v36 = vld [vmem:[%s7477_s2 + $0x80] sm:$0xff] }
 0x169   :  { %7589 = vst [vmem:[#allocation8_spill] sm:$0xff] %v5265_v42  ;;  %v5267_v43 = vadd.f32 %v1092_v39, %v47_v38  ;;  %v1228_v52 = vsel %vm1215_vm2, %v5265_v42, 0.0 }
 0x16a   :  { %7588 = vst [vmem:[#allocation7_spill] sm:$0xff] %v5261_v40  ;;  %1235 = vadd.xlane.f32.xlu0 %v1234_v41  ;;  %v1237_v44 = vsel %vm1215_vm2, %v5261_v40, 0.0  ;;  %v59_v41 = vld [vmem:[%s7477_s2 + $0x88] sm:$0xff] }
 0x16b   :  { %7590 = vst [vmem:[#allocation9_spill] sm:$0xff] %v5267_v43  ;;  %1238 = vadd.xlane.f32.xlu1 %v1237_v44  ;;  %v4168_v46 = vpop.f32.mrb[8].mxu0  ;;  %v1231_v57 = vsel %vm1215_vm2, %v5267_v43, 0.0 }
 0x16c   :  { %v1097_v47 = vadd.f32 %v4168_v46, %v5209_v6  ;;  %v857_v48 = vpop.f32.mrb[9].mxu0 }
 0x16d   :  { %v1095_v49 = vadd.f32 %v5209_v6, %v857_v48  ;;  %v4169_v51 = vpop.f32.mrb[10].mxu0 }
 0x16e   :  { %v5281_v53 = vadd.f32 %v1097_v47, %v52_v45  ;;  %v1098_v55 = vadd.f32 %v4169_v51, %v5209_v6  ;;  %1229 = vadd.xlane.f32.xlu0 %v1228_v52  ;;  %v860_v56 = vpop.f32.mrb[11].mxu0 }
 0x16f   :  { %v1096_v59 = vadd.f32 %v5209_v6, %v860_v56  ;;  %1232 = vadd.xlane.f32.xlu1 %v1231_v57  ;;  %v5297_v62 = vadd.f32 %v1095_v49, %v50_v54  ;;  %v65_v56 = vld [vmem:[%s7477_s2 + $0xb8] sm:$0xff] }
 0x170   :  { %7591 = vst [vmem:[#allocation10_spill] sm:$0xff] %v5281_v53  ;;  %v5293_v60 = vadd.f32 %v1098_v55, %v53_v50  ;;  %v1246_v61 = vsel %vm1215_vm2, %v5281_v53, 0.0  ;;  %v64_v50 = vld [vmem:[%s7477_s2 + $0xb0] sm:$0xff] }
 0x171   :  { %7593 = vst [vmem:[#allocation12_spill] sm:$0xff] %v5297_v62  ;;  %v5299_v63 = vadd.f32 %v1096_v59, %v51_v58  ;;  %v1240_v9 = vsel %vm1215_vm2, %v5297_v62, 0.0 }
 0x172   :  { %7592 = vst [vmem:[#allocation11_spill] sm:$0xff] %v5293_v60  ;;  %1247 = vadd.xlane.f32.xlu0 %v1246_v61  ;;  %v1249_v0 = vsel %vm1215_vm2, %v5293_v60, 0.0  ;;  %v62_v61 = vld [vmem:[%s7477_s2 + $0xa0] sm:$0xff] }
 0x173   :  { %7594 = vst [vmem:[#allocation13_spill] sm:$0xff] %v5299_v63  ;;  %1250 = vadd.xlane.f32.xlu1 %v1249_v0  ;;  %v4172_v2 = vpop.f32.mrb[12].mxu0  ;;  %v1243_v14 = vsel %vm1215_vm2, %v5299_v63, 0.0 }
 0x174   :  { %v1101_v3 = vadd.f32 %v4172_v2, %v5209_v6  ;;  %v873_v4 = vpop.f32.mrb[13].mxu0 }
 0x175   :  { %v1099_v5 = vadd.f32 %v5209_v6, %v873_v4  ;;  %v4173_v8 = vpop.f32.mrb[14].mxu0 }
 0x176   :  { %v5313_v10 = vadd.f32 %v1101_v3, %v56_v1  ;;  %v1102_v12 = vadd.f32 %v4173_v8, %v5209_v6  ;;  %1241 = vadd.xlane.f32.xlu0 %v1240_v9  ;;  %v876_v13 = vpop.f32.mrb[15].mxu0  ;;  %v63_v3 = vld [vmem:[%s7477_s2 + $0xa8] sm:$0xff] }
 0x177   :  { %v1100_v17 = vadd.f32 %v5209_v6, %v876_v13  ;;  %1244 = vadd.xlane.f32.xlu1 %v1243_v14  ;;  %v5329_v22 = vadd.f32 %v1099_v5, %v54_v11 }
 0x178   :  { %7595 = vst [vmem:[#allocation14_spill] sm:$0xff] %v5313_v10  ;;  %v5325_v18 = vadd.f32 %v1102_v12, %v57_v7  ;;  %v1258_v20 = vsel %vm1215_vm2, %v5313_v10, 0.0  ;;  %v68_v12 = vld [vmem:[%s7477_s2 + $0xd0] sm:$0xff] }
 0x179   :  { %7597 = vst [vmem:[#allocation16_spill] sm:$0xff] %v5329_v22  ;;  %v5331_v24 = vadd.f32 %v1100_v17, %v55_v16  ;;  %v1252_v33 = vsel %vm1215_vm2, %v5329_v22, 0.0 }
 0x17a   :  { %7596 = vst [vmem:[#allocation15_spill] sm:$0xff] %v5325_v18  ;;  %1259 = vadd.xlane.f32.xlu0 %v1258_v20  ;;  %v1261_v25 = vsel %vm1215_vm2, %v5325_v18, 0.0  ;;  %v69_v20 = vld [vmem:[%s7477_s2 + $0xd8] sm:$0xff] }
 0x17b   :  { %7598 = vst [vmem:[#allocation17_spill] sm:$0xff] %v5331_v24  ;;  %1262 = vadd.xlane.f32.xlu1 %v1261_v25  ;;  %v4176_v27 = vpop.f32.mrb[16].mxu0  ;;  %v1255_v39 = vsel %vm1215_vm2, %v5331_v24, 0.0 }
 0x17c   :  { %v1105_v28 = vadd.f32 %v4176_v27, %v5209_v6  ;;  %v889_v29 = vpop.f32.mrb[17].mxu0 }
 0x17d   :  { %v1103_v30 = vadd.f32 %v5209_v6, %v889_v29  ;;  %v4177_v32 = vpop.f32.mrb[18].mxu0 }
 0x17e   :  { %v5345_v35 = vadd.f32 %v1105_v28, %v60_v26  ;;  %v1106_v37 = vadd.f32 %v4177_v32, %v5209_v6  ;;  %1253 = vadd.xlane.f32.xlu0 %v1252_v33  ;;  %v892_v38 = vpop.f32.mrb[19].mxu0  ;;  %v66_v28 = vld [vmem:[%s7477_s2 + $0xc0] sm:$0xff]  ;;  %v67_v32 = vld [vmem:[%s7477_s2 + $0xc8] sm:$0xff] }
 0x17f   :  { %v1104_v44 = vadd.f32 %v5209_v6, %v892_v38  ;;  %1256 = vadd.xlane.f32.xlu1 %v1255_v39  ;;  %v5361_v47 = vadd.f32 %v1103_v30, %v58_v36 }
 0x180   :  { %7599 = vst [vmem:[#allocation18_spill] sm:$0xff] %v5345_v35  ;;  %v5357_v45 = vadd.f32 %v1106_v37, %v61_v31  ;;  %v1270_v46 = vsel %vm1215_vm2, %v5345_v35, 0.0 }
 0x181   :  { %7601 = vst [vmem:[#allocation20_spill] sm:$0xff] %v5361_v47  ;;  %v5363_v48 = vadd.f32 %v1104_v44, %v59_v41  ;;  %v1264_v58 = vsel %vm1215_vm2, %v5361_v47, 0.0  ;;  %v72_v44 = vld [vmem:[%s7477_s2 + $0xf0] sm:$0xff] }
 0x182   :  { %7600 = vst [vmem:[#allocation19_spill] sm:$0xff] %v5357_v45  ;;  %1271 = vadd.xlane.f32.xlu0 %v1270_v46  ;;  %v1273_v49 = vsel %vm1215_vm2, %v5357_v45, 0.0 }
 0x183   :  { %7602 = vst [vmem:[#allocation21_spill] sm:$0xff] %v5363_v48  ;;  %1274 = vadd.xlane.f32.xlu1 %v1273_v49  ;;  %v4180_v51 = vpop.f32.mrb[20].mxu0  ;;  %v1267_v2 = vsel %vm1215_vm2, %v5363_v48, 0.0 }
 0x184   :  { %v1109_v52 = vadd.f32 %v4180_v51, %v5209_v6  ;;  %v905_v54 = vpop.f32.mrb[21].mxu0 }
 0x185   :  { %v1107_v55 = vadd.f32 %v5209_v6, %v905_v54  ;;  %v4181_v57 = vpop.f32.mrb[22].mxu0 }
 0x186   :  { %v5377_v59 = vadd.f32 %v1109_v52, %v64_v50  ;;  %v1110_v0 = vadd.f32 %v4181_v57, %v5209_v6  ;;  %1265 = vadd.xlane.f32.xlu0 %v1264_v58  ;;  %v908_v1 = vpop.f32.mrb[23].mxu0  ;;  %v73_v52 = vld [vmem:[%s7477_s2 + $0xf8] sm:$0xff]  ;;  %v70_v57 = vld [vmem:[%s7477_s2 + $0xe0] sm:$0xff] }
 0x187   :  { %v1108_v4 = vadd.f32 %v5209_v6, %v908_v1  ;;  %1268 = vadd.xlane.f32.xlu1 %v1267_v2  ;;  %v5393_v8 = vadd.f32 %v1107_v55, %v62_v61  ;;  %v71_v1 = vld [vmem:[%s7477_s2 + $0xe8] sm:$0xff] }
 0x188   :  { %7603 = vst [vmem:[#allocation22_spill] sm:$0xff] %v5377_v59  ;;  %v5389_v5 = vadd.f32 %v1110_v0, %v65_v56  ;;  %v1282_v7 = vsel %vm1215_vm2, %v5377_v59, 0.0 }
 0x189   :  { %7605 = vst [vmem:[#allocation24_spill] sm:$0xff] %v5393_v8  ;;  %v5395_v9 = vadd.f32 %v1108_v4, %v63_v3  ;;  %v1276_v26 = vsel %vm1215_vm2, %v5393_v8, 0.0 }
 0x18a   :  { %7604 = vst [vmem:[#allocation23_spill] sm:$0xff] %v5389_v5  ;;  %1283 = vadd.xlane.f32.xlu0 %v1282_v7  ;;  %v1285_v11 = vsel %vm1215_vm2, %v5389_v5, 0.0 }
 0x18b   :  { %7606 = vst [vmem:[#allocation25_spill] sm:$0xff] %v5395_v9  ;;  %1286 = vadd.xlane.f32.xlu1 %v1285_v11  ;;  %v4184_v13 = vpop.f32.mrb[24].mxu0  ;;  %v1279_v31 = vsel %vm1215_vm2, %v5395_v9, 0.0 }
 0x18c   :  { %v1113_v14 = vadd.f32 %v4184_v13, %v5209_v6  ;;  %v921_v16 = vpop.f32.mrb[25].mxu0  ;;  %v76_v13 = vld [vmem:[%s7477_s2 + $0x110] sm:$0xff] }
 0x18d   :  { %v1111_v17 = vadd.f32 %v5209_v6, %v921_v16  ;;  %v4185_v25 = vpop.f32.mrb[26].mxu0 }
 0x18e   :  { %v5409_v27 = vadd.f32 %v1113_v14, %v68_v12  ;;  %v1114_v29 = vadd.f32 %v4185_v25, %v5209_v6  ;;  %1277 = vadd.xlane.f32.xlu0 %v1276_v26  ;;  %v924_v30 = vpop.f32.mrb[27].mxu0  ;;  %v77_v25 = vld [vmem:[%s7477_s2 + $0x118] sm:$0xff] }
 0x18f   :  { %v1112_v33 = vadd.f32 %v5209_v6, %v924_v30  ;;  %1280 = vadd.xlane.f32.xlu1 %v1279_v31  ;;  %v5425_v38 = vadd.f32 %v1111_v17, %v66_v28  ;;  %v74_v30 = vld [vmem:[%s7477_s2 + $0x100] sm:$0xff] }
 0x190   :  { %7607 = vst [vmem:[#allocation26_spill] sm:$0xff] %v5409_v27  ;;  %v5421_v36 = vadd.f32 %v1114_v29, %v69_v20  ;;  %v1294_v37 = vsel %vm1215_vm2, %v5409_v27, 0.0 }
 0x191   :  { %7609 = vst [vmem:[#allocation28_spill] sm:$0xff] %v5425_v38  ;;  %v5427_v39 = vadd.f32 %v1112_v33, %v67_v32  ;;  %v1288_v55 = vsel %vm1215_vm2, %v5425_v38, 0.0 }
 0x192   :  { %7608 = vst [vmem:[#allocation27_spill] sm:$0xff] %v5421_v36  ;;  %1295 = vadd.xlane.f32.xlu0 %v1294_v37  ;;  %v1297_v41 = vsel %vm1215_vm2, %v5421_v36, 0.0  ;;  %v75_v37 = vld [vmem:[%s7477_s2 + $0x108] sm:$0xff] }
 0x193   :  { %7610 = vst [vmem:[#allocation29_spill] sm:$0xff] %v5427_v39  ;;  %1298 = vadd.xlane.f32.xlu1 %v1297_v41  ;;  %v4188_v46 = vpop.f32.mrb[28].mxu0  ;;  %v1291_v0 = vsel %vm1215_vm2, %v5427_v39, 0.0 }
 0x194   :  { %v1117_v49 = vadd.f32 %v4188_v46, %v5209_v6  ;;  %v937_v50 = vpop.f32.mrb[29].mxu0 }
 0x195   :  { %v1115_v51 = vadd.f32 %v5209_v6, %v937_v50  ;;  %v4189_v54 = vpop.f32.mrb[30].mxu0 }
 0x196   :  { %v5441_v56 = vadd.f32 %v1117_v49, %v72_v44  ;;  %v1118_v58 = vadd.f32 %v4189_v54, %v5209_v6  ;;  %1289 = vadd.xlane.f32.xlu0 %v1288_v55  ;;  %v940_v61 = vpop.f32.mrb[31].mxu0 }
 0x197   :  { %v1116_v2 = vadd.f32 %v5209_v6, %v940_v61  ;;  %1292 = vadd.xlane.f32.xlu1 %v1291_v0  ;;  %v5457_v7 = vadd.f32 %v1115_v51, %v70_v57  ;;  %v81_v61 = vld [vmem:[%s7477_s2 + $0x138] sm:$0xff] }
 0x198   :  { %7611 = vst [vmem:[#allocation30_spill] sm:$0xff] %v5441_v56  ;;  %v5453_v3 = vadd.f32 %v1118_v58, %v73_v52  ;;  %v1306_v4 = vsel %vm1215_vm2, %v5441_v56, 0.0  ;;  %v80_v52 = vld [vmem:[%s7477_s2 + $0x130] sm:$0xff] }
 0x199   :  { %7613 = vst [vmem:[#allocation32_spill] sm:$0xff] %v5457_v7  ;;  %v5459_v11 = vadd.f32 %v1116_v2, %v71_v1  ;;  %v1300_v28 = vsel %vm1215_vm2, %v5457_v7, 0.0 }
 0x19a   :  { %7612 = vst [vmem:[#allocation31_spill] sm:$0xff] %v5453_v3  ;;  %1307 = vadd.xlane.f32.xlu0 %v1306_v4  ;;  %v1309_v12 = vsel %vm1215_vm2, %v5453_v3, 0.0  ;;  %v78_v4 = vld [vmem:[%s7477_s2 + $0x120] sm:$0xff] }
 0x19b   :  { %7614 = vst [vmem:[#allocation33_spill] sm:$0xff] %v5459_v11  ;;  %1310 = vadd.xlane.f32.xlu1 %v1309_v12  ;;  %v4192_v14 = vpop.f32.mrb[32].mxu0  ;;  %v1303_v33 = vsel %vm1215_vm2, %v5459_v11, 0.0 }
 0x19c   :  { %v1121_v16 = vadd.f32 %v4192_v14, %v5209_v6  ;;  %v953_v17 = vpop.f32.mrb[33].mxu0 }
 0x19d   :  { %v1119_v20 = vadd.f32 %v5209_v6, %v953_v17  ;;  %v4193_v26 = vpop.f32.mrb[34].mxu0 }
 0x19e   :  { %v5473_v29 = vadd.f32 %v1121_v16, %v76_v13  ;;  %v1122_v31 = vadd.f32 %v4193_v26, %v5209_v6  ;;  %1301 = vadd.xlane.f32.xlu0 %v1300_v28  ;;  %v956_v32 = vpop.f32.mrb[35].mxu0  ;;  %v79_v16 = vld [vmem:[%s7477_s2 + $0x128] sm:$0xff] }
 0x19f   :  { %v1120_v41 = vadd.f32 %v5209_v6, %v956_v32  ;;  %1304 = vadd.xlane.f32.xlu1 %v1303_v33  ;;  %v5489_v49 = vadd.f32 %v1119_v20, %v74_v30 }
 0x1a0   :  { %7615 = vst [vmem:[#allocation34_spill] sm:$0xff] %v5473_v29  ;;  %v5485_v44 = vadd.f32 %v1122_v31, %v77_v25  ;;  %v1318_v46 = vsel %vm1215_vm2, %v5473_v29, 0.0  ;;  %v84_v31 = vld [vmem:[%s7477_s2 + $0x150] sm:$0xff] }
 0x1a1   :  { %7617 = vst [vmem:[#allocation36_spill] sm:$0xff] %v5489_v49  ;;  %v5491_v50 = vadd.f32 %v1120_v41, %v75_v37  ;;  %v1312_v1 = vsel %vm1215_vm2, %v5489_v49, 0.0 }
 0x1a2   :  { %7616 = vst [vmem:[#allocation35_spill] sm:$0xff] %v5485_v44  ;;  %1319 = vadd.xlane.f32.xlu0 %v1318_v46  ;;  %v1321_v51 = vsel %vm1215_vm2, %v5485_v44, 0.0  ;;  %v85_v46 = vld [vmem:[%s7477_s2 + $0x158] sm:$0xff] }
 0x1a3   :  { %7618 = vst [vmem:[#allocation37_spill] sm:$0xff] %v5491_v50  ;;  %1322 = vadd.xlane.f32.xlu1 %v1321_v51  ;;  %v4196_v54 = vpop.f32.mrb[36].mxu0  ;;  %v1315_v14 = vsel %vm1215_vm2, %v5491_v50, 0.0 }
 0x1a4   :  { %v1125_v55 = vadd.f32 %v4196_v54, %v5209_v6  ;;  %v969_v57 = vpop.f32.mrb[37].mxu0 }
 0x1a5   :  { %v1123_v58 = vadd.f32 %v5209_v6, %v969_v57  ;;  %v4197_v0 = vpop.f32.mrb[38].mxu0 }
 0x1a6   :  { %v5505_v2 = vadd.f32 %v1125_v55, %v80_v52  ;;  %v1126_v12 = vadd.f32 %v4197_v0, %v5209_v6  ;;  %1313 = vadd.xlane.f32.xlu0 %v1312_v1  ;;  %v972_v13 = vpop.f32.mrb[39].mxu0  ;;  %v82_v55 = vld [vmem:[%s7477_s2 + $0x140] sm:$0xff]  ;;  %v83_v0 = vld [vmem:[%s7477_s2 + $0x148] sm:$0xff] }
 0x1a7   :  { %v1124_v17 = vadd.f32 %v5209_v6, %v972_v13  ;;  %1316 = vadd.xlane.f32.xlu1 %v1315_v14  ;;  %v5521_v26 = vadd.f32 %v1123_v58, %v78_v4 }
 0x1a8   :  { %7619 = vst [vmem:[#allocation38_spill] sm:$0xff] %v5505_v2  ;;  %v5517_v20 = vadd.f32 %v1126_v12, %v81_v61  ;;  %v1330_v25 = vsel %vm1215_vm2, %v5505_v2, 0.0 }
 0x1a9   :  { %7621 = vst [vmem:[#allocation40_spill] sm:$0xff] %v5521_v26  ;;  %v5523_v28 = vadd.f32 %v1124_v17, %v79_v16  ;;  %v1324_v52 = vsel %vm1215_vm2, %v5521_v26, 0.0  ;;  %v88_v17 = vld [vmem:[%s7477_s2 + $0x170] sm:$0xff] }
 0x1aa   :  { %7620 = vst [vmem:[#allocation39_spill] sm:$0xff] %v5517_v20  ;;  %1331 = vadd.xlane.f32.xlu0 %v1330_v25  ;;  %v1333_v30 = vsel %vm1215_vm2, %v5517_v20, 0.0 }
 0x1ab   :  { %7622 = vst [vmem:[#allocation41_spill] sm:$0xff] %v5523_v28  ;;  %1334 = vadd.xlane.f32.xlu1 %v1333_v30  ;;  %v4200_v32 = vpop.f32.mrb[40].mxu0  ;;  %v1327_v61 = vsel %vm1215_vm2, %v5523_v28, 0.0 }
 0x1ac   :  { %v1129_v33 = vadd.f32 %v4200_v32, %v5209_v6  ;;  %v985_v37 = vpop.f32.mrb[41].mxu0 }
 0x1ad   :  { %v1127_v41 = vadd.f32 %v5209_v6, %v985_v37  ;;  %v4201_v51 = vpop.f32.mrb[42].mxu0 }
 0x1ae   :  { %v5537_v54 = vadd.f32 %v1129_v33, %v84_v31  ;;  %v1130_v57 = vadd.f32 %v4201_v51, %v5209_v6  ;;  %1325 = vadd.xlane.f32.xlu0 %v1324_v52  ;;  %v988_v58 = vpop.f32.mrb[43].mxu0  ;;  %v89_v33 = vld [vmem:[%s7477_s2 + $0x178] sm:$0xff]  ;;  %v86_v51 = vld [vmem:[%s7477_s2 + $0x160] sm:$0xff] }
 0x1af   :  { %v1128_v1 = vadd.f32 %v5209_v6, %v988_v58  ;;  %1328 = vadd.xlane.f32.xlu1 %v1327_v61  ;;  %v5553_v13 = vadd.f32 %v1127_v41, %v82_v55  ;;  %v87_v58 = vld [vmem:[%s7477_s2 + $0x168] sm:$0xff] }
 0x1b0   :  { %7623 = vst [vmem:[#allocation42_spill] sm:$0xff] %v5537_v54  ;;  %v5549_v4 = vadd.f32 %v1130_v57, %v85_v46  ;;  %v1342_v12 = vsel %vm1215_vm2, %v5537_v54, 0.0 }
 0x1b1   :  { %7625 = vst [vmem:[#allocation44_spill] sm:$0xff] %v5553_v13  ;;  %v5555_v14 = vadd.f32 %v1128_v1, %v83_v0  ;;  %v1336_v41 = vsel %vm1215_vm2, %v5553_v13, 0.0 }
 0x1b2   :  { %7624 = vst [vmem:[#allocation43_spill] sm:$0xff] %v5549_v4  ;;  %1343 = vadd.xlane.f32.xlu0 %v1342_v12  ;;  %v1345_v16 = vsel %vm1215_vm2, %v5549_v4, 0.0 }
 0x1b3   :  { %7626 = vst [vmem:[#allocation45_spill] sm:$0xff] %v5555_v14  ;;  %1346 = vadd.xlane.f32.xlu1 %v1345_v16  ;;  %v4204_v25 = vpop.f32.mrb[44].mxu0  ;;  %v1339_v57 = vsel %vm1215_vm2, %v5555_v14, 0.0 }
 0x1b4   :  { %v1133_v30 = vadd.f32 %v4204_v25, %v5209_v6  ;;  %v1001_v31 = vpop.f32.mrb[45].mxu0  ;;  %v92_v25 = vld [vmem:[%s7477_s2 + $0x190] sm:$0xff] }
 0x1b5   :  { %v1131_v32 = vadd.f32 %v5209_v6, %v1001_v31  ;;  %v4205_v37 = vpop.f32.mrb[46].mxu0 }
 0x1b6   :  { %v5569_v46 = vadd.f32 %v1133_v30, %v88_v17  ;;  %v1134_v52 = vadd.f32 %v4205_v37, %v5209_v6  ;;  %1337 = vadd.xlane.f32.xlu0 %v1336_v41  ;;  %v1004_v55 = vpop.f32.mrb[47].mxu0 }
 0x1b7   :  { %v1132_v61 = vadd.f32 %v5209_v6, %v1004_v55  ;;  %1340 = vadd.xlane.f32.xlu1 %v1339_v57  ;;  %v5585_v12 = vadd.f32 %v1131_v32, %v86_v51  ;;  %v93_v32 = vld [vmem:[%s7477_s2 + $0x198] sm:$0xff]  ;;  %v90_v55 = vld [vmem:[%s7477_s2 + $0x180] sm:$0xff] }
 0x1b8   :  { %7627 = vst [vmem:[#allocation46_spill] sm:$0xff] %v5569_v46  ;;  %v5581_v0 = vadd.f32 %v1134_v52, %v89_v33  ;;  %v1354_v1 = vsel %vm1215_vm2, %v5569_v46, 0.0 }
 0x1b9   :  { %7629 = vst [vmem:[#allocation48_spill] sm:$0xff] %v5585_v12  ;;  %v5587_v16 = vadd.f32 %v1132_v61, %v87_v58  ;;  %v1348_v51 = vsel %vm1215_vm2, %v5585_v12, 0.0 }
 0x1ba   :  { %7628 = vst [vmem:[#allocation47_spill] sm:$0xff] %v5581_v0  ;;  %1355 = vadd.xlane.f32.xlu0 %v1354_v1  ;;  %v1357_v17 = vsel %vm1215_vm2, %v5581_v0, 0.0  ;;  %v91_v1 = vld [vmem:[%s7477_s2 + $0x188] sm:$0xff] }
 0x1bb   :  { %7630 = vst [vmem:[#allocation49_spill] sm:$0xff] %v5587_v16  ;;  %1358 = vadd.xlane.f32.xlu1 %v1357_v17  ;;  %v4208_v30 = vpop.f32.mrb[48].mxu0  ;;  %v1351_v61 = vsel %vm1215_vm2, %v5587_v16, 0.0 }
 0x1bc   :  { %v1137_v31 = vadd.f32 %v4208_v30, %v5209_v6  ;;  %v1017_v33 = vpop.f32.mrb[49].mxu0 }
 0x1bd   :  { %v1135_v37 = vadd.f32 %v5209_v6, %v1017_v33  ;;  %v4209_v41 = vpop.f32.mrb[50].mxu0 }
 0x1be   :  { %v5601_v52 = vadd.f32 %v1137_v31, %v92_v25  ;;  %v1138_v57 = vadd.f32 %v4209_v41, %v5209_v6  ;;  %1349 = vadd.xlane.f32.xlu0 %v1348_v51  ;;  %v1020_v58 = vpop.f32.mrb[51].mxu0  ;;  %v96_v51 = vld [vmem:[%s7477_s2 + $0x1b0] sm:$0xff] }
 0x1bf   :  { %v1136_v17 = vadd.f32 %v5209_v6, %v1020_v58  ;;  %1352 = vadd.xlane.f32.xlu1 %v1351_v61  ;;  %v5617_v31 = vadd.f32 %v1135_v37, %v90_v55  ;;  %v97_v37 = vld [vmem:[%s7477_s2 + $0x1b8] sm:$0xff] }
 0x1c0   :  { %7631 = vst [vmem:[#allocation50_spill] sm:$0xff] %v5601_v52  ;;  %v5613_v25 = vadd.f32 %v1138_v57, %v93_v32  ;;  %v1366_v30 = vsel %vm1215_vm2, %v5601_v52, 0.0 }
 0x1c1   :  { %7633 = vst [vmem:[#allocation52_spill] sm:$0xff] %v5617_v31  ;;  %v5619_v33 = vadd.f32 %v1136_v17, %v91_v1  ;;  %v1360_v1 = vsel %vm1215_vm2, %v5617_v31, 0.0 }
 0x1c2   :  { %7632 = vst [vmem:[#allocation51_spill] sm:$0xff] %v5613_v25  ;;  %1367 = vadd.xlane.f32.xlu0 %v1366_v30  ;;  %v1369_v41 = vsel %vm1215_vm2, %v5613_v25, 0.0  ;;  %v94_v30 = vld [vmem:[%s7477_s2 + $0x1a0] sm:$0xff]  ;;  %v95_v25 = vld [vmem:[%s7477_s2 + $0x1a8] sm:$0xff] }
 0x1c3   :  { %7634 = vst [vmem:[#allocation53_spill] sm:$0xff] %v5619_v33  ;;  %1370 = vadd.xlane.f32.xlu1 %v1369_v41  ;;  %v4212_v58 = vpop.f32.mrb[52].mxu0 }
 0x1c4   :  { %v1141_v32 = vadd.f32 %v4212_v58, %v5209_v6  ;;  %v1033_v57 = vpop.f32.mrb[53].mxu0 }
 0x1c5   :  { %v1139_v61 = vadd.f32 %v5209_v6, %v1033_v57  ;;  %v4213_v55 = vpop.f32.mrb[54].mxu0  ;;  %v1363_v57 = vsel %vm1215_vm2, %v5619_v33, 0.0  ;;  %v100_v33 = vld [vmem:[%s7477_s2 + $0x1d0] sm:$0xff] }
 0x1c6   :  { %v5633_v17 = vadd.f32 %v1141_v32, %v96_v51  ;;  %v1142_v41 = vadd.f32 %v4213_v55, %v5209_v6  ;;  %1361 = vadd.xlane.f32.xlu0 %v1360_v1  ;;  %v1036_v58 = vpop.f32.mrb[55].mxu0 }
 0x1c7   :  { %v1140_v52 = vadd.f32 %v5209_v6, %v1036_v58  ;;  %1364 = vadd.xlane.f32.xlu1 %v1363_v57  ;;  %v5649_v31 = vadd.f32 %v1139_v61, %v94_v30 }
 0x1c8   :  { %7635 = vst [vmem:[#allocation54_spill] sm:$0xff] %v5633_v17  ;;  %v5645_v51 = vadd.f32 %v1142_v41, %v97_v37  ;;  %v1378_v32 = vsel %vm1215_vm2, %v5633_v17, 0.0 }
 0x1c9   :  { %7637 = vst [vmem:[#allocation56_spill] sm:$0xff] %v5649_v31  ;;  %v5651_v55 = vadd.f32 %v1140_v52, %v95_v25  ;;  %v101_v52 = vld [vmem:[%s7477_s2 + $0x1d8] sm:$0xff]  ;;  %v1372_v61 = vsel %vm1215_vm2, %v5649_v31, 0.0 }
 0x1ca   :  { %7636 = vst [vmem:[#allocation55_spill] sm:$0xff] %v5645_v51  ;;  %1379 = vadd.xlane.f32.xlu0 %v1378_v32  ;;  %v1381_v1 = vsel %vm1215_vm2, %v5645_v51, 0.0  ;;  %v98_v32 = vld [vmem:[%s7477_s2 + $0x1c0] sm:$0xff]  ;;  %v99_v51 = vld [vmem:[%s7477_s2 + $0x1c8] sm:$0xff] }
 0x1cb   :  { %7638 = vst [vmem:[#allocation57_spill] sm:$0xff] %v5651_v55  ;;  %1382 = vadd.xlane.f32.xlu1 %v1381_v1  ;;  %v4216_v58 = vpop.f32.mrb[56].mxu0 }
 0x1cc   :  { %v1145_v37 = vadd.f32 %v4216_v58, %v5209_v6  ;;  %v1049_v41 = vpop.f32.mrb[57].mxu0 }
 0x1cd   :  { %v1143_v57 = vadd.f32 %v5209_v6, %v1049_v41  ;;  %v4217_v25 = vpop.f32.mrb[58].mxu0  ;;  %v1375_v41 = vsel %vm1215_vm2, %v5651_v55, 0.0 }
 0x1ce   :  { %v5665_v30 = vadd.f32 %v1145_v37, %v100_v33  ;;  %v1146_v1 = vadd.f32 %v4217_v25, %v5209_v6  ;;  %1373 = vadd.xlane.f32.xlu0 %v1372_v61  ;;  %v1052_v58 = vpop.f32.mrb[59].mxu0 }
 0x1cf   :  { %v1144_v17 = vadd.f32 %v5209_v6, %v1052_v58  ;;  %1376 = vadd.xlane.f32.xlu1 %v1375_v41  ;;  %v5681_v31 = vadd.f32 %v1143_v57, %v98_v32  ;;  %v102_v58 = vld [vmem:[%s7477_s2 + $0x1e0] sm:$0xff] }
 0x1d0   :  { %7639 = vst [vmem:[#allocation58_spill] sm:$0xff] %v5665_v30  ;;  %v5677_v33 = vadd.f32 %v1146_v1, %v101_v52  ;;  %v1390_v37 = vsel %vm1215_vm2, %v5665_v30, 0.0 }
 0x1d1   :  { %7641 = vst [vmem:[#allocation60_spill] sm:$0xff] %v5681_v31  ;;  %v5683_v25 = vadd.f32 %v1144_v17, %v99_v51  ;;  %v1384_v17 = vsel %vm1215_vm2, %v5681_v31, 0.0  ;;  %v103_v51 = vld [vmem:[%s7477_s2 + $0x1e8] sm:$0xff] }
 0x1d2   :  { %7640 = vst [vmem:[#allocation59_spill] sm:$0xff] %v5677_v33  ;;  %1391 = vadd.xlane.f32.xlu0 %v1390_v37  ;;  %v1393_v61 = vsel %vm1215_vm2, %v5677_v33, 0.0 }
 0x1d3   :  { %7642 = vst [vmem:[#allocation61_spill] sm:$0xff] %v5683_v25  ;;  %1394 = vadd.xlane.f32.xlu1 %v1393_v61  ;;  %v5687_v55 = vpop.f32.mrb[60].mxu0  ;;  %v1387_v32 = vsel %vm1215_vm2, %v5683_v25, 0.0 }
 0x1d4   :  { %v1065_v52 = vpop.f32.mrb[61].mxu0 }
 0x1d5   :  { %v1147_v1 = vadd.f32 %v5209_v6, %v1065_v52  ;;  %v5693_v41 = vpop.f32.mrb[62].mxu0 }
 0x1d6   :  { %1385 = vadd.xlane.f32.xlu0 %v1384_v17  ;;  %v1068_v57 = vpop.f32.mrb[63].mxu0 }
 0x1d7   :  { %v5702_v37 = vadd.f32 %v1147_v1, %v102_v58  ;;  %v1148_v61 = vadd.f32 %v5209_v6, %v1068_v57  ;;  %1388 = vadd.xlane.f32.xlu1 %v1387_v32 }
 0x1d9   :  { %7643 = vst [vmem:[#allocation62_spill] sm:$0xff] %v5702_v37  ;;  %v5705_v52 = vadd.f32 %v1148_v61, %v103_v51  ;;  %v1396_v33 = vsel %vm1215_vm2, %v5702_v37, 0.0 }
 0x1da   :  { %1397 = vadd.xlane.f32.xlu0 %v1396_v33 }
 0x1db   :  { %7644 = vst [vmem:[#allocation63_spill] sm:$0xff] %v5705_v52  ;;  %v1399_v17 = vsel %vm1215_vm2, %v5705_v52, 0.0 }
 0x1dc   :  { %1400 = vadd.xlane.f32.xlu1 %v1399_v17 }
 0x1ee   :  { %v1224_v31 = vpop.xlane.xlu1 %1223 }
 0x1ef   :  { %v1411_v30 = vmul.f32 0.125, %v1224_v31  ;;  %v1218_v0 = vpop.xlane.xlu0 %1217 }
 0x1f0   :  { %v1409_v16 = vmul.f32 0.125, %v1218_v0 }
 0x1f1   :  { %v5712_v58 = vsub.f32 %v5222_v15, %v1411_v30 }
 0x1f2   :  { %v5715_v1 = vsub.f32 %v5228_v19, %v1409_v16  ;;  %v1227_v51 = vpop.xlane.xlu1 %1226 }
 0x1f3   :  { %v1412_v57 = vmul.f32 0.125, %v1227_v51  ;;  %v1221_v32 = vpop.xlane.xlu0 %1220  ;;  %v1539_v33 = vmul.f32 %v5712_v58, %v5712_v58 }
 0x1f4   :  { %v1410_v61 = vmul.f32 0.125, %v1221_v32  ;;  %v1537_v0 = vmul.f32 %v5715_v1, %v5715_v1 }
 0x1f5   :  { %v5720_v52 = vsub.f32 %v5231_v21, %v1412_v57  ;;  %v1607_v31 = vsel %vm1215_vm2, %v1539_v33, 0.0 }
 0x1f6   :  { %v5726_v30 = vsub.f32 %v5235_v23, %v1410_v61  ;;  %1608 = vadd.xlane.f32.xlu0 %v1607_v31  ;;  %v1601_v32 = vsel %vm1215_vm2, %v1537_v0, 0.0 }
 0x1f7   :  { %v1236_v16 = vpop.xlane.xlu0 %1235  ;;  %v1540_v17 = vmul.f32 %v5720_v52, %v5720_v52 }
 0x1f8   :  { %7645 = vst [vmem:[#allocation64_spill] sm:$0xff] %v5726_v30  ;;  %v1415_v51 = vmul.f32 0.125, %v1236_v16  ;;  %v1239_v19 = vpop.xlane.xlu1 %1238  ;;  %v1538_v33 = vmul.f32 %v5726_v30, %v5726_v30 }
 0x1f9   :  { %v1416_v15 = vmul.f32 0.125, %v1239_v19  ;;  %v1610_v57 = vsel %vm1215_vm2, %v1540_v17, 0.0 }
 0x1fa   :  { %v5735_v21 = vsub.f32 %v5251_v34, %v1415_v51  ;;  %1602 = vadd.xlane.f32.xlu0 %v1601_v32  ;;  %1611 = vadd.xlane.f32.xlu1 %v1610_v57  ;;  %v1604_v17 = vsel %vm1215_vm2, %v1538_v33, 0.0 }
 0x1fb   :  { %v5738_v61 = vsub.f32 %v5261_v40, %v1416_v15  ;;  %v1230_v31 = vpop.xlane.xlu0 %1229 }
 0x1fc   :  { %v1413_v23 = vmul.f32 0.125, %v1230_v31  ;;  %v1233_v16 = vpop.xlane.xlu1 %1232  ;;  %v1543_v19 = vmul.f32 %v5735_v21, %v5735_v21 }
 0x1fd   :  { %v1414_v0 = vmul.f32 0.125, %v1233_v16  ;;  %v1544_v30 = vmul.f32 %v5738_v61, %v5738_v61 }
 0x1fe   :  { %v5746_v51 = vsub.f32 %v5265_v42, %v1413_v23  ;;  %1605 = vadd.xlane.f32.xlu1 %v1604_v17  ;;  %v1619_v32 = vsel %vm1215_vm2, %v1543_v19, 0.0 }
 0x1ff   :  { %v5750_v15 = vsub.f32 %v5267_v43, %v1414_v0  ;;  %v1248_v57 = vpop.xlane.xlu0 %1247  ;;  %1620 = vadd.xlane.f32.xlu0 %v1619_v32  ;;  %v1622_v34 = vsel %vm1215_vm2, %v1544_v30, 0.0 }
 0x200   :  { %v1419_v31 = vmul.f32 0.125, %v1248_v57  ;;  %v1251_v40 = vpop.xlane.xlu1 %1250  ;;  %v1541_v16 = vmul.f32 %v5746_v51, %v5746_v51 }
 0x201   :  { %v1420_v33 = vmul.f32 0.125, %v1251_v40  ;;  %v1542_v23 = vmul.f32 %v5750_v15, %v5750_v15 }
 0x202   :  { %v5758_v17 = vsub.f32 %v5281_v53, %v1419_v31  ;;  %1623 = vadd.xlane.f32.xlu1 %v1622_v34  ;;  %v1613_v19 = vsel %vm1215_vm2, %v1541_v16, 0.0 }
 0x203   :  { %v5762_v0 = vsub.f32 %v5293_v60, %v1420_v33  ;;  %v1242_v32 = vpop.xlane.xlu0 %1241  ;;  %1614 = vadd.xlane.f32.xlu0 %v1613_v19  ;;  %v1616_v42 = vsel %vm1215_vm2, %v1542_v23, 0.0 }
 0x204   :  { %v1417_v57 = vmul.f32 0.125, %v1242_v32  ;;  %v1245_v43 = vpop.xlane.xlu1 %1244  ;;  %v1547_v40 = vmul.f32 %v5758_v17, %v5758_v17 }
 0x205   :  { %v1418_v30 = vmul.f32 0.125, %v1245_v43  ;;  %v1548_v31 = vmul.f32 %v5762_v0, %v5762_v0 }
 0x206   :  { %v5770_v34 = vsub.f32 %v5297_v62, %v1417_v57  ;;  %1617 = vadd.xlane.f32.xlu1 %v1616_v42  ;;  %v1631_v16 = vsel %vm1215_vm2, %v1547_v40, 0.0 }
 0x207   :  { %v5774_v33 = vsub.f32 %v5299_v63, %v1418_v30  ;;  %v1260_v19 = vpop.xlane.xlu0 %1259  ;;  %1632 = vadd.xlane.f32.xlu0 %v1631_v16  ;;  %v1634_v53 = vsel %vm1215_vm2, %v1548_v31, 0.0 }
 0x208   :  { %v1423_v32 = vmul.f32 0.125, %v1260_v19  ;;  %v1263_v60 = vpop.xlane.xlu1 %1262  ;;  %v1545_v43 = vmul.f32 %v5770_v34, %v5770_v34 }
 0x209   :  { %v1424_v23 = vmul.f32 0.125, %v1263_v60  ;;  %v1546_v57 = vmul.f32 %v5774_v33, %v5774_v33 }
 0x20a   :  { %v5782_v42 = vsub.f32 %v5313_v10, %v1423_v32  ;;  %1635 = vadd.xlane.f32.xlu1 %v1634_v53  ;;  %v1625_v40 = vsel %vm1215_vm2, %v1545_v43, 0.0 }
 0x20b   :  { %v5786_v30 = vsub.f32 %v5325_v18, %v1424_v23  ;;  %v1254_v16 = vpop.xlane.xlu0 %1253  ;;  %1626 = vadd.xlane.f32.xlu0 %v1625_v40  ;;  %v1628_v62 = vsel %vm1215_vm2, %v1546_v57, 0.0 }
 0x20c   :  { %v1421_v19 = vmul.f32 0.125, %v1254_v16  ;;  %v1257_v63 = vpop.xlane.xlu1 %1256  ;;  %v1551_v60 = vmul.f32 %v5782_v42, %v5782_v42 }
 0x20d   :  { %v1422_v31 = vmul.f32 0.125, %v1257_v63  ;;  %v1552_v32 = vmul.f32 %v5786_v30, %v5786_v30 }
 0x20e   :  { %v5794_v53 = vsub.f32 %v5329_v22, %v1421_v19  ;;  %1629 = vadd.xlane.f32.xlu1 %v1628_v62  ;;  %v1643_v43 = vsel %vm1215_vm2, %v1551_v60, 0.0 }
 0x20f   :  { %v5798_v23 = vsub.f32 %v5331_v24, %v1422_v31  ;;  %v1272_v40 = vpop.xlane.xlu0 %1271  ;;  %1644 = vadd.xlane.f32.xlu0 %v1643_v43  ;;  %v1646_v10 = vsel %vm1215_vm2, %v1552_v32, 0.0 }
 0x210   :  { %v1427_v16 = vmul.f32 0.125, %v1272_v40  ;;  %v1275_v18 = vpop.xlane.xlu1 %1274  ;;  %v1549_v63 = vmul.f32 %v5794_v53, %v5794_v53 }
 0x211   :  { %v1428_v57 = vmul.f32 0.125, %v1275_v18  ;;  %v1550_v19 = vmul.f32 %v5798_v23, %v5798_v23 }
 0x212   :  { %v5806_v62 = vsub.f32 %v5345_v35, %v1427_v16  ;;  %1647 = vadd.xlane.f32.xlu1 %v1646_v10  ;;  %v1637_v60 = vsel %vm1215_vm2, %v1549_v63, 0.0 }
 0x213   :  { %v5810_v31 = vsub.f32 %v5357_v45, %v1428_v57  ;;  %v1266_v43 = vpop.xlane.xlu0 %1265  ;;  %1638 = vadd.xlane.f32.xlu0 %v1637_v60  ;;  %v1640_v22 = vsel %vm1215_vm2, %v1550_v19, 0.0 }
 0x214   :  { %v1425_v40 = vmul.f32 0.125, %v1266_v43  ;;  %v1269_v24 = vpop.xlane.xlu1 %1268  ;;  %v1555_v18 = vmul.f32 %v5806_v62, %v5806_v62 }
 0x215   :  { %v1426_v32 = vmul.f32 0.125, %v1269_v24  ;;  %v1556_v16 = vmul.f32 %v5810_v31, %v5810_v31 }
 0x216   :  { %v5818_v10 = vsub.f32 %v5361_v47, %v1425_v40  ;;  %1641 = vadd.xlane.f32.xlu1 %v1640_v22  ;;  %v1655_v63 = vsel %vm1215_vm2, %v1555_v18, 0.0 }
 0x217   :  { %v5822_v57 = vsub.f32 %v5363_v48, %v1426_v32  ;;  %v1284_v60 = vpop.xlane.xlu0 %1283  ;;  %1656 = vadd.xlane.f32.xlu0 %v1655_v63  ;;  %v1658_v35 = vsel %vm1215_vm2, %v1556_v16, 0.0 }
 0x218   :  { %v1431_v43 = vmul.f32 0.125, %v1284_v60  ;;  %v1287_v45 = vpop.xlane.xlu1 %1286  ;;  %v1553_v24 = vmul.f32 %v5818_v10, %v5818_v10 }
 0x219   :  { %v1432_v19 = vmul.f32 0.125, %v1287_v45  ;;  %v1554_v40 = vmul.f32 %v5822_v57, %v5822_v57 }
 0x21a   :  { %v5830_v22 = vsub.f32 %v5377_v59, %v1431_v43  ;;  %1659 = vadd.xlane.f32.xlu1 %v1658_v35  ;;  %v1649_v18 = vsel %vm1215_vm2, %v1553_v24, 0.0  ;;  %v1149_v35 = vadd.f32 %v5687_v55, %v5209_v6 }
 0x21b   :  { %v5834_v32 = vsub.f32 %v5389_v5, %v1432_v19  ;;  %v1278_v63 = vpop.xlane.xlu0 %1277  ;;  %1650 = vadd.xlane.f32.xlu0 %v1649_v18  ;;  %v1652_v47 = vsel %vm1215_vm2, %v1554_v40, 0.0  ;;  %v2223_v18 = vld [vmem:[%s7478_s8] sm:$0xff] }
 0x21c   :  { %7646 = vst [vmem:[#allocation65_spill] sm:$0xff] %v5830_v22  ;;  %v1429_v60 = vmul.f32 0.125, %v1278_v63  ;;  %v1281_v48 = vpop.xlane.xlu1 %1280  ;;  %v1559_v45 = vmul.f32 %v5830_v22, %v5830_v22  ;;  %v2224_v6 = vpack.c.bf16 %v2223_v18, %v2223_v18  ;;  %v105_v18 = vld [vmem:[%s7477_s2 + $0x1f8] sm:$0xff] }
 0x21d   :  { %v1430_v16 = vmul.f32 0.125, %v1281_v48  ;;  %v1560_v43 = vmul.f32 %v5834_v32, %v5834_v32  ;;  %v104_v48 = vld [vmem:[%s7477_s2 + $0x1f0] sm:$0xff] }
 0x21e   :  { %v5844_v24 = vsub.f32 %v5393_v8, %v1429_v60  ;;  %1653 = vadd.xlane.f32.xlu1 %v1652_v47  ;;  %v1667_v19 = vsel %vm1215_vm2, %v1559_v45, 0.0  ;;  %v4679_v60 = vld [vmem:[%s7476_s5] ss:$0 sm:$0xff]  ;;  %4422 = vmatprep.subr.msk.bf16.mxu1 %vm2328_vm3, %v2224_v6 }
 0x21f   :  { %v5854_v40 = vsub.f32 %v5395_v9, %v1430_v16  ;;  %v1296_v63 = vpop.xlane.xlu0 %1295  ;;  %1668 = vadd.xlane.f32.xlu0 %v1667_v19  ;;  %v1150_v45 = vadd.f32 %v4679_v60, %v5693_v41  ;;  %v1670_v5 = vsel %vm1215_vm2, %v1560_v43, 0.0  ;;  %v2330_v9 = vsel %vm2328_vm3, %v2224_v6, 0 }
 0x220   :  { %7647 = vst [vmem:[#allocation66_spill] sm:$0xff] %v5844_v24  ;;  %v1299_v55 = vpop.xlane.xlu1 %1298  ;;  %v1557_v47 = vmul.f32 %v5844_v24, %v5844_v24  ;;  %v5865_v19 = vadd.f32 %v1149_v35, %v104_v48  ;;  %v1435_v8 = vmul.f32 0.125, %v1296_v63  ;;  %4223 = vmatpush3.bf16.msra.mxu1 %v2330_v9 }
 0x221   :  { %7648 = vst [vmem:[#allocation67_spill] sm:$0xff] %v5854_v40  ;;  %v1558_v16 = vmul.f32 %v5854_v40, %v5854_v40  ;;  %v5871_v60 = vadd.f32 %v1150_v45, %v105_v18  ;;  %v1436_v40 = vmul.f32 0.125, %v1299_v55 }
 0x222   :  { %1671 = vadd.xlane.f32.xlu1 %v1670_v5  ;;  %v1661_v59 = vsel %vm1215_vm2, %v1557_v47, 0.0  ;;  %v5875_v48 = vsub.f32 %v5409_v27, %v1435_v8  ;;  %v1402_v5 = vsel %vm1215_vm2, %v5865_v19, 0.0 }
 0x223   :  { %v1290_v24 = vpop.xlane.xlu0 %1289  ;;  %1662 = vadd.xlane.f32.xlu0 %v1661_v59  ;;  %v1664_v35 = vsel %vm1215_vm2, %v1558_v16, 0.0  ;;  %v5888_v55 = vsub.f32 %v5421_v36, %v1436_v40  ;;  %v1405_v8 = vsel %vm1215_vm2, %v5871_v60, 0.0 }
 0x224   :  { %v1433_v41 = vmul.f32 0.125, %v1290_v24  ;;  %v1293_v43 = vpop.xlane.xlu1 %1292  ;;  %v1563_v16 = vmul.f32 %v5875_v48, %v5875_v48 }
 0x225   :  { %v1434_v22 = vmul.f32 0.125, %v1293_v43 }
 0x226   :  { %v5878_v6 = vsub.f32 %v5425_v38, %v1433_v41  ;;  %1665 = vadd.xlane.f32.xlu1 %v1664_v35 }
 0x227   :  { %v5883_v59 = vsub.f32 %v5427_v39, %v1434_v22  ;;  %v1308_v9 = vpop.xlane.xlu0 %1307  ;;  %1403 = vadd.xlane.f32.xlu0 %v1402_v5  ;;  %v1564_v39 = vmul.f32 %v5888_v55, %v5888_v55 }
 0x228   :  { %v1311_v24 = vpop.xlane.xlu1 %1310  ;;  %v1561_v63 = vmul.f32 %v5878_v6, %v5878_v6  ;;  %v1439_v45 = vmul.f32 0.125, %v1308_v9 }
 0x229   :  { %v1562_v47 = vmul.f32 %v5883_v59, %v5883_v59  ;;  %v1440_v35 = vmul.f32 0.125, %v1311_v24 }
 0x22a   :  { %1406 = vadd.xlane.f32.xlu1 %v1405_v8  ;;  %v1673_v22 = vsel %vm1215_vm2, %v1561_v63, 0.0  ;;  %v5901_v36 = vsub.f32 %v5441_v56, %v1439_v45  ;;  %v1679_v63 = vsel %vm1215_vm2, %v1563_v16, 0.0  ;;  %v1682_v45 = vsel %vm1215_vm2, %v1564_v39, 0.0 }
 0x22b   :  { %v1302_v18 = vpop.xlane.xlu0 %1301  ;;  %1674 = vadd.xlane.f32.xlu0 %v1673_v22  ;;  %v1676_v5 = vsel %vm1215_vm2, %v1562_v47, 0.0 }
 0x22c   :  { %v1437_v41 = vmul.f32 0.125, %v1302_v18  ;;  %v1305_v43 = vpop.xlane.xlu1 %1304  ;;  %v5913_v18 = vsub.f32 %v5453_v3, %v1440_v35 }
 0x22d   :  { %v1438_v40 = vmul.f32 0.125, %v1305_v43 }
 0x22e   :  { %v5904_v9 = vsub.f32 %v5457_v7, %v1437_v41  ;;  %1677 = vadd.xlane.f32.xlu1 %v1676_v5  ;;  %v1568_v39 = vmul.f32 %v5913_v18, %v5913_v18 }
 0x22f   :  { %v5908_v8 = vsub.f32 %v5459_v11, %v1438_v40  ;;  %v1320_v22 = vpop.xlane.xlu0 %1319  ;;  %1680 = vadd.xlane.f32.xlu0 %v1679_v63  ;;  %v1567_v40 = vmul.f32 %v5901_v36, %v5901_v36 }
 0x230   :  { %v1323_v24 = vpop.xlane.xlu1 %1322  ;;  %v1565_v47 = vmul.f32 %v5904_v9, %v5904_v9  ;;  %v1443_v43 = vmul.f32 0.125, %v1320_v22 }
 0x231   :  { %v1566_v41 = vmul.f32 %v5908_v8, %v5908_v8  ;;  %v1444_v7 = vmul.f32 0.125, %v1323_v24 }
 0x232   :  { %1683 = vadd.xlane.f32.xlu1 %v1682_v45  ;;  %v1685_v16 = vsel %vm1215_vm2, %v1565_v47, 0.0  ;;  %v5925_v3 = vsub.f32 %v5473_v29, %v1443_v43  ;;  %v1691_v47 = vsel %vm1215_vm2, %v1567_v40, 0.0  ;;  %v1694_v43 = vsel %vm1215_vm2, %v1568_v39, 0.0 }
 0x233   :  { %v1314_v5 = vpop.xlane.xlu0 %1313  ;;  %1686 = vadd.xlane.f32.xlu0 %v1685_v16  ;;  %v1688_v35 = vsel %vm1215_vm2, %v1566_v41, 0.0  ;;  %v5937_v41 = vsub.f32 %v5485_v44, %v1444_v7 }
 0x234   :  { %v1441_v63 = vmul.f32 0.125, %v1314_v5  ;;  %v1317_v11 = vpop.xlane.xlu1 %1316 }
 0x235   :  { %v1442_v56 = vmul.f32 0.125, %v1317_v11  ;;  %v1572_v39 = vmul.f32 %v5937_v41, %v5937_v41 }
 0x236   :  { %v5928_v22 = vsub.f32 %v5489_v49, %v1441_v63  ;;  %1689 = vadd.xlane.f32.xlu1 %v1688_v35 }
 0x237   :  { %v5932_v45 = vsub.f32 %v5491_v50, %v1442_v56  ;;  %v1332_v16 = vpop.xlane.xlu0 %1331  ;;  %1692 = vadd.xlane.f32.xlu0 %v1691_v47  ;;  %v1571_v56 = vmul.f32 %v5925_v3, %v5925_v3 }
 0x238   :  { %v1335_v11 = vpop.xlane.xlu1 %1334  ;;  %v1569_v24 = vmul.f32 %v5928_v22, %v5928_v22  ;;  %v1447_v63 = vmul.f32 0.125, %v1332_v16 }
 0x239   :  { %v1570_v5 = vmul.f32 %v5932_v45, %v5932_v45  ;;  %v1448_v49 = vmul.f32 0.125, %v1335_v11 }
 0x23a   :  { %1695 = vadd.xlane.f32.xlu1 %v1694_v43  ;;  %v1697_v40 = vsel %vm1215_vm2, %v1569_v24, 0.0  ;;  %v5949_v44 = vsub.f32 %v5505_v2, %v1447_v63  ;;  %v1703_v24 = vsel %vm1215_vm2, %v1571_v56, 0.0  ;;  %v1706_v63 = vsel %vm1215_vm2, %v1572_v39, 0.0 }
 0x23b   :  { %v1326_v35 = vpop.xlane.xlu0 %1325  ;;  %1698 = vadd.xlane.f32.xlu0 %v1697_v40  ;;  %v1700_v7 = vsel %vm1215_vm2, %v1570_v5, 0.0  ;;  %v5961_v5 = vsub.f32 %v5517_v20, %v1448_v49 }
 0x23c   :  { %v1445_v47 = vmul.f32 0.125, %v1326_v35  ;;  %v1329_v50 = vpop.xlane.xlu1 %1328 }
 0x23d   :  { %v1446_v29 = vmul.f32 0.125, %v1329_v50  ;;  %v1576_v39 = vmul.f32 %v5961_v5, %v5961_v5 }
 0x23e   :  { %v5952_v16 = vsub.f32 %v5521_v26, %v1445_v47  ;;  %1701 = vadd.xlane.f32.xlu1 %v1700_v7 }
 0x23f   :  { %v5956_v43 = vsub.f32 %v5523_v28, %v1446_v29  ;;  %v1344_v40 = vpop.xlane.xlu0 %1343  ;;  %1704 = vadd.xlane.f32.xlu0 %v1703_v24  ;;  %v1575_v29 = vmul.f32 %v5949_v44, %v5949_v44 }
 0x240   :  { %v1347_v50 = vpop.xlane.xlu1 %1346  ;;  %v1573_v11 = vmul.f32 %v5952_v16, %v5952_v16  ;;  %v1451_v47 = vmul.f32 0.125, %v1344_v40 }
 0x241   :  { %v1574_v35 = vmul.f32 %v5956_v43, %v5956_v43  ;;  %v1452_v26 = vmul.f32 0.125, %v1347_v50 }
 0x242   :  { %1707 = vadd.xlane.f32.xlu1 %v1706_v63  ;;  %v1709_v56 = vsel %vm1215_vm2, %v1573_v11, 0.0  ;;  %v5973_v20 = vsub.f32 %v5537_v54, %v1451_v47  ;;  %v1715_v11 = vsel %vm1215_vm2, %v1575_v29, 0.0  ;;  %v1718_v47 = vsel %vm1215_vm2, %v1576_v39, 0.0 }
 0x243   :  { %v1338_v7 = vpop.xlane.xlu0 %1337  ;;  %1710 = vadd.xlane.f32.xlu0 %v1709_v56  ;;  %v1712_v49 = vsel %vm1215_vm2, %v1574_v35, 0.0  ;;  %v5985_v35 = vsub.f32 %v5549_v4, %v1452_v26 }
 0x244   :  { %v1449_v24 = vmul.f32 0.125, %v1338_v7  ;;  %v1341_v28 = vpop.xlane.xlu1 %1340 }
 0x245   :  { %v1450_v2 = vmul.f32 0.125, %v1341_v28  ;;  %v1580_v39 = vmul.f32 %v5985_v35, %v5985_v35 }
 0x246   :  { %v5976_v40 = vsub.f32 %v5553_v13, %v1449_v24  ;;  %1713 = vadd.xlane.f32.xlu1 %v1712_v49 }
 0x247   :  { %v5980_v63 = vsub.f32 %v5555_v14, %v1450_v2  ;;  %v1356_v56 = vpop.xlane.xlu0 %1355  ;;  %1716 = vadd.xlane.f32.xlu0 %v1715_v11  ;;  %v1579_v2 = vmul.f32 %v5973_v20, %v5973_v20 }
 0x248   :  { %v1359_v28 = vpop.xlane.xlu1 %1358  ;;  %v1577_v50 = vmul.f32 %v5976_v40, %v5976_v40  ;;  %v1455_v24 = vmul.f32 0.125, %v1356_v56 }
 0x249   :  { %v1578_v7 = vmul.f32 %v5980_v63, %v5980_v63  ;;  %v1456_v13 = vmul.f32 0.125, %v1359_v28 }
 0x24a   :  { %1719 = vadd.xlane.f32.xlu1 %v1718_v47  ;;  %v1721_v29 = vsel %vm1215_vm2, %v1577_v50, 0.0  ;;  %v5997_v4 = vsub.f32 %v5569_v46, %v1455_v24  ;;  %v1727_v50 = vsel %vm1215_vm2, %v1579_v2, 0.0  ;;  %v7651_v47 = vld [vmem:[#allocation49_spill] sm:$0xff]  ;;  %v1730_v24 = vsel %vm1215_vm2, %v1580_v39, 0.0 }
 0x24b   :  { %v1350_v49 = vpop.xlane.xlu0 %1349  ;;  %1722 = vadd.xlane.f32.xlu0 %v1721_v29  ;;  %v1724_v26 = vsel %vm1215_vm2, %v1578_v7, 0.0  ;;  %v7653_v7 = vld [vmem:[#allocation47_spill] sm:$0xff] }
 0x24c   :  { %v1453_v11 = vmul.f32 0.125, %v1350_v49  ;;  %v1353_v14 = vpop.xlane.xlu1 %1352  ;;  %7649 = vst [vmem:[#allocation68_spill] sm:$0xff] %v5997_v4  ;;  %v6009_v38 = vsub.f32 %v7653_v7, %v1456_v13  ;;  %v7655_v7 = vld [vmem:[#allocation50_spill] sm:$0xff] }
 0x24d   :  { %v1454_v54 = vmul.f32 0.125, %v1353_v14 }
 0x24e   :  { %v6000_v56 = vsub.f32 %v5585_v12, %v1453_v11  ;;  %1725 = vadd.xlane.f32.xlu1 %v1724_v26  ;;  %7654 = vst [vmem:[#allocation71_spill] sm:$0xff] %v6009_v38  ;;  %v1584_v39 = vmul.f32 %v6009_v38, %v6009_v38 }
 0x24f   :  { %v6004_v29 = vsub.f32 %v7651_v47, %v1454_v54  ;;  %v1368_v49 = vpop.xlane.xlu0 %1367  ;;  %1728 = vadd.xlane.f32.xlu0 %v1727_v50  ;;  %v1583_v54 = vmul.f32 %v5997_v4, %v5997_v4  ;;  %v7659_v4 = vld [vmem:[#allocation53_spill] sm:$0xff] }
 0x250   :  { %7650 = vst [vmem:[#allocation69_spill] sm:$0xff] %v6000_v56  ;;  %v1371_v14 = vpop.xlane.xlu1 %1370  ;;  %v1581_v28 = vmul.f32 %v6000_v56, %v6000_v56  ;;  %v1459_v26 = vmul.f32 0.125, %v1368_v49  ;;  %v7657_v49 = vld [vmem:[#allocation52_spill] sm:$0xff] }
 0x251   :  { %7652 = vst [vmem:[#allocation70_spill] sm:$0xff] %v6004_v29  ;;  %v1582_v11 = vmul.f32 %v6004_v29, %v6004_v29  ;;  %v1460_v46 = vmul.f32 0.125, %v1371_v14 }
 0x252   :  { %1731 = vadd.xlane.f32.xlu1 %v1730_v24  ;;  %v1733_v2 = vsel %vm1215_vm2, %v1581_v28, 0.0  ;;  %v6021_v29 = vsub.f32 %v7655_v7, %v1459_v26  ;;  %v1739_v28 = vsel %vm1215_vm2, %v1583_v54, 0.0  ;;  %v1742_v26 = vsel %vm1215_vm2, %v1584_v39, 0.0 }
 0x253   :  { %v1362_v50 = vpop.xlane.xlu0 %1361  ;;  %1734 = vadd.xlane.f32.xlu0 %v1733_v2  ;;  %v1736_v13 = vsel %vm1215_vm2, %v1582_v11, 0.0  ;;  %v7661_v11 = vld [vmem:[#allocation51_spill] sm:$0xff] }
 0x254   :  { %v1457_v47 = vmul.f32 0.125, %v1362_v50  ;;  %v1365_v12 = vpop.xlane.xlu1 %1364  ;;  %7656 = vst [vmem:[#allocation72_spill] sm:$0xff] %v6021_v29  ;;  %v6033_v38 = vsub.f32 %v7661_v11, %v1460_v46  ;;  %v7663_v11 = vld [vmem:[#allocation54_spill] sm:$0xff] }
 0x255   :  { %v1458_v27 = vmul.f32 0.125, %v1365_v12 }
 0x256   :  { %v6024_v24 = vsub.f32 %v7657_v49, %v1457_v47  ;;  %1737 = vadd.xlane.f32.xlu1 %v1736_v13  ;;  %7662 = vst [vmem:[#allocation75_spill] sm:$0xff] %v6033_v38  ;;  %v1588_v39 = vmul.f32 %v6033_v38, %v6033_v38 }
 0x257   :  { %v6028_v2 = vsub.f32 %v7659_v4, %v1458_v27  ;;  %v1380_v50 = vpop.xlane.xlu0 %1379  ;;  %1740 = vadd.xlane.f32.xlu0 %v1739_v28  ;;  %v1587_v27 = vmul.f32 %v6021_v29, %v6021_v29  ;;  %v7667_v29 = vld [vmem:[#allocation57_spill] sm:$0xff] }
 0x258   :  { %7658 = vst [vmem:[#allocation73_spill] sm:$0xff] %v6024_v24  ;;  %v1383_v12 = vpop.xlane.xlu1 %1382  ;;  %v1585_v14 = vmul.f32 %v6024_v24, %v6024_v24  ;;  %v1463_v13 = vmul.f32 0.125, %v1380_v50  ;;  %v7665_v50 = vld [vmem:[#allocation56_spill] sm:$0xff] }
 0x259   :  { %7660 = vst [vmem:[#allocation74_spill] sm:$0xff] %v6028_v2  ;;  %v1586_v47 = vmul.f32 %v6028_v2, %v6028_v2  ;;  %v1464_v7 = vmul.f32 0.125, %v1383_v12 }
 0x25a   :  { %1743 = vadd.xlane.f32.xlu1 %v1742_v26  ;;  %v1745_v54 = vsel %vm1215_vm2, %v1585_v14, 0.0  ;;  %v6045_v2 = vsub.f32 %v7663_v11, %v1463_v13  ;;  %v1751_v14 = vsel %vm1215_vm2, %v1587_v27, 0.0  ;;  %v1754_v13 = vsel %vm1215_vm2, %v1588_v39, 0.0 }
 0x25b   :  { %v1374_v28 = vpop.xlane.xlu0 %1373  ;;  %1746 = vadd.xlane.f32.xlu0 %v1745_v54  ;;  %v1748_v46 = vsel %vm1215_vm2, %v1586_v47, 0.0  ;;  %v7669_v47 = vld [vmem:[#allocation55_spill] sm:$0xff] }
 0x25c   :  { %v1461_v4 = vmul.f32 0.125, %v1374_v28  ;;  %v1377_v49 = vpop.xlane.xlu1 %1376  ;;  %7664 = vst [vmem:[#allocation76_spill] sm:$0xff] %v6045_v2  ;;  %v6057_v38 = vsub.f32 %v7669_v47, %v1464_v7  ;;  %v7671_v47 = vld [vmem:[#allocation58_spill] sm:$0xff] }
 0x25d   :  { %v1462_v24 = vmul.f32 0.125, %v1377_v49 }
 0x25e   :  { %v6048_v26 = vsub.f32 %v7665_v50, %v1461_v4  ;;  %1749 = vadd.xlane.f32.xlu1 %v1748_v46  ;;  %7670 = vst [vmem:[#allocation79_spill] sm:$0xff] %v6057_v38  ;;  %v1592_v39 = vmul.f32 %v6057_v38, %v6057_v38 }
 0x25f   :  { %v6052_v54 = vsub.f32 %v7667_v29, %v1462_v24  ;;  %v1392_v28 = vpop.xlane.xlu0 %1391  ;;  %1752 = vadd.xlane.f32.xlu0 %v1751_v14  ;;  %v1591_v24 = vmul.f32 %v6045_v2, %v6045_v2 }
 0x260   :  { %7666 = vst [vmem:[#allocation77_spill] sm:$0xff] %v6048_v26  ;;  %v1395_v49 = vpop.xlane.xlu1 %1394  ;;  %v1589_v12 = vmul.f32 %v6048_v26, %v6048_v26  ;;  %v1467_v46 = vmul.f32 0.125, %v1392_v28  ;;  %v7673_v28 = vld [vmem:[#allocation60_spill] sm:$0xff] }
 0x261   :  { %7668 = vst [vmem:[#allocation78_spill] sm:$0xff] %v6052_v54  ;;  %v1590_v4 = vmul.f32 %v6052_v54, %v6052_v54  ;;  %v1468_v11 = vmul.f32 0.125, %v1395_v49 }
 0x262   :  { %1755 = vadd.xlane.f32.xlu1 %v1754_v13  ;;  %v1757_v27 = vsel %vm1215_vm2, %v1589_v12, 0.0  ;;  %v6069_v54 = vsub.f32 %v7671_v47, %v1467_v46  ;;  %v1763_v12 = vsel %vm1215_vm2, %v1591_v24, 0.0  ;;  %v1766_v47 = vsel %vm1215_vm2, %v1592_v39, 0.0 }
 0x263   :  { %v1386_v14 = vpop.xlane.xlu0 %1385  ;;  %1758 = vadd.xlane.f32.xlu0 %v1757_v27  ;;  %v1760_v7 = vsel %vm1215_vm2, %v1590_v4, 0.0 }
 0x264   :  { %v1465_v29 = vmul.f32 0.125, %v1386_v14  ;;  %v1389_v50 = vpop.xlane.xlu1 %1388  ;;  %7672 = vst [vmem:[#allocation80_spill] sm:$0xff] %v6069_v54  ;;  %v7676_v14 = vld [vmem:[#allocation59_spill] sm:$0xff] }
 0x265   :  { %v1466_v26 = vmul.f32 0.125, %v1389_v50  ;;  %v6081_v38 = vsub.f32 %v7676_v14, %v1468_v11 }
 0x266   :  { %v6072_v13 = vsub.f32 %v7673_v28, %v1465_v29  ;;  %1761 = vadd.xlane.f32.xlu1 %v1760_v7 }
 0x267   :  { %v6076_v27 = vsub.f32 %v5683_v25, %v1466_v26  ;;  %1764 = vadd.xlane.f32.xlu0 %v1763_v12  ;;  %v1398_v49 = vpop.xlane.xlu0 %1397  ;;  %7677 = vst [vmem:[#allocation83_spill] sm:$0xff] %v6081_v38  ;;  %v1595_v12 = vmul.f32 %v6069_v54, %v6069_v54  ;;  %v1596_v39 = vmul.f32 %v6081_v38, %v6081_v38 }
 0x268   :  { %7674 = vst [vmem:[#allocation81_spill] sm:$0xff] %v6072_v13  ;;  %v1469_v50 = vmul.f32 0.125, %v1398_v49  ;;  %v1593_v4 = vmul.f32 %v6072_v13, %v6072_v13  ;;  %v7679_v49 = vld [vmem:[#allocation63_spill] sm:$0xff] }
 0x269   :  { %7675 = vst [vmem:[#allocation82_spill] sm:$0xff] %v6076_v27  ;;  %v1401_v46 = vpop.xlane.xlu1 %1400  ;;  %v1594_v29 = vmul.f32 %v6076_v27, %v6076_v27 }
 0x26a   :  { %v6087_v24 = vsub.f32 %v5702_v37, %v1469_v50  ;;  %v1470_v26 = vmul.f32 0.125, %v1401_v46  ;;  %1767 = vadd.xlane.f32.xlu1 %v1766_v47  ;;  %v1769_v7 = vsel %vm1215_vm2, %v1593_v4, 0.0  ;;  %v1775_v50 = vsel %vm1215_vm2, %v1595_v12, 0.0 }
 0x26b   :  { %1770 = vadd.xlane.f32.xlu0 %v1769_v7  ;;  %v1772_v25 = vsel %vm1215_vm2, %v1594_v29, 0.0  ;;  %v1778_v4 = vsel %vm1215_vm2, %v1596_v39, 0.0 }
 0x26c   :  { %7678 = vst [vmem:[#allocation84_spill] sm:$0xff] %v6087_v24  ;;  %v6093_v11 = vsub.f32 %v7679_v49, %v1470_v26  ;;  %v1597_v47 = vmul.f32 %v6087_v24, %v6087_v24 }
 0x26e   :  { %7680 = vst [vmem:[#allocation85_spill] sm:$0xff] %v6093_v11  ;;  %1773 = vadd.xlane.f32.xlu1 %v1772_v25  ;;  %v1598_v46 = vmul.f32 %v6093_v11, %v6093_v11  ;;  %v1781_v26 = vsel %vm1215_vm2, %v1597_v47, 0.0 }
 0x26f   :  { %1776 = vadd.xlane.f32.xlu0 %v1775_v50 }
 0x270   :  { %v1784_v29 = vsel %vm1215_vm2, %v1598_v46, 0.0 }
 0x272   :  { %1779 = vadd.xlane.f32.xlu1 %v1778_v4 }
 0x273   :  { %1782 = vadd.xlane.f32.xlu0 %v1781_v26 }
 0x276   :  { %1785 = vadd.xlane.f32.xlu1 %v1784_v29 }
 0x283   :  { %v1609_v7 = vpop.xlane.xlu0 %1608 }
 0x284   :  { %v1795_v25 = vmul.f32 0.125, %v1609_v7 }
 0x286   :  { %v1859_v49 = vadd.f32 1e-05, %v1795_v25 }
 0x287   :  { %v1603_v12 = vpop.xlane.xlu0 %1602  ;;  %v1612_v37 = vpop.xlane.xlu1 %1611 }
 0x288   :  { %v1793_v14 = vmul.f32 0.125, %v1603_v12  ;;  %v1796_v28 = vmul.f32 0.125, %v1612_v37  ;;  %4423 = vrsqrt.f32 %v1859_v49 }
 0x28a   :  { %v1857_v50 = vadd.f32 1e-05, %v1793_v14  ;;  %v1860_v39 = vadd.f32 1e-05, %v1796_v28 }
 0x28b   :  { %v1606_v24 = vpop.xlane.xlu1 %1605 }
 0x28c   :  { %4425 = vrsqrt.f32 %v1857_v50  ;;  %v1794_v11 = vmul.f32 0.125, %v1606_v24  ;;  %v1621_v4 = vpop.xlane.xlu0 %1620 }
 0x28d   :  { %4427 = vrsqrt.f32 %v1860_v39  ;;  %v1799_v47 = vmul.f32 0.125, %v1621_v4 }
 0x28e   :  { %v1858_v26 = vadd.f32 1e-05, %v1794_v11 }
 0x28f   :  { %v1863_v38 = vadd.f32 1e-05, %v1799_v47  ;;  %v1624_v46 = vpop.xlane.xlu1 %1623 }
 0x290   :  { %4429 = vrsqrt.f32 %v1858_v26  ;;  %v1800_v29 = vmul.f32 0.125, %v1624_v46  ;;  %v1615_v7 = vpop.xlane.xlu0 %1614 }
 0x291   :  { %v1797_v25 = vmul.f32 0.125, %v1615_v7  ;;  %4431 = vrsqrt.f32 %v1863_v38  ;;  %v6111_v38 = vld [vmem:[%s7479_s6] ss:$0 sm:$0xff] }
 0x292   :  { %v1864_v54 = vadd.f32 1e-05, %v1800_v29  ;;  %v4424_v27 = vpop.eup %4423 }
 0x293   :  { %v1861_v37 = vadd.f32 1e-05, %v1797_v25  ;;  %v1618_v49 = vpop.xlane.xlu1 %1617  ;;  %v1987_v50 = vmul.f32 %v4424_v27, %v5712_v58 }
 0x294   :  { %4433 = vrsqrt.f32 %v1864_v54  ;;  %v1798_v28 = vmul.f32 0.125, %v1618_v49  ;;  %v1633_v14 = vpop.xlane.xlu0 %1632 }
 0x295   :  { %4435 = vrsqrt.f32 %v1861_v37  ;;  %v1803_v24 = vmul.f32 0.125, %v1633_v14  ;;  %v2058_v27 = vmul.f32 %v6111_v38, %v1987_v50 }
 0x296   :  { %v4426_v12 = vpop.eup %4425  ;;  %v1862_v11 = vadd.f32 1e-05, %v1798_v28  ;;  %v7681_v28 = vld [vmem:[#allocation64_spill] sm:$0xff] }
 0x297   :  { %v4428_v39 = vpop.eup %4427  ;;  %v1867_v4 = vadd.f32 1e-05, %v1803_v24  ;;  %v1636_v47 = vpop.xlane.xlu1 %1635  ;;  %v1985_v26 = vmul.f32 %v4426_v12, %v5715_v1 }
 0x298   :  { %v1988_v54 = vmul.f32 %v4428_v39, %v5720_v52  ;;  %4437 = vrsqrt.f32 %v1862_v11  ;;  %v1804_v46 = vmul.f32 0.125, %v1636_v47  ;;  %v1627_v29 = vpop.xlane.xlu0 %1626  ;;  %v6121_v52 = vld [vmem:[%s7480_s7] ss:$0 sm:$0xff] }
 0x299   :  { %4439 = vrsqrt.f32 %v1867_v4  ;;  %v1801_v7 = vmul.f32 0.125, %v1627_v29  ;;  %v2056_v24 = vmul.f32 %v6111_v38, %v1985_v26 }
 0x29a   :  { %v4430_v25 = vpop.eup %4429  ;;  %v1868_v58 = vadd.f32 1e-05, %v1804_v46  ;;  %v2059_v37 = vmul.f32 %v6111_v38, %v1988_v54  ;;  %v2129_v46 = vadd.f32 %v6121_v52, %v2058_v27 }
 0x29b   :  { %v1865_v49 = vadd.f32 1e-05, %v1801_v7  ;;  %v1630_v1 = vpop.xlane.xlu1 %1629  ;;  %v1986_v14 = vmul.f32 %v4430_v25, %v7681_v28  ;;  %v4432_v39 = vpop.eup %4431 }
 0x29c   :  { %4441 = vrsqrt.f32 %v1868_v58  ;;  %v1802_v12 = vmul.f32 0.125, %v1630_v1  ;;  %v1645_v11 = vpop.xlane.xlu0 %1644  ;;  %v2130_v29 = vadd.f32 %v6121_v52, %v2059_v37  ;;  %v2127_v58 = vadd.f32 %v6121_v52, %v2056_v24 }
 0x29d   :  { %4443 = vrsqrt.f32 %v1865_v49  ;;  %v1807_v4 = vmul.f32 0.125, %v1645_v11  ;;  %v2057_v50 = vmul.f32 %v6111_v38, %v1986_v14  ;;  %v1991_v49 = vmul.f32 %v4432_v39, %v5735_v21 }
 0x29e   :  { %v4434_v47 = vpop.eup %4433  ;;  %v1866_v54 = vadd.f32 1e-05, %v1802_v12  ;;  %v2192_v56 = vpack.c.bf16 %v2130_v29, %v2129_v46 }
 0x29f   :  { %v4436_v26 = vpop.eup %4435  ;;  %v1992_v7 = vmul.f32 %v4434_v47, %v5738_v61  ;;  %v1871_v25 = vadd.f32 1e-05, %v1807_v4  ;;  %v1648_v28 = vpop.xlane.xlu1 %1647  ;;  %v2128_v1 = vadd.f32 %v6121_v52, %v2057_v50 }
 0x2a0   :  { %v1989_v11 = vmul.f32 %v4436_v26, %v5746_v51  ;;  %4445 = vrsqrt.f32 %v1866_v54  ;;  %v1808_v14 = vmul.f32 0.125, %v1648_v28  ;;  %v1639_v12 = vpop.xlane.xlu0 %1638  ;;  %v2062_v54 = vmul.f32 %v6111_v38, %v1991_v49 }
 0x2a1   :  { %v1805_v13 = vmul.f32 0.125, %v1639_v12  ;;  %v2191_v27 = vpack.c.bf16 %v2128_v1, %v2127_v58  ;;  %v2063_v61 = vmul.f32 %v6111_v38, %v1992_v7  ;;  %4447 = vrsqrt.f32 %v1871_v25 }
 0x2a2   :  { %v4438_v2 = vpop.eup %4437  ;;  %v1872_v37 = vadd.f32 1e-05, %v1808_v14  ;;  %v2060_v51 = vmul.f32 %v6111_v38, %v1989_v11  ;;  %v2133_v12 = vadd.f32 %v6121_v52, %v2062_v54 }
 0x2a3   :  { %v4440_v4 = vpop.eup %4439  ;;  %v1990_v47 = vmul.f32 %v4438_v2, %v5750_v15  ;;  %v1869_v24 = vadd.f32 1e-05, %v1805_v13  ;;  %4224 = vmatprep.mubr.msk.bf16.mxu1 %vm1215_vm2, %v2191_v27  ;;  %v1642_v21 = vpop.xlane.xlu1 %1641  ;;  %v2134_v13 = vadd.f32 %v6121_v52, %v2063_v61 }
 0x2a4   :  { %4449 = vrsqrt.f32 %v1872_v37  ;;  %v1806_v39 = vmul.f32 0.125, %v1642_v21  ;;  %v1657_v50 = vpop.xlane.xlu0 %1656  ;;  %4225 = vmatmul.mubr.msk.bf16.vlgmr.msra.gmra.mrb[0].mxu1 %vm1215_vm2, %v2192_v56  ;;  %v1995_v15 = vmul.f32 %v4440_v4, %v5758_v17  ;;  %v2131_v1 = vadd.f32 %v6121_v52, %v2060_v51 }
 0x2a5   :  { %4451 = vrsqrt.f32 %v1869_v24  ;;  %v1811_v46 = vmul.f32 0.125, %v1657_v50  ;;  %v2061_v29 = vmul.f32 %v6111_v38, %v1990_v47  ;;  %v2194_v4 = vpack.c.bf16 %v2134_v13, %v2133_v12 }
 0x2a6   :  { %v4442_v26 = vpop.eup %4441  ;;  %v1870_v2 = vadd.f32 1e-05, %v1806_v39 }
 0x2a7   :  { %v4444_v7 = vpop.eup %4443  ;;  %v1996_v25 = vmul.f32 %v4442_v26, %v5762_v0  ;;  %v1875_v28 = vadd.f32 1e-05, %v1811_v46  ;;  %v1660_v58 = vpop.xlane.xlu1 %1659  ;;  %v2132_v56 = vadd.f32 %v6121_v52, %v2061_v29  ;;  %v2066_v0 = vmul.f32 %v6111_v38, %v1995_v15 }
 0x2a8   :  { %v1993_v49 = vmul.f32 %v4444_v7, %v5770_v34  ;;  %4453 = vrsqrt.f32 %v1870_v2  ;;  %v1812_v11 = vmul.f32 0.125, %v1660_v58  ;;  %v1651_v14 = vpop.xlane.xlu0 %1650 }
 0x2a9   :  { %4455 = vrsqrt.f32 %v1875_v28  ;;  %v1809_v17 = vmul.f32 0.125, %v1651_v14  ;;  %v2193_v27 = vpack.c.bf16 %v2132_v56, %v2131_v1  ;;  %v2067_v47 = vmul.f32 %v6111_v38, %v1996_v25 }
 0x2aa   :  { %v4446_v37 = vpop.eup %4445  ;;  %v1876_v61 = vadd.f32 1e-05, %v1812_v11  ;;  %v2064_v51 = vmul.f32 %v6111_v38, %v1993_v49 }
 0x2ab   :  { %v1994_v24 = vmul.f32 %v4446_v37, %v5774_v33  ;;  %v1873_v21 = vadd.f32 1e-05, %v1809_v17  ;;  %4228 = vmatprep.mubr.msk.bf16.mxu1 %vm1215_vm2, %v2193_v27  ;;  %v1654_v34 = vpop.xlane.xlu1 %1653  ;;  %v4448_v54 = vpop.eup %4447  ;;  %v2137_v33 = vadd.f32 %v6121_v52, %v2066_v0  ;;  %v2138_v2 = vadd.f32 %v6121_v52, %v2067_v47 }
 0x2ac   :  { %4457 = vrsqrt.f32 %v1876_v61  ;;  %v1810_v39 = vmul.f32 0.125, %v1654_v34  ;;  %v1669_v50 = vpop.xlane.xlu0 %1668  ;;  %4229 = vmatmul.mubr.msk.bf16.gmra.mrb[4].mxu1 %vm1215_vm2, %v2194_v4  ;;  %v2135_v58 = vadd.f32 %v6121_v52, %v2064_v51  ;;  %v1999_v56 = vmul.f32 %v4448_v54, %v5782_v42 }
 0x2ad   :  { %4459 = vrsqrt.f32 %v1873_v21  ;;  %v1815_v46 = vmul.f32 0.125, %v1669_v50  ;;  %v2065_v29 = vmul.f32 %v6111_v38, %v1994_v24  ;;  %v2196_v61 = vpack.c.bf16 %v2138_v2, %v2137_v33 }
 0x2ae   :  { %v4450_v26 = vpop.eup %4449  ;;  %v1874_v15 = vadd.f32 1e-05, %v1810_v39  ;;  %v2070_v34 = vmul.f32 %v6111_v38, %v1999_v56 }
 0x2af   :  { %v4452_v13 = vpop.eup %4451  ;;  %v2000_v7 = vmul.f32 %v4450_v26, %v5786_v30  ;;  %v1879_v25 = vadd.f32 1e-05, %v1815_v46  ;;  %v1672_v28 = vpop.xlane.xlu1 %1671  ;;  %v2136_v1 = vadd.f32 %v6121_v52, %v2065_v29 }
 0x2b0   :  { %v1997_v49 = vmul.f32 %v4452_v13, %v5794_v53  ;;  %4461 = vrsqrt.f32 %v1874_v15  ;;  %v1816_v11 = vmul.f32 0.125, %v1672_v28  ;;  %v1663_v14 = vpop.xlane.xlu0 %1662 }
 0x2b1   :  { %v1813_v12 = vmul.f32 0.125, %v1663_v14  ;;  %v2195_v17 = vpack.c.bf16 %v2136_v1, %v2135_v58  ;;  %v2071_v30 = vmul.f32 %v6111_v38, %v2000_v7  ;;  %4463 = vrsqrt.f32 %v1879_v25 }
 0x2b2   :  { %v4454_v27 = vpop.eup %4453  ;;  %v1880_v37 = vadd.f32 1e-05, %v1816_v11  ;;  %v2068_v53 = vmul.f32 %v6111_v38, %v1997_v49 }
 0x2b3   :  { %v4456_v4 = vpop.eup %4455  ;;  %v1998_v0 = vmul.f32 %v4454_v27, %v5798_v23  ;;  %v1877_v47 = vadd.f32 1e-05, %v1813_v12  ;;  %4232 = vmatprep.mubr.msk.bf16.mxu1 %vm1215_vm2, %v2195_v17  ;;  %v1666_v42 = vpop.xlane.xlu1 %1665  ;;  %v2142_v46 = vadd.f32 %v6121_v52, %v2071_v30 }
 0x2b4   :  { %4465 = vrsqrt.f32 %v1880_v37  ;;  %v1814_v24 = vmul.f32 0.125, %v1666_v42  ;;  %v1404_v21 = vpop.xlane.xlu0 %1403  ;;  %4233 = vmatmul.mubr.msk.bf16.gmra.mrb[8].mxu1 %vm1215_vm2, %v2196_v61  ;;  %v2003_v23 = vmul.f32 %v4456_v4, %v5806_v62  ;;  %v2139_v2 = vadd.f32 %v6121_v52, %v2068_v53 }
 0x2b5   :  { %4467 = vrsqrt.f32 %v1877_v47  ;;  %v1471_v51 = vmul.f32 0.125, %v1404_v21  ;;  %v2069_v39 = vmul.f32 %v6111_v38, %v1998_v0  ;;  %v2141_v62 = vadd.f32 %v6121_v52, %v2070_v34 }
 0x2b6   :  { %v4458_v50 = vpop.eup %4457  ;;  %v1878_v54 = vadd.f32 1e-05, %v1814_v24  ;;  %v2074_v14 = vmul.f32 %v6111_v38, %v2003_v23 }
 0x2b7   :  { %v4460_v29 = vpop.eup %4459  ;;  %v2004_v26 = vmul.f32 %v4458_v50, %v5810_v31  ;;  %v6170_v15 = vsub.f32 %v5865_v19, %v1471_v51  ;;  %v1407_v33 = vpop.xlane.xlu1 %1406  ;;  %v2140_v13 = vadd.f32 %v6121_v52, %v2069_v39  ;;  %v2198_v11 = vpack.c.bf16 %v2142_v46, %v2141_v62 }
 0x2b8   :  { %v2001_v7 = vmul.f32 %v4460_v29, %v5818_v10  ;;  %4469 = vrsqrt.f32 %v1878_v54  ;;  %v1472_v25 = vmul.f32 0.125, %v1407_v33  ;;  %v1675_v28 = vpop.xlane.xlu0 %1674  ;;  %v2145_v34 = vadd.f32 %v6121_v52, %v2074_v14 }
 0x2b9   :  { %v1817_v58 = vmul.f32 0.125, %v1675_v28  ;;  %v2197_v1 = vpack.c.bf16 %v2140_v13, %v2139_v2  ;;  %v1599_v31 = vmul.f32 %v6170_v15, %v6170_v15  ;;  %v2075_v12 = vmul.f32 %v6111_v38, %v2004_v26  ;;  %v7682_v26 = vld [vmem:[#allocation65_spill] sm:$0xff]  ;;  %v7683_v2 = vld [vmem:[#allocation66_spill] sm:$0xff] }
 0x2ba   :  { %v4462_v56 = vpop.eup %4461  ;;  %v6179_v49 = vsub.f32 %v5871_v60, %v1472_v25  ;;  %v2072_v61 = vmul.f32 %v6111_v38, %v2001_v7 }
 0x2bb   :  { %v2002_v10 = vmul.f32 %v4462_v56, %v5822_v57  ;;  %v1881_v17 = vadd.f32 1e-05, %v1817_v58  ;;  %4236 = vmatprep.mubr.msk.bf16.mxu1 %vm1215_vm2, %v2197_v1  ;;  %v1678_v27 = vpop.xlane.xlu1 %1677  ;;  %v1787_v37 = vsel %vm1215_vm2, %v1599_v31, 0.0  ;;  %v4464_v47 = vpop.eup %4463  ;;  %v2146_v51 = vadd.f32 %v6121_v52, %v2075_v12  ;;  %v7684_v56 = vld [vmem:[#allocation67_spill] sm:$0xff] }
 0x2bc   :  { %v1818_v30 = vmul.f32 0.125, %v1678_v27  ;;  %1788 = vadd.xlane.f32.xlu0 %v1787_v37  ;;  %v1681_v4 = vpop.xlane.xlu0 %1680  ;;  %4237 = vmatmul.mubr.msk.bf16.gmra.mrb[12].mxu1 %vm1215_vm2, %v2198_v11  ;;  %v1600_v0 = vmul.f32 %v6179_v49, %v6179_v49  ;;  %v2143_v46 = vadd.f32 %v6121_v52, %v2072_v61  ;;  %v2007_v33 = vmul.f32 %v4464_v47, %v7682_v26 }
 0x2bd   :  { %4471 = vrsqrt.f32 %v1881_v17  ;;  %v1819_v42 = vmul.f32 0.125, %v1681_v4  ;;  %v2073_v57 = vmul.f32 %v6111_v38, %v2002_v10 }
 0x2be   :  { %v4466_v53 = vpop.eup %4465  ;;  %v1882_v24 = vadd.f32 1e-05, %v1818_v30  ;;  %v1790_v21 = vsel %vm1215_vm2, %v1600_v0, 0.0  ;;  %v2078_v37 = vmul.f32 %v6111_v38, %v2007_v33 }
 0x2bf   :  { %v4468_v39 = vpop.eup %4467  ;;  %v2008_v50 = vmul.f32 %v4466_v53, %v5834_v32  ;;  %v1883_v23 = vadd.f32 1e-05, %v1819_v42  ;;  %1791 = vadd.xlane.f32.xlu1 %v1790_v21  ;;  %v1684_v54 = vpop.xlane.xlu1 %1683  ;;  %v2144_v29 = vadd.f32 %v6121_v52, %v2073_v57  ;;  %v2200_v32 = vpack.c.bf16 %v2146_v51, %v2145_v34 }
 0x2c0   :  { %v2005_v13 = vmul.f32 %v4468_v39, %v7683_v2  ;;  %4473 = vrsqrt.f32 %v1882_v24  ;;  %v1820_v7 = vmul.f32 0.125, %v1684_v54  ;;  %v1687_v25 = vpop.xlane.xlu0 %1686  ;;  %v2149_v39 = vadd.f32 %v6121_v52, %v2078_v37 }
 0x2c1   :  { %4475 = vrsqrt.f32 %v1883_v23  ;;  %v1821_v28 = vmul.f32 0.125, %v1687_v25  ;;  %v2199_v62 = vpack.c.bf16 %v2144_v29, %v2143_v46  ;;  %v2079_v31 = vmul.f32 %v6111_v38, %v2008_v50 }
 0x2c2   :  { %v4470_v58 = vpop.eup %4469  ;;  %v1884_v1 = vadd.f32 1e-05, %v1820_v7  ;;  %v2076_v10 = vmul.f32 %v6111_v38, %v2005_v13 }
 0x2c3   :  { %v2006_v11 = vmul.f32 %v4470_v58, %v7684_v56  ;;  %v1885_v14 = vadd.f32 1e-05, %v1821_v28  ;;  %4240 = vmatprep.mubr.msk.bf16.mxu1 %vm1215_vm2, %v2199_v62  ;;  %v1690_v12 = vpop.xlane.xlu1 %1689  ;;  %v2150_v0 = vadd.f32 %v6121_v52, %v2079_v31 }
 0x2c4   :  { %4477 = vrsqrt.f32 %v1884_v1  ;;  %v1822_v17 = vmul.f32 0.125, %v1690_v12  ;;  %v1693_v27 = vpop.xlane.xlu0 %1692  ;;  %4241 = vmatmul.mubr.msk.bf16.gmra.mrb[16].mxu1 %vm1215_vm2, %v2200_v32  ;;  %v2147_v53 = vadd.f32 %v6121_v52, %v2076_v10 }
 0x2c5   :  { %4479 = vrsqrt.f32 %v1885_v14  ;;  %v1823_v61 = vmul.f32 0.125, %v1693_v27  ;;  %v2077_v30 = vmul.f32 %v6111_v38, %v2006_v11  ;;  %v2202_v29 = vpack.c.bf16 %v2150_v0, %v2149_v39 }
 0x2c6   :  { %v1886_v4 = vadd.f32 1e-05, %v1822_v17 }
 0x2c7   :  { %v4472_v47 = vpop.eup %4471  ;;  %v1887_v42 = vadd.f32 1e-05, %v1823_v61  ;;  %v1696_v57 = vpop.xlane.xlu1 %1695  ;;  %v2148_v24 = vadd.f32 %v6121_v52, %v2077_v30 }
 0x2c8   :  { %v2009_v21 = vmul.f32 %v4472_v47, %v5878_v6  ;;  %4481 = vrsqrt.f32 %v1886_v4  ;;  %v1824_v34 = vmul.f32 0.125, %v1696_v57  ;;  %v1699_v51 = vpop.xlane.xlu0 %1698 }
 0x2c9   :  { %4483 = vrsqrt.f32 %v1887_v42  ;;  %v1825_v50 = vmul.f32 0.125, %v1699_v51  ;;  %v2201_v23 = vpack.c.bf16 %v2148_v24, %v2147_v53 }
 0x2ca   :  { %v4474_v54 = vpop.eup %4473  ;;  %v1888_v46 = vadd.f32 1e-05, %v1824_v34  ;;  %v2080_v6 = vmul.f32 %v6111_v38, %v2009_v21 }
 0x2cb   :  { %v4476_v26 = vpop.eup %4475  ;;  %v2010_v33 = vmul.f32 %v4474_v54, %v5883_v59  ;;  %v1889_v2 = vadd.f32 1e-05, %v1825_v50  ;;  %4244 = vmatprep.mubr.msk.bf16.mxu1 %vm1215_vm2, %v2201_v23  ;;  %v1702_v13 = vpop.xlane.xlu1 %1701 }
 0x2cc   :  { %v2011_v7 = vmul.f32 %v4476_v26, %v5875_v48  ;;  %4485 = vrsqrt.f32 %v1888_v46  ;;  %v1826_v25 = vmul.f32 0.125, %v1702_v13  ;;  %v1705_v28 = vpop.xlane.xlu0 %1704  ;;  %4245 = vmatmul.mubr.msk.bf16.gmra.mrb[20].mxu1 %vm1215_vm2, %v2202_v29  ;;  %v2151_v48 = vadd.f32 %v6121_v52, %v2080_v6 }
 0x2cd   :  { %4487 = vrsqrt.f32 %v1889_v2  ;;  %v1827_v62 = vmul.f32 0.125, %v1705_v28  ;;  %v2081_v58 = vmul.f32 %v6111_v38, %v2010_v33 }
 0x2ce   :  { %v4478_v1 = vpop.eup %4477  ;;  %v1890_v32 = vadd.f32 1e-05, %v1826_v25  ;;  %v2082_v59 = vmul.f32 %v6111_v38, %v2011_v7 }
 0x2cf   :  { %v4480_v31 = vpop.eup %4479  ;;  %v2012_v56 = vmul.f32 %v4478_v1, %v5888_v55  ;;  %v1891_v11 = vadd.f32 1e-05, %v1827_v62  ;;  %v1708_v14 = vpop.xlane.xlu1 %1707  ;;  %v2152_v12 = vadd.f32 %v6121_v52, %v2081_v58 }
 0x2d0   :  { %v2013_v10 = vmul.f32 %v4480_v31, %v5904_v9  ;;  %4489 = vrsqrt.f32 %v1890_v32  ;;  %v1828_v17 = vmul.f32 0.125, %v1708_v14  ;;  %v1711_v27 = vpop.xlane.xlu0 %1710  ;;  %v2153_v55 = vadd.f32 %v6121_v52, %v2082_v59 }
 0x2d1   :  { %4491 = vrsqrt.f32 %v1891_v11  ;;  %v1829_v37 = vmul.f32 0.125, %v1711_v27  ;;  %v2203_v61 = vpack.c.bf16 %v2152_v12, %v2151_v48  ;;  %v2083_v30 = vmul.f32 %v6111_v38, %v2012_v56 }
 0x2d2   :  { %v4482_v4 = vpop.eup %4481  ;;  %v1892_v0 = vadd.f32 1e-05, %v1828_v17  ;;  %v2084_v24 = vmul.f32 %v6111_v38, %v2013_v10 }
 0x2d3   :  { %v4484_v47 = vpop.eup %4483  ;;  %v2014_v42 = vmul.f32 %v4482_v4, %v5908_v8  ;;  %v1893_v57 = vadd.f32 1e-05, %v1829_v37  ;;  %4248 = vmatprep.mubr.msk.bf16.mxu1 %vm1215_vm2, %v2203_v61  ;;  %v1714_v53 = vpop.xlane.xlu1 %1713  ;;  %v2154_v9 = vadd.f32 %v6121_v52, %v2083_v30  ;;  %v3230_v61 = vld [vmem:[%s7481_s10 + $0x8] sm:$0xff] }
 0x2d4   :  { %v2015_v21 = vmul.f32 %v4484_v47, %v5901_v36  ;;  %4493 = vrsqrt.f32 %v1892_v0  ;;  %v1830_v34 = vmul.f32 0.125, %v1714_v53  ;;  %v1717_v51 = vpop.xlane.xlu0 %1716  ;;  %v2155_v36 = vadd.f32 %v6121_v52, %v2084_v24 }
 0x2d5   :  { %4495 = vrsqrt.f32 %v1893_v57  ;;  %v1831_v39 = vmul.f32 0.125, %v1717_v51  ;;  %v2204_v50 = vpack.c.bf16 %v2154_v9, %v2153_v55  ;;  %v2085_v23 = vmul.f32 %v6111_v38, %v2014_v42 }
 0x2d6   :  { %v4486_v54 = vpop.eup %4485  ;;  %v1894_v8 = vadd.f32 1e-05, %v1830_v34  ;;  %v2086_v46 = vmul.f32 %v6111_v38, %v2015_v21 }
 0x2d7   :  { %v4488_v29 = vpop.eup %4487  ;;  %v2016_v26 = vmul.f32 %v4486_v54, %v5913_v18  ;;  %v1895_v33 = vadd.f32 1e-05, %v1831_v39  ;;  %4249 = vmatmul.mubr.msk.bf16.gmra.mrb[24].mxu1 %vm1215_vm2, %v2204_v50  ;;  %v1720_v2 = vpop.xlane.xlu1 %1719  ;;  %v2156_v13 = vadd.f32 %v6121_v52, %v2085_v23 }
 0x2d8   :  { %v2017_v6 = vmul.f32 %v4488_v29, %v5928_v22  ;;  %4497 = vrsqrt.f32 %v1894_v8  ;;  %v1832_v7 = vmul.f32 0.125, %v1720_v2  ;;  %v1723_v25 = vpop.xlane.xlu0 %1722  ;;  %v2157_v32 = vadd.f32 %v6121_v52, %v2086_v46 }
 0x2d9   :  { %4499 = vrsqrt.f32 %v1895_v33  ;;  %v1833_v28 = vmul.f32 0.125, %v1723_v25  ;;  %v2205_v62 = vpack.c.bf16 %v2156_v13, %v2155_v36  ;;  %v2087_v58 = vmul.f32 %v6111_v38, %v2016_v26 }
 0x2da   :  { %v4490_v1 = vpop.eup %4489  ;;  %v1896_v18 = vadd.f32 1e-05, %v1832_v7  ;;  %v2088_v14 = vmul.f32 %v6111_v38, %v2017_v6 }
 0x2db   :  { %v4492_v59 = vpop.eup %4491  ;;  %v2018_v31 = vmul.f32 %v4490_v1, %v5932_v45  ;;  %v1897_v56 = vadd.f32 1e-05, %v1833_v28  ;;  %4252 = vmatprep.mubr.msk.bf16.mxu1 %vm1215_vm2, %v2205_v62  ;;  %v1726_v11 = vpop.xlane.xlu1 %1725  ;;  %v2158_v22 = vadd.f32 %v6121_v52, %v2087_v58  ;;  %v3229_v45 = vld [vmem:[%s7481_s10] sm:$0xff] }
 0x2dc   :  { %v2019_v48 = vmul.f32 %v4492_v59, %v5925_v3  ;;  %4501 = vrsqrt.f32 %v1896_v18  ;;  %v1834_v12 = vmul.f32 0.125, %v1726_v11  ;;  %v1729_v10 = vpop.xlane.xlu0 %1728  ;;  %v3233_v0 = vpack.c.bf16 %v3230_v61, %v3229_v45 }
 0x2dd   :  { %4503 = vrsqrt.f32 %v1897_v56  ;;  %v1835_v17 = vmul.f32 0.125, %v1729_v10  ;;  %v2206_v27 = vpack.c.bf16 %v2158_v22, %v2157_v32  ;;  %v2089_v37 = vmul.f32 %v6111_v38, %v2018_v31 }
 0x2de   :  { %v4494_v30 = vpop.eup %4493  ;;  %v1898_v4 = vadd.f32 1e-05, %v1834_v12  ;;  %v2090_v3 = vmul.f32 %v6111_v38, %v2019_v48  ;;  %v2159_v53 = vadd.f32 %v6121_v52, %v2088_v14  ;;  %4288 = vmatprep.subr.bf16.mxu1 %v3233_v0 }
 0x2df   :  { %v4496_v55 = vpop.eup %4495  ;;  %v2020_v47 = vmul.f32 %v4494_v30, %v5937_v41  ;;  %v1899_v42 = vadd.f32 1e-05, %v1835_v17  ;;  %4253 = vmatmul.mubr.msk.bf16.gmra.mrb[28].mxu1 %vm1215_vm2, %v2206_v27  ;;  %v1732_v57 = vpop.xlane.xlu1 %1731  ;;  %v2160_v9 = vadd.f32 %v6121_v52, %v2089_v37 }
 0x2e0   :  { %v2021_v24 = vmul.f32 %v4496_v55, %v5952_v16  ;;  %4505 = vrsqrt.f32 %v1898_v4  ;;  %v1836_v21 = vmul.f32 0.125, %v1732_v57  ;;  %v1735_v34 = vpop.xlane.xlu0 %1734  ;;  %4289 = vmatpush3.bf16.msra.mxu1 %v3233_v0  ;;  %v2161_v54 = vadd.f32 %v6121_v52, %v2090_v3 }
 0x2e1   :  { %4507 = vrsqrt.f32 %v1899_v42  ;;  %v1837_v51 = vmul.f32 0.125, %v1735_v34  ;;  %v2207_v39 = vpack.c.bf16 %v2160_v9, %v2159_v53  ;;  %v2091_v50 = vmul.f32 %v6111_v38, %v2020_v47 }
 0x2e2   :  { %v4498_v41 = vpop.eup %4497  ;;  %v1900_v23 = vadd.f32 1e-05, %v1836_v21  ;;  %v2092_v33 = vmul.f32 %v6111_v38, %v2021_v24 }
 0x2e3   :  { %v4500_v8 = vpop.eup %4499  ;;  %v2022_v46 = vmul.f32 %v4498_v41, %v5956_v43  ;;  %v1901_v29 = vadd.f32 1e-05, %v1837_v51  ;;  %4256 = vmatprep.mubr.msk.bf16.mxu1 %vm1215_vm2, %v2207_v39  ;;  %v1738_v16 = vpop.xlane.xlu1 %1737  ;;  %v2162_v26 = vadd.f32 %v6121_v52, %v2091_v50  ;;  %v7685_v51 = vld [vmem:[#allocation69_spill] sm:$0xff] }
 0x2e4   :  { %v2023_v2 = vmul.f32 %v4500_v8, %v5949_v44  ;;  %4509 = vrsqrt.f32 %v1900_v23  ;;  %v1838_v36 = vmul.f32 0.125, %v1738_v16  ;;  %v1741_v13 = vpop.xlane.xlu0 %1740  ;;  %v2163_v44 = vadd.f32 %v6121_v52, %v2092_v33 }
 0x2e5   :  { %4511 = vrsqrt.f32 %v1901_v29  ;;  %v1839_v6 = vmul.f32 0.125, %v1741_v13  ;;  %v2208_v7 = vpack.c.bf16 %v2162_v26, %v2161_v54  ;;  %v2093_v25 = vmul.f32 %v6111_v38, %v2022_v46  ;;  %v7686_v26 = vld [vmem:[#allocation70_spill] sm:$0xff] }
 0x2e6   :  { %v4502_v28 = vpop.eup %4501  ;;  %v1902_v43 = vadd.f32 1e-05, %v1838_v36  ;;  %v2094_v62 = vmul.f32 %v6111_v38, %v2023_v2 }
 0x2e7   :  { %v4504_v58 = vpop.eup %4503  ;;  %v2024_v1 = vmul.f32 %v4502_v28, %v5961_v5  ;;  %v1903_v18 = vadd.f32 1e-05, %v1839_v6  ;;  %4257 = vmatmul.mubr.msk.bf16.gmra.mrb[32].mxu1 %vm1215_vm2, %v2208_v7  ;;  %v1744_v32 = vpop.xlane.xlu1 %1743  ;;  %v2164_v59 = vadd.f32 %v6121_v52, %v2093_v25  ;;  %v7687_v7 = vld [vmem:[#allocation68_spill] sm:$0xff] }
 0x2e8   :  { %v2025_v31 = vmul.f32 %v4504_v58, %v5976_v40  ;;  %4513 = vrsqrt.f32 %v1902_v43  ;;  %v1840_v56 = vmul.f32 0.125, %v1744_v32  ;;  %v1747_v11 = vpop.xlane.xlu0 %1746  ;;  %v2165_v10 = vadd.f32 %v6121_v52, %v2094_v62 }
 0x2e9   :  { %4515 = vrsqrt.f32 %v1903_v18  ;;  %v1841_v22 = vmul.f32 0.125, %v1747_v11  ;;  %v2209_v14 = vpack.c.bf16 %v2164_v59, %v2163_v44  ;;  %v2095_v48 = vmul.f32 %v6111_v38, %v2024_v1 }
 0x2ea   :  { %v4506_v12 = vpop.eup %4505  ;;  %v1904_v5 = vadd.f32 1e-05, %v1840_v56  ;;  %v2096_v61 = vmul.f32 %v6111_v38, %v2025_v31  ;;  %v7688_v31 = vld [vmem:[#allocation71_spill] sm:$0xff] }
 0x2eb   :  { %v4508_v17 = vpop.eup %4507  ;;  %v2026_v27 = vmul.f32 %v4506_v12, %v5980_v63  ;;  %v1905_v37 = vadd.f32 1e-05, %v1841_v22  ;;  %4260 = vmatprep.mubr.msk.bf16.mxu1 %vm1215_vm2, %v2209_v14  ;;  %v1750_v45 = vpop.xlane.xlu1 %1749  ;;  %v2166_v40 = vadd.f32 %v6121_v52, %v2095_v48  ;;  %v7689_v12 = vld [vmem:[#allocation73_spill] sm:$0xff] }
 0x2ec   :  { %v2027_v30 = vmul.f32 %v4508_v17, %v5973_v20  ;;  %4517 = vrsqrt.f32 %v1904_v5  ;;  %v1842_v4 = vmul.f32 0.125, %v1750_v45  ;;  %v1753_v3 = vpop.xlane.xlu0 %1752  ;;  %v2167_v20 = vadd.f32 %v6121_v52, %v2096_v61 }
 0x2ed   :  { %4519 = vrsqrt.f32 %v1905_v37  ;;  %v1843_v0 = vmul.f32 0.125, %v1753_v3  ;;  %v2210_v55 = vpack.c.bf16 %v2166_v40, %v2165_v10  ;;  %v2097_v47 = vmul.f32 %v6111_v38, %v2026_v27  ;;  %v7690_v3 = vld [vmem:[#allocation74_spill] sm:$0xff] }
 0x2ee   :  { %v4510_v42 = vpop.eup %4509  ;;  %v1906_v63 = vadd.f32 1e-05, %v1842_v4  ;;  %v2098_v57 = vmul.f32 %v6111_v38, %v2027_v30 }
 0x2ef   :  { %v4512_v53 = vpop.eup %4511  ;;  %v2028_v9 = vmul.f32 %v4510_v42, %v5985_v35  ;;  %v1907_v24 = vadd.f32 1e-05, %v1843_v0  ;;  %4261 = vmatmul.mubr.msk.bf16.gmra.mrb[36].mxu1 %vm1215_vm2, %v2210_v55  ;;  %v1756_v21 = vpop.xlane.xlu1 %1755  ;;  %v2168_v34 = vadd.f32 %v6121_v52, %v2097_v47 }
 0x2f0   :  { %v2029_v39 = vmul.f32 %v4512_v53, %v7685_v51  ;;  %4521 = vrsqrt.f32 %v1906_v63  ;;  %v1844_v50 = vmul.f32 0.125, %v1756_v21  ;;  %v1759_v41 = vpop.xlane.xlu0 %1758  ;;  %v2169_v29 = vadd.f32 %v6121_v52, %v2098_v57  ;;  %v7691_v57 = vld [vmem:[#allocation72_spill] sm:$0xff] }
 0x2f1   :  { %4523 = vrsqrt.f32 %v1907_v24  ;;  %v1845_v23 = vmul.f32 0.125, %v1759_v41  ;;  %v2211_v54 = vpack.c.bf16 %v2168_v34, %v2167_v20  ;;  %v2099_v8 = vmul.f32 %v6111_v38, %v2028_v9 }
 0x2f2   :  { %v4514_v46 = vpop.eup %4513  ;;  %v1908_v35 = vadd.f32 1e-05, %v1844_v50  ;;  %v2100_v6 = vmul.f32 %v6111_v38, %v2029_v39 }
 0x2f3   :  { %v4516_v16 = vpop.eup %4515  ;;  %v2030_v33 = vmul.f32 %v4514_v46, %v7686_v26  ;;  %v1909_v2 = vadd.f32 1e-05, %v1845_v23  ;;  %4264 = vmatprep.mubr.msk.bf16.mxu1 %vm1215_vm2, %v2211_v54  ;;  %v1762_v36 = vpop.xlane.xlu1 %1761  ;;  %v2170_v13 = vadd.f32 %v6121_v52, %v2099_v8  ;;  %v7692_v23 = vld [vmem:[#allocation75_spill] sm:$0xff] }
 0x2f4   :  { %v2031_v25 = vmul.f32 %v4516_v16, %v7687_v7  ;;  %4525 = vrsqrt.f32 %v1908_v35  ;;  %v1846_v28 = vmul.f32 0.125, %v1762_v36  ;;  %v1765_v43 = vpop.xlane.xlu0 %1764  ;;  %v2171_v14 = vadd.f32 %v6121_v52, %v2100_v6  ;;  %v7693_v16 = vld [vmem:[#allocation77_spill] sm:$0xff] }
 0x2f5   :  { %4527 = vrsqrt.f32 %v1909_v2  ;;  %v1847_v62 = vmul.f32 0.125, %v1765_v43  ;;  %v2212_v58 = vpack.c.bf16 %v2170_v13, %v2169_v29  ;;  %v2101_v1 = vmul.f32 %v6111_v38, %v2030_v33 }
 0x2f6   :  { %v4518_v18 = vpop.eup %4517  ;;  %v1910_v32 = vadd.f32 1e-05, %v1846_v28  ;;  %v2102_v44 = vmul.f32 %v6111_v38, %v2031_v25 }
 0x2f7   :  { %v4520_v59 = vpop.eup %4519  ;;  %v2032_v56 = vmul.f32 %v4518_v18, %v7688_v31  ;;  %v1911_v11 = vadd.f32 1e-05, %v1847_v62  ;;  %4265 = vmatmul.mubr.msk.bf16.gmra.mrb[40].mxu1 %vm1215_vm2, %v2212_v58  ;;  %v1768_v22 = vpop.xlane.xlu1 %1767  ;;  %v2172_v48 = vadd.f32 %v6121_v52, %v2101_v1  ;;  %v7694_v62 = vld [vmem:[#allocation78_spill] sm:$0xff] }
 0x2f8   :  { %v2033_v5 = vmul.f32 %v4520_v59, %v7689_v12  ;;  %4529 = vrsqrt.f32 %v1910_v32  ;;  %v1848_v10 = vmul.f32 0.125, %v1768_v22  ;;  %v1771_v17 = vpop.xlane.xlu0 %1770  ;;  %v2173_v30 = vadd.f32 %v6121_v52, %v2102_v44  ;;  %v7695_v59 = vld [vmem:[#allocation76_spill] sm:$0xff] }
 0x2f9   :  { %4531 = vrsqrt.f32 %v1911_v11  ;;  %v1849_v27 = vmul.f32 0.125, %v1771_v17  ;;  %v2213_v37 = vpack.c.bf16 %v2172_v48, %v2171_v14  ;;  %v2103_v45 = vmul.f32 %v6111_v38, %v2032_v56 }
 0x2fa   :  { %v4522_v40 = vpop.eup %4521  ;;  %v1912_v61 = vadd.f32 1e-05, %v1848_v10  ;;  %v2104_v63 = vmul.f32 %v6111_v38, %v2033_v5  ;;  %v7696_v5 = vld [vmem:[#allocation79_spill] sm:$0xff] }
 0x2fb   :  { %v4524_v4 = vpop.eup %4523  ;;  %v2034_v0 = vmul.f32 %v4522_v40, %v7690_v3  ;;  %v1913_v55 = vadd.f32 1e-05, %v1849_v27  ;;  %4268 = vmatprep.mubr.msk.bf16.mxu1 %vm1215_vm2, %v2213_v37  ;;  %v1774_v47 = vpop.xlane.xlu1 %1773  ;;  %v2174_v42 = vadd.f32 %v6121_v52, %v2103_v45  ;;  %v7697_v45 = vld [vmem:[#allocation81_spill] sm:$0xff] }
 0x2fc   :  { %v2035_v53 = vmul.f32 %v4524_v4, %v7691_v57  ;;  %4533 = vrsqrt.f32 %v1912_v61  ;;  %v1850_v9 = vmul.f32 0.125, %v1774_v47  ;;  %v1777_v24 = vpop.xlane.xlu0 %1776  ;;  %v2175_v35 = vadd.f32 %v6121_v52, %v2104_v63  ;;  %v4680_v63 = vld [vmem:[%s7479_s6] ss:$0 sm:$0xff] }
 0x2fd   :  { %4535 = vrsqrt.f32 %v1913_v55  ;;  %v1851_v21 = vmul.f32 0.125, %v1777_v24  ;;  %v2214_v20 = vpack.c.bf16 %v2174_v42, %v2173_v30  ;;  %v2105_v34 = vmul.f32 %v6111_v38, %v2034_v0  ;;  %v7698_v0 = vld [vmem:[#allocation82_spill] sm:$0xff] }
 0x2fe   :  { %v4526_v51 = vpop.eup %4525  ;;  %v1914_v39 = vadd.f32 1e-05, %v1850_v9  ;;  %v2106_v50 = vmul.f32 %v6111_v38, %v2035_v53  ;;  %v7699_v53 = vld [vmem:[#allocation80_spill] sm:$0xff] }
 0x2ff   :  { %v4528_v41 = vpop.eup %4527  ;;  %v2036_v54 = vmul.f32 %v4526_v51, %v7692_v23  ;;  %v1915_v8 = vadd.f32 1e-05, %v1851_v21  ;;  %4269 = vmatmul.mubr.msk.bf16.gmra.mrb[44].mxu1 %vm1215_vm2, %v2214_v20  ;;  %v1780_v46 = vpop.xlane.xlu1 %1779  ;;  %v2176_v29 = vadd.f32 %v6121_v52, %v2105_v34  ;;  %v7700_v34 = vld [vmem:[#allocation83_spill] sm:$0xff]  ;;  %v7701_v23 = vld [vmem:[#allocation84_spill] sm:$0xff] }
 0x300   :  { %v2037_v26 = vmul.f32 %v4528_v41, %v7693_v16  ;;  %4537 = vrsqrt.f32 %v1914_v39  ;;  %v1852_v33 = vmul.f32 0.125, %v1780_v46  ;;  %v1783_v2 = vpop.xlane.xlu0 %1782  ;;  %v2177_v28 = vadd.f32 %v6121_v52, %v2106_v50 }
 0x301   :  { %4539 = vrsqrt.f32 %v1915_v8  ;;  %v1853_v36 = vmul.f32 0.125, %v1783_v2  ;;  %v2215_v13 = vpack.c.bf16 %v2176_v29, %v2175_v35  ;;  %v2107_v6 = vmul.f32 %v6111_v38, %v2036_v54  ;;  %v7702_v29 = vld [vmem:[#allocation85_spill] sm:$0xff] }
 0x302   :  { %v4530_v7 = vpop.eup %4529  ;;  %v1916_v25 = vadd.f32 1e-05, %v1852_v33  ;;  %v2108_v44 = vmul.f32 %v6111_v38, %v2037_v26  ;;  %v4681_v26 = vld [vmem:[%s7480_s7] ss:$0 sm:$0xff] }
 0x303   :  { %v4532_v43 = vpop.eup %4531  ;;  %v2038_v58 = vmul.f32 %v4530_v7, %v7694_v62  ;;  %v1917_v1 = vadd.f32 1e-05, %v1853_v36  ;;  %4272 = vmatprep.mubr.msk.bf16.mxu1 %vm1215_vm2, %v2215_v13  ;;  %v1786_v18 = vpop.xlane.xlu1 %1785  ;;  %v2178_v32 = vadd.f32 %v6121_v52, %v2107_v6 }
 0x304   :  { %v2039_v31 = vmul.f32 %v4532_v43, %v7695_v59  ;;  %4541 = vrsqrt.f32 %v1916_v25  ;;  %v1854_v56 = vmul.f32 0.125, %v1786_v18  ;;  %v2179_v17 = vadd.f32 %v6121_v52, %v2108_v44  ;;  %v3232_v43 = vld [vmem:[%s7481_s10 + $0x18] sm:$0xff] }
 0x305   :  { %4543 = vrsqrt.f32 %v1917_v1  ;;  %v2216_v11 = vpack.c.bf16 %v2178_v32, %v2177_v28  ;;  %v2109_v22 = vmul.f32 %v6111_v38, %v2038_v58  ;;  %v3231_v28 = vld [vmem:[%s7481_s10 + $0x10] sm:$0xff] }
 0x306   :  { %v4534_v14 = vpop.eup %4533  ;;  %v1918_v48 = vadd.f32 1e-05, %v1854_v56  ;;  %v2110_v37 = vmul.f32 %v6111_v38, %v2039_v31  ;;  %v3234_v62 = vpack.c.bf16 %v3232_v43, %v3231_v28 }
 0x307   :  { %v4536_v12 = vpop.eup %4535  ;;  %v2040_v10 = vmul.f32 %v4534_v14, %v7696_v5  ;;  %4273 = vmatmul.mubr.msk.bf16.gmra.mrb[48].mxu1 %vm1215_vm2, %v2216_v11  ;;  %v2180_v27 = vadd.f32 %v6121_v52, %v2109_v22 }
 0x308   :  { %v2041_v40 = vmul.f32 %v4536_v12, %v7697_v45  ;;  %4545 = vrsqrt.f32 %v1918_v48  ;;  %v2181_v47 = vadd.f32 %v6121_v52, %v2110_v37  ;;  %4290 = vmatprep.subr.bf16.mxu1 %v3234_v62 }
 0x309   :  { %v2217_v61 = vpack.c.bf16 %v2180_v27, %v2179_v17  ;;  %v2111_v30 = vmul.f32 %v6111_v38, %v2040_v10  ;;  %4291 = vmatpush3.bf16.msra.mxu1 %v3234_v62  ;;  %v6359_v17 = vld [vmem:[%s7482_s9] ss:$0 sm:$0xff] }
 0x30a   :  { %v4538_v4 = vpop.eup %4537  ;;  %v2112_v57 = vmul.f32 %v4680_v63, %v2041_v40 }
 0x30b   :  { %v4540_v3 = vpop.eup %4539  ;;  %v2042_v55 = vmul.f32 %v4538_v4, %v7698_v0  ;;  %4276 = vmatprep.mubr.msk.bf16.mxu1 %vm1215_vm2, %v2217_v61  ;;  %v2182_v42 = vadd.f32 %v6121_v52, %v2111_v30 }
 0x30c   :  { %v2043_v9 = vmul.f32 %v4540_v3, %v7699_v53  ;;  %v2183_v39 = vadd.f32 %v6121_v52, %v2112_v57 }
 0x30d   :  { %v2218_v24 = vpack.c.bf16 %v2182_v42, %v2181_v47  ;;  %v2113_v21 = vmul.f32 %v4680_v63, %v2042_v55 }
 0x30e   :  { %v4542_v38 = vpop.eup %4541  ;;  %v2114_v41 = vmul.f32 %v4680_v63, %v2043_v9 }
 0x30f   :  { %v4544_v20 = vpop.eup %4543  ;;  %v2044_v51 = vmul.f32 %v4542_v38, %v7700_v34  ;;  %4277 = vmatmul.mubr.msk.bf16.gmra.mrb[52].mxu1 %vm1215_vm2, %v2218_v24  ;;  %v2184_v50 = vadd.f32 %v6121_v52, %v2113_v21 }
 0x310   :  { %v2045_v54 = vmul.f32 %v4544_v20, %v7701_v23  ;;  %v2185_v33 = vadd.f32 %v4681_v26, %v2114_v41 }
 0x311   :  { %v2219_v8 = vpack.c.bf16 %v2184_v50, %v2183_v39  ;;  %v2115_v46 = vmul.f32 %v4680_v63, %v2044_v51 }
 0x312   :  { %v4546_v35 = vpop.eup %4545  ;;  %v2116_v36 = vmul.f32 %v4680_v63, %v2045_v54 }
 0x313   :  { %v2046_v16 = vmul.f32 %v4546_v35, %v7702_v29  ;;  %4280 = vmatprep.mubr.msk.bf16.mxu1 %vm1215_vm2, %v2219_v8  ;;  %v2186_v2 = vadd.f32 %v4681_v26, %v2115_v46 }
 0x314   :  { %v2187_v52 = vadd.f32 %v4681_v26, %v2116_v36 }
 0x315   :  { %v2220_v13 = vpack.c.bf16 %v2186_v2, %v2185_v33  ;;  %v2117_v6 = vmul.f32 %v4680_v63, %v2046_v16 }
 0x317   :  { %4281 = vmatmul.mubr.msk.bf16.gmra.mrb[56].mxu1 %vm1215_vm2, %v2220_v13  ;;  %v2188_v7 = vadd.f32 %v4681_v26, %v2117_v6 }
 0x319   :  { %v2221_v25 = vpack.c.bf16 %v2188_v7, %v2187_v52 }
 0x31b   :  { %4284 = vmatprep.mubr.msk.bf16.mxu1 %vm1215_vm2, %v2221_v25 }
 0x349   :  { %v1789_v58 = vpop.xlane.xlu0 %1788 }
 0x34a   :  { %v1855_v1 = vmul.f32 0.125, %v1789_v58 }
 0x34c   :  { %v1919_v18 = vadd.f32 1e-05, %v1855_v1  ;;  %v1792_v32 = vpop.xlane.xlu1 %1791 }
 0x34d   :  { %v1856_v44 = vmul.f32 0.125, %v1792_v32 }
 0x34e   :  { %4547 = vrsqrt.f32 %v1919_v18 }
 0x34f   :  { %v1920_v59 = vadd.f32 1e-05, %v1856_v44 }
 0x351   :  { %4549 = vrsqrt.f32 %v1920_v59 }
 0x358   :  { %v4548_v31 = vpop.eup %4547 }
 0x359   :  { %v2047_v56 = vmul.f32 %v4548_v31, %v6170_v15 }
 0x35b   :  { %v4550_v11 = vpop.eup %4549  ;;  %v2118_v14 = vmul.f32 %v4680_v63, %v2047_v56 }
 0x35c   :  { %v2048_v22 = vmul.f32 %v4550_v11, %v6179_v49 }
 0x35d   :  { %v2189_v12 = vadd.f32 %v4681_v26, %v2118_v14 }
 0x35e   :  { %v2119_v48 = vmul.f32 %v4680_v63, %v2048_v22 }
 0x360   :  { %v2190_v5 = vadd.f32 %v4681_v26, %v2119_v48 }
 0x362   :  { %v2222_v10 = vpack.c.bf16 %v2190_v5, %v2189_v12 }
 0x364   :  { %4285 = vmatmul.mubr.msk.bf16.gmra.mrb[60].mxu1 %vm1215_vm2, %v2222_v10 }
 0x377   :  { %v4226_v27 = vpop.f32.mrb[0].mxu1 }
 0x378   :  { %v6362_v37 = vadd.f32 %v4226_v27, %v6359_v17  ;;  %v2366_v15 = vpop.f32.mrb[1].mxu1 }
 0x379   :  { %v6365_v45 = vadd.f32 %v6359_v17, %v2366_v15  ;;  %v4227_v49 = vpop.f32.mrb[2].mxu1 }
 0x37a   :  { %v2623_v40 = vmul.f32 %v6362_v37, %v6362_v37  ;;  %v6370_v61 = vadd.f32 %v4227_v49, %v6359_v17  ;;  %v2369_v30 = vpop.f32.mrb[3].mxu1 }
 0x37b   :  { %v2621_v4 = vmul.f32 %v6365_v45, %v6365_v45  ;;  %v6375_v3 = vadd.f32 %v6359_v17, %v2369_v30 }
 0x37c   :  { %v2687_v0 = vmul.f32 %v2623_v40, %v6362_v37  ;;  %v2624_v55 = vmul.f32 %v6370_v61, %v6370_v61 }
 0x37d   :  { %v2685_v47 = vmul.f32 %v2621_v4, %v6365_v45  ;;  %v2622_v42 = vmul.f32 %v6375_v3, %v6375_v3 }
 0x37e   :  { %v2751_v63 = vmul.f32 0.044715, %v2687_v0  ;;  %v2688_v57 = vmul.f32 %v2624_v55, %v6370_v61 }
 0x37f   :  { %v2749_v53 = vmul.f32 0.044715, %v2685_v47  ;;  %v2686_v9 = vmul.f32 %v2622_v42, %v6375_v3  ;;  %v4230_v24 = vpop.f32.mrb[4].mxu1 }
 0x380   :  { %v2815_v21 = vadd.f32 %v2751_v63, %v6362_v37  ;;  %v2752_v38 = vmul.f32 0.044715, %v2688_v57  ;;  %v6387_v20 = vadd.f32 %v4230_v24, %v6359_v17  ;;  %v2382_v34 = vpop.f32.mrb[5].mxu1 }
 0x381   :  { %v2813_v51 = vadd.f32 %v2749_v53, %v6365_v45  ;;  %v2750_v39 = vmul.f32 0.044715, %v2686_v9  ;;  %v6391_v50 = vadd.f32 %v6359_v17, %v2382_v34  ;;  %v4231_v41 = vpop.f32.mrb[6].mxu1 }
 0x382   :  { %v2879_v23 = vmul.f32 0.7978846, %v2815_v21  ;;  %v2816_v54 = vadd.f32 %v2752_v38, %v6370_v61  ;;  %v2627_v8 = vmul.f32 %v6387_v20, %v6387_v20  ;;  %v6397_v46 = vadd.f32 %v4231_v41, %v6359_v17  ;;  %v2385_v35 = vpop.f32.mrb[7].mxu1 }
 0x383   :  { %v2877_v29 = vmul.f32 0.7978846, %v2813_v51  ;;  %v2814_v16 = vadd.f32 %v2750_v39, %v6375_v3  ;;  %v2625_v26 = vmul.f32 %v6391_v50, %v6391_v50  ;;  %v6403_v33 = vadd.f32 %v6359_v17, %v2385_v35 }
 0x384   :  { %4551 = vtanh.f32 %v2879_v23  ;;  %v2880_v2 = vmul.f32 0.7978846, %v2816_v54  ;;  %v2691_v36 = vmul.f32 %v2627_v8, %v6387_v20  ;;  %v2628_v13 = vmul.f32 %v6397_v46, %v6397_v46 }
 0x385   :  { %4553 = vtanh.f32 %v2877_v29  ;;  %v2878_v6 = vmul.f32 0.7978846, %v2814_v16  ;;  %v2689_v52 = vmul.f32 %v2625_v26, %v6391_v50  ;;  %v2626_v7 = vmul.f32 %v6403_v33, %v6403_v33 }
 0x386   :  { %4555 = vtanh.f32 %v2880_v2  ;;  %v2755_v25 = vmul.f32 0.044715, %v2691_v36  ;;  %v2692_v28 = vmul.f32 %v2628_v13, %v6397_v46 }
 0x387   :  { %4557 = vtanh.f32 %v2878_v6  ;;  %v2753_v43 = vmul.f32 0.044715, %v2689_v52  ;;  %v2690_v62 = vmul.f32 %v2626_v7, %v6403_v33  ;;  %v4234_v58 = vpop.f32.mrb[8].mxu1 }
 0x388   :  { %v2819_v1 = vadd.f32 %v2755_v25, %v6387_v20  ;;  %v2756_v18 = vmul.f32 0.044715, %v2692_v28  ;;  %v6415_v32 = vadd.f32 %v4234_v58, %v6359_v17  ;;  %v2398_v44 = vpop.f32.mrb[9].mxu1 }
 0x389   :  { %v2817_v59 = vadd.f32 %v2753_v43, %v6391_v50  ;;  %v2754_v31 = vmul.f32 0.044715, %v2690_v62  ;;  %v6419_v56 = vadd.f32 %v6359_v17, %v2398_v44  ;;  %v4235_v11 = vpop.f32.mrb[10].mxu1 }
 0x38a   :  { %v2883_v22 = vmul.f32 0.7978846, %v2819_v1  ;;  %v2820_v14 = vadd.f32 %v2756_v18, %v6397_v46  ;;  %v2631_v48 = vmul.f32 %v6415_v32, %v6415_v32  ;;  %v6425_v12 = vadd.f32 %v4235_v11, %v6359_v17  ;;  %v2401_v5 = vpop.f32.mrb[11].mxu1 }
 0x38b   :  { %v2881_v10 = vmul.f32 0.7978846, %v2817_v59  ;;  %v2818_v27 = vadd.f32 %v2754_v31, %v6403_v33  ;;  %v2629_v15 = vmul.f32 %v6419_v56, %v6419_v56  ;;  %v6431_v49 = vadd.f32 %v6359_v17, %v2401_v5 }
 0x38c   :  { %4559 = vtanh.f32 %v2883_v22  ;;  %v2884_v40 = vmul.f32 0.7978846, %v2820_v14  ;;  %v2695_v30 = vmul.f32 %v2631_v48, %v6415_v32  ;;  %v2632_v4 = vmul.f32 %v6425_v12, %v6425_v12 }
 0x38d   :  { %4561 = vtanh.f32 %v2881_v10  ;;  %v2882_v0 = vmul.f32 0.7978846, %v2818_v27  ;;  %v2693_v55 = vmul.f32 %v2629_v15, %v6419_v56  ;;  %v2630_v47 = vmul.f32 %v6431_v49, %v6431_v49 }
 0x38e   :  { %v4552_v42 = vpop.eup %4551  ;;  %4563 = vtanh.f32 %v2884_v40  ;;  %v2759_v63 = vmul.f32 0.044715, %v2695_v30  ;;  %v2696_v57 = vmul.f32 %v2632_v4, %v6425_v12 }
 0x38f   :  { %v4554_v53 = vpop.eup %4553  ;;  %v3007_v9 = vadd.f32 1.0, %v4552_v42  ;;  %4565 = vtanh.f32 %v2882_v0  ;;  %v2757_v24 = vmul.f32 0.044715, %v2693_v55  ;;  %v2694_v21 = vmul.f32 %v2630_v47, %v6431_v49  ;;  %v4238_v38 = vpop.f32.mrb[12].mxu1 }
 0x390   :  { %v4556_v34 = vpop.eup %4555  ;;  %v3005_v51 = vadd.f32 1.0, %v4554_v53  ;;  %v2823_v39 = vadd.f32 %v2759_v63, %v6415_v32  ;;  %v2760_v41 = vmul.f32 0.044715, %v2696_v57  ;;  %v6443_v23 = vadd.f32 %v4238_v38, %v6359_v17  ;;  %v2414_v54 = vpop.f32.mrb[13].mxu1 }
 0x391   :  { %v4558_v8 = vpop.eup %4557  ;;  %v3071_v35 = vmul.f32 0.5, %v3007_v9  ;;  %v3008_v29 = vadd.f32 1.0, %v4556_v34  ;;  %v2821_v16 = vadd.f32 %v2757_v24, %v6419_v56  ;;  %v2758_v26 = vmul.f32 0.044715, %v2694_v21  ;;  %v4239_v2 = vpop.f32.mrb[14].mxu1 }
 0x392   :  { %v3069_v36 = vmul.f32 0.5, %v3005_v51  ;;  %v3006_v13 = vadd.f32 1.0, %v4558_v8  ;;  %v2887_v6 = vmul.f32 0.7978846, %v2823_v39  ;;  %v2824_v52 = vadd.f32 %v2760_v41, %v6425_v12  ;;  %v2417_v7 = vpop.f32.mrb[15].mxu1 }
 0x393   :  { %v3072_v25 = vmul.f32 0.5, %v3008_v29  ;;  %v2885_v28 = vmul.f32 0.7978846, %v2821_v16  ;;  %v2822_v43 = vadd.f32 %v2758_v26, %v6431_v49  ;;  %v6449_v62 = vmul.f32 %v3071_v35, %v6362_v37 }
 0x394   :  { %v6452_v58 = vmul.f32 %v3069_v36, %v6365_v45  ;;  %4567 = vtanh.f32 %v2887_v6  ;;  %v2888_v1 = vmul.f32 0.7978846, %v2824_v52  ;;  %v2635_v59 = vmul.f32 %v6443_v23, %v6443_v23 }
 0x395   :  { %v6455_v18 = vmul.f32 %v3072_v25, %v6370_v61  ;;  %4569 = vtanh.f32 %v2885_v28  ;;  %v2886_v44 = vmul.f32 0.7978846, %v2822_v43  ;;  %v3070_v11 = vmul.f32 0.5, %v3006_v13 }
 0x396   :  { %v4560_v31 = vpop.eup %4559  ;;  %4571 = vtanh.f32 %v2888_v1  ;;  %v6460_v22 = vadd.f32 %v6359_v17, %v2414_v54  ;;  %v6463_v37 = vadd.f32 %v4239_v2, %v6359_v17  ;;  %v2699_v48 = vmul.f32 %v2635_v59, %v6443_v23 }
 0x397   :  { %v4562_v45 = vpop.eup %4561  ;;  %v3198_v14 = vpack.c.bf16 %v6455_v18, %v6449_v62  ;;  %v3011_v61 = vadd.f32 1.0, %v4560_v31  ;;  %4573 = vtanh.f32 %v2886_v44  ;;  %v4242_v5 = vpop.f32.mrb[16].mxu1  ;;  %v6473_v30 = vadd.f32 %v6359_v17, %v2417_v7 }
 0x398   :  { %v4564_v10 = vpop.eup %4563  ;;  %v3009_v27 = vadd.f32 1.0, %v4562_v45  ;;  %v2633_v15 = vmul.f32 %v6460_v22, %v6460_v22  ;;  %v2636_v40 = vmul.f32 %v6463_v37, %v6463_v37  ;;  %v2430_v4 = vpop.f32.mrb[17].mxu1  ;;  %v2763_v42 = vmul.f32 0.044715, %v2699_v48 }
 0x399   :  { %v4566_v0 = vpop.eup %4565  ;;  %v3075_v55 = vmul.f32 0.5, %v3011_v61  ;;  %v3012_v47 = vadd.f32 1.0, %v4564_v10  ;;  %v6476_v63 = vadd.f32 %v4242_v5, %v6359_v17  ;;  %v4243_v57 = vpop.f32.mrb[18].mxu1  ;;  %v6481_v34 = vmul.f32 %v3070_v11, %v6375_v3 }
 0x39a   :  { %v3073_v53 = vmul.f32 0.5, %v3009_v27  ;;  %v3010_v9 = vadd.f32 1.0, %v4566_v0  ;;  %v2697_v24 = vmul.f32 %v2633_v15, %v6460_v22  ;;  %v2700_v21 = vmul.f32 %v2636_v40, %v6463_v37  ;;  %v2433_v38 = vpop.f32.mrb[19].mxu1 }
 0x39b   :  { %v3076_v51 = vmul.f32 0.5, %v3012_v47  ;;  %v2827_v39 = vadd.f32 %v2763_v42, %v6443_v23  ;;  %v2634_v41 = vmul.f32 %v6473_v30, %v6473_v30  ;;  %v6487_v54 = vmul.f32 %v3075_v55, %v6387_v20 }
 0x39c   :  { %v6490_v8 = vmul.f32 %v3073_v53, %v6391_v50  ;;  %v2761_v35 = vmul.f32 0.044715, %v2697_v24  ;;  %v2764_v29 = vmul.f32 0.044715, %v2700_v21  ;;  %v3074_v16 = vmul.f32 0.5, %v3010_v9 }
 0x39d   :  { %v2891_v26 = vmul.f32 0.7978846, %v2827_v39  ;;  %v2698_v2 = vmul.f32 %v2634_v41, %v6473_v30  ;;  %v2639_v3 = vmul.f32 %v6476_v63, %v6476_v63  ;;  %v6496_v13 = vmul.f32 %v3076_v51, %v6397_v46 }
 0x39e   :  { %v4568_v36 = vpop.eup %4567  ;;  %v2825_v20 = vadd.f32 %v2761_v35, %v6460_v22  ;;  %v2828_v6 = vadd.f32 %v2764_v29, %v6463_v37  ;;  %v6501_v50 = vadd.f32 %v6359_v17, %v2430_v4  ;;  %v3138_v55 = vmul.f32 %v3074_v16, %v6403_v33 }
 0x39f   :  { %v4570_v52 = vpop.eup %4569  ;;  %v3015_v7 = vadd.f32 1.0, %v4568_v36  ;;  %4575 = vtanh.f32 %v2891_v26  ;;  %v2762_v25 = vmul.f32 0.044715, %v2698_v2  ;;  %v2703_v28 = vmul.f32 %v2639_v3, %v6476_v63  ;;  %v4246_v43 = vpop.f32.mrb[20].mxu1 }
 0x3a0   :  { %v4572_v1 = vpop.eup %4571  ;;  %v3013_v44 = vadd.f32 1.0, %v4570_v52  ;;  %v2889_v59 = vmul.f32 0.7978846, %v2825_v20  ;;  %v2892_v31 = vmul.f32 0.7978846, %v2828_v6  ;;  %v2637_v46 = vmul.f32 %v6501_v50, %v6501_v50  ;;  %v2446_v11 = vpop.f32.mrb[21].mxu1 }
 0x3a1   :  { %v4574_v45 = vpop.eup %4573  ;;  %v3079_v61 = vmul.f32 0.5, %v3015_v7  ;;  %v3016_v48 = vadd.f32 1.0, %v4572_v1  ;;  %v2826_v5 = vadd.f32 %v2762_v25, %v6473_v30  ;;  %v2767_v10 = vmul.f32 0.044715, %v2703_v28  ;;  %v4247_v27 = vpop.f32.mrb[22].mxu1 }
 0x3a2   :  { %v3077_v15 = vmul.f32 0.5, %v3013_v44  ;;  %v3014_v40 = vadd.f32 1.0, %v4574_v45  ;;  %4577 = vtanh.f32 %v2889_v59  ;;  %v2701_v4 = vmul.f32 %v2637_v46, %v6501_v50  ;;  %v2449_v0 = vpop.f32.mrb[23].mxu1 }
 0x3a3   :  { %v3080_v47 = vmul.f32 0.5, %v3016_v48  ;;  %4579 = vtanh.f32 %v2892_v31  ;;  %v2890_v42 = vmul.f32 0.7978846, %v2826_v5  ;;  %v6510_v53 = vmul.f32 %v3079_v61, %v6415_v32 }
 0x3a4   :  { %v6513_v9 = vmul.f32 %v3077_v15, %v6419_v56  ;;  %v2831_v24 = vadd.f32 %v2767_v10, %v6476_v63  ;;  %v2765_v21 = vmul.f32 0.044715, %v2701_v4  ;;  %v3078_v51 = vmul.f32 0.5, %v3014_v40 }
 0x3a5   :  { %4581 = vtanh.f32 %v2890_v42  ;;  %v6517_v39 = vadd.f32 %v4243_v57, %v6359_v17  ;;  %v6520_v41 = vadd.f32 %v6359_v17, %v2433_v38  ;;  %v6523_v33 = vmul.f32 %v3080_v47, %v6425_v12 }
 0x3a6   :  { %v2895_v35 = vmul.f32 0.7978846, %v2831_v24  ;;  %v2829_v32 = vadd.f32 %v2765_v21, %v6501_v50  ;;  %v3197_v56 = vpack.c.bf16 %v6481_v34, %v6452_v58  ;;  %v6533_v57 = vadd.f32 %v4246_v43, %v6359_v17 }
 0x3a7   :  { %v2640_v29 = vmul.f32 %v6517_v39, %v6517_v39  ;;  %v2638_v16 = vmul.f32 %v6520_v41, %v6520_v41  ;;  %v6536_v38 = vadd.f32 %v6359_v17, %v2446_v11  ;;  %v6540_v26 = vadd.f32 %v4247_v27, %v6359_v17 }
 0x3a8   :  { %4583 = vtanh.f32 %v2895_v35  ;;  %v2893_v12 = vmul.f32 0.7978846, %v2829_v32  ;;  %4292 = vmatprep.mubr.msk.bf16.mxu1 %vm3235_vm4, %v3197_v56  ;;  %v6543_v58 = vadd.f32 %v6359_v17, %v2449_v0  ;;  %v2643_v36 = vmul.f32 %v6533_v57, %v6533_v57 }
 0x3a9   :  { %v4576_v34 = vpop.eup %4575  ;;  %v2704_v2 = vmul.f32 %v2640_v29, %v6517_v39  ;;  %v2702_v3 = vmul.f32 %v2638_v16, %v6520_v41  ;;  %4293 = vmatmul.mubr.msk.bf16.vlgmr.msra.gmra.mrb[64].mxu1 %vm3235_vm4, %v3198_v14  ;;  %v2641_v20 = vmul.f32 %v6536_v38, %v6536_v38  ;;  %v2644_v52 = vmul.f32 %v6540_v26, %v6540_v26 }
 0x3aa   :  { %v3019_v6 = vadd.f32 1.0, %v4576_v34  ;;  %4585 = vtanh.f32 %v2893_v12  ;;  %v2642_v7 = vmul.f32 %v6543_v58, %v6543_v58  ;;  %v4250_v25 = vpop.f32.mrb[24].mxu1  ;;  %v2707_v62 = vmul.f32 %v2643_v36, %v6533_v57 }
 0x3ab   :  { %v2768_v28 = vmul.f32 0.044715, %v2704_v2  ;;  %v2766_v43 = vmul.f32 0.044715, %v2702_v3  ;;  %v2705_v18 = vmul.f32 %v2641_v20, %v6536_v38  ;;  %v2462_v14 = vpop.f32.mrb[25].mxu1  ;;  %v2708_v59 = vmul.f32 %v2644_v52, %v6540_v26 }
 0x3ac   :  { %v4578_v1 = vpop.eup %4577  ;;  %v3083_v44 = vmul.f32 0.5, %v3019_v6  ;;  %v2706_v31 = vmul.f32 %v2642_v7, %v6543_v58  ;;  %v3199_v46 = vpack.c.bf16 %v3138_v55, %v6490_v8  ;;  %v4251_v11 = vpop.f32.mrb[26].mxu1  ;;  %v2771_v10 = vmul.f32 0.044715, %v2707_v62 }
 0x3ad   :  { %v4580_v45 = vpop.eup %4579  ;;  %v3017_v61 = vadd.f32 1.0, %v4578_v1  ;;  %v2832_v48 = vadd.f32 %v2768_v28, %v6517_v39  ;;  %v2830_v5 = vadd.f32 %v2766_v43, %v6520_v41  ;;  %v2465_v27 = vpop.f32.mrb[27].mxu1  ;;  %v3142_v15 = vmul.f32 %v3078_v51, %v6431_v49 }
 0x3ae   :  { %v3020_v40 = vadd.f32 1.0, %v4580_v45  ;;  %v2769_v4 = vmul.f32 0.044715, %v2705_v18  ;;  %v2772_v0 = vmul.f32 0.044715, %v2708_v59  ;;  %4296 = vmatprep.mubr.msk.bf16.mxu1 %vm3235_vm4, %v3199_v46  ;;  %v2835_v55 = vadd.f32 %v2771_v10, %v6533_v57 }
 0x3af   :  { %v4582_v47 = vpop.eup %4581  ;;  %v3081_v42 = vmul.f32 0.5, %v3017_v61  ;;  %v2896_v24 = vmul.f32 0.7978846, %v2832_v48  ;;  %v2894_v8 = vmul.f32 0.7978846, %v2830_v5  ;;  %v6570_v21 = vmul.f32 %v3083_v44, %v6443_v23 }
 0x3b0   :  { %v3018_v35 = vadd.f32 1.0, %v4582_v47  ;;  %v2833_v32 = vadd.f32 %v2769_v4, %v6536_v38  ;;  %v2836_v56 = vadd.f32 %v2772_v0, %v6540_v26  ;;  %v3084_v49 = vmul.f32 0.5, %v3020_v40 }
 0x3b1   :  { %4587 = vtanh.f32 %v2896_v24  ;;  %v2899_v51 = vmul.f32 0.7978846, %v2835_v55  ;;  %v2770_v29 = vmul.f32 0.044715, %v2706_v31  ;;  %v6575_v12 = vmul.f32 %v3081_v42, %v6460_v22 }
 0x3b2   :  { %v4584_v16 = vpop.eup %4583  ;;  %v3082_v34 = vmul.f32 0.5, %v3018_v35  ;;  %4589 = vtanh.f32 %v2894_v8  ;;  %v2897_v2 = vmul.f32 0.7978846, %v2833_v32  ;;  %v4254_v3 = vpop.f32.mrb[28].mxu1  ;;  %v2900_v23 = vmul.f32 0.7978846, %v2836_v56 }
 0x3b3   :  { %v3023_v36 = vadd.f32 1.0, %v4584_v16  ;;  %4591 = vtanh.f32 %v2899_v51  ;;  %v2834_v20 = vadd.f32 %v2770_v29, %v6543_v58  ;;  %v2478_v6 = vpop.f32.mrb[29].mxu1  ;;  %v3200_v28 = vpack.c.bf16 %v6496_v13, %v6487_v54 }
 0x3b4   :  { %v4586_v52 = vpop.eup %4585  ;;  %v6579_v7 = vmul.f32 %v3082_v34, %v6473_v30  ;;  %4593 = vtanh.f32 %v2897_v2  ;;  %v6584_v22 = vadd.f32 %v4250_v25, %v6359_v17  ;;  %v4255_v43 = vpop.f32.mrb[30].mxu1  ;;  %v3201_v59 = vpack.c.bf16 %v3142_v15, %v6513_v9 }
 0x3b5   :  { %v3087_v62 = vmul.f32 0.5, %v3023_v36  ;;  %v3021_v18 = vadd.f32 1.0, %v4586_v52  ;;  %4595 = vtanh.f32 %v2900_v23  ;;  %v2898_v1 = vmul.f32 0.7978846, %v2834_v20  ;;  %v6586_v44 = vpop.f32.mrb[31].mxu1  ;;  %4297 = vmatmul.mubr.msk.bf16.gmra.mrb[68].mxu1 %vm3235_vm4, %v3200_v28 }
 0x3b6   :  { %v2647_v30 = vmul.f32 %v6584_v22, %v6584_v22  ;;  %v6593_v31 = vadd.f32 %v6359_v17, %v2462_v14  ;;  %v3202_v54 = vpack.c.bf16 %v6523_v33, %v6510_v53  ;;  %v6598_v13 = vmul.f32 %v3084_v49, %v6463_v37  ;;  %4300 = vmatprep.mubr.msk.bf16.mxu1 %vm3235_vm4, %v3201_v59 }
 0x3b7   :  { %v3085_v25 = vmul.f32 0.5, %v3021_v18  ;;  %4597 = vtanh.f32 %v2898_v1  ;;  %v6601_v46 = vadd.f32 %v4251_v11, %v6359_v17  ;;  %v6608_v14 = vadd.f32 %v6359_v17, %v2465_v27 }
 0x3b8   :  { %v2711_v45 = vmul.f32 %v2647_v30, %v6584_v22  ;;  %v2645_v9 = vmul.f32 %v6593_v31, %v6593_v31  ;;  %v6611_v53 = vadd.f32 %v4254_v3, %v6359_v17  ;;  %v6614_v37 = vmul.f32 %v3087_v62, %v6476_v63 }
 0x3b9   :  { %v2648_v33 = vmul.f32 %v6601_v46, %v6601_v46  ;;  %v3203_v11 = vpack.c.bf16 %v6579_v7, %v6575_v12  ;;  %v6621_v61 = vadd.f32 %v6359_v17, %v2478_v6  ;;  %v2646_v10 = vmul.f32 %v6608_v14, %v6608_v14 }
 0x3ba   :  { %v2775_v48 = vmul.f32 0.044715, %v2711_v45  ;;  %v2709_v5 = vmul.f32 %v2645_v9, %v6593_v31  ;;  %v2651_v27 = vmul.f32 %v6611_v53, %v6611_v53  ;;  %v6628_v63 = vpop.f32.mrb[32].mxu1  ;;  %v6631_v40 = vmul.f32 %v3085_v25, %v6501_v50 }
 0x3bb   :  { %v4588_v15 = vpop.eup %4587  ;;  %v2712_v4 = vmul.f32 %v2648_v33, %v6601_v46  ;;  %v2649_v0 = vmul.f32 %v6621_v61, %v6621_v61  ;;  %v3204_v47 = vpack.c.bf16 %v6598_v13, %v6570_v21  ;;  %v6638_v42 = vpop.f32.mrb[33].mxu1  ;;  %v2710_v32 = vmul.f32 %v2646_v10, %v6608_v14 }
 0x3bc   :  { %v4590_v24 = vpop.eup %4589  ;;  %v3024_v8 = vadd.f32 1.0, %v4588_v15  ;;  %v2839_v55 = vadd.f32 %v2775_v48, %v6584_v22  ;;  %v2773_v35 = vmul.f32 0.044715, %v2709_v5  ;;  %v4259_v56 = vpop.f32.mrb[34].mxu1  ;;  %v2715_v29 = vmul.f32 %v2651_v27, %v6611_v53 }
 0x3bd   :  { %v4592_v50 = vpop.eup %4591  ;;  %v3022_v49 = vadd.f32 1.0, %v4590_v24  ;;  %v2776_v51 = vmul.f32 0.044715, %v2712_v4  ;;  %v2713_v16 = vmul.f32 %v2649_v0, %v6621_v61  ;;  %v2497_v12 = vpop.f32.mrb[35].mxu1  ;;  %4301 = vmatmul.mubr.msk.bf16.gmra.mrb[72].mxu1 %vm3235_vm4, %v3202_v54  ;;  %v2774_v7 = vmul.f32 0.044715, %v2710_v32 }
 0x3be   :  { %v4594_v34 = vpop.eup %4593  ;;  %v3088_v21 = vmul.f32 0.5, %v3024_v8  ;;  %v3027_v2 = vadd.f32 1.0, %v4592_v50  ;;  %v2903_v3 = vmul.f32 0.7978846, %v2839_v55  ;;  %v2837_v36 = vadd.f32 %v2773_v35, %v6593_v31  ;;  %4304 = vmatprep.mubr.msk.bf16.mxu1 %vm3235_vm4, %v3203_v11 }
 0x3bf   :  { %v4596_v23 = vpop.eup %4595  ;;  %v3086_v20 = vmul.f32 0.5, %v3022_v49  ;;  %v3025_v6 = vadd.f32 1.0, %v4594_v34  ;;  %v2840_v52 = vadd.f32 %v2776_v51, %v6601_v46  ;;  %v6649_v18 = vadd.f32 %v4255_v43, %v6359_v17 }
 0x3c0   :  { %v3091_v28 = vmul.f32 0.5, %v3027_v2  ;;  %v3028_v62 = vadd.f32 1.0, %v4596_v23  ;;  %4599 = vtanh.f32 %v2903_v3  ;;  %v6652_v30 = vmul.f32 %v3088_v21, %v6517_v39 }
 0x3c1   :  { %v4598_v1 = vpop.eup %4597  ;;  %v3089_v59 = vmul.f32 0.5, %v3025_v6  ;;  %v2901_v54 = vmul.f32 0.7978846, %v2837_v36  ;;  %v2904_v13 = vmul.f32 0.7978846, %v2840_v52  ;;  %v3150_v25 = vmul.f32 %v3086_v20, %v6520_v41 }
 0x3c2   :  { %v3092_v45 = vmul.f32 0.5, %v3028_v62  ;;  %v3026_v9 = vadd.f32 1.0, %v4598_v1  ;;  %v2838_v33 = vadd.f32 %v2774_v7, %v6608_v14  ;;  %v6656_v11 = vpop.f32.mrb[36].mxu1  ;;  %v6659_v48 = vmul.f32 %v3091_v28, %v6533_v57 }
 0x3c3   :  { %4601 = vtanh.f32 %v2901_v54  ;;  %v2779_v43 = vmul.f32 0.044715, %v2715_v29  ;;  %v2777_v5 = vmul.f32 0.044715, %v2713_v16  ;;  %v6661_v10 = vpop.f32.mrb[37].mxu1  ;;  %v6664_v39 = vmul.f32 %v3089_v59, %v6536_v38 }
 0x3c4   :  { %v6667_v27 = vmul.f32 %v3092_v45, %v6540_v26  ;;  %4603 = vtanh.f32 %v2904_v13  ;;  %v2902_v41 = vmul.f32 0.7978846, %v2838_v33  ;;  %v6669_v15 = vpop.f32.mrb[38].mxu1  ;;  %v2652_v0 = vmul.f32 %v6649_v18, %v6649_v18 }
 0x3c5   :  { %v2843_v4 = vadd.f32 %v2779_v43, %v6611_v53  ;;  %v2841_v57 = vadd.f32 %v2777_v5, %v6621_v61  ;;  %v6677_v24 = vadd.f32 %v6359_v17, %v6586_v44  ;;  %v6679_v38 = vpop.f32.mrb[39].mxu1  ;;  %v3090_v8 = vmul.f32 0.5, %v3026_v9  ;;  %4305 = vmatmul.mubr.msk.bf16.gmra.mrb[76].mxu1 %vm3235_vm4, %v3204_v47 }
 0x3c6   :  { %4605 = vtanh.f32 %v2902_v41  ;;  %v6684_v26 = vadd.f32 %v6628_v63, %v6359_v17  ;;  %v3205_v55 = vpack.c.bf16 %v3150_v25, %v6631_v40  ;;  %v2716_v50 = vmul.f32 %v2652_v0, %v6649_v18 }
 0x3c7   :  { %v2907_v35 = vmul.f32 0.7978846, %v2843_v4  ;;  %v2905_v32 = vmul.f32 0.7978846, %v2841_v57  ;;  %v2650_v44 = vmul.f32 %v6677_v24, %v6677_v24  ;;  %v6695_v47 = vadd.f32 %v6359_v17, %v6638_v42 }
 0x3c8   :  { %v2655_v49 = vmul.f32 %v6684_v26, %v6684_v26  ;;  %4308 = vmatprep.mubr.msk.bf16.mxu1 %vm3235_vm4, %v3205_v55  ;;  %v3206_v63 = vpack.c.bf16 %v6652_v30, %v6614_v37  ;;  %v6700_v40 = vadd.f32 %v4259_v56, %v6359_v17  ;;  %v2780_v51 = vmul.f32 0.044715, %v2716_v50 }
 0x3c9   :  { %4607 = vtanh.f32 %v2907_v35  ;;  %v2714_v29 = vmul.f32 %v2650_v44, %v6677_v24  ;;  %v6704_v16 = vadd.f32 %v6359_v17, %v2497_v12  ;;  %v2653_v42 = vmul.f32 %v6695_v47, %v6695_v47 }
 0x3ca   :  { %v4600_v34 = vpop.eup %4599  ;;  %4609 = vtanh.f32 %v2905_v32  ;;  %v2719_v21 = vmul.f32 %v2655_v49, %v6684_v26  ;;  %v2656_v37 = vmul.f32 %v6700_v40, %v6700_v40  ;;  %v6711_v2 = vpop.f32.mrb[40].mxu1  ;;  %v2844_v3 = vadd.f32 %v2780_v51, %v6649_v18 }
 0x3cb   :  { %v3031_v56 = vadd.f32 1.0, %v4600_v34  ;;  %v2778_v36 = vmul.f32 0.044715, %v2714_v29  ;;  %v2654_v12 = vmul.f32 %v6704_v16, %v6704_v16  ;;  %v6716_v23 = vpop.f32.mrb[41].mxu1  ;;  %v3154_v20 = vmul.f32 %v3090_v8, %v6543_v58 }
 0x3cc   :  { %v2783_v6 = vmul.f32 0.044715, %v2719_v21  ;;  %v2717_v52 = vmul.f32 %v2653_v42, %v6695_v47  ;;  %v2720_v7 = vmul.f32 %v2656_v37, %v6700_v40  ;;  %v6721_v28 = vpop.f32.mrb[42].mxu1  ;;  %v2908_v30 = vmul.f32 0.7978846, %v2844_v3 }
 0x3cd   :  { %v4602_v62 = vpop.eup %4601  ;;  %v3095_v1 = vmul.f32 0.5, %v3031_v56  ;;  %v2842_v59 = vadd.f32 %v2778_v36, %v6677_v24  ;;  %v2718_v54 = vmul.f32 %v2654_v12, %v6704_v16  ;;  %v6725_v13 = vpop.f32.mrb[43].mxu1  ;;  %4309 = vmatmul.mubr.msk.bf16.gmra.mrb[80].mxu1 %vm3235_vm4, %v3206_v63  ;;  %v6731_v41 = vadd.f32 %v6656_v11, %v6359_v17 }
 0x3ce   :  { %v4604_v25 = vpop.eup %4603  ;;  %v3029_v45 = vadd.f32 1.0, %v4602_v62  ;;  %v2847_v58 = vadd.f32 %v2783_v6, %v6684_v26  ;;  %v2781_v9 = vmul.f32 0.044715, %v2717_v52  ;;  %v2784_v33 = vmul.f32 0.044715, %v2720_v7 }
 0x3cf   :  { %v3032_v43 = vadd.f32 1.0, %v4604_v25  ;;  %4611 = vtanh.f32 %v2908_v30  ;;  %v2906_v5 = vmul.f32 0.7978846, %v2842_v59  ;;  %v2782_v50 = vmul.f32 0.044715, %v2718_v54 }
 0x3d0   :  { %v4606_v4 = vpop.eup %4605  ;;  %v3093_v57 = vmul.f32 0.5, %v3029_v45  ;;  %v2911_v0 = vmul.f32 0.7978846, %v2847_v58  ;;  %v2845_v8 = vadd.f32 %v2781_v9, %v6695_v47  ;;  %v2848_v55 = vadd.f32 %v2784_v33, %v6700_v40 }
 0x3d1   :  { %v3096_v35 = vmul.f32 0.5, %v3032_v43  ;;  %v3030_v32 = vadd.f32 1.0, %v4606_v4  ;;  %4613 = vtanh.f32 %v2906_v5  ;;  %v6736_v44 = vmul.f32 %v3095_v1, %v6584_v22 }
 0x3d2   :  { %4615 = vtanh.f32 %v2911_v0  ;;  %v2909_v49 = vmul.f32 0.7978846, %v2845_v8  ;;  %v2912_v63 = vmul.f32 0.7978846, %v2848_v55  ;;  %v6738_v51 = vpop.f32.mrb[44].mxu1  ;;  %v6741_v29 = vmul.f32 %v3093_v57, %v6593_v31 }
 0x3d3   :  { %v4608_v11 = vpop.eup %4607  ;;  %v3094_v34 = vmul.f32 0.5, %v3030_v32  ;;  %v2846_v21 = vadd.f32 %v2782_v50, %v6704_v16  ;;  %v2659_v42 = vmul.f32 %v6731_v41, %v6731_v41  ;;  %v6746_v37 = vpop.f32.mrb[45].mxu1  ;;  %v3207_v3 = vpack.c.bf16 %v3154_v20, %v6664_v39 }
 0x3d4   :  { %v4610_v56 = vpop.eup %4609  ;;  %v3035_v22 = vadd.f32 1.0, %v4608_v11  ;;  %4617 = vtanh.f32 %v2909_v49  ;;  %v6751_v36 = vadd.f32 %v6359_v17, %v6661_v10  ;;  %v6753_v12 = vpop.f32.mrb[46].mxu1  ;;  %v6756_v31 = vmul.f32 %v3096_v35, %v6601_v46 }
 0x3d5   :  { %v3033_v6 = vadd.f32 1.0, %v4610_v56  ;;  %4619 = vtanh.f32 %v2912_v63  ;;  %v2910_v52 = vmul.f32 0.7978846, %v2846_v21  ;;  %v6758_v7 = vpop.f32.mrb[47].mxu1  ;;  %v2723_v1 = vmul.f32 %v2659_v42, %v6731_v41  ;;  %4312 = vmatprep.mubr.msk.bf16.mxu1 %vm3235_vm4, %v3207_v3 }
 0x3d6   :  { %v3099_v62 = vmul.f32 0.5, %v3035_v22  ;;  %v2657_v39 = vmul.f32 %v6751_v36, %v6751_v36  ;;  %v3208_v10 = vpack.c.bf16 %v6667_v27, %v6659_v48  ;;  %v6768_v46 = vadd.f32 %v6669_v15, %v6359_v17 }
 0x3d7   :  { %v3097_v20 = vmul.f32 0.5, %v3033_v6  ;;  %4621 = vtanh.f32 %v2910_v52  ;;  %v6772_v30 = vadd.f32 %v6359_v17, %v6679_v38  ;;  %v6775_v59 = vmul.f32 %v3094_v34, %v6608_v14 }
 0x3d8   :  { %v2787_v54 = vmul.f32 0.044715, %v2723_v1  ;;  %v2721_v25 = vmul.f32 %v2657_v39, %v6751_v36  ;;  %4313 = vmatmul.mubr.msk.bf16.gmra.mrb[84].mxu1 %vm3235_vm4, %v3208_v10  ;;  %v6781_v48 = vadd.f32 %v6711_v2, %v6359_v17  ;;  %v6784_v15 = vmul.f32 %v3099_v62, %v6611_v53 }
 0x3d9   :  { %v4612_v27 = vpop.eup %4611  ;;  %v2660_v38 = vmul.f32 %v6768_v46, %v6768_v46  ;;  %v2658_v14 = vmul.f32 %v6772_v30, %v6772_v30  ;;  %v6792_v45 = vadd.f32 %v6359_v17, %v6716_v23  ;;  %v6800_v5 = vmul.f32 %v3097_v20, %v6621_v61 }
 0x3da   :  { %v3036_v58 = vadd.f32 1.0, %v4612_v27  ;;  %v2851_v9 = vadd.f32 %v2787_v54, %v6731_v41  ;;  %v2785_v33 = vmul.f32 0.044715, %v2721_v25  ;;  %v2663_v2 = vmul.f32 %v6781_v48, %v6781_v48  ;;  %v6797_v43 = vpop.f32.mrb[48].mxu1 }
 0x3db   :  { %v4614_v53 = vpop.eup %4613  ;;  %v2724_v4 = vmul.f32 %v2660_v38, %v6768_v46  ;;  %v2722_v57 = vmul.f32 %v2658_v14, %v6772_v30  ;;  %v2661_v23 = vmul.f32 %v6792_v45, %v6792_v45  ;;  %v6806_v0 = vpop.f32.mrb[49].mxu1  ;;  %v6816_v3 = vadd.f32 %v6721_v28, %v6359_v17 }
 0x3dc   :  { %v4616_v8 = vpop.eup %4615  ;;  %v3100_v55 = vmul.f32 0.5, %v3036_v58  ;;  %v3034_v35 = vadd.f32 1.0, %v4614_v53  ;;  %v2915_v32 = vmul.f32 0.7978846, %v2851_v9  ;;  %v2849_v50 = vadd.f32 %v2785_v33, %v6751_v36  ;;  %v6809_v49 = vpop.f32.mrb[50].mxu1 }
 0x3dd   :  { %v3039_v63 = vadd.f32 1.0, %v4616_v8  ;;  %v2788_v61 = vmul.f32 0.044715, %v2724_v4  ;;  %v2786_v11 = vmul.f32 0.044715, %v2722_v57  ;;  %v2727_v34 = vmul.f32 %v2663_v2, %v6781_v48  ;;  %v6812_v21 = vpop.f32.mrb[51].mxu1 }
 0x3de   :  { %v4618_v42 = vpop.eup %4617  ;;  %v3098_v56 = vmul.f32 0.5, %v3034_v35  ;;  %4623 = vtanh.f32 %v2915_v32  ;;  %v2913_v22 = vmul.f32 0.7978846, %v2849_v50  ;;  %v6821_v10 = vmul.f32 %v3100_v55, %v6649_v18 }
 0x3df   :  { %v4620_v6 = vpop.eup %4619  ;;  %v3103_v52 = vmul.f32 0.5, %v3039_v63  ;;  %v3037_v62 = vadd.f32 1.0, %v4618_v42  ;;  %v2852_v1 = vadd.f32 %v2788_v61, %v6768_v46  ;;  %v2850_v39 = vadd.f32 %v2786_v11, %v6772_v30  ;;  %v6859_v63 = vld [vmem:[%s7482_s9] ss:$0 sm:$0xff] }
 0x3e0   :  { %v3040_v20 = vadd.f32 1.0, %v4620_v6  ;;  %4625 = vtanh.f32 %v2913_v22  ;;  %v2791_v54 = vmul.f32 0.044715, %v2727_v34  ;;  %v3162_v27 = vmul.f32 %v3098_v56, %v6677_v24 }
 0x3e1   :  { %v4622_v25 = vpop.eup %4621  ;;  %v3101_v38 = vmul.f32 0.5, %v3037_v62  ;;  %v2916_v14 = vmul.f32 0.7978846, %v2852_v1  ;;  %v2914_v28 = vmul.f32 0.7978846, %v2850_v39  ;;  %v2725_v2 = vmul.f32 %v2661_v23, %v6792_v45 }
 0x3e2   :  { %v3104_v58 = vmul.f32 0.5, %v3040_v20  ;;  %v3038_v9 = vadd.f32 1.0, %v4622_v25  ;;  %v2855_v33 = vadd.f32 %v2791_v54, %v6781_v48  ;;  %v6826_v53 = vpop.f32.mrb[52].mxu1  ;;  %v6829_v18 = vmul.f32 %v3103_v52, %v6684_v26 }
 0x3e3   :  { %4627 = vtanh.f32 %v2916_v14  ;;  %v2664_v4 = vmul.f32 %v6816_v3, %v6816_v3  ;;  %v6835_v24 = vadd.f32 %v6359_v17, %v6725_v13  ;;  %v6837_v57 = vpop.f32.mrb[53].mxu1  ;;  %v6840_v8 = vmul.f32 %v3101_v38, %v6695_v47 }
 0x3e4   :  { %v6843_v23 = vmul.f32 %v3104_v58, %v6700_v40  ;;  %4629 = vtanh.f32 %v2914_v28  ;;  %v2919_v55 = vmul.f32 0.7978846, %v2855_v33  ;;  %v6845_v26 = vpop.f32.mrb[54].mxu1  ;;  %v2789_v35 = vmul.f32 0.044715, %v2725_v2 }
 0x3e5   :  { %v2728_v32 = vmul.f32 %v2664_v4, %v6816_v3  ;;  %v2662_v50 = vmul.f32 %v6835_v24, %v6835_v24  ;;  %v3209_v17 = vpack.c.bf16 %v6775_v59, %v6741_v29  ;;  %v6852_v13 = vpop.f32.mrb[55].mxu1  ;;  %v3102_v47 = vmul.f32 0.5, %v3038_v9 }
 0x3e6   :  { %4631 = vtanh.f32 %v2919_v55  ;;  %v3210_v40 = vpack.c.bf16 %v6756_v31, %v6736_v44  ;;  %v6863_v61 = vadd.f32 %v6859_v63, %v6738_v51  ;;  %v2853_v11 = vadd.f32 %v2789_v35, %v6792_v45 }
 0x3e7   :  { %v2792_v34 = vmul.f32 0.044715, %v2728_v32  ;;  %v2726_v29 = vmul.f32 %v2662_v50, %v6835_v24  ;;  %4316 = vmatprep.mubr.msk.bf16.mxu1 %vm3235_vm4, %v3209_v17  ;;  %v6870_v59 = vadd.f32 %v6859_v63, %v6746_v37  ;;  %v6877_v51 = vadd.f32 %v6859_v63, %v6753_v12 }
 0x3e8   :  { %v4624_v44 = vpop.eup %4623  ;;  %4317 = vmatmul.mubr.msk.bf16.gmra.mrb[88].mxu1 %vm3235_vm4, %v3210_v40  ;;  %v2667_v31 = vmul.f32 %v6863_v61, %v6863_v61  ;;  %v6881_v42 = vadd.f32 %v6859_v63, %v6758_v7  ;;  %v3211_v56 = vpack.c.bf16 %v3162_v27, %v6800_v5  ;;  %v2917_v6 = vmul.f32 0.7978846, %v2853_v11 }
 0x3e9   :  { %v3043_v22 = vadd.f32 1.0, %v4624_v44  ;;  %v2856_v37 = vadd.f32 %v2792_v34, %v6816_v3  ;;  %v2790_v52 = vmul.f32 0.044715, %v2726_v29  ;;  %v2665_v39 = vmul.f32 %v6870_v59, %v6870_v59 }
 0x3ea   :  { %v4626_v62 = vpop.eup %4625  ;;  %v2731_v1 = vmul.f32 %v2667_v31, %v6863_v61  ;;  %v2668_v12 = vmul.f32 %v6877_v51, %v6877_v51  ;;  %v2666_v7 = vmul.f32 %v6881_v42, %v6881_v42  ;;  %4320 = vmatprep.mubr.msk.bf16.mxu1 %vm3235_vm4, %v3211_v56  ;;  %v6893_v5 = vpop.f32.mrb[56].mxu1  ;;  %4633 = vtanh.f32 %v2917_v6 }
 0x3eb   :  { %v3107_v20 = vmul.f32 0.5, %v3043_v22  ;;  %v3041_v54 = vadd.f32 1.0, %v4626_v62  ;;  %v2920_v25 = vmul.f32 0.7978846, %v2856_v37  ;;  %v6895_v27 = vpop.f32.mrb[57].mxu1  ;;  %v2854_v38 = vadd.f32 %v2790_v52, %v6835_v24 }
 0x3ec   :  { %v2795_v14 = vmul.f32 0.044715, %v2731_v1  ;;  %v2729_v28 = vmul.f32 %v2665_v39, %v6870_v59  ;;  %v2732_v58 = vmul.f32 %v2668_v12, %v6877_v51  ;;  %v6900_v9 = vpop.f32.mrb[58].mxu1  ;;  %v3166_v2 = vmul.f32 %v3102_v47, %v6704_v16 }
 0x3ed   :  { %v4628_v33 = vpop.eup %4627  ;;  %v3105_v4 = vmul.f32 0.5, %v3041_v54  ;;  %4635 = vtanh.f32 %v2920_v25  ;;  %v2730_v55 = vmul.f32 %v2666_v7, %v6881_v42  ;;  %v6904_v35 = vpop.f32.mrb[59].mxu1  ;;  %v2918_v17 = vmul.f32 0.7978846, %v2854_v38 }
 0x3ee   :  { %v4630_v32 = vpop.eup %4629  ;;  %v3044_v50 = vadd.f32 1.0, %v4628_v33  ;;  %v2859_v40 = vadd.f32 %v2795_v14, %v6863_v61  ;;  %v2793_v11 = vmul.f32 0.044715, %v2729_v28  ;;  %v6908_v34 = vmul.f32 %v3107_v20, %v6731_v41 }
 0x3ef   :  { %v3042_v29 = vadd.f32 1.0, %v4630_v32  ;;  %v2796_v44 = vmul.f32 0.044715, %v2732_v58  ;;  %v2794_v31 = vmul.f32 0.044715, %v2730_v55  ;;  %4637 = vtanh.f32 %v2918_v17 }
 0x3f0   :  { %v4632_v56 = vpop.eup %4631  ;;  %v3108_v16 = vmul.f32 0.5, %v3044_v50  ;;  %v2923_v47 = vmul.f32 0.7978846, %v2859_v40  ;;  %v2857_v22 = vadd.f32 %v2793_v11, %v6870_v59  ;;  %v6914_v1 = vmul.f32 %v3105_v4, %v6751_v36 }
 0x3f1   :  { %v3106_v6 = vmul.f32 0.5, %v3042_v29  ;;  %v3047_v37 = vadd.f32 1.0, %v4632_v56  ;;  %v2860_v52 = vadd.f32 %v2796_v44, %v6877_v51  ;;  %v2858_v62 = vadd.f32 %v2794_v31, %v6881_v42 }
 0x3f2   :  { %4639 = vtanh.f32 %v2923_v47  ;;  %v2921_v41 = vmul.f32 0.7978846, %v2857_v22  ;;  %v3212_v39 = vpack.c.bf16 %v6821_v10, %v6784_v15  ;;  %v6919_v12 = vmul.f32 %v3108_v16, %v6768_v46 }
 0x3f3   :  { %v6922_v7 = vmul.f32 %v3106_v6, %v6772_v30  ;;  %v2924_v20 = vmul.f32 0.7978846, %v2860_v52  ;;  %v2922_v54 = vmul.f32 0.7978846, %v2858_v62  ;;  %v6927_v36 = vadd.f32 %v6859_v63, %v6797_v43 }
 0x3f4   :  { %4641 = vtanh.f32 %v2921_v41  ;;  %4321 = vmatmul.mubr.msk.bf16.gmra.mrb[92].mxu1 %vm3235_vm4, %v3212_v39  ;;  %v6931_v25 = vadd.f32 %v6859_v63, %v6806_v0  ;;  %v6935_v46 = vadd.f32 %v6859_v63, %v6809_v49  ;;  %v4634_v15 = vpop.eup %4633  ;;  %v3111_v30 = vmul.f32 0.5, %v3047_v37 }
 0x3f5   :  { %4643 = vtanh.f32 %v2924_v20  ;;  %v6939_v10 = vadd.f32 %v6859_v63, %v6812_v21  ;;  %v3213_v38 = vpack.c.bf16 %v3166_v2, %v6840_v8  ;;  %v3045_v14 = vadd.f32 1.0, %v4634_v15 }
 0x3f6   :  { %4645 = vtanh.f32 %v2922_v54  ;;  %v2671_v43 = vmul.f32 %v6927_v36, %v6927_v36  ;;  %v2669_v0 = vmul.f32 %v6931_v25, %v6931_v25  ;;  %v2672_v49 = vmul.f32 %v6935_v46, %v6935_v46 }
 0x3f7   :  { %v4636_v28 = vpop.eup %4635  ;;  %v2670_v58 = vmul.f32 %v6939_v10, %v6939_v10  ;;  %4324 = vmatprep.mubr.msk.bf16.mxu1 %vm3235_vm4, %v3213_v38  ;;  %v3214_v21 = vpack.c.bf16 %v6843_v23, %v6829_v18  ;;  %v6955_v8 = vadd.f32 %v6859_v63, %v6826_v53  ;;  %v3109_v33 = vmul.f32 0.5, %v3045_v14 }
 0x3f8   :  { %v3048_v2 = vadd.f32 1.0, %v4636_v28  ;;  %v2735_v4 = vmul.f32 %v2671_v43, %v6927_v36  ;;  %v2733_v55 = vmul.f32 %v2669_v0, %v6931_v25  ;;  %v2736_v32 = vmul.f32 %v2672_v49, %v6935_v46 }
 0x3f9   :  { %v2734_v50 = vmul.f32 %v2670_v58, %v6939_v10  ;;  %v2675_v17 = vmul.f32 %v6955_v8, %v6955_v8  ;;  %v6965_v18 = vadd.f32 %v6859_v63, %v6837_v57  ;;  %v4638_v23 = vpop.eup %4637  ;;  %v6968_v53 = vmul.f32 %v3111_v30, %v6781_v48 }
 0x3fa   :  { %v3112_v40 = vmul.f32 0.5, %v3048_v2  ;;  %v2799_v11 = vmul.f32 0.044715, %v2735_v4  ;;  %v2797_v29 = vmul.f32 0.044715, %v2733_v55  ;;  %v3046_v44 = vadd.f32 1.0, %v4638_v23 }
 0x3fb   :  { %v2800_v31 = vmul.f32 0.044715, %v2736_v32  ;;  %v2798_v56 = vmul.f32 0.044715, %v2734_v50  ;;  %v2739_v16 = vmul.f32 %v2675_v17, %v6955_v8  ;;  %v3173_v22 = vmul.f32 %v3109_v33, %v6792_v45 }
 0x3fc   :  { %v4640_v47 = vpop.eup %4639  ;;  %v2863_v6 = vadd.f32 %v2799_v11, %v6927_v36  ;;  %v2861_v57 = vadd.f32 %v2797_v29, %v6931_v25  ;;  %4325 = vmatmul.mubr.msk.bf16.gmra.mrb[96].mxu1 %vm3235_vm4, %v3214_v21  ;;  %v2673_v48 = vmul.f32 %v6965_v18, %v6965_v18  ;;  %v3110_v37 = vmul.f32 0.5, %v3046_v44 }
 0x3fd   :  { %v3051_v52 = vadd.f32 1.0, %v4640_v47  ;;  %v2864_v62 = vadd.f32 %v2800_v31, %v6935_v46  ;;  %v2862_v41 = vadd.f32 %v2798_v56, %v6939_v10  ;;  %v2803_v15 = vmul.f32 0.044715, %v2739_v16 }
 0x3fe   :  { %v4642_v39 = vpop.eup %4641  ;;  %v2927_v20 = vmul.f32 0.7978846, %v2863_v6  ;;  %v2925_v54 = vmul.f32 0.7978846, %v2861_v57  ;;  %v2737_v45 = vmul.f32 %v2673_v48, %v6965_v18  ;;  %v6981_v38 = vmul.f32 %v3112_v40, %v6816_v3 }
 0x3ff   :  { %v4644_v30 = vpop.eup %4643  ;;  %v3174_v14 = vmul.f32 %v3110_v37, %v6835_v24  ;;  %v3049_v43 = vadd.f32 1.0, %v4642_v39  ;;  %v2928_v0 = vmul.f32 0.7978846, %v2864_v62  ;;  %v2926_v58 = vmul.f32 0.7978846, %v2862_v41 }
 0x400   :  { %v4646_v28 = vpop.eup %4645  ;;  %v3052_v49 = vadd.f32 1.0, %v4644_v30  ;;  %4647 = vtanh.f32 %v2927_v20  ;;  %v2867_v21 = vadd.f32 %v2803_v15, %v6955_v8  ;;  %v6985_v33 = vmul.f32 0.5, %v3051_v52 }
 0x401   :  { %v3113_v2 = vmul.f32 0.5, %v3049_v43  ;;  %v3050_v4 = vadd.f32 1.0, %v4646_v28  ;;  %4649 = vtanh.f32 %v2925_v54  ;;  %v2801_v3 = vmul.f32 0.044715, %v2737_v45 }
 0x402   :  { %v3116_v55 = vmul.f32 0.5, %v3052_v49  ;;  %4651 = vtanh.f32 %v2928_v0  ;;  %v2931_v32 = vmul.f32 0.7978846, %v2867_v21  ;;  %v6992_v17 = vadd.f32 %v6859_v63, %v6845_v26 }
 0x403   :  { %v6988_v50 = vmul.f32 %v3113_v2, %v6870_v59  ;;  %v3114_v24 = vmul.f32 0.5, %v3050_v4  ;;  %4653 = vtanh.f32 %v2926_v58  ;;  %v2865_v40 = vadd.f32 %v2801_v3, %v6965_v18 }
 0x404   :  { %v6995_v23 = vmul.f32 %v3116_v55, %v6877_v51  ;;  %4655 = vtanh.f32 %v2931_v32  ;;  %v7000_v11 = vadd.f32 %v6859_v63, %v6852_v13  ;;  %v2676_v59 = vmul.f32 %v6992_v17, %v6992_v17 }
 0x405   :  { %v3178_v29 = vmul.f32 %v3114_v24, %v6881_v42  ;;  %v3215_v44 = vpack.c.bf16 %v6922_v7, %v6914_v1  ;;  %v3216_v26 = vpack.c.bf16 %v6919_v12, %v6908_v34  ;;  %v2929_v51 = vmul.f32 0.7978846, %v2865_v40 }
 0x406   :  { %v2674_v31 = vmul.f32 %v7000_v11, %v7000_v11  ;;  %v7013_v56 = vadd.f32 %v6859_v63, %v6893_v5  ;;  %v7017_v13 = vadd.f32 %v6859_v63, %v6895_v27  ;;  %v2740_v42 = vmul.f32 %v2676_v59, %v6992_v17 }
 0x407   :  { %4328 = vmatprep.mubr.msk.bf16.mxu1 %vm3235_vm4, %v3215_v44  ;;  %v7023_v1 = vadd.f32 %v6859_v63, %v6900_v9  ;;  %v7027_v34 = vadd.f32 %v6859_v63, %v6904_v35  ;;  %v3217_v12 = vpack.c.bf16 %v3174_v14, %v3173_v22  ;;  %4657 = vtanh.f32 %v2929_v51 }
 0x408   :  { %v2738_v5 = vmul.f32 %v2674_v31, %v7000_v11  ;;  %4329 = vmatmul.mubr.msk.bf16.gmra.mrb[100].mxu1 %vm3235_vm4, %v3216_v26  ;;  %v2679_v27 = vmul.f32 %v7013_v56, %v7013_v56  ;;  %v2677_v7 = vmul.f32 %v7017_v13, %v7017_v13  ;;  %v2804_v16 = vmul.f32 0.044715, %v2740_v42 }
 0x409   :  { %v2680_v9 = vmul.f32 %v7023_v1, %v7023_v1  ;;  %v2678_v35 = vmul.f32 %v7027_v34, %v7027_v34  ;;  %4332 = vmatprep.mubr.msk.bf16.mxu1 %vm3235_vm4, %v3217_v12  ;;  %v3218_v47 = vpack.c.bf16 %v6981_v38, %v6968_v53  ;;  %v3219_v37 = vpack.c.bf16 %v3178_v29, %v6988_v50 }
 0x40a   :  { %v4648_v22 = vpop.eup %4647  ;;  %v2802_v6 = vmul.f32 0.044715, %v2738_v5  ;;  %v2743_v57 = vmul.f32 %v2679_v27, %v7013_v56  ;;  %v2741_v48 = vmul.f32 %v2677_v7, %v7017_v13  ;;  %v2868_v41 = vadd.f32 %v2804_v16, %v6992_v17 }
 0x40b   :  { %v4650_v52 = vpop.eup %4649  ;;  %v3055_v62 = vadd.f32 1.0, %v4648_v22  ;;  %v2744_v39 = vmul.f32 %v2680_v9, %v7023_v1  ;;  %v2742_v20 = vmul.f32 %v2678_v35, %v7027_v34  ;;  %v3179_v55 = vmul.f32 %v6985_v33, %v6863_v61 }
 0x40c   :  { %v4652_v54 = vpop.eup %4651  ;;  %v3053_v15 = vadd.f32 1.0, %v4650_v52  ;;  %v2866_v53 = vadd.f32 %v2802_v6, %v7000_v11  ;;  %v2807_v45 = vmul.f32 0.044715, %v2743_v57  ;;  %v2805_v30 = vmul.f32 0.044715, %v2741_v48 }
 0x40d   :  { %v4654_v38 = vpop.eup %4653  ;;  %v3119_v14 = vmul.f32 0.5, %v3055_v62  ;;  %v3056_v43 = vadd.f32 1.0, %v4652_v54  ;;  %v2932_v0 = vmul.f32 0.7978846, %v2868_v41  ;;  %v2808_v28 = vmul.f32 0.044715, %v2744_v39 }
 0x40e   :  { %v4656_v49 = vpop.eup %4655  ;;  %v3117_v58 = vmul.f32 0.5, %v3053_v15  ;;  %v3054_v21 = vadd.f32 1.0, %v4654_v38  ;;  %v2930_v2 = vmul.f32 0.7978846, %v2866_v53  ;;  %v2871_v4 = vadd.f32 %v2807_v45, %v7013_v56 }
 0x40f   :  { %v3120_v32 = vmul.f32 0.5, %v3056_v43  ;;  %4659 = vtanh.f32 %v2932_v0  ;;  %v3183_v3 = vmul.f32 %v3119_v14, %v6927_v36  ;;  %v2869_v59 = vadd.f32 %v2805_v30, %v7017_v13 }
 0x410   :  { %v3118_v50 = vmul.f32 0.5, %v3054_v21  ;;  %4661 = vtanh.f32 %v2930_v2  ;;  %v2935_v24 = vmul.f32 0.7978846, %v2871_v4  ;;  %4333 = vmatmul.mubr.msk.bf16.gmra.mrb[104].mxu1 %vm3235_vm4, %v3218_v47  ;;  %v3181_v40 = vmul.f32 %v3117_v58, %v6931_v25 }
 0x411   :  { %v3184_v29 = vmul.f32 %v3120_v32, %v6935_v46  ;;  %v2872_v44 = vadd.f32 %v2808_v28, %v7023_v1  ;;  %4336 = vmatprep.mubr.msk.bf16.mxu1 %vm3235_vm4, %v3219_v37  ;;  %v4658_v61 = vpop.eup %4657  ;;  %v2806_v36 = vmul.f32 0.044715, %v2742_v20  ;;  %v3220_v26 = vpack.c.bf16 %v6995_v23, %v3179_v55 }
 0x412   :  { %v3182_v33 = vmul.f32 %v3118_v50, %v6939_v10  ;;  %4663 = vtanh.f32 %v2935_v24  ;;  %v2933_v51 = vmul.f32 0.7978846, %v2869_v59  ;;  %v3059_v46 = vadd.f32 1.0, %v4656_v49 }
 0x413   :  { %v2936_v31 = vmul.f32 0.7978846, %v2872_v44  ;;  %v2870_v42 = vadd.f32 %v2806_v36, %v7027_v34  ;;  %v3222_v12 = vpack.c.bf16 %v3184_v29, %v3183_v3  ;;  %v3057_v27 = vadd.f32 1.0, %v4658_v61 }
 0x414   :  { %v3221_v25 = vpack.c.bf16 %v3182_v33, %v3181_v40  ;;  %4665 = vtanh.f32 %v2933_v51  ;;  %v3123_v16 = vmul.f32 0.5, %v3059_v46 }
 0x415   :  { %4667 = vtanh.f32 %v2936_v31  ;;  %v2934_v5 = vmul.f32 0.7978846, %v2870_v42  ;;  %v3121_v9 = vmul.f32 0.5, %v3057_v27 }
 0x416   :  { %v3187_v48 = vmul.f32 %v3123_v16, %v6955_v8 }
 0x417   :  { %4669 = vtanh.f32 %v2934_v5  ;;  %v3185_v62 = vmul.f32 %v3121_v9, %v6965_v18 }
 0x418   :  { %4337 = vmatmul.mubr.msk.bf16.gmra.mrb[108].mxu1 %vm3235_vm4, %v3220_v26 }
 0x419   :  { %v4660_v7 = vpop.eup %4659  ;;  %4340 = vmatprep.mubr.msk.bf16.mxu1 %vm3235_vm4, %v3221_v25 }
 0x41a   :  { %v4662_v10 = vpop.eup %4661  ;;  %v3060_v23 = vadd.f32 1.0, %v4660_v7 }
 0x41b   :  { %v3058_v35 = vadd.f32 1.0, %v4662_v10 }
 0x41c   :  { %v4664_v47 = vpop.eup %4663  ;;  %v3124_v22 = vmul.f32 0.5, %v3060_v23 }
 0x41d   :  { %v3122_v6 = vmul.f32 0.5, %v3058_v35  ;;  %v3063_v57 = vadd.f32 1.0, %v4664_v47 }
 0x41e   :  { %v3188_v37 = vmul.f32 %v3124_v22, %v6992_v17  ;;  %v4666_v52 = vpop.eup %4665 }
 0x41f   :  { %v3186_v41 = vmul.f32 %v3122_v6, %v7000_v11  ;;  %v4668_v39 = vpop.eup %4667  ;;  %v3061_v20 = vadd.f32 1.0, %v4666_v52  ;;  %v3127_v15 = vmul.f32 0.5, %v3063_v57 }
 0x420   :  { %4341 = vmatmul.mubr.msk.bf16.gmra.mrb[112].mxu1 %vm3235_vm4, %v3222_v12  ;;  %v3224_v54 = vpack.c.bf16 %v3188_v37, %v3187_v48  ;;  %v3064_v53 = vadd.f32 1.0, %v4668_v39 }
 0x421   :  { %v3223_v45 = vpack.c.bf16 %v3186_v41, %v3185_v62  ;;  %v4670_v30 = vpop.eup %4669  ;;  %v3125_v38 = vmul.f32 0.5, %v3061_v20  ;;  %v3191_v8 = vmul.f32 %v3127_v15, %v7013_v56  ;;  %v7703_v15 = vld [vmem:[#allocation2_spill] sm:$0xff] }
 0x422   :  { %v3128_v14 = vmul.f32 0.5, %v3064_v53  ;;  %v3062_v43 = vadd.f32 1.0, %v4670_v30  ;;  %v7704_v30 = vld [vmem:[#allocation3_spill] sm:$0xff] }
 0x423   :  { %4344 = vmatprep.mubr.msk.bf16.mxu1 %vm3235_vm4, %v3223_v45  ;;  %v3189_v11 = vmul.f32 %v3125_v38, %v7017_v13 }
 0x424   :  { %v3192_v18 = vmul.f32 %v3128_v14, %v7023_v1  ;;  %v3126_v17 = vmul.f32 0.5, %v3062_v43 }
 0x426   :  { %v3190_v0 = vmul.f32 %v3126_v17, %v7027_v34  ;;  %v3226_v28 = vpack.c.bf16 %v3192_v18, %v3191_v8  ;;  %v7705_v8 = vld [vmem:[#allocation4_spill] sm:$0xff] }
 0x428   :  { %4345 = vmatmul.mubr.msk.bf16.gmra.mrb[116].mxu1 %vm3235_vm4, %v3224_v54  ;;  %v3225_v49 = vpack.c.bf16 %v3190_v0, %v3189_v11  ;;  %v7086_v54 = vld [vmem:[%s7483_s11] ss:$0 sm:$0xff]  ;;  %v7706_v0 = vld [vmem:[#allocation5_spill] sm:$0xff] }
 0x42a   :  { %4348 = vmatprep.mubr.msk.bf16.mxu1 %vm3235_vm4, %v3225_v49 }
 0x430   :  { %4349 = vmatmul.mubr.msk.bf16.gmra.mrb[120].mxu1 %vm3235_vm4, %v3226_v28 }
 0x437   :  { %v4286_v58 = vpop.f32.mrb[60].mxu1 }
 0x438   :  { %v2615_v21 = vadd.f32 %v6859_v63, %v4286_v58  ;;  %v2606_v2 = vpop.f32.mrb[61].mxu1 }
 0x439   :  { %v2607_v56 = vadd.f32 %v6859_v63, %v2606_v2  ;;  %v4287_v1 = vpop.f32.mrb[62].mxu1  ;;  %v7707_v2 = vld [vmem:[#allocation6_spill] sm:$0xff] }
 0x43a   :  { %v2683_v4 = vmul.f32 %v2615_v21, %v2615_v21  ;;  %v2618_v13 = vadd.f32 %v6859_v63, %v4287_v1  ;;  %v2609_v55 = vpop.f32.mrb[63].mxu1 }
 0x43b   :  { %v2681_v34 = vmul.f32 %v2607_v56, %v2607_v56  ;;  %v2610_v32 = vadd.f32 %v6859_v63, %v2609_v55 }
 0x43c   :  { %v2747_v3 = vmul.f32 %v2683_v4, %v2615_v21  ;;  %v2684_v50 = vmul.f32 %v2618_v13, %v2618_v13  ;;  %v7708_v4 = vld [vmem:[#allocation8_spill] sm:$0xff] }
 0x43d   :  { %v2745_v24 = vmul.f32 %v2681_v34, %v2607_v56  ;;  %v2682_v40 = vmul.f32 %v2610_v32, %v2610_v32 }
 0x43e   :  { %v2811_v29 = vmul.f32 0.044715, %v2747_v3  ;;  %v2748_v59 = vmul.f32 %v2684_v50, %v2618_v13 }
 0x43f   :  { %v2809_v44 = vmul.f32 0.044715, %v2745_v24  ;;  %v2746_v61 = vmul.f32 %v2682_v40, %v2610_v32  ;;  %v7710_v40 = vld [vmem:[#allocation9_spill] sm:$0xff] }
 0x440   :  { %v2875_v33 = vadd.f32 %v2811_v29, %v2615_v21  ;;  %v2812_v36 = vmul.f32 0.044715, %v2748_v59 }
 0x441   :  { %v2873_v26 = vadd.f32 %v2809_v44, %v2607_v56  ;;  %v2810_v51 = vmul.f32 0.044715, %v2746_v61 }
 0x442   :  { %v2939_v31 = vmul.f32 0.7978846, %v2875_v33  ;;  %v2876_v42 = vadd.f32 %v2812_v36, %v2618_v13  ;;  %v7711_v33 = vld [vmem:[#allocation10_spill] sm:$0xff] }
 0x443   :  { %v2937_v25 = vmul.f32 0.7978846, %v2873_v26  ;;  %v2874_v12 = vadd.f32 %v2810_v51, %v2610_v32  ;;  %v7712_v51 = vld [vmem:[#allocation12_spill] sm:$0xff] }
 0x444   :  { %4671 = vtanh.f32 %v2939_v31  ;;  %v2940_v46 = vmul.f32 0.7978846, %v2876_v42 }
 0x445   :  { %4673 = vtanh.f32 %v2937_v25  ;;  %v2938_v63 = vmul.f32 0.7978846, %v2874_v12  ;;  %v7713_v12 = vld [vmem:[#allocation11_spill] sm:$0xff] }
 0x446   :  { %4675 = vtanh.f32 %v2940_v46 }
 0x447   :  { %4677 = vtanh.f32 %v2938_v63 }
 0x44e   :  { %v4672_v5 = vpop.eup %4671 }
 0x44f   :  { %v4674_v27 = vpop.eup %4673  ;;  %v3067_v7 = vadd.f32 1.0, %v4672_v5 }
 0x450   :  { %v4676_v10 = vpop.eup %4675  ;;  %v3065_v16 = vadd.f32 1.0, %v4674_v27  ;;  %v7714_v27 = vld [vmem:[#allocation13_spill] sm:$0xff] }
 0x451   :  { %v4678_v23 = vpop.eup %4677  ;;  %v3131_v9 = vmul.f32 0.5, %v3067_v7  ;;  %v3068_v35 = vadd.f32 1.0, %v4676_v10 }
 0x452   :  { %v3129_v47 = vmul.f32 0.5, %v3065_v16  ;;  %v3066_v22 = vadd.f32 1.0, %v4678_v23 }
 0x453   :  { %v3132_v6 = vmul.f32 0.5, %v3068_v35  ;;  %v3195_v48 = vmul.f32 %v3131_v9, %v2615_v21  ;;  %v7715_v9 = vld [vmem:[#allocation14_spill] sm:$0xff] }
 0x454   :  { %v3130_v57 = vmul.f32 0.5, %v3066_v22  ;;  %v3193_v52 = vmul.f32 %v3129_v47, %v2607_v56  ;;  %v7716_v22 = vld [vmem:[#allocation16_spill] sm:$0xff] }
 0x455   :  { %v3196_v37 = vmul.f32 %v3132_v6, %v2618_v13 }
 0x456   :  { %v3194_v62 = vmul.f32 %v3130_v57, %v2610_v32  ;;  %v7709_v32 = vld [vmem:[#allocation7_spill] sm:$0xff] }
 0x457   :  { %v3228_v41 = vpack.c.bf16 %v3196_v37, %v3195_v48  ;;  %v7717_v37 = vld [vmem:[#allocation15_spill] sm:$0xff] }
 0x458   :  { %v3227_v39 = vpack.c.bf16 %v3194_v62, %v3193_v52 }
 0x45a   :  { %4352 = vmatprep.mubr.msk.bf16.mxu1 %vm3235_vm4, %v3227_v39  ;;  %v7718_v39 = vld [vmem:[#allocation17_spill] sm:$0xff] }
 0x45b   :  { %4353 = vmatmul.mubr.msk.bf16.gmra.mrb[124].mxu1 %vm3235_vm4, %v3228_v41 }
 0x47c   :  { %v4294_v20 = vpop.f32.mrb[64].mxu1 }
 0x47d   :  { %v3623_v53 = vadd.f32 %v4294_v20, %v7703_v15  ;;  %v3366_v45 = vpop.f32.mrb[65].mxu1 }
 0x47e   :  { %v3621_v38 = vadd.f32 %v3366_v45, %v7704_v30  ;;  %v4295_v14 = vpop.f32.mrb[66].mxu1  ;;  %v7719_v30 = vld [vmem:[#allocation18_spill] sm:$0xff] }
 0x47f   :  { %v3694_v43 = vadd.f32 %v7086_v54, %v3623_v53  ;;  %v3624_v18 = vadd.f32 %v4295_v14, %v7705_v8  ;;  %v3369_v17 = vpop.f32.mrb[67].mxu1 }
 0x480   :  { %v3692_v11 = vadd.f32 %v7086_v54, %v3621_v38  ;;  %v3622_v28 = vadd.f32 %v3369_v17, %v7706_v0 }
 0x481   :  { %3758 = vst.msk [vmem:[%s7484_s12 + $0x10] sm:$0xff] %vm1215_vm2, %v3694_v43  ;;  %v3695_v49 = vadd.f32 %v7086_v54, %v3624_v18  ;;  %v7720_v43 = vld [vmem:[#allocation20_spill] sm:$0xff] }
 0x482   :  { %3756 = vst.msk [vmem:[%s7484_s12] sm:$0xff] %vm1215_vm2, %v3692_v11  ;;  %v3693_v58 = vadd.f32 %v7086_v54, %v3622_v28  ;;  %v7721_v11 = vld [vmem:[#allocation19_spill] sm:$0xff] }
 0x483   :  { %3759 = vst.msk [vmem:[%s7484_s12 + $0x18] sm:$0xff] %vm1215_vm2, %v3695_v49 }
 0x484   :  { %3757 = vst.msk [vmem:[%s7484_s12 + $0x8] sm:$0xff] %vm1215_vm2, %v3693_v58  ;;  %v7722_v58 = vld [vmem:[#allocation21_spill] sm:$0xff] }
 0x488   :  { %v4298_v21 = vpop.f32.mrb[68].mxu1 }
 0x489   :  { %v3627_v56 = vadd.f32 %v4298_v21, %v7707_v2  ;;  %v3382_v1 = vpop.f32.mrb[69].mxu1 }
 0x48a   :  { %v3625_v13 = vadd.f32 %v3382_v1, %v7708_v4  ;;  %v4299_v55 = vpop.f32.mrb[70].mxu1  ;;  %v7723_v4 = vld [vmem:[#allocation22_spill] sm:$0xff] }
 0x48b   :  { %v3698_v34 = vadd.f32 %v7086_v54, %v3627_v56  ;;  %v3628_v3 = vadd.f32 %v4299_v55, %v7709_v32  ;;  %v3385_v50 = vpop.f32.mrb[71].mxu1 }
 0x48c   :  { %v3696_v24 = vadd.f32 %v7086_v54, %v3625_v13  ;;  %v3626_v29 = vadd.f32 %v3385_v50, %v7710_v40 }
 0x48d   :  { %3762 = vst.msk [vmem:[%s7484_s12 + $0x30] sm:$0xff] %vm1215_vm2, %v3698_v34  ;;  %v3699_v59 = vadd.f32 %v7086_v54, %v3628_v3  ;;  %v7724_v34 = vld [vmem:[#allocation24_spill] sm:$0xff] }
 0x48e   :  { %3760 = vst.msk [vmem:[%s7484_s12 + $0x20] sm:$0xff] %vm1215_vm2, %v3696_v24  ;;  %v3697_v44 = vadd.f32 %v7086_v54, %v3626_v29  ;;  %v7725_v24 = vld [vmem:[#allocation23_spill] sm:$0xff] }
 0x48f   :  { %3763 = vst.msk [vmem:[%s7484_s12 + $0x38] sm:$0xff] %vm1215_vm2, %v3699_v59 }
 0x490   :  { %3761 = vst.msk [vmem:[%s7484_s12 + $0x28] sm:$0xff] %vm1215_vm2, %v3697_v44  ;;  %v4302_v61 = vpop.f32.mrb[72].mxu1  ;;  %v7726_v44 = vld [vmem:[#allocation25_spill] sm:$0xff] }
 0x491   :  { %v3631_v36 = vadd.f32 %v4302_v61, %v7711_v33  ;;  %v3398_v26 = vpop.f32.mrb[73].mxu1 }
 0x492   :  { %v3629_v31 = vadd.f32 %v3398_v26, %v7712_v51  ;;  %v4303_v42 = vpop.f32.mrb[74].mxu1  ;;  %v7727_v51 = vld [vmem:[#allocation26_spill] sm:$0xff] }
 0x493   :  { %v3702_v25 = vadd.f32 %v7086_v54, %v3631_v36  ;;  %v3632_v46 = vadd.f32 %v4303_v42, %v7713_v12  ;;  %v3401_v63 = vpop.f32.mrb[75].mxu1 }
 0x494   :  { %v3700_v5 = vadd.f32 %v7086_v54, %v3629_v31  ;;  %v3630_v7 = vadd.f32 %v3401_v63, %v7714_v27 }
 0x495   :  { %3766 = vst.msk [vmem:[%s7484_s12 + $0x50] sm:$0xff] %vm1215_vm2, %v3702_v25  ;;  %v3703_v10 = vadd.f32 %v7086_v54, %v3632_v46  ;;  %v7728_v25 = vld [vmem:[#allocation28_spill] sm:$0xff] }
 0x496   :  { %3764 = vst.msk [vmem:[%s7484_s12 + $0x40] sm:$0xff] %vm1215_vm2, %v3700_v5  ;;  %v3701_v16 = vadd.f32 %v7086_v54, %v3630_v7  ;;  %v7729_v5 = vld [vmem:[#allocation27_spill] sm:$0xff] }
 0x497   :  { %3767 = vst.msk [vmem:[%s7484_s12 + $0x58] sm:$0xff] %vm1215_vm2, %v3703_v10 }
 0x498   :  { %3765 = vst.msk [vmem:[%s7484_s12 + $0x48] sm:$0xff] %vm1215_vm2, %v3701_v16  ;;  %v4306_v23 = vpop.f32.mrb[76].mxu1  ;;  %v7730_v16 = vld [vmem:[#allocation29_spill] sm:$0xff] }
 0x499   :  { %v3635_v35 = vadd.f32 %v4306_v23, %v7715_v9  ;;  %v3414_v47 = vpop.f32.mrb[77].mxu1 }
 0x49a   :  { %v3633_v6 = vadd.f32 %v3414_v47, %v7716_v22  ;;  %v4307_v57 = vpop.f32.mrb[78].mxu1  ;;  %v7731_v22 = vld [vmem:[#allocation30_spill] sm:$0xff] }
 0x49b   :  { %v3706_v48 = vadd.f32 %v7086_v54, %v3635_v35  ;;  %v3636_v52 = vadd.f32 %v4307_v57, %v7717_v37  ;;  %v3417_v62 = vpop.f32.mrb[79].mxu1 }
 0x49c   :  { %v3704_v41 = vadd.f32 %v7086_v54, %v3633_v6  ;;  %v3634_v20 = vadd.f32 %v3417_v62, %v7718_v39 }
 0x49d   :  { %3770 = vst.msk [vmem:[%s7484_s12 + $0x70] sm:$0xff] %vm1215_vm2, %v3706_v48  ;;  %v3707_v15 = vadd.f32 %v7086_v54, %v3636_v52  ;;  %v7732_v48 = vld [vmem:[#allocation32_spill] sm:$0xff] }
 0x49e   :  { %3768 = vst.msk [vmem:[%s7484_s12 + $0x60] sm:$0xff] %vm1215_vm2, %v3704_v41  ;;  %v3705_v53 = vadd.f32 %v7086_v54, %v3634_v20  ;;  %v7733_v41 = vld [vmem:[#allocation31_spill] sm:$0xff] }
 0x49f   :  { %3771 = vst.msk [vmem:[%s7484_s12 + $0x78] sm:$0xff] %vm1215_vm2, %v3707_v15 }
 0x4a0   :  { %3769 = vst.msk [vmem:[%s7484_s12 + $0x68] sm:$0xff] %vm1215_vm2, %v3705_v53  ;;  %v4310_v45 = vpop.f32.mrb[80].mxu1  ;;  %v7734_v53 = vld [vmem:[#allocation33_spill] sm:$0xff] }
 0x4a1   :  { %v3639_v38 = vadd.f32 %v4310_v45, %v7719_v30  ;;  %v3430_v14 = vpop.f32.mrb[81].mxu1 }
 0x4a2   :  { %v3637_v8 = vadd.f32 %v3430_v14, %v7720_v43  ;;  %v4311_v18 = vpop.f32.mrb[82].mxu1  ;;  %v7735_v43 = vld [vmem:[#allocation34_spill] sm:$0xff] }
 0x4a3   :  { %v3710_v17 = vadd.f32 %v7086_v54, %v3639_v38  ;;  %v3640_v0 = vadd.f32 %v4311_v18, %v7721_v11  ;;  %v3433_v28 = vpop.f32.mrb[83].mxu1 }
 0x4a4   :  { %v3708_v49 = vadd.f32 %v7086_v54, %v3637_v8  ;;  %v3638_v21 = vadd.f32 %v3433_v28, %v7722_v58 }
 0x4a5   :  { %3774 = vst.msk [vmem:[%s7484_s12 + $0x90] sm:$0xff] %vm1215_vm2, %v3710_v17  ;;  %v3711_v2 = vadd.f32 %v7086_v54, %v3640_v0  ;;  %v7736_v17 = vld [vmem:[#allocation36_spill] sm:$0xff] }
 0x4a6   :  { %3772 = vst.msk [vmem:[%s7484_s12 + $0x80] sm:$0xff] %vm1215_vm2, %v3708_v49  ;;  %v3709_v56 = vadd.f32 %v7086_v54, %v3638_v21  ;;  %v7737_v49 = vld [vmem:[#allocation35_spill] sm:$0xff] }
 0x4a7   :  { %3775 = vst.msk [vmem:[%s7484_s12 + $0x98] sm:$0xff] %vm1215_vm2, %v3711_v2 }
 0x4a8   :  { %3773 = vst.msk [vmem:[%s7484_s12 + $0x88] sm:$0xff] %vm1215_vm2, %v3709_v56  ;;  %v7738_v56 = vld [vmem:[#allocation37_spill] sm:$0xff] }
 0x4ab   :  { %v4314_v1 = vpop.f32.mrb[84].mxu1 }
 0x4ac   :  { %v3643_v13 = vadd.f32 %v4314_v1, %v7723_v4  ;;  %v3446_v55 = vpop.f32.mrb[85].mxu1 }
 0x4ad   :  { %v3641_v32 = vadd.f32 %v3446_v55, %v7724_v34  ;;  %v4315_v3 = vpop.f32.mrb[86].mxu1  ;;  %v7739_v34 = vld [vmem:[#allocation38_spill] sm:$0xff] }
 0x4ae   :  { %v3714_v50 = vadd.f32 %v7086_v54, %v3643_v13  ;;  %v3644_v40 = vadd.f32 %v4315_v3, %v7725_v24  ;;  %v3449_v29 = vpop.f32.mrb[87].mxu1 }
 0x4af   :  { %v3712_v59 = vadd.f32 %v7086_v54, %v3641_v32  ;;  %v3642_v61 = vadd.f32 %v3449_v29, %v7726_v44 }
 0x4b0   :  { %3778 = vst.msk [vmem:[%s7484_s12 + $0xb0] sm:$0xff] %vm1215_vm2, %v3714_v50  ;;  %v3715_v33 = vadd.f32 %v7086_v54, %v3644_v40  ;;  %v7740_v50 = vld [vmem:[#allocation40_spill] sm:$0xff] }
 0x4b1   :  { %3776 = vst.msk [vmem:[%s7484_s12 + $0xa0] sm:$0xff] %vm1215_vm2, %v3712_v59  ;;  %v3713_v36 = vadd.f32 %v7086_v54, %v3642_v61  ;;  %v7741_v59 = vld [vmem:[#allocation39_spill] sm:$0xff] }
 0x4b2   :  { %3779 = vst.msk [vmem:[%s7484_s12 + $0xb8] sm:$0xff] %vm1215_vm2, %v3715_v33 }
 0x4b3   :  { %3777 = vst.msk [vmem:[%s7484_s12 + $0xa8] sm:$0xff] %vm1215_vm2, %v3713_v36  ;;  %v7742_v36 = vld [vmem:[#allocation41_spill] sm:$0xff] }
 0x4bb   :  { %v4318_v26 = vpop.f32.mrb[88].mxu1 }
 0x4bc   :  { %v3647_v31 = vadd.f32 %v4318_v26, %v7727_v51  ;;  %v3462_v42 = vpop.f32.mrb[89].mxu1 }
 0x4bd   :  { %v3645_v12 = vadd.f32 %v3462_v42, %v7728_v25  ;;  %v4319_v46 = vpop.f32.mrb[90].mxu1  ;;  %v7743_v25 = vld [vmem:[#allocation42_spill] sm:$0xff] }
 0x4be   :  { %v3718_v63 = vadd.f32 %v7086_v54, %v3647_v31  ;;  %v3648_v27 = vadd.f32 %v4319_v46, %v7729_v5  ;;  %v3465_v7 = vpop.f32.mrb[91].mxu1 }
 0x4bf   :  { %v3716_v10 = vadd.f32 %v7086_v54, %v3645_v12  ;;  %v3646_v23 = vadd.f32 %v3465_v7, %v7730_v16 }
 0x4c0   :  { %3782 = vst.msk [vmem:[%s7484_s12 + $0xd0] sm:$0xff] %vm1215_vm2, %v3718_v63  ;;  %v3719_v9 = vadd.f32 %v7086_v54, %v3648_v27  ;;  %v7744_v63 = vld [vmem:[#allocation44_spill] sm:$0xff] }
 0x4c1   :  { %3780 = vst.msk [vmem:[%s7484_s12 + $0xc0] sm:$0xff] %vm1215_vm2, %v3716_v10  ;;  %v3717_v35 = vadd.f32 %v7086_v54, %v3646_v23  ;;  %v7745_v10 = vld [vmem:[#allocation43_spill] sm:$0xff] }
 0x4c2   :  { %3783 = vst.msk [vmem:[%s7484_s12 + $0xd8] sm:$0xff] %vm1215_vm2, %v3719_v9 }
 0x4c3   :  { %3781 = vst.msk [vmem:[%s7484_s12 + $0xc8] sm:$0xff] %vm1215_vm2, %v3717_v35  ;;  %v7746_v35 = vld [vmem:[#allocation45_spill] sm:$0xff] }
 0x4c7   :  { %v4322_v47 = vpop.f32.mrb[92].mxu1 }
 0x4c8   :  { %v3651_v6 = vadd.f32 %v4322_v47, %v7731_v22  ;;  %v3478_v57 = vpop.f32.mrb[93].mxu1 }
 0x4c9   :  { %v3649_v37 = vadd.f32 %v3478_v57, %v7732_v48  ;;  %v4323_v52 = vpop.f32.mrb[94].mxu1  ;;  %v7747_v48 = vld [vmem:[#allocation46_spill] sm:$0xff] }
 0x4ca   :  { %v3722_v62 = vadd.f32 %v7086_v54, %v3651_v6  ;;  %v3652_v39 = vadd.f32 %v4323_v52, %v7733_v41  ;;  %v3481_v20 = vpop.f32.mrb[95].mxu1 }
 0x4cb   :  { %v3720_v15 = vadd.f32 %v7086_v54, %v3649_v37  ;;  %v3650_v45 = vadd.f32 %v3481_v20, %v7734_v53 }
 0x4cc   :  { %3786 = vst.msk [vmem:[%s7484_s12 + $0xf0] sm:$0xff] %vm1215_vm2, %v3722_v62  ;;  %v3723_v30 = vadd.f32 %v7086_v54, %v3652_v39  ;;  %v7748_v62 = vld [vmem:[#allocation48_spill] sm:$0xff] }
 0x4cd   :  { %3784 = vst.msk [vmem:[%s7484_s12 + $0xe0] sm:$0xff] %vm1215_vm2, %v3720_v15  ;;  %v3721_v38 = vadd.f32 %v7086_v54, %v3650_v45  ;;  %v7749_v15 = vld [vmem:[#allocation47_spill] sm:$0xff] }
 0x4ce   :  { %3787 = vst.msk [vmem:[%s7484_s12 + $0xf8] sm:$0xff] %vm1215_vm2, %v3723_v30 }
 0x4cf   :  { %3785 = vst.msk [vmem:[%s7484_s12 + $0xe8] sm:$0xff] %vm1215_vm2, %v3721_v38  ;;  %v4326_v14 = vpop.f32.mrb[96].mxu1  ;;  %v7750_v38 = vld [vmem:[#allocation49_spill] sm:$0xff] }
 0x4d0   :  { %v3655_v8 = vadd.f32 %v4326_v14, %v7735_v43  ;;  %v3494_v18 = vpop.f32.mrb[97].mxu1 }
 0x4d1   :  { %v3653_v11 = vadd.f32 %v3494_v18, %v7736_v17  ;;  %v4327_v0 = vpop.f32.mrb[98].mxu1  ;;  %v7751_v17 = vld [vmem:[#allocation50_spill] sm:$0xff] }
 0x4d2   :  { %v3726_v28 = vadd.f32 %v7086_v54, %v3655_v8  ;;  %v3656_v58 = vadd.f32 %v4327_v0, %v7737_v49  ;;  %v3497_v21 = vpop.f32.mrb[99].mxu1 }
 0x4d3   :  { %v3724_v2 = vadd.f32 %v7086_v54, %v3653_v11  ;;  %v3654_v1 = vadd.f32 %v3497_v21, %v7738_v56 }
 0x4d4   :  { %3790 = vst.msk [vmem:[%s7484_s12 + $0x110] sm:$0xff] %vm1215_vm2, %v3726_v28  ;;  %v3727_v4 = vadd.f32 %v7086_v54, %v3656_v58  ;;  %v7752_v28 = vld [vmem:[#allocation52_spill] sm:$0xff] }
 0x4d5   :  { %3788 = vst.msk [vmem:[%s7484_s12 + $0x100] sm:$0xff] %vm1215_vm2, %v3724_v2  ;;  %v3725_v13 = vadd.f32 %v7086_v54, %v3654_v1  ;;  %v7753_v2 = vld [vmem:[#allocation51_spill] sm:$0xff] }
 0x4d6   :  { %3791 = vst.msk [vmem:[%s7484_s12 + $0x118] sm:$0xff] %vm1215_vm2, %v3727_v4 }
 0x4d7   :  { %3789 = vst.msk [vmem:[%s7484_s12 + $0x108] sm:$0xff] %vm1215_vm2, %v3725_v13  ;;  %v7754_v13 = vld [vmem:[#allocation53_spill] sm:$0xff] }
 0x4db   :  { %v4330_v55 = vpop.f32.mrb[100].mxu1 }
 0x4dc   :  { %v3659_v32 = vadd.f32 %v4330_v55, %v7739_v34  ;;  %v3510_v3 = vpop.f32.mrb[101].mxu1 }
 0x4dd   :  { %v3657_v24 = vadd.f32 %v3510_v3, %v7740_v50  ;;  %v4331_v40 = vpop.f32.mrb[102].mxu1  ;;  %v7755_v50 = vld [vmem:[#allocation54_spill] sm:$0xff] }
 0x4de   :  { %v3730_v29 = vadd.f32 %v7086_v54, %v3659_v32  ;;  %v3660_v44 = vadd.f32 %v4331_v40, %v7741_v59  ;;  %v3513_v61 = vpop.f32.mrb[103].mxu1 }
 0x4df   :  { %v3728_v33 = vadd.f32 %v7086_v54, %v3657_v24  ;;  %v3658_v26 = vadd.f32 %v3513_v61, %v7742_v36 }
 0x4e0   :  { %3794 = vst.msk [vmem:[%s7484_s12 + $0x130] sm:$0xff] %vm1215_vm2, %v3730_v29  ;;  %v3731_v51 = vadd.f32 %v7086_v54, %v3660_v44  ;;  %v7756_v29 = vld [vmem:[#allocation56_spill] sm:$0xff] }
 0x4e1   :  { %3792 = vst.msk [vmem:[%s7484_s12 + $0x120] sm:$0xff] %vm1215_vm2, %v3728_v33  ;;  %v3729_v31 = vadd.f32 %v7086_v54, %v3658_v26  ;;  %v7757_v33 = vld [vmem:[#allocation55_spill] sm:$0xff] }
 0x4e2   :  { %3795 = vst.msk [vmem:[%s7484_s12 + $0x138] sm:$0xff] %vm1215_vm2, %v3731_v51 }
 0x4e3   :  { %3793 = vst.msk [vmem:[%s7484_s12 + $0x128] sm:$0xff] %vm1215_vm2, %v3729_v31  ;;  %v4334_v42 = vpop.f32.mrb[104].mxu1  ;;  %v7758_v31 = vld [vmem:[#allocation57_spill] sm:$0xff] }
 0x4e4   :  { %v3663_v12 = vadd.f32 %v4334_v42, %v7743_v25  ;;  %v3526_v46 = vpop.f32.mrb[105].mxu1 }
 0x4e5   :  { %v3661_v5 = vadd.f32 %v3526_v46, %v7744_v63  ;;  %v4335_v27 = vpop.f32.mrb[106].mxu1  ;;  %v7759_v63 = vld [vmem:[#allocation58_spill] sm:$0xff] }
 0x4e6   :  { %v3734_v7 = vadd.f32 %v7086_v54, %v3663_v12  ;;  %v3664_v16 = vadd.f32 %v4335_v27, %v7745_v10  ;;  %v3529_v23 = vpop.f32.mrb[107].mxu1 }
 0x4e7   :  { %v3732_v9 = vadd.f32 %v7086_v54, %v3661_v5  ;;  %v3662_v47 = vadd.f32 %v3529_v23, %v7746_v35 }
 0x4e8   :  { %3798 = vst.msk [vmem:[%s7484_s12 + $0x150] sm:$0xff] %vm1215_vm2, %v3734_v7  ;;  %v3735_v22 = vadd.f32 %v7086_v54, %v3664_v16  ;;  %v7760_v7 = vld [vmem:[#allocation60_spill] sm:$0xff] }
 0x4e9   :  { %3796 = vst.msk [vmem:[%s7484_s12 + $0x140] sm:$0xff] %vm1215_vm2, %v3732_v9  ;;  %v3733_v6 = vadd.f32 %v7086_v54, %v3662_v47  ;;  %v7761_v9 = vld [vmem:[#allocation59_spill] sm:$0xff] }
 0x4ea   :  { %3799 = vst.msk [vmem:[%s7484_s12 + $0x158] sm:$0xff] %vm1215_vm2, %v3735_v22 }
 0x4eb   :  { %3797 = vst.msk [vmem:[%s7484_s12 + $0x148] sm:$0xff] %vm1215_vm2, %v3733_v6  ;;  %v4338_v57 = vpop.f32.mrb[108].mxu1  ;;  %v7762_v6 = vld [vmem:[#allocation61_spill] sm:$0xff] }
 0x4ec   :  { %v3667_v37 = vadd.f32 %v4338_v57, %v7747_v48  ;;  %v3542_v52 = vpop.f32.mrb[109].mxu1 }
 0x4ed   :  { %v3665_v41 = vadd.f32 %v3542_v52, %v7748_v62  ;;  %v4339_v39 = vpop.f32.mrb[110].mxu1 }
 0x4ee   :  { %v3738_v20 = vadd.f32 %v7086_v54, %v3667_v37  ;;  %v3668_v53 = vadd.f32 %v4339_v39, %v7749_v15  ;;  %v3545_v45 = vpop.f32.mrb[111].mxu1  ;;  %v7763_v39 = vld [vmem:[#allocation62_spill] sm:$0xff] }
 0x4ef   :  { %v3736_v30 = vadd.f32 %v7086_v54, %v3665_v41  ;;  %v3666_v14 = vadd.f32 %v3545_v45, %v7750_v38 }
 0x4f0   :  { %3802 = vst.msk [vmem:[%s7484_s12 + $0x170] sm:$0xff] %vm1215_vm2, %v3738_v20  ;;  %v3739_v43 = vadd.f32 %v7086_v54, %v3668_v53 }
 0x4f1   :  { %3800 = vst.msk [vmem:[%s7484_s12 + $0x160] sm:$0xff] %vm1215_vm2, %v3736_v30  ;;  %v3737_v8 = vadd.f32 %v7086_v54, %v3666_v14  ;;  %v7764_v14 = vld [vmem:[#allocation63_spill] sm:$0xff] }
 0x4f2   :  { %3803 = vst.msk [vmem:[%s7484_s12 + $0x178] sm:$0xff] %vm1215_vm2, %v3739_v43 }
 0x4f3   :  { %3801 = vst.msk [vmem:[%s7484_s12 + $0x168] sm:$0xff] %vm1215_vm2, %v3737_v8  ;;  %v4342_v18 = vpop.f32.mrb[112].mxu1 }
 0x4f4   :  { %v3671_v11 = vadd.f32 %v4342_v18, %v7751_v17  ;;  %v3558_v0 = vpop.f32.mrb[113].mxu1 }
 0x4f5   :  { %v3669_v49 = vadd.f32 %v3558_v0, %v7752_v28  ;;  %v4343_v58 = vpop.f32.mrb[114].mxu1 }
 0x4f6   :  { %v3742_v21 = vadd.f32 %v7086_v54, %v3671_v11  ;;  %v3672_v56 = vadd.f32 %v4343_v58, %v7753_v2  ;;  %v3561_v1 = vpop.f32.mrb[115].mxu1 }
 0x4f7   :  { %v3740_v4 = vadd.f32 %v7086_v54, %v3669_v49  ;;  %v3670_v55 = vadd.f32 %v3561_v1, %v7754_v13 }
 0x4f8   :  { %3806 = vst.msk [vmem:[%s7484_s12 + $0x190] sm:$0xff] %vm1215_vm2, %v3742_v21  ;;  %v3743_v34 = vadd.f32 %v7086_v54, %v3672_v56 }
 0x4f9   :  { %3804 = vst.msk [vmem:[%s7484_s12 + $0x180] sm:$0xff] %vm1215_vm2, %v3740_v4  ;;  %v3741_v32 = vadd.f32 %v7086_v54, %v3670_v55 }
 0x4fa   :  { %3807 = vst.msk [vmem:[%s7484_s12 + $0x198] sm:$0xff] %vm1215_vm2, %v3743_v34 }
 0x4fb   :  { %3805 = vst.msk [vmem:[%s7484_s12 + $0x188] sm:$0xff] %vm1215_vm2, %v3741_v32  ;;  %v4346_v3 = vpop.f32.mrb[116].mxu1 }
 0x4fc   :  { %v3675_v24 = vadd.f32 %v4346_v3, %v7755_v50  ;;  %v3574_v40 = vpop.f32.mrb[117].mxu1 }
 0x4fd   :  { %v3673_v59 = vadd.f32 %v3574_v40, %v7756_v29  ;;  %v4347_v44 = vpop.f32.mrb[118].mxu1 }
 0x4fe   :  { %v3746_v61 = vadd.f32 %v7086_v54, %v3675_v24  ;;  %v3676_v36 = vadd.f32 %v4347_v44, %v7757_v33  ;;  %v3577_v26 = vpop.f32.mrb[119].mxu1 }
 0x4ff   :  { %v3744_v51 = vadd.f32 %v7086_v54, %v3673_v59  ;;  %v3674_v42 = vadd.f32 %v3577_v26, %v7758_v31 }
 0x500   :  { %3810 = vst.msk [vmem:[%s7484_s12 + $0x1b0] sm:$0xff] %vm1215_vm2, %v3746_v61  ;;  %v3747_v25 = vadd.f32 %v7086_v54, %v3676_v36 }
 0x501   :  { %3808 = vst.msk [vmem:[%s7484_s12 + $0x1a0] sm:$0xff] %vm1215_vm2, %v3744_v51  ;;  %v3745_v12 = vadd.f32 %v7086_v54, %v3674_v42 }
 0x502   :  { %3811 = vst.msk [vmem:[%s7484_s12 + $0x1b8] sm:$0xff] %vm1215_vm2, %v3747_v25 }
 0x503   :  { %3809 = vst.msk [vmem:[%s7484_s12 + $0x1a8] sm:$0xff] %vm1215_vm2, %v3745_v12  ;;  %v4350_v46 = vpop.f32.mrb[120].mxu1 }
 0x504   :  { %v3679_v5 = vadd.f32 %v4350_v46, %v7759_v63  ;;  %v3590_v27 = vpop.f32.mrb[121].mxu1 }
 0x505   :  { %v3677_v10 = vadd.f32 %v3590_v27, %v7760_v7  ;;  %v4351_v16 = vpop.f32.mrb[122].mxu1 }
 0x506   :  { %v3750_v23 = vadd.f32 %v7086_v54, %v3679_v5  ;;  %v3680_v35 = vadd.f32 %v4351_v16, %v7761_v9  ;;  %v3593_v47 = vpop.f32.mrb[123].mxu1 }
 0x507   :  { %v3748_v22 = vadd.f32 %v7086_v54, %v3677_v10  ;;  %v3678_v57 = vadd.f32 %v3593_v47, %v7762_v6 }
 0x508   :  { %3814 = vst.msk [vmem:[%s7484_s12 + $0x1d0] sm:$0xff] %vm1215_vm2, %v3750_v23  ;;  %v3751_v48 = vadd.f32 %v7086_v54, %v3680_v35 }
 0x509   :  { %3812 = vst.msk [vmem:[%s7484_s12 + $0x1c0] sm:$0xff] %vm1215_vm2, %v3748_v22  ;;  %v3749_v37 = vadd.f32 %v7086_v54, %v3678_v57 }
 0x50a   :  { %3815 = vst.msk [vmem:[%s7484_s12 + $0x1d8] sm:$0xff] %vm1215_vm2, %v3751_v48 }
 0x50b   :  { %3813 = vst.msk [vmem:[%s7484_s12 + $0x1c8] sm:$0xff] %vm1215_vm2, %v3749_v37 }
 0x52e   :  { %v4354_v52 = vpop.f32.mrb[124].mxu1 }
 0x52f   :  { %v3683_v62 = vadd.f32 %v4354_v52, %v5865_v19  ;;  %v3606_v41 = vpop.f32.mrb[125].mxu1 }
 0x530   :  { %v3681_v20 = vadd.f32 %v3606_v41, %v7763_v39  ;;  %v4355_v15 = vpop.f32.mrb[126].mxu1 }
 0x531   :  { %v3754_v53 = vadd.f32 %v7086_v54, %v3683_v62  ;;  %v3684_v45 = vadd.f32 %v4355_v15, %v5871_v60  ;;  %v3609_v30 = vpop.f32.mrb[127].mxu1 }
 0x532   :  { %v3752_v38 = vadd.f32 %v7086_v54, %v3681_v20  ;;  %v3682_v43 = vadd.f32 %v3609_v30, %v7764_v14 }
 0x533   :  { %3818 = vst.msk [vmem:[%s7484_s12 + $0x1f0] sm:$0xff] %vm1215_vm2, %v3754_v53  ;;  %v3755_v19 = vadd.f32 %v7086_v54, %v3684_v45 }
 0x534   :  { %3816 = vst.msk [vmem:[%s7484_s12 + $0x1e0] sm:$0xff] %vm1215_vm2, %v3752_v38  ;;  %v3753_v8 = vadd.f32 %v7086_v54, %v3682_v43 }
 0x535   :  { %3819 = vst.msk [vmem:[%s7484_s12 + $0x1f8] sm:$0xff] %vm1215_vm2, %v3755_v19 }
 0x536   :  { %3817 = vst.msk [vmem:[%s7484_s12 + $0x1e8] sm:$0xff] %vm1215_vm2, %v3753_v8 }

// kernel: attention_blocks_forward.14
= control target key start
LH: loop header
LB: loop body
LE: loop exit
PB: predicated region body
PF: predicated region fallthrough
CT: control target
= control target key end

     0   :  { %v648_v0 = vmov 0.0   ;;  %vm33_vm0 = vcmask 261120   ;;  %vm649_vm1 = vmmov 0   ;;  %vm128_vm2 = vcmask 130048   ;;  %s806_s1 = inlined_call_operand.vmem [shape: f32[2,16,64], index: 1, kind: input, shape index: {}]   ;;  %s807_s0 = inlined_call_operand.vmem [shape: f32[2,16,64], index: 0, kind: input, shape index: {}]   ;;  %s808_s2 = inlined_call_operand.vmem [shape: f32[2,16,64], index: 2, kind: input, shape index: {}]   ;;  %s809_s3 = inlined_call_operand.vmem [shape: f32[2,16,64], index: 3, kind: output, shape index: {}]  }
   0x1   :  { %564 = vmatprep.subr.bf16.mxu0 %v648_v0  ;;  %570 = vmatprep.subr.bf16.mxu1 %v648_v0  ;;  %v19_v1 = vld [vmem:[%s806_s1] sm:$0xff]  ;;  %v20_v2 = vld [vmem:[%s806_s1 + $0x8] sm:$0xff]  ;;  %v21_v3 = vld [vmem:[%s806_s1 + $0x10] sm:$0xff]  ;;  %vm531_vm3 = vcmask 523264  }
   0x2   :  { %v683_v4 = vpack.c.bf16 %v20_v2, %v19_v1  ;;  %v22_v5 = vld [vmem:[%s806_s1 + $0x18] sm:$0xff]  ;;  %566 = vmatprep.mubr.msk.bf16.mxu0 %vm649_vm1, %v648_v0  ;;  %572 = vmatprep.mubr.msk.bf16.mxu1 %vm649_vm1, %v648_v0  ;;  %v15_v9 = vld [vmem:[%s807_s0] sm:$0xff]  ;;  %v16_v10 = vld [vmem:[%s807_s0 + $0x8] sm:$0xff] }
   0x3   :  { %v30_v6 = vpack.c.bf16 %v22_v5, %v21_v3  ;;  %v17_v11 = vld [vmem:[%s807_s0 + $0x10] sm:$0xff]  ;;  %v18_v12 = vld [vmem:[%s807_s0 + $0x18] sm:$0xff]  ;;  %v27_v13 = vpack.c.bf16 %v16_v10, %v15_v9  ;;  %s650_s0 = smov 96   ;;  %v23_v47 = vld [vmem:[%s808_s2] sm:$0xff] }
   0x4   :  { %v38_v7 = vsel %vm33_vm0, %v683_v4, 0  ;;  %v28_v14 = vpack.c.bf16 %v18_v12, %v17_v11  ;;  %v24_v48 = vld [vmem:[%s808_s2 + $0x8] sm:$0xff]  ;;  %v25_v50 = vld [vmem:[%s808_s2 + $0x10] sm:$0xff]  ;;  %v26_v51 = vld [vmem:[%s808_s2 + $0x18] sm:$0xff]  ;;  %s651_s2 = smov 32  }
   0x5   :  { %565 = vmatpush3.bf16.xpose.msra.mxu0 %v38_v7  ;;  %v85_v8 = vsel %vm33_vm0, %v30_v6, 0  ;;  %v730_v49 = vpack.c.bf16 %v24_v48, %v23_v47  ;;  %v742_v52 = vpack.c.bf16 %v26_v51, %v25_v50 }
   0x6   :  { %571 = vmatpush3.bf16.xpose.msra.mxu1 %v85_v8  ;;  %576 = vmatprep.subr.bf16.mxu0 %v648_v0 }
   0x7   :  { %582 = vmatprep.subr.bf16.mxu1 %v648_v0 }
   0xc   :  { %567 = vmatmul.mubr.msk.bf16.vlgmr.msra.gmra.mrb[0].mxu0 %vm33_vm0, %v27_v13 }
   0xd   :  { %573 = vmatmul.mubr.msk.bf16.vlgmr.msra.gmra.mrb[0].mxu1 %vm33_vm0, %v28_v14  ;;  %578 = vmatprep.mubr.msk.bf16.mxu0 %vm649_vm1, %v648_v0 }
   0xe   :  { %584 = vmatprep.mubr.msk.bf16.mxu1 %vm649_vm1, %v648_v0  ;;  %577 = vmatpush3.bf16.msra.mxu0 %v730_v49 }
   0xf   :  { %588 = vmatprep.subr.bf16.mxu0 %v648_v0  ;;  %583 = vmatpush3.bf16.msra.mxu1 %v742_v52 }
  0x10   :  { %594 = vmatprep.subr.bf16.mxu1 %v648_v0 }
  0xdf   :  { %v74_v15 = vpop.f32.mrb[0].mxu0 }
  0xe0   :  { %v121_v16 = vpop.f32.mrb[0].mxu1  ;;  %v568_v17 = vpop.f32.mrb[1].mxu0  ;;  %v129_v18 = vsel %vm128_vm2, %v74_v15, -inf }
  0xe1   :  { %v135_v19 = vsel %vm128_vm2, %v121_v16, -inf  ;;  %v574_v20 = vpop.f32.mrb[1].mxu1  ;;  %130 = vmax.xlane.f32.xlu0 %v129_v18  ;;  %v77_v21 = vpop.f32.mrb[2].mxu0 }
  0xe2   :  { %136 = vmax.xlane.f32.xlu1 %v135_v19  ;;  %v569_v22 = vpop.f32.mrb[3].mxu0  ;;  %v124_v23 = vpop.f32.mrb[2].mxu1  ;;  %v132_v26 = vsel %vm128_vm2, %v77_v21, -inf }
  0xe3   :  { %v575_v24 = vpop.f32.mrb[3].mxu1  ;;  %v138_v25 = vsel %vm128_vm2, %v124_v23, -inf }
  0xe5   :  { %133 = vmax.xlane.f32.xlu0 %v132_v26 }
  0xe6   :  { %139 = vmax.xlane.f32.xlu1 %v138_v25 }
  0xf7   :  { %320 = vrot.lane.b32.xlu1 %v30_v6, %s650_s0 }
 0x16e   :  { %v131_v27 = vpop.xlane.xlu0 %130 }
 0x16f   :  { %v137_v28 = vpop.xlane.xlu1 %136  ;;  %v141_v29 = vsub.f32 %v74_v15, %v131_v27 }
 0x170   :  { %v143_v30 = vsub.f32 %v121_v16, %v137_v28 }
 0x171   :  { %v145_v31 = vmul.f32 1.442695, %v141_v29 }
 0x172   :  { %v149_v32 = vmul.f32 1.442695, %v143_v30  ;;  %v134_v33 = vpop.xlane.xlu0 %133 }
 0x173   :  { %616 = vpow2.f32 %v145_v31  ;;  %v140_v34 = vpop.xlane.xlu1 %139  ;;  %v142_v35 = vsub.f32 %v77_v21, %v134_v33 }
 0x174   :  { %v144_v36 = vsub.f32 %v124_v23, %v140_v34  ;;  %618 = vpow2.f32 %v149_v32 }
 0x175   :  { %v147_v37 = vmul.f32 1.442695, %v142_v35 }
 0x176   :  { %v151_v38 = vmul.f32 1.442695, %v144_v36 }
 0x177   :  { %620 = vpow2.f32 %v147_v37  ;;  %v321_v53 = vpop.permute.xlu1 %320 }
 0x178   :  { %622 = vpow2.f32 %v151_v38  ;;  %v326_v8 = vsel %vm33_vm0, %v321_v53, 0 }
 0x17d   :  { %v617_v39 = vpop.eup %616 }
 0x17e   :  { %v153_v40 = vsel %vm128_vm2, %v617_v39, 0.0  ;;  %v619_v41 = vpop.eup %618 }
 0x17f   :  { %154 = vadd.xlane.f32.xlu0 %v153_v40  ;;  %v159_v43 = vsel %vm128_vm2, %v619_v41, 0.0 }
 0x181   :  { %v621_v42 = vpop.eup %620 }
 0x182   :  { %v156_v44 = vsel %vm128_vm2, %v621_v42, 0.0  ;;  %v623_v45 = vpop.eup %622 }
 0x183   :  { %160 = vadd.xlane.f32.xlu0 %v159_v43  ;;  %157 = vadd.xlane.f32.xlu1 %v156_v44  ;;  %v162_v46 = vsel %vm128_vm2, %v623_v45, 0.0 }
 0x187   :  { %163 = vadd.xlane.f32.xlu1 %v162_v46 }
 0x198   :  { %264 = vrot.lane.b32.xlu1 %v27_v13, %s650_s0 }
 0x199   :  { %267 = vrot.lane.b32.xlu0 %v683_v4, %s650_s0 }
 0x19c   :  { %317 = vrot.lane.b32.xlu1 %v28_v14, %s650_s0 }
 0x20c   :  { %v155_v54 = vpop.xlane.xlu0 %154 }
 0x20d   :  { %624 = vrcp.f32 %v155_v54 }
 0x210   :  { %v158_v55 = vpop.xlane.xlu1 %157  ;;  %v161_v56 = vpop.xlane.xlu0 %160 }
 0x211   :  { %626 = vrcp.f32 %v158_v55 }
 0x212   :  { %628 = vrcp.f32 %v161_v56 }
 0x214   :  { %v164_v57 = vpop.xlane.xlu1 %163  ;;  %v268_v60 = vpop.permute.xlu0 %267 }
 0x215   :  { %630 = vrcp.f32 %v164_v57  ;;  %v273_v1 = vsel %vm33_vm0, %v268_v60, 0 }
 0x217   :  { %v625_v58 = vpop.eup %624 }
 0x218   :  { %v169_v61 = vmul.f32 %v625_v58, %v617_v39  ;;  %v265_v7 = vpop.permute.xlu1 %264 }
 0x21b   :  { %v627_v59 = vpop.eup %626 }
 0x21c   :  { %v170_v62 = vmul.f32 %v627_v59, %v621_v42  ;;  %v629_v63 = vpop.eup %628  ;;  %v318_v9 = vpop.permute.xlu1 %317 }
 0x21d   :  { %v171_v4 = vmul.f32 %v629_v63, %v619_v41 }
 0x21e   :  { %v173_v2 = vpack.c.bf16 %v170_v62, %v169_v61 }
 0x21f   :  { %v631_v3 = vpop.eup %630 }
 0x220   :  { %v172_v5 = vmul.f32 %v631_v3, %v623_v45  ;;  %579 = vmatmul.mubr.msk.bf16.vlgmr.msra.gmra.mrb[4].mxu0 %vm128_vm2, %v173_v2 }
 0x221   :  { %589 = vmatpush3.bf16.xpose.msra.mxu0 %v273_v1  ;;  %590 = vmatprep.mubr.msk.bf16.mxu0 %vm649_vm1, %v648_v0 }
 0x222   :  { %v174_v6 = vpack.c.bf16 %v172_v5, %v171_v4  ;;  %600 = vmatprep.subr.bf16.mxu0 %v648_v0 }
 0x224   :  { %585 = vmatmul.mubr.msk.bf16.vlgmr.msra.gmra.mrb[4].mxu1 %vm128_vm2, %v174_v6 }
 0x225   :  { %595 = vmatpush3.bf16.xpose.msra.mxu1 %v326_v8  ;;  %596 = vmatprep.mubr.msk.bf16.mxu1 %vm649_vm1, %v648_v0 }
 0x226   :  { %606 = vmatprep.subr.bf16.mxu1 %v648_v0 }
 0x228   :  { %591 = vmatmul.mubr.msk.bf16.vlgmr.msra.gmra.mrb[8].mxu0 %vm33_vm0, %v265_v7 }
 0x229   :  { %602 = vmatprep.mubr.msk.bf16.mxu0 %vm649_vm1, %v648_v0 }
 0x22c   :  { %597 = vmatmul.mubr.msk.bf16.vlgmr.msra.gmra.mrb[8].mxu1 %vm33_vm0, %v318_v9 }
 0x22d   :  { %608 = vmatprep.mubr.msk.bf16.mxu1 %vm649_vm1, %v648_v0 }
 0x2f3   :  { %v764_v10 = vpop.f32.mrb[4].mxu0 }
 0x2f4   :  { %v580_v11 = vpop.f32.mrb[5].mxu0 }
 0x2f5   :  { %v766_v12 = vpop.f32.mrb[6].mxu0 }
 0x2f6   :  { %v581_v13 = vpop.f32.mrb[7].mxu0 }
 0x2f7   :  { %v768_v14 = vpop.f32.mrb[4].mxu1 }
 0x2f8   :  { %v586_v15 = vpop.f32.mrb[5].mxu1 }
 0x2f9   :  { %v770_v16 = vpop.f32.mrb[6].mxu1 }
 0x2fa   :  { %v587_v17 = vpop.f32.mrb[7].mxu1 }
 0x2fb   :  { %v309_v18 = vpop.f32.mrb[8].mxu0 }
 0x2fc   :  { %v592_v19 = vpop.f32.mrb[9].mxu0  ;;  %v369_v20 = vsel %vm128_vm2, %v309_v18, -inf }
 0x2fd   :  { %370 = vmax.xlane.f32.xlu0 %v369_v20  ;;  %v312_v21 = vpop.f32.mrb[10].mxu0 }
 0x2fe   :  { %v593_v22 = vpop.f32.mrb[11].mxu0  ;;  %v372_v0 = vsel %vm128_vm2, %v312_v21, -inf }
 0x2ff   :  { %v362_v23 = vpop.f32.mrb[8].mxu1  ;;  %373 = vmax.xlane.f32.xlu1 %v372_v0 }
 0x300   :  { %v598_v24 = vpop.f32.mrb[9].mxu1  ;;  %v375_v25 = vsel %vm128_vm2, %v362_v23, -inf }
 0x301   :  { %v365_v26 = vpop.f32.mrb[10].mxu1  ;;  %376 = vmax.xlane.f32.xlu0 %v375_v25 }
 0x302   :  { %v599_v27 = vpop.f32.mrb[11].mxu1  ;;  %v378_v28 = vsel %vm128_vm2, %v365_v26, -inf }
 0x305   :  { %379 = vmax.xlane.f32.xlu0 %v378_v28 }
 0x38a   :  { %v371_v29 = vpop.xlane.xlu0 %370 }
 0x38b   :  { %v381_v30 = vsub.f32 %v309_v18, %v371_v29 }
 0x38c   :  { %v374_v31 = vpop.xlane.xlu1 %373 }
 0x38d   :  { %v385_v32 = vmul.f32 1.442695, %v381_v30  ;;  %v382_v33 = vsub.f32 %v312_v21, %v374_v31 }
 0x38e   :  { %v377_v34 = vpop.xlane.xlu0 %376 }
 0x38f   :  { %632 = vpow2.f32 %v385_v32  ;;  %v387_v35 = vmul.f32 1.442695, %v382_v33  ;;  %v383_v36 = vsub.f32 %v362_v23, %v377_v34 }
 0x391   :  { %634 = vpow2.f32 %v387_v35  ;;  %v389_v37 = vmul.f32 1.442695, %v383_v36 }
 0x392   :  { %v380_v38 = vpop.xlane.xlu0 %379 }
 0x393   :  { %636 = vpow2.f32 %v389_v37  ;;  %v384_v39 = vsub.f32 %v365_v26, %v380_v38 }
 0x395   :  { %v391_v40 = vmul.f32 1.442695, %v384_v39 }
 0x397   :  { %638 = vpow2.f32 %v391_v40 }
 0x399   :  { %v633_v41 = vpop.eup %632 }
 0x39a   :  { %v393_v42 = vsel %vm128_vm2, %v633_v41, 0.0 }
 0x39b   :  { %v635_v43 = vpop.eup %634  ;;  %394 = vadd.xlane.f32.xlu0 %v393_v42 }
 0x39c   :  { %v396_v44 = vsel %vm128_vm2, %v635_v43, 0.0 }
 0x39d   :  { %v637_v45 = vpop.eup %636  ;;  %397 = vadd.xlane.f32.xlu1 %v396_v44 }
 0x39e   :  { %v399_v46 = vsel %vm128_vm2, %v637_v45, 0.0 }
 0x39f   :  { %400 = vadd.xlane.f32.xlu0 %v399_v46 }
 0x3a1   :  { %v639_v47 = vpop.eup %638 }
 0x3a2   :  { %v402_v48 = vsel %vm128_vm2, %v639_v47, 0.0 }
 0x3a3   :  { %403 = vadd.xlane.f32.xlu1 %v402_v48 }
 0x3b4   :  { %464 = vrot.lane.b32.xlu1 %v742_v52, %s650_s0 }
 0x3b5   :  { %416 = vrot.lane.b32.xlu0 %v730_v49, %s650_s0 }
 0x428   :  { %v395_v50 = vpop.xlane.xlu0 %394 }
 0x429   :  { %640 = vrcp.f32 %v395_v50 }
 0x42a   :  { %v398_v51 = vpop.xlane.xlu1 %397 }
 0x42b   :  { %642 = vrcp.f32 %v398_v51 }
 0x42c   :  { %v401_v53 = vpop.xlane.xlu0 %400 }
 0x42d   :  { %644 = vrcp.f32 %v401_v53 }
 0x430   :  { %v404_v54 = vpop.xlane.xlu1 %403  ;;  %v417_v55 = vpop.permute.xlu0 %416 }
 0x431   :  { %646 = vrcp.f32 %v404_v54  ;;  %601 = vmatpush3.bf16.msra.mxu0 %v417_v55 }
 0x433   :  { %v641_v56 = vpop.eup %640 }
 0x434   :  { %v465_v57 = vpop.permute.xlu1 %464  ;;  %v409_v59 = vmul.f32 %v641_v56, %v633_v41 }
 0x435   :  { %v643_v58 = vpop.eup %642  ;;  %607 = vmatpush3.bf16.msra.mxu1 %v465_v57 }
 0x436   :  { %v410_v60 = vmul.f32 %v643_v58, %v635_v43 }
 0x437   :  { %v645_v61 = vpop.eup %644 }
 0x438   :  { %v413_v52 = vpack.c.bf16 %v410_v60, %v409_v59  ;;  %v411_v62 = vmul.f32 %v645_v61, %v637_v45 }
 0x43a   :  { %603 = vmatmul.mubr.msk.bf16.vlgmr.msra.gmra.mrb[12].mxu0 %vm128_vm2, %v413_v52 }
 0x43b   :  { %v647_v49 = vpop.eup %646 }
 0x43c   :  { %v412_v63 = vmul.f32 %v647_v49, %v639_v47 }
 0x43e   :  { %v414_v1 = vpack.c.bf16 %v412_v63, %v411_v62 }
 0x440   :  { %609 = vmatmul.mubr.msk.bf16.vlgmr.msra.gmra.mrb[12].mxu1 %vm128_vm2, %v414_v1 }
 0x50d   :  { %v456_v2 = vpop.f32.mrb[12].mxu0 }
 0x50e   :  { %515 = vrot.lane.b32.xlu1 %v456_v2, %s651_s2  ;;  %v604_v3 = vpop.f32.mrb[13].mxu0 }
 0x50f   :  { %v459_v4 = vpop.f32.mrb[14].mxu0 }
 0x510   :  { %v605_v5 = vpop.f32.mrb[15].mxu0 }
 0x512   :  { %517 = vrot.lane.b32.xlu1 %v459_v4, %s651_s2 }
 0x513   :  { %v504_v6 = vpop.f32.mrb[12].mxu1 }
 0x514   :  { %519 = vrot.lane.b32.xlu0 %v504_v6, %s651_s2  ;;  %v610_v7 = vpop.f32.mrb[13].mxu1 }
 0x515   :  { %v507_v8 = vpop.f32.mrb[14].mxu1 }
 0x516   :  { %v611_v9 = vpop.f32.mrb[15].mxu1  ;;  %521 = vrot.lane.b32.xlu1 %v507_v8, %s651_s2 }
 0x580   :  { %v516_v11 = vpop.permute.xlu1 %515 }
 0x581   :  { %v527_v13 = vsel %vm33_vm0, %v764_v10, %v516_v11 }
 0x582   :  { %532 = vst.msk [vmem:[%s809_s3] sm:$0xff] %vm531_vm3, %v527_v13 }
 0x584   :  { %v518_v15 = vpop.permute.xlu1 %517 }
 0x585   :  { %v528_v17 = vsel %vm33_vm0, %v766_v12, %v518_v15 }
 0x586   :  { %533 = vst.msk [vmem:[%s809_s3 + $0x8] sm:$0xff] %vm531_vm3, %v528_v17  ;;  %v520_v18 = vpop.permute.xlu0 %519 }
 0x587   :  { %v529_v19 = vsel %vm33_vm0, %v768_v14, %v520_v18 }
 0x588   :  { %534 = vst.msk [vmem:[%s809_s3 + $0x10] sm:$0xff] %vm531_vm3, %v529_v19  ;;  %v522_v10 = vpop.permute.xlu1 %521 }
 0x589   :  { %v530_v20 = vsel %vm33_vm0, %v770_v16, %v522_v10 }
 0x58a   :  { %535 = vst.msk [vmem:[%s809_s3 + $0x18] sm:$0xff] %vm531_vm3, %v530_v20 }

</bundles_post_ra>
